<compile_context>
chip_gen: v7x
topology: tpu7x:2x2x1
jax: 0.10.0
libtpu: 0.0.40
codegen_flags: <defaults>
</compile_context>

<pallas_src>
import jax
import jax.numpy as jnp
from jax.experimental import pallas as pl
from jax.experimental.pallas import tpu as pltpu


def _round_up(x, m):
    return (x + m - 1) // m * m


def _prep_weight(w, rows):
    """PyTorch ConvTranspose2d weight (Cin, Cout, K, K) -> full-correlation matrix
    (Cout, K*K*rows), tap-major, Cin zero-padded to `rows` so every tap occupies an
    aligned 8-sublane slab of the stacked MXU operand."""
    cin, cout, k, _ = w.shape
    wf = jnp.flip(w, axis=(2, 3))                      # (Cin, Cout, K, K)
    wt = jnp.transpose(wf, (1, 2, 3, 0))               # (Cout, K, K, Cin)
    wt = jnp.pad(wt, ((0, 0), (0, 0), (0, 0), (0, rows - cin)))
    return wt.reshape(cout, k * k * rows).astype(jnp.float32)


def small_kernel_upsample(x_nchw, w1, b1, w2, b2):
    """Fused forward pass of SmallKernelUpsample (NCHW in -> NCHW out)."""
    N, Cin, H, W = x_nchw.shape
    _, Cout1, K1, _ = w1.shape
    _, Cout2, K2, _ = w2.shape

    P1, P2 = K1 - 1, K2 - 1            # per-layer transposed-conv pads (3, 4)
    P = P1 + P2                        # fused canvas pad per side (7)
    Ho1, Wo1 = H + P1, W + P1          # true layer-1 output (19, 19)
    Ho2, Wo2 = Ho1 + P2, Wo1 + P2      # final output (23, 23)
    Hc, Wc = H + 2 * P, W + 2 * P      # fused zero-padded canvas (30, 30)

    R1 = _round_up(Cin, 8)             # sublane rows per tap, layer 1
    R2 = _round_up(Cout1, 8)           # sublane rows per tap, layer 2

    # One shared flat segment per batch element. It holds the whole canvas, the
    # whole layer-1 output grid and the layer-2 output grid, and is a multiple of
    # 256 lanes so every tap copy / MXU N dim / epilogue slab is full-lane-tile.
    SEG = _round_up(Hc * Wc, 256)      # 1024 for H=W=16
    NSEG = N * SEG
    # Head-room so a contiguous lane slice at the largest tap shift stays in-bounds
    # (max shift = P2*Wc + P2 = 124 < 128). Tail/overreach columns are junk that is
    # masked (layer 1) or cropped in the wrapper (layer 2).
    TAIL = 128

    def kernel(x_ref, w1_ref, b1_ref, w2_ref, b2_ref, mask_ref, o_ref,
               canvas, stk1, y1, stk2):
        # ---- build the fused zero-padded canvas (channel-major, flat spatial) ----
        # Zeroed once per call: provides both the spatial pad margins and the
        # Cin -> R1 zero rows that pair with the zero-padded weight columns.
        canvas[...] = jnp.zeros_like(canvas)
        # y1's shift head-room is never written by the dot; keep it defined (zero).
        y1[:, pl.ds(NSEG, TAIL)] = jnp.zeros((Cout1, TAIL), jnp.float32)
        for b in range(N):
            base = b * SEG + P * Wc + P
            for h in range(H):
                canvas[pl.ds(0, Cin), pl.ds(base + h * Wc, W)] = \
                    x_ref[b, :, pl.ds(h * W, W)]

        # ---- layer 1: gather K1*K1 shifted windows, one fat MXU contraction ----
        for p in range(K1):
            for q in range(K1):
                t = p * K1 + q
                stk1[pl.ds(t * R1, R1), :] = canvas[:, pl.ds(p * Wc + q, NSEG)]
        a1 = jnp.dot(w1_ref[...], stk1[...], preferred_element_type=jnp.float32)
        # bias + ReLU, then zero everything outside the true (Ho1, Wo1) interior so
        # this same buffer *is* the zero-padded layer-2 input (no re-pad loop).
        y1[:, pl.ds(0, NSEG)] = jnp.maximum(a1 + b1_ref[...], 0.0) * mask_ref[...]

        # ---- layer 2: same shifted-window trick, gathered straight off y1 ----
        for p in range(K2):
            for q in range(K2):
                t = p * K2 + q
                stk2[pl.ds(t * R2, R2), :] = y1[:, pl.ds(p * Wc + q, NSEG)]
        a2 = jnp.dot(w2_ref[...], stk2[...], preferred_element_type=jnp.float32)
        # One lane-dense, uncropped store; the wrapper crops the tiny HBM result.
        o_ref[...] = a2 + b2_ref[...]

    # Channel-major flat input: NCHW is already (N, C, H*W) row-major -> free reshape.
    x_flat = x_nchw.reshape(N, Cin, H * W).astype(jnp.float32)
    w1s = _prep_weight(w1, R1)                          # (Cout1, K1*K1*R1)
    w2s = _prep_weight(w2, R2)                          # (Cout2, K2*K2*R2)
    b1c = b1.reshape(Cout1, 1).astype(jnp.float32)
    b2c = b2.reshape(Cout2, 1).astype(jnp.float32)

    # 0/1 mask selecting the true layer-1 interior (rows/cols [P2, P2+Ho1/Wo1) of the
    # Wc-strided grid) inside every SEG segment; constant-folded at compile time.
    seg_idx = jnp.arange(SEG, dtype=jnp.int32)
    row, col = seg_idx // Wc, seg_idx % Wc
    seg_mask = ((row >= P2) & (row < P2 + Ho1) &
                (col >= P2) & (col < P2 + Wo1)).astype(jnp.float32)
    mask = jnp.tile(seg_mask, (N,)).reshape(1, NSEG)

    out_flat = pl.pallas_call(
        kernel,
        out_shape=jax.ShapeDtypeStruct((Cout2, NSEG), jnp.float32),
        grid_spec=pltpu.PrefetchScalarGridSpec(
            num_scalar_prefetch=0,
            grid=(1,),                                   # whole batch in one step
            in_specs=[
                pl.BlockSpec((N, Cin, H * W), lambda i: (0, 0, 0)),
                pl.BlockSpec((Cout1, K1 * K1 * R1), lambda i: (0, 0)),
                pl.BlockSpec((Cout1, 1), lambda i: (0, 0)),
                pl.BlockSpec((Cout2, K2 * K2 * R2), lambda i: (0, 0)),
                pl.BlockSpec((Cout2, 1), lambda i: (0, 0)),
                pl.BlockSpec((1, NSEG), lambda i: (0, 0)),
            ],
            out_specs=pl.BlockSpec((Cout2, NSEG), lambda i: (0, 0)),
            scratch_shapes=[
                pltpu.VMEM((R1, NSEG + TAIL), jnp.float32),           # fused canvas
                pltpu.VMEM((K1 * K1 * R1, NSEG), jnp.float32),        # stacked taps L1
                pltpu.VMEM((Cout1, NSEG + TAIL), jnp.float32),        # masked y1
                pltpu.VMEM((K2 * K2 * R2, NSEG), jnp.float32),        # stacked taps L2
            ],
        ),
        compiler_params=pltpu.CompilerParams(
            dimension_semantics=("arbitrary",)),
    )(x_flat, w1s, b1c, w2s, b2c, mask)

    # Cheap wrapper-side crop of the uncropped (Cout2, N*SEG) slab -> NCHW output.
    out = out_flat.reshape(Cout2, N, SEG)[:, :, :Ho2 * Wc]
    out = out.reshape(Cout2, N, Ho2, Wc)[:, :, :, :Wo2]
    return jnp.transpose(out, (1, 0, 2, 3))


def _reference_convt_nchw(x, w, b, *, apply_relu):
    """Pure-JAX reference of stride-1 ConvTranspose2d (NCHW), high precision."""
    Cin, Cout, K, _ = w.shape
    wf = jnp.flip(w, axis=(2, 3))
    xp = jnp.pad(x, ((0, 0), (0, 0), (K - 1, K - 1), (K - 1, K - 1)))
    N, _, Hp, Wp = xp.shape
    Ho, Wo = Hp - K + 1, Wp - K + 1
    out = jnp.zeros((N, Cout, Ho, Wo), jnp.float32)
    for p in range(K):
        for q in range(K):
            out = out + jnp.einsum('nchw,cd->ndhw',
                                   xp[:, :, p:p + Ho, q:q + Wo], wf[:, :, p, q],
                                   precision=jax.lax.Precision.HIGHEST)
    out = out + b[None, :, None, None]
    return jnp.maximum(out, 0.0) if apply_relu else out


if __name__ == "__main__":
    in_channels, out_channels = 4, 8
    N, H, W = 2, 16, 16

    key = jax.random.PRNGKey(0)
    kx, kw1, kb1, kw2, kb2 = jax.random.split(key, 5)

    x = jax.random.normal(kx, (N, in_channels, H, W), jnp.float32)
    # ConvTranspose2d weights are (in_channels, out_channels, kH, kW).
    w1 = 0.1 * jax.random.normal(kw1, (in_channels, out_channels, 4, 4), jnp.float32)
    b1 = 0.1 * jax.random.normal(kb1, (out_channels,), jnp.float32)
    w2 = 0.1 * jax.random.normal(kw2, (out_channels, out_channels, 5, 5), jnp.float32)
    b2 = 0.1 * jax.random.normal(kb2, (out_channels,), jnp.float32)

    out = jax.jit(small_kernel_upsample)(x, w1, b1, w2, b2)
    out = jax.block_until_ready(out)

    expected_shape = (N, out_channels, H + 3 + 4, W + 3 + 4)        # (2, 8, 23, 23)
    assert out.shape == expected_shape, out.shape

    # Validate against a high-precision pure-JAX reference. The kernel's matmuls use
    # the MXU's default (bf16-grade) operand precision, hence the 2e-2 tolerance.
    ref = _reference_convt_nchw(x, w1, b1, apply_relu=True)
    ref = _reference_convt_nchw(ref, w2, b2, apply_relu=False)
    max_err = float(jnp.max(jnp.abs(out - ref)))
    assert jnp.allclose(out, ref, atol=2e-2, rtol=2e-2), max_err

    print("KERNEL_OK")
</pallas_src>

<mosaic_0001>
module attributes {stable_mosaic.version = 11 : i64} {
  func.func @kernel(%arg0: i32, %arg1: memref<2x4x256xf32, #tpu.memory_space<vmem>>, %arg2: memref<8x128xf32, #tpu.memory_space<vmem>>, %arg3: memref<8x1xf32, #tpu.memory_space<vmem>>, %arg4: memref<8x200xf32, #tpu.memory_space<vmem>>, %arg5: memref<8x1xf32, #tpu.memory_space<vmem>>, %arg6: memref<1x2048xf32, #tpu.memory_space<vmem>>, %arg7: memref<8x2048xf32, #tpu.memory_space<vmem>>, %arg8: memref<8x2176xf32, #tpu.memory_space<vmem>>, %arg9: memref<128x2048xf32, #tpu.memory_space<vmem>>, %arg10: memref<8x2176xf32, #tpu.memory_space<vmem>>, %arg11: memref<200x2048xf32, #tpu.memory_space<vmem>>) attributes {dimension_semantics = [#tpu.dimension_semantics<arbitrary>], iteration_bounds = array<i64: 1>, scalar_prefetch = 0 : i64, scratch_operands = 4 : i64, tpu.core_type = #tpu.core_type<tc>, window_params = [{pipeline_mode = #tpu.pipeline_mode<synchronous>, transform_indices = @transform_0, window_bounds = array<i64: 2, 4, 256>}, {pipeline_mode = #tpu.pipeline_mode<synchronous>, transform_indices = @transform_1, window_bounds = array<i64: 8, 128>}, {pipeline_mode = #tpu.pipeline_mode<synchronous>, transform_indices = @transform_2, window_bounds = array<i64: 8, 1>}, {pipeline_mode = #tpu.pipeline_mode<synchronous>, transform_indices = @transform_3, window_bounds = array<i64: 8, 200>}, {pipeline_mode = #tpu.pipeline_mode<synchronous>, transform_indices = @transform_4, window_bounds = array<i64: 8, 1>}, {pipeline_mode = #tpu.pipeline_mode<synchronous>, transform_indices = @transform_5, window_bounds = array<i64: 1, 2048>}, {pipeline_mode = #tpu.pipeline_mode<synchronous>, transform_indices = @transform_6, window_bounds = array<i64: 8, 2048>}]} {
    %cst = arith.constant 0.000000e+00 : f32
    %0 = vector.broadcast %cst : f32 to vector<8x2176xf32>
    %c0 = arith.constant 0 : index
    %c0_0 = arith.constant 0 : index
    %1 = vector.load %arg8[%c0, %c0_0] : memref<8x2176xf32, #tpu.memory_space<vmem>>, vector<8x2176xf32>
    tpu.vector_store %arg8[%c0, %c0_0], %0 {strides = array<i32>} : memref<8x2176xf32, #tpu.memory_space<vmem>>, vector<8x2176xf32>,
    %cst_1 = arith.constant 0.000000e+00 : f32
    %2 = vector.broadcast %cst_1 : f32 to vector<8x128xf32>
    %c0_2 = arith.constant 0 : index
    %c2048 = arith.constant 2048 : index
    %3 = vector.load %arg10[%c0_2, %c2048] : memref<8x2176xf32, #tpu.memory_space<vmem>>, vector<8x128xf32>
    tpu.vector_store %arg10[%c0_2, %c2048], %2 {strides = array<i32>} : memref<8x2176xf32, #tpu.memory_space<vmem>>, vector<8x128xf32>,
    %c0_3 = arith.constant 0 : index
    %c0_4 = arith.constant 0 : index
    %c0_5 = arith.constant 0 : index
    %4 = vector.load %arg1[%c0_3, %c0_4, %c0_5] : memref<2x4x256xf32, #tpu.memory_space<vmem>>, vector<1x4x16xf32>
    %5 = vector.shape_cast %4 : vector<1x4x16xf32> to vector<4x16xf32>
    %c0_6 = arith.constant 0 : index
    %c217 = arith.constant 217 : index
    %6 = vector.load %arg8[%c0_6, %c217] : memref<8x2176xf32, #tpu.memory_space<vmem>>, vector<4x16xf32>
    tpu.vector_store %arg8[%c0_6, %c217], %5 {strides = array<i32>} : memref<8x2176xf32, #tpu.memory_space<vmem>>, vector<4x16xf32>,
    %c0_7 = arith.constant 0 : index
    %c0_8 = arith.constant 0 : index
    %c16 = arith.constant 16 : index
    %7 = vector.load %arg1[%c0_7, %c0_8, %c16] : memref<2x4x256xf32, #tpu.memory_space<vmem>>, vector<1x4x16xf32>
    %8 = vector.shape_cast %7 : vector<1x4x16xf32> to vector<4x16xf32>
    %c0_9 = arith.constant 0 : index
    %c247 = arith.constant 247 : index
    %9 = vector.load %arg8[%c0_9, %c247] : memref<8x2176xf32, #tpu.memory_space<vmem>>, vector<4x16xf32>
    tpu.vector_store %arg8[%c0_9, %c247], %8 {strides = array<i32>} : memref<8x2176xf32, #tpu.memory_space<vmem>>, vector<4x16xf32>,
    %c0_10 = arith.constant 0 : index
    %c0_11 = arith.constant 0 : index
    %c32 = arith.constant 32 : index
    %10 = vector.load %arg1[%c0_10, %c0_11, %c32] : memref<2x4x256xf32, #tpu.memory_space<vmem>>, vector<1x4x16xf32>
    %11 = vector.shape_cast %10 : vector<1x4x16xf32> to vector<4x16xf32>
    %c0_12 = arith.constant 0 : index
    %c277 = arith.constant 277 : index
    %12 = vector.load %arg8[%c0_12, %c277] : memref<8x2176xf32, #tpu.memory_space<vmem>>, vector<4x16xf32>
    tpu.vector_store %arg8[%c0_12, %c277], %11 {strides = array<i32>} : memref<8x2176xf32, #tpu.memory_space<vmem>>, vector<4x16xf32>,
    %c0_13 = arith.constant 0 : index
    %c0_14 = arith.constant 0 : index
    %c48 = arith.constant 48 : index
    %13 = vector.load %arg1[%c0_13, %c0_14, %c48] : memref<2x4x256xf32, #tpu.memory_space<vmem>>, vector<1x4x16xf32>
    %14 = vector.shape_cast %13 : vector<1x4x16xf32> to vector<4x16xf32>
    %c0_15 = arith.constant 0 : index
    %c307 = arith.constant 307 : index
    %15 = vector.load %arg8[%c0_15, %c307] : memref<8x2176xf32, #tpu.memory_space<vmem>>, vector<4x16xf32>
    tpu.vector_store %arg8[%c0_15, %c307], %14 {strides = array<i32>} : memref<8x2176xf32, #tpu.memory_space<vmem>>, vector<4x16xf32>,
    %c0_16 = arith.constant 0 : index
    %c0_17 = arith.constant 0 : index
    %c64 = arith.constant 64 : index
    %16 = vector.load %arg1[%c0_16, %c0_17, %c64] : memref<2x4x256xf32, #tpu.memory_space<vmem>>, vector<1x4x16xf32>
    %17 = vector.shape_cast %16 : vector<1x4x16xf32> to vector<4x16xf32>
    %c0_18 = arith.constant 0 : index
    %c337 = arith.constant 337 : index
    %18 = vector.load %arg8[%c0_18, %c337] : memref<8x2176xf32, #tpu.memory_space<vmem>>, vector<4x16xf32>
    tpu.vector_store %arg8[%c0_18, %c337], %17 {strides = array<i32>} : memref<8x2176xf32, #tpu.memory_space<vmem>>, vector<4x16xf32>,
    %c0_19 = arith.constant 0 : index
    %c0_20 = arith.constant 0 : index
    %c80 = arith.constant 80 : index
    %19 = vector.load %arg1[%c0_19, %c0_20, %c80] : memref<2x4x256xf32, #tpu.memory_space<vmem>>, vector<1x4x16xf32>
    %20 = vector.shape_cast %19 : vector<1x4x16xf32> to vector<4x16xf32>
    %c0_21 = arith.constant 0 : index
    %c367 = arith.constant 367 : index
    %21 = vector.load %arg8[%c0_21, %c367] : memref<8x2176xf32, #tpu.memory_space<vmem>>, vector<4x16xf32>
    tpu.vector_store %arg8[%c0_21, %c367], %20 {strides = array<i32>} : memref<8x2176xf32, #tpu.memory_space<vmem>>, vector<4x16xf32>,
    %c0_22 = arith.constant 0 : index
    %c0_23 = arith.constant 0 : index
    %c96 = arith.constant 96 : index
    %22 = vector.load %arg1[%c0_22, %c0_23, %c96] : memref<2x4x256xf32, #tpu.memory_space<vmem>>, vector<1x4x16xf32>
    %23 = vector.shape_cast %22 : vector<1x4x16xf32> to vector<4x16xf32>
    %c0_24 = arith.constant 0 : index
    %c397 = arith.constant 397 : index
    %24 = vector.load %arg8[%c0_24, %c397] : memref<8x2176xf32, #tpu.memory_space<vmem>>, vector<4x16xf32>
    tpu.vector_store %arg8[%c0_24, %c397], %23 {strides = array<i32>} : memref<8x2176xf32, #tpu.memory_space<vmem>>, vector<4x16xf32>,
    %c0_25 = arith.constant 0 : index
    %c0_26 = arith.constant 0 : index
    %c112 = arith.constant 112 : index
    %25 = vector.load %arg1[%c0_25, %c0_26, %c112] : memref<2x4x256xf32, #tpu.memory_space<vmem>>, vector<1x4x16xf32>
    %26 = vector.shape_cast %25 : vector<1x4x16xf32> to vector<4x16xf32>
    %c0_27 = arith.constant 0 : index
    %c427 = arith.constant 427 : index
    %27 = vector.load %arg8[%c0_27, %c427] : memref<8x2176xf32, #tpu.memory_space<vmem>>, vector<4x16xf32>
    tpu.vector_store %arg8[%c0_27, %c427], %26 {strides = array<i32>} : memref<8x2176xf32, #tpu.memory_space<vmem>>, vector<4x16xf32>,
    %c0_28 = arith.constant 0 : index
    %c0_29 = arith.constant 0 : index
    %c128 = arith.constant 128 : index
    %28 = vector.load %arg1[%c0_28, %c0_29, %c128] : memref<2x4x256xf32, #tpu.memory_space<vmem>>, vector<1x4x16xf32>
    %29 = vector.shape_cast %28 : vector<1x4x16xf32> to vector<4x16xf32>
    %c0_30 = arith.constant 0 : index
    %c457 = arith.constant 457 : index
    %30 = vector.load %arg8[%c0_30, %c457] : memref<8x2176xf32, #tpu.memory_space<vmem>>, vector<4x16xf32>
    tpu.vector_store %arg8[%c0_30, %c457], %29 {strides = array<i32>} : memref<8x2176xf32, #tpu.memory_space<vmem>>, vector<4x16xf32>,
    %c0_31 = arith.constant 0 : index
    %c0_32 = arith.constant 0 : index
    %c144 = arith.constant 144 : index
    %31 = vector.load %arg1[%c0_31, %c0_32, %c144] : memref<2x4x256xf32, #tpu.memory_space<vmem>>, vector<1x4x16xf32>
    %32 = vector.shape_cast %31 : vector<1x4x16xf32> to vector<4x16xf32>
    %c0_33 = arith.constant 0 : index
    %c487 = arith.constant 487 : index
    %33 = vector.load %arg8[%c0_33, %c487] : memref<8x2176xf32, #tpu.memory_space<vmem>>, vector<4x16xf32>
    tpu.vector_store %arg8[%c0_33, %c487], %32 {strides = array<i32>} : memref<8x2176xf32, #tpu.memory_space<vmem>>, vector<4x16xf32>,
    %c0_34 = arith.constant 0 : index
    %c0_35 = arith.constant 0 : index
    %c160 = arith.constant 160 : index
    %34 = vector.load %arg1[%c0_34, %c0_35, %c160] : memref<2x4x256xf32, #tpu.memory_space<vmem>>, vector<1x4x16xf32>
    %35 = vector.shape_cast %34 : vector<1x4x16xf32> to vector<4x16xf32>
    %c0_36 = arith.constant 0 : index
    %c517 = arith.constant 517 : index
    %36 = vector.load %arg8[%c0_36, %c517] : memref<8x2176xf32, #tpu.memory_space<vmem>>, vector<4x16xf32>
    tpu.vector_store %arg8[%c0_36, %c517], %35 {strides = array<i32>} : memref<8x2176xf32, #tpu.memory_space<vmem>>, vector<4x16xf32>,
    %c0_37 = arith.constant 0 : index
    %c0_38 = arith.constant 0 : index
    %c176 = arith.constant 176 : index
    %37 = vector.load %arg1[%c0_37, %c0_38, %c176] : memref<2x4x256xf32, #tpu.memory_space<vmem>>, vector<1x4x16xf32>
    %38 = vector.shape_cast %37 : vector<1x4x16xf32> to vector<4x16xf32>
    %c0_39 = arith.constant 0 : index
    %c547 = arith.constant 547 : index
    %39 = vector.load %arg8[%c0_39, %c547] : memref<8x2176xf32, #tpu.memory_space<vmem>>, vector<4x16xf32>
    tpu.vector_store %arg8[%c0_39, %c547], %38 {strides = array<i32>} : memref<8x2176xf32, #tpu.memory_space<vmem>>, vector<4x16xf32>,
    %c0_40 = arith.constant 0 : index
    %c0_41 = arith.constant 0 : index
    %c192 = arith.constant 192 : index
    %40 = vector.load %arg1[%c0_40, %c0_41, %c192] : memref<2x4x256xf32, #tpu.memory_space<vmem>>, vector<1x4x16xf32>
    %41 = vector.shape_cast %40 : vector<1x4x16xf32> to vector<4x16xf32>
    %c0_42 = arith.constant 0 : index
    %c577 = arith.constant 577 : index
    %42 = vector.load %arg8[%c0_42, %c577] : memref<8x2176xf32, #tpu.memory_space<vmem>>, vector<4x16xf32>
    tpu.vector_store %arg8[%c0_42, %c577], %41 {strides = array<i32>} : memref<8x2176xf32, #tpu.memory_space<vmem>>, vector<4x16xf32>,
    %c0_43 = arith.constant 0 : index
    %c0_44 = arith.constant 0 : index
    %c208 = arith.constant 208 : index
    %43 = vector.load %arg1[%c0_43, %c0_44, %c208] : memref<2x4x256xf32, #tpu.memory_space<vmem>>, vector<1x4x16xf32>
    %44 = vector.shape_cast %43 : vector<1x4x16xf32> to vector<4x16xf32>
    %c0_45 = arith.constant 0 : index
    %c607 = arith.constant 607 : index
    %45 = vector.load %arg8[%c0_45, %c607] : memref<8x2176xf32, #tpu.memory_space<vmem>>, vector<4x16xf32>
    tpu.vector_store %arg8[%c0_45, %c607], %44 {strides = array<i32>} : memref<8x2176xf32, #tpu.memory_space<vmem>>, vector<4x16xf32>,
    %c0_46 = arith.constant 0 : index
    %c0_47 = arith.constant 0 : index
    %c224 = arith.constant 224 : index
    %46 = vector.load %arg1[%c0_46, %c0_47, %c224] : memref<2x4x256xf32, #tpu.memory_space<vmem>>, vector<1x4x16xf32>
    %47 = vector.shape_cast %46 : vector<1x4x16xf32> to vector<4x16xf32>
    %c0_48 = arith.constant 0 : index
    %c637 = arith.constant 637 : index
    %48 = vector.load %arg8[%c0_48, %c637] : memref<8x2176xf32, #tpu.memory_space<vmem>>, vector<4x16xf32>
    tpu.vector_store %arg8[%c0_48, %c637], %47 {strides = array<i32>} : memref<8x2176xf32, #tpu.memory_space<vmem>>, vector<4x16xf32>,
    %c0_49 = arith.constant 0 : index
    %c0_50 = arith.constant 0 : index
    %c240 = arith.constant 240 : index
    %49 = vector.load %arg1[%c0_49, %c0_50, %c240] : memref<2x4x256xf32, #tpu.memory_space<vmem>>, vector<1x4x16xf32>
    %50 = vector.shape_cast %49 : vector<1x4x16xf32> to vector<4x16xf32>
    %c0_51 = arith.constant 0 : index
    %c667 = arith.constant 667 : index
    %51 = vector.load %arg8[%c0_51, %c667] : memref<8x2176xf32, #tpu.memory_space<vmem>>, vector<4x16xf32>
    tpu.vector_store %arg8[%c0_51, %c667], %50 {strides = array<i32>} : memref<8x2176xf32, #tpu.memory_space<vmem>>, vector<4x16xf32>,
    %c1 = arith.constant 1 : index
    %c0_52 = arith.constant 0 : index
    %c0_53 = arith.constant 0 : index
    %52 = vector.load %arg1[%c1, %c0_52, %c0_53] : memref<2x4x256xf32, #tpu.memory_space<vmem>>, vector<1x4x16xf32>
    %53 = vector.shape_cast %52 : vector<1x4x16xf32> to vector<4x16xf32>
    %c0_54 = arith.constant 0 : index
    %c1241 = arith.constant 1241 : index
    %54 = vector.load %arg8[%c0_54, %c1241] : memref<8x2176xf32, #tpu.memory_space<vmem>>, vector<4x16xf32>
    tpu.vector_store %arg8[%c0_54, %c1241], %53 {strides = array<i32>} : memref<8x2176xf32, #tpu.memory_space<vmem>>, vector<4x16xf32>,
    %c1_55 = arith.constant 1 : index
    %c0_56 = arith.constant 0 : index
    %c16_57 = arith.constant 16 : index
    %55 = vector.load %arg1[%c1_55, %c0_56, %c16_57] : memref<2x4x256xf32, #tpu.memory_space<vmem>>, vector<1x4x16xf32>
    %56 = vector.shape_cast %55 : vector<1x4x16xf32> to vector<4x16xf32>
    %c0_58 = arith.constant 0 : index
    %c1271 = arith.constant 1271 : index
    %57 = vector.load %arg8[%c0_58, %c1271] : memref<8x2176xf32, #tpu.memory_space<vmem>>, vector<4x16xf32>
    tpu.vector_store %arg8[%c0_58, %c1271], %56 {strides = array<i32>} : memref<8x2176xf32, #tpu.memory_space<vmem>>, vector<4x16xf32>,
    %c1_59 = arith.constant 1 : index
    %c0_60 = arith.constant 0 : index
    %c32_61 = arith.constant 32 : index
    %58 = vector.load %arg1[%c1_59, %c0_60, %c32_61] : memref<2x4x256xf32, #tpu.memory_space<vmem>>, vector<1x4x16xf32>
    %59 = vector.shape_cast %58 : vector<1x4x16xf32> to vector<4x16xf32>
    %c0_62 = arith.constant 0 : index
    %c1301 = arith.constant 1301 : index
    %60 = vector.load %arg8[%c0_62, %c1301] : memref<8x2176xf32, #tpu.memory_space<vmem>>, vector<4x16xf32>
    tpu.vector_store %arg8[%c0_62, %c1301], %59 {strides = array<i32>} : memref<8x2176xf32, #tpu.memory_space<vmem>>, vector<4x16xf32>,
    %c1_63 = arith.constant 1 : index
    %c0_64 = arith.constant 0 : index
    %c48_65 = arith.constant 48 : index
    %61 = vector.load %arg1[%c1_63, %c0_64, %c48_65] : memref<2x4x256xf32, #tpu.memory_space<vmem>>, vector<1x4x16xf32>
    %62 = vector.shape_cast %61 : vector<1x4x16xf32> to vector<4x16xf32>
    %c0_66 = arith.constant 0 : index
    %c1331 = arith.constant 1331 : index
    %63 = vector.load %arg8[%c0_66, %c1331] : memref<8x2176xf32, #tpu.memory_space<vmem>>, vector<4x16xf32>
    tpu.vector_store %arg8[%c0_66, %c1331], %62 {strides = array<i32>} : memref<8x2176xf32, #tpu.memory_space<vmem>>, vector<4x16xf32>,
    %c1_67 = arith.constant 1 : index
    %c0_68 = arith.constant 0 : index
    %c64_69 = arith.constant 64 : index
    %64 = vector.load %arg1[%c1_67, %c0_68, %c64_69] : memref<2x4x256xf32, #tpu.memory_space<vmem>>, vector<1x4x16xf32>
    %65 = vector.shape_cast %64 : vector<1x4x16xf32> to vector<4x16xf32>
    %c0_70 = arith.constant 0 : index
    %c1361 = arith.constant 1361 : index
    %66 = vector.load %arg8[%c0_70, %c1361] : memref<8x2176xf32, #tpu.memory_space<vmem>>, vector<4x16xf32>
    tpu.vector_store %arg8[%c0_70, %c1361], %65 {strides = array<i32>} : memref<8x2176xf32, #tpu.memory_space<vmem>>, vector<4x16xf32>,
    %c1_71 = arith.constant 1 : index
    %c0_72 = arith.constant 0 : index
    %c80_73 = arith.constant 80 : index
    %67 = vector.load %arg1[%c1_71, %c0_72, %c80_73] : memref<2x4x256xf32, #tpu.memory_space<vmem>>, vector<1x4x16xf32>
    %68 = vector.shape_cast %67 : vector<1x4x16xf32> to vector<4x16xf32>
    %c0_74 = arith.constant 0 : index
    %c1391 = arith.constant 1391 : index
    %69 = vector.load %arg8[%c0_74, %c1391] : memref<8x2176xf32, #tpu.memory_space<vmem>>, vector<4x16xf32>
    tpu.vector_store %arg8[%c0_74, %c1391], %68 {strides = array<i32>} : memref<8x2176xf32, #tpu.memory_space<vmem>>, vector<4x16xf32>,
    %c1_75 = arith.constant 1 : index
    %c0_76 = arith.constant 0 : index
    %c96_77 = arith.constant 96 : index
    %70 = vector.load %arg1[%c1_75, %c0_76, %c96_77] : memref<2x4x256xf32, #tpu.memory_space<vmem>>, vector<1x4x16xf32>
    %71 = vector.shape_cast %70 : vector<1x4x16xf32> to vector<4x16xf32>
    %c0_78 = arith.constant 0 : index
    %c1421 = arith.constant 1421 : index
    %72 = vector.load %arg8[%c0_78, %c1421] : memref<8x2176xf32, #tpu.memory_space<vmem>>, vector<4x16xf32>
    tpu.vector_store %arg8[%c0_78, %c1421], %71 {strides = array<i32>} : memref<8x2176xf32, #tpu.memory_space<vmem>>, vector<4x16xf32>,
    %c1_79 = arith.constant 1 : index
    %c0_80 = arith.constant 0 : index
    %c112_81 = arith.constant 112 : index
    %73 = vector.load %arg1[%c1_79, %c0_80, %c112_81] : memref<2x4x256xf32, #tpu.memory_space<vmem>>, vector<1x4x16xf32>
    %74 = vector.shape_cast %73 : vector<1x4x16xf32> to vector<4x16xf32>
    %c0_82 = arith.constant 0 : index
    %c1451 = arith.constant 1451 : index
    %75 = vector.load %arg8[%c0_82, %c1451] : memref<8x2176xf32, #tpu.memory_space<vmem>>, vector<4x16xf32>
    tpu.vector_store %arg8[%c0_82, %c1451], %74 {strides = array<i32>} : memref<8x2176xf32, #tpu.memory_space<vmem>>, vector<4x16xf32>,
    %c1_83 = arith.constant 1 : index
    %c0_84 = arith.constant 0 : index
    %c128_85 = arith.constant 128 : index
    %76 = vector.load %arg1[%c1_83, %c0_84, %c128_85] : memref<2x4x256xf32, #tpu.memory_space<vmem>>, vector<1x4x16xf32>
    %77 = vector.shape_cast %76 : vector<1x4x16xf32> to vector<4x16xf32>
    %c0_86 = arith.constant 0 : index
    %c1481 = arith.constant 1481 : index
    %78 = vector.load %arg8[%c0_86, %c1481] : memref<8x2176xf32, #tpu.memory_space<vmem>>, vector<4x16xf32>
    tpu.vector_store %arg8[%c0_86, %c1481], %77 {strides = array<i32>} : memref<8x2176xf32, #tpu.memory_space<vmem>>, vector<4x16xf32>,
    %c1_87 = arith.constant 1 : index
    %c0_88 = arith.constant 0 : index
    %c144_89 = arith.constant 144 : index
    %79 = vector.load %arg1[%c1_87, %c0_88, %c144_89] : memref<2x4x256xf32, #tpu.memory_space<vmem>>, vector<1x4x16xf32>
    %80 = vector.shape_cast %79 : vector<1x4x16xf32> to vector<4x16xf32>
    %c0_90 = arith.constant 0 : index
    %c1511 = arith.constant 1511 : index
    %81 = vector.load %arg8[%c0_90, %c1511] : memref<8x2176xf32, #tpu.memory_space<vmem>>, vector<4x16xf32>
    tpu.vector_store %arg8[%c0_90, %c1511], %80 {strides = array<i32>} : memref<8x2176xf32, #tpu.memory_space<vmem>>, vector<4x16xf32>,
    %c1_91 = arith.constant 1 : index
    %c0_92 = arith.constant 0 : index
    %c160_93 = arith.constant 160 : index
    %82 = vector.load %arg1[%c1_91, %c0_92, %c160_93] : memref<2x4x256xf32, #tpu.memory_space<vmem>>, vector<1x4x16xf32>
    %83 = vector.shape_cast %82 : vector<1x4x16xf32> to vector<4x16xf32>
    %c0_94 = arith.constant 0 : index
    %c1541 = arith.constant 1541 : index
    %84 = vector.load %arg8[%c0_94, %c1541] : memref<8x2176xf32, #tpu.memory_space<vmem>>, vector<4x16xf32>
    tpu.vector_store %arg8[%c0_94, %c1541], %83 {strides = array<i32>} : memref<8x2176xf32, #tpu.memory_space<vmem>>, vector<4x16xf32>,
    %c1_95 = arith.constant 1 : index
    %c0_96 = arith.constant 0 : index
    %c176_97 = arith.constant 176 : index
    %85 = vector.load %arg1[%c1_95, %c0_96, %c176_97] : memref<2x4x256xf32, #tpu.memory_space<vmem>>, vector<1x4x16xf32>
    %86 = vector.shape_cast %85 : vector<1x4x16xf32> to vector<4x16xf32>
    %c0_98 = arith.constant 0 : index
    %c1571 = arith.constant 1571 : index
    %87 = vector.load %arg8[%c0_98, %c1571] : memref<8x2176xf32, #tpu.memory_space<vmem>>, vector<4x16xf32>
    tpu.vector_store %arg8[%c0_98, %c1571], %86 {strides = array<i32>} : memref<8x2176xf32, #tpu.memory_space<vmem>>, vector<4x16xf32>,
    %c1_99 = arith.constant 1 : index
    %c0_100 = arith.constant 0 : index
    %c192_101 = arith.constant 192 : index
    %88 = vector.load %arg1[%c1_99, %c0_100, %c192_101] : memref<2x4x256xf32, #tpu.memory_space<vmem>>, vector<1x4x16xf32>
    %89 = vector.shape_cast %88 : vector<1x4x16xf32> to vector<4x16xf32>
    %c0_102 = arith.constant 0 : index
    %c1601 = arith.constant 1601 : index
    %90 = vector.load %arg8[%c0_102, %c1601] : memref<8x2176xf32, #tpu.memory_space<vmem>>, vector<4x16xf32>
    tpu.vector_store %arg8[%c0_102, %c1601], %89 {strides = array<i32>} : memref<8x2176xf32, #tpu.memory_space<vmem>>, vector<4x16xf32>,
    %c1_103 = arith.constant 1 : index
    %c0_104 = arith.constant 0 : index
    %c208_105 = arith.constant 208 : index
    %91 = vector.load %arg1[%c1_103, %c0_104, %c208_105] : memref<2x4x256xf32, #tpu.memory_space<vmem>>, vector<1x4x16xf32>
    %92 = vector.shape_cast %91 : vector<1x4x16xf32> to vector<4x16xf32>
    %c0_106 = arith.constant 0 : index
    %c1631 = arith.constant 1631 : index
    %93 = vector.load %arg8[%c0_106, %c1631] : memref<8x2176xf32, #tpu.memory_space<vmem>>, vector<4x16xf32>
    tpu.vector_store %arg8[%c0_106, %c1631], %92 {strides = array<i32>} : memref<8x2176xf32, #tpu.memory_space<vmem>>, vector<4x16xf32>,
    %c1_107 = arith.constant 1 : index
    %c0_108 = arith.constant 0 : index
    %c224_109 = arith.constant 224 : index
    %94 = vector.load %arg1[%c1_107, %c0_108, %c224_109] : memref<2x4x256xf32, #tpu.memory_space<vmem>>, vector<1x4x16xf32>
    %95 = vector.shape_cast %94 : vector<1x4x16xf32> to vector<4x16xf32>
    %c0_110 = arith.constant 0 : index
    %c1661 = arith.constant 1661 : index
    %96 = vector.load %arg8[%c0_110, %c1661] : memref<8x2176xf32, #tpu.memory_space<vmem>>, vector<4x16xf32>
    tpu.vector_store %arg8[%c0_110, %c1661], %95 {strides = array<i32>} : memref<8x2176xf32, #tpu.memory_space<vmem>>, vector<4x16xf32>,
    %c1_111 = arith.constant 1 : index
    %c0_112 = arith.constant 0 : index
    %c240_113 = arith.constant 240 : index
    %97 = vector.load %arg1[%c1_111, %c0_112, %c240_113] : memref<2x4x256xf32, #tpu.memory_space<vmem>>, vector<1x4x16xf32>
    %98 = vector.shape_cast %97 : vector<1x4x16xf32> to vector<4x16xf32>
    %c0_114 = arith.constant 0 : index
    %c1691 = arith.constant 1691 : index
    %99 = vector.load %arg8[%c0_114, %c1691] : memref<8x2176xf32, #tpu.memory_space<vmem>>, vector<4x16xf32>
    tpu.vector_store %arg8[%c0_114, %c1691], %98 {strides = array<i32>} : memref<8x2176xf32, #tpu.memory_space<vmem>>, vector<4x16xf32>,
    %c0_115 = arith.constant 0 : index
    %c0_116 = arith.constant 0 : index
    %100 = vector.load %arg8[%c0_115, %c0_116] : memref<8x2176xf32, #tpu.memory_space<vmem>>, vector<8x2048xf32>
    %c0_117 = arith.constant 0 : index
    %c0_118 = arith.constant 0 : index
    %101 = vector.load %arg9[%c0_117, %c0_118] : memref<128x2048xf32, #tpu.memory_space<vmem>>, vector<8x2048xf32>
    tpu.vector_store %arg9[%c0_117, %c0_118], %100 {strides = array<i32>} : memref<128x2048xf32, #tpu.memory_space<vmem>>, vector<8x2048xf32>,
    %c0_119 = arith.constant 0 : index
    %c1_120 = arith.constant 1 : index
    %102 = vector.load %arg8[%c0_119, %c1_120] : memref<8x2176xf32, #tpu.memory_space<vmem>>, vector<8x2048xf32>
    %c8 = arith.constant 8 : index
    %c0_121 = arith.constant 0 : index
    %103 = vector.load %arg9[%c8, %c0_121] : memref<128x2048xf32, #tpu.memory_space<vmem>>, vector<8x2048xf32>
    tpu.vector_store %arg9[%c8, %c0_121], %102 {strides = array<i32>} : memref<128x2048xf32, #tpu.memory_space<vmem>>, vector<8x2048xf32>,
    %c0_122 = arith.constant 0 : index
    %c2 = arith.constant 2 : index
    %104 = vector.load %arg8[%c0_122, %c2] : memref<8x2176xf32, #tpu.memory_space<vmem>>, vector<8x2048xf32>
    %c16_123 = arith.constant 16 : index
    %c0_124 = arith.constant 0 : index
    %105 = vector.load %arg9[%c16_123, %c0_124] : memref<128x2048xf32, #tpu.memory_space<vmem>>, vector<8x2048xf32>
    tpu.vector_store %arg9[%c16_123, %c0_124], %104 {strides = array<i32>} : memref<128x2048xf32, #tpu.memory_space<vmem>>, vector<8x2048xf32>,
    %c0_125 = arith.constant 0 : index
    %c3 = arith.constant 3 : index
    %106 = vector.load %arg8[%c0_125, %c3] : memref<8x2176xf32, #tpu.memory_space<vmem>>, vector<8x2048xf32>
    %c24 = arith.constant 24 : index
    %c0_126 = arith.constant 0 : index
    %107 = vector.load %arg9[%c24, %c0_126] : memref<128x2048xf32, #tpu.memory_space<vmem>>, vector<8x2048xf32>
    tpu.vector_store %arg9[%c24, %c0_126], %106 {strides = array<i32>} : memref<128x2048xf32, #tpu.memory_space<vmem>>, vector<8x2048xf32>,
    %c0_127 = arith.constant 0 : index
    %c30 = arith.constant 30 : index
    %108 = vector.load %arg8[%c0_127, %c30] : memref<8x2176xf32, #tpu.memory_space<vmem>>, vector<8x2048xf32>
    %c32_128 = arith.constant 32 : index
    %c0_129 = arith.constant 0 : index
    %109 = vector.load %arg9[%c32_128, %c0_129] : memref<128x2048xf32, #tpu.memory_space<vmem>>, vector<8x2048xf32>
    tpu.vector_store %arg9[%c32_128, %c0_129], %108 {strides = array<i32>} : memref<128x2048xf32, #tpu.memory_space<vmem>>, vector<8x2048xf32>,
    %c0_130 = arith.constant 0 : index
    %c31 = arith.constant 31 : index
    %110 = vector.load %arg8[%c0_130, %c31] : memref<8x2176xf32, #tpu.memory_space<vmem>>, vector<8x2048xf32>
    %c40 = arith.constant 40 : index
    %c0_131 = arith.constant 0 : index
    %111 = vector.load %arg9[%c40, %c0_131] : memref<128x2048xf32, #tpu.memory_space<vmem>>, vector<8x2048xf32>
    tpu.vector_store %arg9[%c40, %c0_131], %110 {strides = array<i32>} : memref<128x2048xf32, #tpu.memory_space<vmem>>, vector<8x2048xf32>,
    %c0_132 = arith.constant 0 : index
    %c32_133 = arith.constant 32 : index
    %112 = vector.load %arg8[%c0_132, %c32_133] : memref<8x2176xf32, #tpu.memory_space<vmem>>, vector<8x2048xf32>
    %c48_134 = arith.constant 48 : index
    %c0_135 = arith.constant 0 : index
    %113 = vector.load %arg9[%c48_134, %c0_135] : memref<128x2048xf32, #tpu.memory_space<vmem>>, vector<8x2048xf32>
    tpu.vector_store %arg9[%c48_134, %c0_135], %112 {strides = array<i32>} : memref<128x2048xf32, #tpu.memory_space<vmem>>, vector<8x2048xf32>,
    %c0_136 = arith.constant 0 : index
    %c33 = arith.constant 33 : index
    %114 = vector.load %arg8[%c0_136, %c33] : memref<8x2176xf32, #tpu.memory_space<vmem>>, vector<8x2048xf32>
    %c56 = arith.constant 56 : index
    %c0_137 = arith.constant 0 : index
    %115 = vector.load %arg9[%c56, %c0_137] : memref<128x2048xf32, #tpu.memory_space<vmem>>, vector<8x2048xf32>
    tpu.vector_store %arg9[%c56, %c0_137], %114 {strides = array<i32>} : memref<128x2048xf32, #tpu.memory_space<vmem>>, vector<8x2048xf32>,
    %c0_138 = arith.constant 0 : index
    %c60 = arith.constant 60 : index
    %116 = vector.load %arg8[%c0_138, %c60] : memref<8x2176xf32, #tpu.memory_space<vmem>>, vector<8x2048xf32>
    %c64_139 = arith.constant 64 : index
    %c0_140 = arith.constant 0 : index
    %117 = vector.load %arg9[%c64_139, %c0_140] : memref<128x2048xf32, #tpu.memory_space<vmem>>, vector<8x2048xf32>
    tpu.vector_store %arg9[%c64_139, %c0_140], %116 {strides = array<i32>} : memref<128x2048xf32, #tpu.memory_space<vmem>>, vector<8x2048xf32>,
    %c0_141 = arith.constant 0 : index
    %c61 = arith.constant 61 : index
    %118 = vector.load %arg8[%c0_141, %c61] : memref<8x2176xf32, #tpu.memory_space<vmem>>, vector<8x2048xf32>
    %c72 = arith.constant 72 : index
    %c0_142 = arith.constant 0 : index
    %119 = vector.load %arg9[%c72, %c0_142] : memref<128x2048xf32, #tpu.memory_space<vmem>>, vector<8x2048xf32>
    tpu.vector_store %arg9[%c72, %c0_142], %118 {strides = array<i32>} : memref<128x2048xf32, #tpu.memory_space<vmem>>, vector<8x2048xf32>,
    %c0_143 = arith.constant 0 : index
    %c62 = arith.constant 62 : index
    %120 = vector.load %arg8[%c0_143, %c62] : memref<8x2176xf32, #tpu.memory_space<vmem>>, vector<8x2048xf32>
    %c80_144 = arith.constant 80 : index
    %c0_145 = arith.constant 0 : index
    %121 = vector.load %arg9[%c80_144, %c0_145] : memref<128x2048xf32, #tpu.memory_space<vmem>>, vector<8x2048xf32>
    tpu.vector_store %arg9[%c80_144, %c0_145], %120 {strides = array<i32>} : memref<128x2048xf32, #tpu.memory_space<vmem>>, vector<8x2048xf32>,
    %c0_146 = arith.constant 0 : index
    %c63 = arith.constant 63 : index
    %122 = vector.load %arg8[%c0_146, %c63] : memref<8x2176xf32, #tpu.memory_space<vmem>>, vector<8x2048xf32>
    %c88 = arith.constant 88 : index
    %c0_147 = arith.constant 0 : index
    %123 = vector.load %arg9[%c88, %c0_147] : memref<128x2048xf32, #tpu.memory_space<vmem>>, vector<8x2048xf32>
    tpu.vector_store %arg9[%c88, %c0_147], %122 {strides = array<i32>} : memref<128x2048xf32, #tpu.memory_space<vmem>>, vector<8x2048xf32>,
    %c0_148 = arith.constant 0 : index
    %c90 = arith.constant 90 : index
    %124 = vector.load %arg8[%c0_148, %c90] : memref<8x2176xf32, #tpu.memory_space<vmem>>, vector<8x2048xf32>
    %c96_149 = arith.constant 96 : index
    %c0_150 = arith.constant 0 : index
    %125 = vector.load %arg9[%c96_149, %c0_150] : memref<128x2048xf32, #tpu.memory_space<vmem>>, vector<8x2048xf32>
    tpu.vector_store %arg9[%c96_149, %c0_150], %124 {strides = array<i32>} : memref<128x2048xf32, #tpu.memory_space<vmem>>, vector<8x2048xf32>,
    %c0_151 = arith.constant 0 : index
    %c91 = arith.constant 91 : index
    %126 = vector.load %arg8[%c0_151, %c91] : memref<8x2176xf32, #tpu.memory_space<vmem>>, vector<8x2048xf32>
    %c104 = arith.constant 104 : index
    %c0_152 = arith.constant 0 : index
    %127 = vector.load %arg9[%c104, %c0_152] : memref<128x2048xf32, #tpu.memory_space<vmem>>, vector<8x2048xf32>
    tpu.vector_store %arg9[%c104, %c0_152], %126 {strides = array<i32>} : memref<128x2048xf32, #tpu.memory_space<vmem>>, vector<8x2048xf32>,
    %c0_153 = arith.constant 0 : index
    %c92 = arith.constant 92 : index
    %128 = vector.load %arg8[%c0_153, %c92] : memref<8x2176xf32, #tpu.memory_space<vmem>>, vector<8x2048xf32>
    %c112_154 = arith.constant 112 : index
    %c0_155 = arith.constant 0 : index
    %129 = vector.load %arg9[%c112_154, %c0_155] : memref<128x2048xf32, #tpu.memory_space<vmem>>, vector<8x2048xf32>
    tpu.vector_store %arg9[%c112_154, %c0_155], %128 {strides = array<i32>} : memref<128x2048xf32, #tpu.memory_space<vmem>>, vector<8x2048xf32>,
    %c0_156 = arith.constant 0 : index
    %c93 = arith.constant 93 : index
    %130 = vector.load %arg8[%c0_156, %c93] : memref<8x2176xf32, #tpu.memory_space<vmem>>, vector<8x2048xf32>
    %c120 = arith.constant 120 : index
    %c0_157 = arith.constant 0 : index
    %131 = vector.load %arg9[%c120, %c0_157] : memref<128x2048xf32, #tpu.memory_space<vmem>>, vector<8x2048xf32>
    tpu.vector_store %arg9[%c120, %c0_157], %130 {strides = array<i32>} : memref<128x2048xf32, #tpu.memory_space<vmem>>, vector<8x2048xf32>,
    %c0_158 = arith.constant 0 : index
    %c0_159 = arith.constant 0 : index
    %132 = vector.load %arg2[%c0_158, %c0_159] : memref<8x128xf32, #tpu.memory_space<vmem>>, vector<8x128xf32>
    %c0_160 = arith.constant 0 : index
    %c0_161 = arith.constant 0 : index
    %133 = vector.load %arg9[%c0_160, %c0_161] : memref<128x2048xf32, #tpu.memory_space<vmem>>, vector<128x2048xf32>
    %cst_162 = arith.constant dense<0.000000e+00> : vector<8x2048xf32>
    %134 = tpu.matmul %132, %133, %cst_162 {dimension_numbers = #tpu.dot_dimension_numbers<[1], [0], [0], [1], [0, 0, 1, 1], [], []>} : vector<8x128xf32>, vector<128x2048xf32>, vector<8x2048xf32> -> vector<8x2048xf32>
    %c0_163 = arith.constant 0 : index
    %c0_164 = arith.constant 0 : index
    %135 = vector.load %arg3[%c0_163, %c0_164] : memref<8x1xf32, #tpu.memory_space<vmem>>, vector<8x1xf32>
    %136 = vector.broadcast %135 : vector<8x1xf32> to vector<8x2048xf32>
    %137 = arith.addf %134, %136 : vector<8x2048xf32>
    %cst_165 = arith.constant 0.000000e+00 : f32
    %138 = vector.broadcast %cst_165 : f32 to vector<8x2048xf32>
    %139 = arith.maximumf %137, %138 : vector<8x2048xf32>
    %c0_166 = arith.constant 0 : index
    %c0_167 = arith.constant 0 : index
    %140 = vector.load %arg6[%c0_166, %c0_167] : memref<1x2048xf32, #tpu.memory_space<vmem>>, vector<1x2048xf32>
    %141 = vector.broadcast %140 : vector<1x2048xf32> to vector<8x2048xf32>
    %142 = arith.mulf %139, %141 : vector<8x2048xf32>
    %c0_168 = arith.constant 0 : index
    %c0_169 = arith.constant 0 : index
    %143 = vector.load %arg10[%c0_168, %c0_169] : memref<8x2176xf32, #tpu.memory_space<vmem>>, vector<8x2048xf32>
    tpu.vector_store %arg10[%c0_168, %c0_169], %142 {strides = array<i32>} : memref<8x2176xf32, #tpu.memory_space<vmem>>, vector<8x2048xf32>,
    %c0_170 = arith.constant 0 : index
    %c0_171 = arith.constant 0 : index
    %144 = vector.load %arg10[%c0_170, %c0_171] : memref<8x2176xf32, #tpu.memory_space<vmem>>, vector<8x2048xf32>
    %c0_172 = arith.constant 0 : index
    %c0_173 = arith.constant 0 : index
    %145 = vector.load %arg11[%c0_172, %c0_173] : memref<200x2048xf32, #tpu.memory_space<vmem>>, vector<8x2048xf32>
    tpu.vector_store %arg11[%c0_172, %c0_173], %144 {strides = array<i32>} : memref<200x2048xf32, #tpu.memory_space<vmem>>, vector<8x2048xf32>,
    %c0_174 = arith.constant 0 : index
    %c1_175 = arith.constant 1 : index
    %146 = vector.load %arg10[%c0_174, %c1_175] : memref<8x2176xf32, #tpu.memory_space<vmem>>, vector<8x2048xf32>
    %c8_176 = arith.constant 8 : index
    %c0_177 = arith.constant 0 : index
    %147 = vector.load %arg11[%c8_176, %c0_177] : memref<200x2048xf32, #tpu.memory_space<vmem>>, vector<8x2048xf32>
    tpu.vector_store %arg11[%c8_176, %c0_177], %146 {strides = array<i32>} : memref<200x2048xf32, #tpu.memory_space<vmem>>, vector<8x2048xf32>,
    %c0_178 = arith.constant 0 : index
    %c2_179 = arith.constant 2 : index
    %148 = vector.load %arg10[%c0_178, %c2_179] : memref<8x2176xf32, #tpu.memory_space<vmem>>, vector<8x2048xf32>
    %c16_180 = arith.constant 16 : index
    %c0_181 = arith.constant 0 : index
    %149 = vector.load %arg11[%c16_180, %c0_181] : memref<200x2048xf32, #tpu.memory_space<vmem>>, vector<8x2048xf32>
    tpu.vector_store %arg11[%c16_180, %c0_181], %148 {strides = array<i32>} : memref<200x2048xf32, #tpu.memory_space<vmem>>, vector<8x2048xf32>,
    %c0_182 = arith.constant 0 : index
    %c3_183 = arith.constant 3 : index
    %150 = vector.load %arg10[%c0_182, %c3_183] : memref<8x2176xf32, #tpu.memory_space<vmem>>, vector<8x2048xf32>
    %c24_184 = arith.constant 24 : index
    %c0_185 = arith.constant 0 : index
    %151 = vector.load %arg11[%c24_184, %c0_185] : memref<200x2048xf32, #tpu.memory_space<vmem>>, vector<8x2048xf32>
    tpu.vector_store %arg11[%c24_184, %c0_185], %150 {strides = array<i32>} : memref<200x2048xf32, #tpu.memory_space<vmem>>, vector<8x2048xf32>,
    %c0_186 = arith.constant 0 : index
    %c4 = arith.constant 4 : index
    %152 = vector.load %arg10[%c0_186, %c4] : memref<8x2176xf32, #tpu.memory_space<vmem>>, vector<8x2048xf32>
    %c32_187 = arith.constant 32 : index
    %c0_188 = arith.constant 0 : index
    %153 = vector.load %arg11[%c32_187, %c0_188] : memref<200x2048xf32, #tpu.memory_space<vmem>>, vector<8x2048xf32>
    tpu.vector_store %arg11[%c32_187, %c0_188], %152 {strides = array<i32>} : memref<200x2048xf32, #tpu.memory_space<vmem>>, vector<8x2048xf32>,
    %c0_189 = arith.constant 0 : index
    %c30_190 = arith.constant 30 : index
    %154 = vector.load %arg10[%c0_189, %c30_190] : memref<8x2176xf32, #tpu.memory_space<vmem>>, vector<8x2048xf32>
    %c40_191 = arith.constant 40 : index
    %c0_192 = arith.constant 0 : index
    %155 = vector.load %arg11[%c40_191, %c0_192] : memref<200x2048xf32, #tpu.memory_space<vmem>>, vector<8x2048xf32>
    tpu.vector_store %arg11[%c40_191, %c0_192], %154 {strides = array<i32>} : memref<200x2048xf32, #tpu.memory_space<vmem>>, vector<8x2048xf32>,
    %c0_193 = arith.constant 0 : index
    %c31_194 = arith.constant 31 : index
    %156 = vector.load %arg10[%c0_193, %c31_194] : memref<8x2176xf32, #tpu.memory_space<vmem>>, vector<8x2048xf32>
    %c48_195 = arith.constant 48 : index
    %c0_196 = arith.constant 0 : index
    %157 = vector.load %arg11[%c48_195, %c0_196] : memref<200x2048xf32, #tpu.memory_space<vmem>>, vector<8x2048xf32>
    tpu.vector_store %arg11[%c48_195, %c0_196], %156 {strides = array<i32>} : memref<200x2048xf32, #tpu.memory_space<vmem>>, vector<8x2048xf32>,
    %c0_197 = arith.constant 0 : index
    %c32_198 = arith.constant 32 : index
    %158 = vector.load %arg10[%c0_197, %c32_198] : memref<8x2176xf32, #tpu.memory_space<vmem>>, vector<8x2048xf32>
    %c56_199 = arith.constant 56 : index
    %c0_200 = arith.constant 0 : index
    %159 = vector.load %arg11[%c56_199, %c0_200] : memref<200x2048xf32, #tpu.memory_space<vmem>>, vector<8x2048xf32>
    tpu.vector_store %arg11[%c56_199, %c0_200], %158 {strides = array<i32>} : memref<200x2048xf32, #tpu.memory_space<vmem>>, vector<8x2048xf32>,
    %c0_201 = arith.constant 0 : index
    %c33_202 = arith.constant 33 : index
    %160 = vector.load %arg10[%c0_201, %c33_202] : memref<8x2176xf32, #tpu.memory_space<vmem>>, vector<8x2048xf32>
    %c64_203 = arith.constant 64 : index
    %c0_204 = arith.constant 0 : index
    %161 = vector.load %arg11[%c64_203, %c0_204] : memref<200x2048xf32, #tpu.memory_space<vmem>>, vector<8x2048xf32>
    tpu.vector_store %arg11[%c64_203, %c0_204], %160 {strides = array<i32>} : memref<200x2048xf32, #tpu.memory_space<vmem>>, vector<8x2048xf32>,
    %c0_205 = arith.constant 0 : index
    %c34 = arith.constant 34 : index
    %162 = vector.load %arg10[%c0_205, %c34] : memref<8x2176xf32, #tpu.memory_space<vmem>>, vector<8x2048xf32>
    %c72_206 = arith.constant 72 : index
    %c0_207 = arith.constant 0 : index
    %163 = vector.load %arg11[%c72_206, %c0_207] : memref<200x2048xf32, #tpu.memory_space<vmem>>, vector<8x2048xf32>
    tpu.vector_store %arg11[%c72_206, %c0_207], %162 {strides = array<i32>} : memref<200x2048xf32, #tpu.memory_space<vmem>>, vector<8x2048xf32>,
    %c0_208 = arith.constant 0 : index
    %c60_209 = arith.constant 60 : index
    %164 = vector.load %arg10[%c0_208, %c60_209] : memref<8x2176xf32, #tpu.memory_space<vmem>>, vector<8x2048xf32>
    %c80_210 = arith.constant 80 : index
    %c0_211 = arith.constant 0 : index
    %165 = vector.load %arg11[%c80_210, %c0_211] : memref<200x2048xf32, #tpu.memory_space<vmem>>, vector<8x2048xf32>
    tpu.vector_store %arg11[%c80_210, %c0_211], %164 {strides = array<i32>} : memref<200x2048xf32, #tpu.memory_space<vmem>>, vector<8x2048xf32>,
    %c0_212 = arith.constant 0 : index
    %c61_213 = arith.constant 61 : index
    %166 = vector.load %arg10[%c0_212, %c61_213] : memref<8x2176xf32, #tpu.memory_space<vmem>>, vector<8x2048xf32>
    %c88_214 = arith.constant 88 : index
    %c0_215 = arith.constant 0 : index
    %167 = vector.load %arg11[%c88_214, %c0_215] : memref<200x2048xf32, #tpu.memory_space<vmem>>, vector<8x2048xf32>
    tpu.vector_store %arg11[%c88_214, %c0_215], %166 {strides = array<i32>} : memref<200x2048xf32, #tpu.memory_space<vmem>>, vector<8x2048xf32>,
    %c0_216 = arith.constant 0 : index
    %c62_217 = arith.constant 62 : index
    %168 = vector.load %arg10[%c0_216, %c62_217] : memref<8x2176xf32, #tpu.memory_space<vmem>>, vector<8x2048xf32>
    %c96_218 = arith.constant 96 : index
    %c0_219 = arith.constant 0 : index
    %169 = vector.load %arg11[%c96_218, %c0_219] : memref<200x2048xf32, #tpu.memory_space<vmem>>, vector<8x2048xf32>
    tpu.vector_store %arg11[%c96_218, %c0_219], %168 {strides = array<i32>} : memref<200x2048xf32, #tpu.memory_space<vmem>>, vector<8x2048xf32>,
    %c0_220 = arith.constant 0 : index
    %c63_221 = arith.constant 63 : index
    %170 = vector.load %arg10[%c0_220, %c63_221] : memref<8x2176xf32, #tpu.memory_space<vmem>>, vector<8x2048xf32>
    %c104_222 = arith.constant 104 : index
    %c0_223 = arith.constant 0 : index
    %171 = vector.load %arg11[%c104_222, %c0_223] : memref<200x2048xf32, #tpu.memory_space<vmem>>, vector<8x2048xf32>
    tpu.vector_store %arg11[%c104_222, %c0_223], %170 {strides = array<i32>} : memref<200x2048xf32, #tpu.memory_space<vmem>>, vector<8x2048xf32>,
    %c0_224 = arith.constant 0 : index
    %c64_225 = arith.constant 64 : index
    %172 = vector.load %arg10[%c0_224, %c64_225] : memref<8x2176xf32, #tpu.memory_space<vmem>>, vector<8x2048xf32>
    %c112_226 = arith.constant 112 : index
    %c0_227 = arith.constant 0 : index
    %173 = vector.load %arg11[%c112_226, %c0_227] : memref<200x2048xf32, #tpu.memory_space<vmem>>, vector<8x2048xf32>
    tpu.vector_store %arg11[%c112_226, %c0_227], %172 {strides = array<i32>} : memref<200x2048xf32, #tpu.memory_space<vmem>>, vector<8x2048xf32>,
    %c0_228 = arith.constant 0 : index
    %c90_229 = arith.constant 90 : index
    %174 = vector.load %arg10[%c0_228, %c90_229] : memref<8x2176xf32, #tpu.memory_space<vmem>>, vector<8x2048xf32>
    %c120_230 = arith.constant 120 : index
    %c0_231 = arith.constant 0 : index
    %175 = vector.load %arg11[%c120_230, %c0_231] : memref<200x2048xf32, #tpu.memory_space<vmem>>, vector<8x2048xf32>
    tpu.vector_store %arg11[%c120_230, %c0_231], %174 {strides = array<i32>} : memref<200x2048xf32, #tpu.memory_space<vmem>>, vector<8x2048xf32>,
    %c0_232 = arith.constant 0 : index
    %c91_233 = arith.constant 91 : index
    %176 = vector.load %arg10[%c0_232, %c91_233] : memref<8x2176xf32, #tpu.memory_space<vmem>>, vector<8x2048xf32>
    %c128_234 = arith.constant 128 : index
    %c0_235 = arith.constant 0 : index
    %177 = vector.load %arg11[%c128_234, %c0_235] : memref<200x2048xf32, #tpu.memory_space<vmem>>, vector<8x2048xf32>
    tpu.vector_store %arg11[%c128_234, %c0_235], %176 {strides = array<i32>} : memref<200x2048xf32, #tpu.memory_space<vmem>>, vector<8x2048xf32>,
    %c0_236 = arith.constant 0 : index
    %c92_237 = arith.constant 92 : index
    %178 = vector.load %arg10[%c0_236, %c92_237] : memref<8x2176xf32, #tpu.memory_space<vmem>>, vector<8x2048xf32>
    %c136 = arith.constant 136 : index
    %c0_238 = arith.constant 0 : index
    %179 = vector.load %arg11[%c136, %c0_238] : memref<200x2048xf32, #tpu.memory_space<vmem>>, vector<8x2048xf32>
    tpu.vector_store %arg11[%c136, %c0_238], %178 {strides = array<i32>} : memref<200x2048xf32, #tpu.memory_space<vmem>>, vector<8x2048xf32>,
    %c0_239 = arith.constant 0 : index
    %c93_240 = arith.constant 93 : index
    %180 = vector.load %arg10[%c0_239, %c93_240] : memref<8x2176xf32, #tpu.memory_space<vmem>>, vector<8x2048xf32>
    %c144_241 = arith.constant 144 : index
    %c0_242 = arith.constant 0 : index
    %181 = vector.load %arg11[%c144_241, %c0_242] : memref<200x2048xf32, #tpu.memory_space<vmem>>, vector<8x2048xf32>
    tpu.vector_store %arg11[%c144_241, %c0_242], %180 {strides = array<i32>} : memref<200x2048xf32, #tpu.memory_space<vmem>>, vector<8x2048xf32>,
    %c0_243 = arith.constant 0 : index
    %c94 = arith.constant 94 : index
    %182 = vector.load %arg10[%c0_243, %c94] : memref<8x2176xf32, #tpu.memory_space<vmem>>, vector<8x2048xf32>
    %c152 = arith.constant 152 : index
    %c0_244 = arith.constant 0 : index
    %183 = vector.load %arg11[%c152, %c0_244] : memref<200x2048xf32, #tpu.memory_space<vmem>>, vector<8x2048xf32>
    tpu.vector_store %arg11[%c152, %c0_244], %182 {strides = array<i32>} : memref<200x2048xf32, #tpu.memory_space<vmem>>, vector<8x2048xf32>,
    %c0_245 = arith.constant 0 : index
    %c120_246 = arith.constant 120 : index
    %184 = vector.load %arg10[%c0_245, %c120_246] : memref<8x2176xf32, #tpu.memory_space<vmem>>, vector<8x2048xf32>
    %c160_247 = arith.constant 160 : index
    %c0_248 = arith.constant 0 : index
    %185 = vector.load %arg11[%c160_247, %c0_248] : memref<200x2048xf32, #tpu.memory_space<vmem>>, vector<8x2048xf32>
    tpu.vector_store %arg11[%c160_247, %c0_248], %184 {strides = array<i32>} : memref<200x2048xf32, #tpu.memory_space<vmem>>, vector<8x2048xf32>,
    %c0_249 = arith.constant 0 : index
    %c121 = arith.constant 121 : index
    %186 = vector.load %arg10[%c0_249, %c121] : memref<8x2176xf32, #tpu.memory_space<vmem>>, vector<8x2048xf32>
    %c168 = arith.constant 168 : index
    %c0_250 = arith.constant 0 : index
    %187 = vector.load %arg11[%c168, %c0_250] : memref<200x2048xf32, #tpu.memory_space<vmem>>, vector<8x2048xf32>
    tpu.vector_store %arg11[%c168, %c0_250], %186 {strides = array<i32>} : memref<200x2048xf32, #tpu.memory_space<vmem>>, vector<8x2048xf32>,
    %c0_251 = arith.constant 0 : index
    %c122 = arith.constant 122 : index
    %188 = vector.load %arg10[%c0_251, %c122] : memref<8x2176xf32, #tpu.memory_space<vmem>>, vector<8x2048xf32>
    %c176_252 = arith.constant 176 : index
    %c0_253 = arith.constant 0 : index
    %189 = vector.load %arg11[%c176_252, %c0_253] : memref<200x2048xf32, #tpu.memory_space<vmem>>, vector<8x2048xf32>
    tpu.vector_store %arg11[%c176_252, %c0_253], %188 {strides = array<i32>} : memref<200x2048xf32, #tpu.memory_space<vmem>>, vector<8x2048xf32>,
    %c0_254 = arith.constant 0 : index
    %c123 = arith.constant 123 : index
    %190 = vector.load %arg10[%c0_254, %c123] : memref<8x2176xf32, #tpu.memory_space<vmem>>, vector<8x2048xf32>
    %c184 = arith.constant 184 : index
    %c0_255 = arith.constant 0 : index
    %191 = vector.load %arg11[%c184, %c0_255] : memref<200x2048xf32, #tpu.memory_space<vmem>>, vector<8x2048xf32>
    tpu.vector_store %arg11[%c184, %c0_255], %190 {strides = array<i32>} : memref<200x2048xf32, #tpu.memory_space<vmem>>, vector<8x2048xf32>,
    %c0_256 = arith.constant 0 : index
    %c124 = arith.constant 124 : index
    %192 = vector.load %arg10[%c0_256, %c124] : memref<8x2176xf32, #tpu.memory_space<vmem>>, vector<8x2048xf32>
    %c192_257 = arith.constant 192 : index
    %c0_258 = arith.constant 0 : index
    %193 = vector.load %arg11[%c192_257, %c0_258] : memref<200x2048xf32, #tpu.memory_space<vmem>>, vector<8x2048xf32>
    tpu.vector_store %arg11[%c192_257, %c0_258], %192 {strides = array<i32>} : memref<200x2048xf32, #tpu.memory_space<vmem>>, vector<8x2048xf32>,
    %c0_259 = arith.constant 0 : index
    %c0_260 = arith.constant 0 : index
    %194 = vector.load %arg4[%c0_259, %c0_260] : memref<8x200xf32, #tpu.memory_space<vmem>>, vector<8x200xf32>
    %c0_261 = arith.constant 0 : index
    %c0_262 = arith.constant 0 : index
    %195 = vector.load %arg11[%c0_261, %c0_262] : memref<200x2048xf32, #tpu.memory_space<vmem>>, vector<200x2048xf32>
    %cst_263 = arith.constant dense<0.000000e+00> : vector<8x2048xf32>
    %196 = tpu.matmul %194, %195, %cst_263 {dimension_numbers = #tpu.dot_dimension_numbers<[1], [0], [0], [1], [0, 0, 1, 1], [], []>} : vector<8x200xf32>, vector<200x2048xf32>, vector<8x2048xf32> -> vector<8x2048xf32>
    %c0_264 = arith.constant 0 : index
    %c0_265 = arith.constant 0 : index
    %197 = vector.load %arg5[%c0_264, %c0_265] : memref<8x1xf32, #tpu.memory_space<vmem>>, vector<8x1xf32>
    %198 = vector.broadcast %197 : vector<8x1xf32> to vector<8x2048xf32>
    %199 = arith.addf %196, %198 : vector<8x2048xf32>
    %c0_266 = arith.constant 0 : index
    %c0_267 = arith.constant 0 : index
    %200 = vector.load %arg7[%c0_266, %c0_267] : memref<8x2048xf32, #tpu.memory_space<vmem>>, vector<8x2048xf32>
    tpu.vector_store %arg7[%c0_266, %c0_267], %199 {strides = array<i32>} : memref<8x2048xf32, #tpu.memory_space<vmem>>, vector<8x2048xf32>,
    return
  }
  func.func @transform_0(%arg0: i32) -> (i32, i32, i32) {
    %c0_i32 = arith.constant 0 : i32
    %c0_i32_0 = arith.constant 0 : i32
    %c0_i32_1 = arith.constant 0 : i32
    %c0_i32_2 = arith.constant 0 : i32
    return %c0_i32, %c0_i32_0, %c0_i32_1 : i32, i32, i32
  }
  func.func @transform_1(%arg0: i32) -> (i32, i32) {
    %c0_i32 = arith.constant 0 : i32
    %c0_i32_0 = arith.constant 0 : i32
    %c0_i32_1 = arith.constant 0 : i32
    return %c0_i32, %c0_i32_0 : i32, i32
  }
  func.func @transform_2(%arg0: i32) -> (i32, i32) {
    %c0_i32 = arith.constant 0 : i32
    %c0_i32_0 = arith.constant 0 : i32
    %c0_i32_1 = arith.constant 0 : i32
    return %c0_i32, %c0_i32_0 : i32, i32
  }
  func.func @transform_3(%arg0: i32) -> (i32, i32) {
    %c0_i32 = arith.constant 0 : i32
    %c0_i32_0 = arith.constant 0 : i32
    %c0_i32_1 = arith.constant 0 : i32
    return %c0_i32, %c0_i32_0 : i32, i32
  }
  func.func @transform_4(%arg0: i32) -> (i32, i32) {
    %c0_i32 = arith.constant 0 : i32
    %c0_i32_0 = arith.constant 0 : i32
    %c0_i32_1 = arith.constant 0 : i32
    return %c0_i32, %c0_i32_0 : i32, i32
  }
  func.func @transform_5(%arg0: i32) -> (i32, i32) {
    %c0_i32 = arith.constant 0 : i32
    %c0_i32_0 = arith.constant 0 : i32
    %c0_i32_1 = arith.constant 0 : i32
    return %c0_i32, %c0_i32_0 : i32, i32
  }
  func.func @transform_6(%arg0: i32) -> (i32, i32) {
    %c0_i32 = arith.constant 0 : i32
    %c0_i32_0 = arith.constant 0 : i32
    %c0_i32_1 = arith.constant 0 : i32
    return %c0_i32, %c0_i32_0 : i32, i32
  }
}

</mosaic_0001>

<bundles_post_ra>
// kernel: small_kernel_upsample.1
= control target key start
LH: loop header
LB: loop body
LE: loop exit
PB: predicated region body
PF: predicated region fallthrough
CT: control target
= control target key end

     0   :  { %v13348_v2 = vmov 0.0   ;;  %s9065_s25 = smov 89   ;;  %s9066_s26 = smov 117   ;;  %vm46_vm0 = vcmask 855752   ;;  %vm53_vm1 = vcmask 1044408   ;;  %vm55_vm2 = vcmask 52224   ;;  %s13332_s0 = inlined_call_operand.vmem [shape: f32[2,4,256], index: 0, kind: input, shape index: {}]   ;;  %s13333_s2 = inlined_call_operand.vmem [shape: f32[8,1], index: 2, kind: input, shape index: {}]   ;;  %s13334_s1 = inlined_call_operand.vmem [shape: f32[8,128], index: 1, kind: input, shape index: {}]   ;;  %s13335_s5 = inlined_call_operand.vmem [shape: f32[1,2048], index: 5, kind: input, shape index: {}]   ;;  %s13336_s3 = inlined_call_operand.vmem [shape: f32[8,200], index: 3, kind: input, shape index: {}]   ;;  %s13337_s4 = inlined_call_operand.vmem [shape: f32[8,1], index: 4, kind: input, shape index: {}]   ;;  %s13338_s6 = inlined_call_operand.vmem [shape: f32[8,2048], index: 6, kind: output, shape index: {}]  }
   0x1   :  { %v41_v0 = vld [vmem:[%s13332_s0] sm:$0xf]  ;;  %29 = vst [vmem:[#allocation2 + $0x30] sm:$0xff] %v13348_v2  ;;  %24 = vst [vmem:[#allocation2 + $0x8] sm:$0xff] %v13348_v2  ;;  %2370 = vmatprep.mubr.f32.mxu0 %v13348_v2  ;;  %2441 = vmatprep.mubr.f32.mxu1 %v13348_v2  ;;  %s9067_s7 = smov 103   ;;  %s9068_s8 = smov 3  }
   0x2   :  { %v57_v1 = vld [vmem:[%s13332_s0] sm:$0xf]  ;;  %25 = vst [vmem:[#allocation2 + $0x10] sm:$0xff] %v13348_v2  ;;  %26 = vst [vmem:[#allocation2 + $0x18] sm:$0xff] %v13348_v2  ;;  %43 = vrot.lane.b32.xlu0 %v41_v0, %s9065_s25  ;;  %s9069_s13 = smov 17   ;;  %s9070_s14 = smov 31  }
   0x3   :  { %27 = vst [vmem:[#allocation2 + $0x20] sm:$0xff] %v13348_v2  ;;  %28 = vst [vmem:[#allocation2 + $0x28] sm:$0xff] %v13348_v2  ;;  %59 = vrot.lane.b32.xlu1 %v57_v1, %s9066_s26  ;;  %v48_v3 = vld [vmem:[%s13332_s0] sm:$0xf]  ;;  %s9071_s19 = smov 45   ;;  %s9072_s20 = smov 59  }
   0x4   :  { %32 = vst [vmem:[#allocation2 + $0x48] sm:$0xff] %v13348_v2  ;;  %33 = vst [vmem:[#allocation2 + $0x50] sm:$0xff] %v13348_v2  ;;  %v64_v4 = vld [vmem:[%s13332_s0] sm:$0xf]  ;;  %v99_v9 = vld [vmem:[%s13332_s0 + $0x4] sm:$0xf] }
   0x5   :  { %34 = vst [vmem:[#allocation2 + $0x58] sm:$0xff] %v13348_v2  ;;  %35 = vst [vmem:[#allocation2 + $0x60] sm:$0xff] %v13348_v2  ;;  %v71_v5 = vld [vmem:[%s13332_s0] sm:$0xf]  ;;  %v106_v10 = vld [vmem:[%s13332_s0 + $0x4] sm:$0xf] }
   0x6   :  { %36 = vst [vmem:[#allocation2 + $0x68] sm:$0xff] %v13348_v2  ;;  %50 = vrot.lane.b32.xlu0 %v48_v3, %s9067_s7  ;;  %v78_v6 = vld [vmem:[%s13332_s0] sm:$0xf]  ;;  %s9073_s27 = smov 73   ;;  %s9074_s28 = smov 87   ;;  %vm62_vm3 = vcmask 298152  }
   0x7   :  { %66 = vrot.lane.b32.xlu1 %v64_v4, %s9068_s8  ;;  %v85_v7 = vld [vmem:[%s13332_s0] sm:$0xf]  ;;  %v113_v11 = vld [vmem:[%s13332_s0 + $0x4] sm:$0xf]  ;;  %s9075_s11 = smov 101   ;;  %s9076_s12 = smov 115  }
   0x8   :  { %v92_v8 = vld [vmem:[%s13332_s0] sm:$0xf]  ;;  %v120_v12 = vld [vmem:[%s13332_s0 + $0x4] sm:$0xf]  ;;  %s9077_s21 = smov 1   ;;  %s9078_s22 = smov 15  }
   0x9   :  { %v127_v13 = vld [vmem:[%s13332_s0 + $0x4] sm:$0xf]  ;;  %s9079_s9 = smov 29   ;;  %s9080_s10 = smov 43   ;;  %v6831_v17 = vld [vmem:[%s13332_s0 + $0x8] sm:$0xf] }
   0xa   :  { %73 = vrot.lane.b32.xlu0 %v71_v5, %s9069_s13  ;;  %v134_v14 = vld [vmem:[%s13332_s0 + $0x4] sm:$0xf]  ;;  %v6832_v18 = vld [vmem:[%s13332_s0 + $0x8] sm:$0xf]  ;;  %v6839_v25 = vld [vmem:[%s13332_s0 + $0xc] sm:$0xf] }
   0xb   :  { %80 = vrot.lane.b32.xlu1 %v78_v6, %s9070_s14  ;;  %v141_v15 = vld [vmem:[%s13332_s0 + $0x4] sm:$0xf]  ;;  %v6833_v19 = vld [vmem:[%s13332_s0 + $0x8] sm:$0xf]  ;;  %v6840_v26 = vld [vmem:[%s13332_s0 + $0xc] sm:$0xf] }
   0xc   :  { %v150_v16 = vld [vmem:[%s13332_s0 + $0x4] sm:$0xf]  ;;  %v6834_v20 = vld [vmem:[%s13332_s0 + $0x8] sm:$0xf]  ;;  %v6841_v27 = vld [vmem:[%s13332_s0 + $0xc] sm:$0xf] }
   0xd   :  { %v6835_v21 = vld [vmem:[%s13332_s0 + $0x8] sm:$0xf]  ;;  %v6842_v28 = vld [vmem:[%s13332_s0 + $0xc] sm:$0xf]  ;;  %vm69_vm4 = vcmask 544152   ;;  %vm76_vm5 = vcmask 790152  }
   0xe   :  { %87 = vrot.lane.b32.xlu0 %v85_v7, %s9071_s19  ;;  %v6836_v22 = vld [vmem:[%s13332_s0 + $0x8] sm:$0xf]  ;;  %v6843_v29 = vld [vmem:[%s13332_s0 + $0xc] sm:$0xf]  ;;  %vm83_vm6 = vcmask 1036152   ;;  %vm90_vm7 = vcmask 232552  }
   0xf   :  { %94 = vrot.lane.b32.xlu1 %v92_v8, %s9072_s20  ;;  %v6837_v23 = vld [vmem:[%s13332_s0 + $0x8] sm:$0xf]  ;;  %v6844_v30 = vld [vmem:[%s13332_s0 + $0xc] sm:$0xf]  ;;  %vm13340_vm8 = vcmask 478552   ;;  %vm13339_vm9 = vcmask 724552  }
  0x10   :  { %v6838_v24 = vld [vmem:[%s13332_s0 + $0x8] sm:$0xf]  ;;  %v6845_v31 = vld [vmem:[%s13332_s0 + $0xc] sm:$0xf]  ;;  %vm111_vm10 = vcmask 970552   ;;  %vm118_vm11 = vcmask 166952  }
  0x11   :  { %v6846_v32 = vld [vmem:[%s13332_s0 + $0xc] sm:$0xf]  ;;  %s9083_s0 = smov 125   ;;  %vm125_vm12 = vcmask 412952   ;;  %vm132_vm13 = vcmask 658952   ;;  %vm139_vm14 = vcmask 904952  }
  0x12   :  { %101 = vrot.lane.b32.xlu0 %v99_v9, %s9073_s27  ;;  %vm146_vm15 = vcmask 1044456   ;;  %s9087_s18 = smov 95   ;;  %s9088_s23 = smov 68  }
  0x13   :  { %108 = vrot.lane.b32.xlu1 %v106_v10, %s9074_s28  ;;  %s9091_s24 = smov 65   ;;  %s9092_s29 = smov 38  }
  0x14   :  { %s9095_s30 = smov 35   ;;  %s9102_s15 = smov 7  }
  0x16   :  { %115 = vrot.lane.b32.xlu0 %v113_v11, %s9075_s11 }
  0x17   :  { %122 = vrot.lane.b32.xlu1 %v120_v12, %s9076_s12 }
  0x1a   :  { %129 = vrot.lane.b32.xlu0 %v127_v13, %s9077_s21 }
  0x1b   :  { %136 = vrot.lane.b32.xlu1 %v134_v14, %s9078_s22 }
  0x1e   :  { %143 = vrot.lane.b32.xlu0 %v141_v15, %s9079_s9 }
  0x1f   :  { %152 = vrot.lane.b32.xlu1 %v150_v16, %s9080_s10 }
  0x22   :  { %160 = vrot.lane.b32.xlu0 %v6831_v17, %s9065_s25 }
  0x23   :  { %166 = vrot.lane.b32.xlu1 %v6832_v18, %s9067_s7  ;;  %s9100_s7 = smov 34  }
  0x26   :  { %173 = vrot.lane.b32.xlu0 %v6833_v19, %s9066_s26  ;;  %s9089_s26 = smov 67  }
  0x27   :  { %179 = vrot.lane.b32.xlu1 %v6834_v20, %s9068_s8  ;;  %s9090_s8 = smov 66  }
  0x2a   :  { %185 = vrot.lane.b32.xlu0 %v6835_v21, %s9069_s13  ;;  %s9093_s13 = smov 37  }
  0x2b   :  { %191 = vrot.lane.b32.xlu1 %v6836_v22, %s9070_s14  ;;  %s9094_s14 = smov 36  }
  0x2e   :  { %197 = vrot.lane.b32.xlu0 %v6837_v23, %s9071_s19  ;;  %s9103_s19 = smov 6  }
  0x2f   :  { %203 = vrot.lane.b32.xlu1 %v6838_v24, %s9072_s20  ;;  %s9104_s20 = smov 5  }
  0x32   :  { %209 = vrot.lane.b32.xlu0 %v6839_v25, %s9073_s27 }
  0x33   :  { %215 = vrot.lane.b32.xlu1 %v6840_v26, %s9074_s28 }
  0x36   :  { %221 = vrot.lane.b32.xlu0 %v6841_v27, %s9075_s11  ;;  %s9101_s11 = smov 8  }
  0x37   :  { %227 = vrot.lane.b32.xlu1 %v6842_v28, %s9076_s12  ;;  %s9081_s12 = smov 127  }
  0x3a   :  { %233 = vrot.lane.b32.xlu0 %v6843_v29, %s9077_s21  ;;  %s9082_s21 = smov 126  }
  0x3b   :  { %239 = vrot.lane.b32.xlu1 %v6844_v30, %s9078_s22  ;;  %s9084_s22 = smov 98  }
  0x3e   :  { %245 = vrot.lane.b32.xlu0 %v6845_v31, %s9079_s9  ;;  %s9085_s9 = smov 97  }
  0x3f   :  { %252 = vrot.lane.b32.xlu1 %v6846_v32, %s9080_s10  ;;  %s9086_s10 = smov 96  }
  0x42   :  { %354 = vrot.lane.b32.xlu0 %v13348_v2, %s9081_s12 }
  0x43   :  { %7538 = vrot.lane.b32.xlu1 %v13348_v2, %s9081_s12 }
  0x46   :  { %7548 = vrot.lane.b32.xlu0 %v13348_v2, %s9082_s21 }
  0x47   :  { %7543 = vrot.lane.b32.xlu1 %v13348_v2, %s9081_s12 }
  0x4a   :  { %7553 = vrot.lane.b32.xlu0 %v13348_v2, %s9082_s21 }
  0x4b   :  { %471 = vrot.lane.b32.xlu1 %v13348_v2, %s9082_s21 }
  0x4e   :  { %588 = vrot.lane.b32.xlu0 %v13348_v2, %s9083_s0 }
  0x4f   :  { %7558 = vrot.lane.b32.xlu1 %v13348_v2, %s9083_s0 }
  0x52   :  { %7568 = vrot.lane.b32.xlu0 %v13348_v2, %s9084_s22 }
  0x53   :  { %7563 = vrot.lane.b32.xlu1 %v13348_v2, %s9083_s0 }
  0x74   :  { %v44_v33 = vpop.permute.xlu0 %43 }
  0x75   :  { %v60_v34 = vpop.permute.xlu1 %59  ;;  %47 = vst.msk [vmem:[#allocation2 + $0x8] sm:$0xf] %vm46_vm0, %v44_v33 }
  0x78   :  { %v51_v35 = vpop.permute.xlu0 %50 }
  0x79   :  { %v67_v36 = vpop.permute.xlu1 %66  ;;  %54 = vst.msk [vmem:[#allocation2 + $0x8] sm:$0xf] %vm53_vm1, %v51_v35 }
  0x7a   :  { %56 = vst.msk [vmem:[#allocation2 + $0x10] sm:$0xf] %vm55_vm2, %v51_v35 }
  0x7b   :  { %63 = vst.msk [vmem:[#allocation2 + $0x10] sm:$0xf] %vm62_vm3, %v60_v34 }
  0x7c   :  { %70 = vst.msk [vmem:[#allocation2 + $0x10] sm:$0xf] %vm69_vm4, %v67_v36  ;;  %v74_v37 = vpop.permute.xlu0 %73 }
  0x7d   :  { %v81_v38 = vpop.permute.xlu1 %80  ;;  %77 = vst.msk [vmem:[#allocation2 + $0x10] sm:$0xf] %vm76_vm5, %v74_v37 }
  0x7e   :  { %84 = vst.msk [vmem:[#allocation2 + $0x10] sm:$0xf] %vm83_vm6, %v81_v38 }
  0x80   :  { %v88_v39 = vpop.permute.xlu0 %87  ;;  %v9309_v41 = vld [vmem:[#allocation2 + $0x8] sm:$0xff] }
  0x81   :  { %v95_v40 = vpop.permute.xlu1 %94  ;;  %91 = vst.msk [vmem:[#allocation2 + $0x18] sm:$0xf] %vm90_vm7, %v88_v39  ;;  %v9314_v42 = vpack.i.bf16 %v9309_v41, %v13348_v2 }
  0x82   :  { %98 = vst.msk [vmem:[#allocation2 + $0x18] sm:$0xf] %vm13340_vm8, %v95_v40  ;;  %vm155_vm8 = vcmask 347352  }
  0x83   :  { %7583 = vrot.lane.b32.xlu1 %v9314_v42, %s9082_s21  ;;  %7573 = vrot.lane.b32.xlu0 %v9314_v42, %s9081_s12 }
  0x84   :  { %v102_v43 = vpop.permute.xlu0 %101 }
  0x85   :  { %v109_v44 = vpop.permute.xlu1 %108  ;;  %105 = vst.msk [vmem:[#allocation2 + $0x18] sm:$0xf] %vm13339_vm9, %v102_v43  ;;  %vm148_vm9 = vcmask 101376   ;;  %v9359_v5 = vld [vmem:[#allocation2 + $0x10] sm:$0xff] }
  0x86   :  { %112 = vst.msk [vmem:[#allocation2 + $0x18] sm:$0xf] %vm111_vm10, %v109_v44 }
  0x88   :  { %v116_v45 = vpop.permute.xlu0 %115 }
  0x89   :  { %v123_v46 = vpop.permute.xlu1 %122  ;;  %119 = vst.msk [vmem:[#allocation2 + $0x20] sm:$0xf] %vm118_vm11, %v116_v45 }
  0x8a   :  { %126 = vst.msk [vmem:[#allocation2 + $0x20] sm:$0xf] %vm125_vm12, %v123_v46 }
  0x8c   :  { %v130_v47 = vpop.permute.xlu0 %129 }
  0x8d   :  { %v137_v48 = vpop.permute.xlu1 %136  ;;  %133 = vst.msk [vmem:[#allocation2 + $0x20] sm:$0xf] %vm132_vm13, %v130_v47  ;;  %v9352_v63 = vld [vmem:[#allocation2 + $0x18] sm:$0xff] }
  0x8e   :  { %140 = vst.msk [vmem:[#allocation2 + $0x20] sm:$0xf] %vm139_vm14, %v137_v48  ;;  %v9364_v6 = vpack.i.bf16 %v9352_v63, %v9359_v5 }
  0x90   :  { %v144_v49 = vpop.permute.xlu0 %143 }
  0x91   :  { %v153_v50 = vpop.permute.xlu1 %152  ;;  %147 = vst.msk [vmem:[#allocation2 + $0x20] sm:$0xf] %vm146_vm15, %v144_v49 }
  0x92   :  { %149 = vst.msk [vmem:[#allocation2 + $0x28] sm:$0xf] %vm148_vm9, %v144_v49 }
  0x93   :  { %156 = vst.msk [vmem:[#allocation2 + $0x28] sm:$0xf] %vm155_vm8, %v153_v50 }
  0x94   :  { %v161_v51 = vpop.permute.xlu0 %160 }
  0x95   :  { %v167_v52 = vpop.permute.xlu1 %166  ;;  %163 = vst.msk [vmem:[#allocation2 + $0x48] sm:$0xf] %vm46_vm0, %v161_v51  ;;  %vm13641_vm0 = vcmask 478552  }
  0x96   :  { %170 = vst.msk [vmem:[#allocation2 + $0x50] sm:$0xf] %vm55_vm2, %v167_v52  ;;  %vm356_vm2 = vcmask 1039360  }
  0x97   :  { %169 = vst.msk [vmem:[#allocation2 + $0x48] sm:$0xf] %vm53_vm1, %v167_v52  ;;  %vm13642_vm1 = vcmask 724552  }
  0x98   :  { %v174_v53 = vpop.permute.xlu0 %173  ;;  %v292_v0 = vld [vmem:[#allocation2 + $0x20] sm:$0xff] }
  0x99   :  { %v180_v54 = vpop.permute.xlu1 %179  ;;  %176 = vst.msk [vmem:[#allocation2 + $0x50] sm:$0xf] %vm62_vm3, %v174_v53  ;;  %vm473_vm3 = vcmask 1031168  }
  0x9a   :  { %182 = vst.msk [vmem:[#allocation2 + $0x50] sm:$0xf] %vm69_vm4, %v180_v54  ;;  %v293_v1 = vld [vmem:[#allocation2 + $0x28] sm:$0xff]  ;;  %vm590_vm4 = vcmask 1022976  }
  0x9b   :  { %v9366_v7 = vpack.i.bf16 %v293_v1, %v292_v0 }
  0x9c   :  { %v186_v55 = vpop.permute.xlu0 %185 }
  0x9d   :  { %v192_v56 = vpop.permute.xlu1 %191  ;;  %188 = vst.msk [vmem:[#allocation2 + $0x50] sm:$0xf] %vm76_vm5, %v186_v55  ;;  %vm13629_vm5 = vcmask 801792  }
  0x9e   :  { %v414_v57 = vld [vmem:[#allocation2 + $0x48] sm:$0xff]  ;;  %194 = vst.msk [vmem:[#allocation2 + $0x50] sm:$0xf] %vm83_vm6, %v192_v56  ;;  %vm13517_vm6 = vcmask 793600  }
  0x9f   :  { %v9338_v58 = vpack.i.bf16 %v414_v57, %v13348_v2 }
  0xa0   :  { %v198_v59 = vpop.permute.xlu0 %197 }
  0xa1   :  { %7588 = vrot.lane.b32.xlu1 %v9338_v58, %s9082_s21  ;;  %7578 = vrot.lane.b32.xlu0 %v9338_v58, %s9081_s12  ;;  %v204_v60 = vpop.permute.xlu1 %203  ;;  %200 = vst.msk [vmem:[#allocation2 + $0x58] sm:$0xf] %vm90_vm7, %v198_v59  ;;  %vm13514_vm7 = vcmask 785408  }
  0xa2   :  { %206 = vst.msk [vmem:[#allocation2 + $0x58] sm:$0xf] %vm13641_vm0, %v204_v60  ;;  %vm13439_vm0 = vcmask 285696  }
  0xa4   :  { %v210_v61 = vpop.permute.xlu0 %209 }
  0xa5   :  { %7603 = vrot.lane.b32.xlu1 %v9314_v42, %s9084_s22  ;;  %7593 = vrot.lane.b32.xlu0 %v9314_v42, %s9083_s0  ;;  %v216_v62 = vpop.permute.xlu1 %215  ;;  %212 = vst.msk [vmem:[#allocation2 + $0x58] sm:$0xf] %vm13642_vm1, %v210_v61  ;;  %v298_v10 = vld [vmem:[#allocation2 + $0x50] sm:$0xff]  ;;  %vm3454_vm1 = vcmask 1014784  }
  0xa6   :  { %218 = vst.msk [vmem:[#allocation2 + $0x58] sm:$0xf] %vm111_vm10, %v216_v62  ;;  %vm1292_vm10 = vcmask 547840  }
  0xa8   :  { %v222_v3 = vpop.permute.xlu0 %221 }
  0xa9   :  { %7608 = vrot.lane.b32.xlu1 %v9338_v58, %s9084_s22  ;;  %7598 = vrot.lane.b32.xlu0 %v9338_v58, %s9083_s0  ;;  %v228_v4 = vpop.permute.xlu1 %227  ;;  %224 = vst.msk [vmem:[#allocation2 + $0x60] sm:$0xf] %vm118_vm11, %v222_v3  ;;  %vm13520_vm11 = vcmask 539648  }
  0xaa   :  { %230 = vst.msk [vmem:[#allocation2 + $0x60] sm:$0xf] %vm125_vm12, %v228_v4  ;;  %vm13519_vm12 = vcmask 531456  }
  0xac   :  { %v234_v8 = vpop.permute.xlu0 %233 }
  0xad   :  { %7613 = vrot.lane.b32.xlu1 %v9364_v6, %s9081_s12  ;;  %7618 = vrot.lane.b32.xlu0 %v9366_v7, %s9081_s12  ;;  %v240_v9 = vpop.permute.xlu1 %239  ;;  %236 = vst.msk [vmem:[#allocation2 + $0x60] sm:$0xf] %vm132_vm13, %v234_v8  ;;  %v299_v11 = vld [vmem:[#allocation2 + $0x58] sm:$0xff]  ;;  %vm1643_vm13 = vcmask 310272  }
  0xae   :  { %242 = vst.msk [vmem:[#allocation2 + $0x60] sm:$0xf] %vm139_vm14, %v240_v9  ;;  %v9374_v12 = vpack.i.bf16 %v299_v11, %v298_v10  ;;  %vm1760_vm14 = vcmask 302080  }
  0xb0   :  { %v246_v13 = vpop.permute.xlu0 %245 }
  0xb1   :  { %7623 = vrot.lane.b32.xlu1 %v9374_v12, %s9081_s12  ;;  %v253_v14 = vpop.permute.xlu1 %252  ;;  %248 = vst.msk [vmem:[#allocation2 + $0x60] sm:$0xf] %vm146_vm15, %v246_v13  ;;  %vm1877_vm15 = vcmask 293888  }
  0xb2   :  { %249 = vst.msk [vmem:[#allocation2 + $0x68] sm:$0xf] %vm148_vm9, %v246_v13  ;;  %vm1175_vm9 = vcmask 556032  }
  0xb3   :  { %255 = vst.msk [vmem:[#allocation2 + $0x68] sm:$0xf] %vm155_vm8, %v253_v14  ;;  %vm13502_vm8 = vcmask 777216  }
  0xb4   :  { %v9439_v19 = vpop.permute.xlu0 %354 }
  0xb5   :  { %7638 = vrot.lane.b32.xlu1 %v9366_v7, %s9082_s21  ;;  %v9437_v18 = vpop.permute.xlu1 %7538 }
  0xb8   :  { %v417_v15 = vld [vmem:[#allocation2 + $0x60] sm:$0xff]  ;;  %v9451_v21 = vpop.permute.xlu0 %7548 }
  0xb9   :  { %v9449_v20 = vpop.permute.xlu1 %7543 }
  0xba   :  { %v418_v16 = vld [vmem:[#allocation2 + $0x68] sm:$0xff] }
  0xbb   :  { %v9383_v17 = vpack.i.bf16 %v418_v16, %v417_v15 }
  0xbc   :  { %v9459_v23 = vpop.permute.xlu0 %7553 }
  0xbd   :  { %7648 = vrot.lane.b32.xlu1 %v9383_v17, %s9082_s21  ;;  %7628 = vrot.lane.b32.xlu0 %v9383_v17, %s9081_s12  ;;  %v9457_v22 = vpop.permute.xlu1 %471  ;;  %13643 = vst [vmem:[#allocation6_spill] sm:$0xff] %v9459_v23 }
  0xc0   :  { %v9471_v25 = vpop.permute.xlu0 %588 }
  0xc1   :  { %7653 = vrot.lane.b32.xlu1 %v9364_v6, %s9083_s0  ;;  %7633 = vrot.lane.b32.xlu0 %v9364_v6, %s9082_s21  ;;  %v9469_v24 = vpop.permute.xlu1 %7558  ;;  %13644 = vst [vmem:[#allocation7_spill] sm:$0xff] %v9471_v25 }
  0xc4   :  { %v9479_v27 = vpop.permute.xlu0 %7568 }
  0xc5   :  { %7663 = vrot.lane.b32.xlu1 %v9374_v12, %s9083_s0  ;;  %7643 = vrot.lane.b32.xlu0 %v9374_v12, %s9082_s21  ;;  %v9477_v26 = vpop.permute.xlu1 %7563 }
  0xc6   :  { %13645 = vst [vmem:[#allocation8_spill] sm:$0xff] %v9477_v26 }
  0xc9   :  { %7678 = vrot.lane.b32.xlu1 %v9366_v7, %s9084_s22  ;;  %7658 = vrot.lane.b32.xlu0 %v9366_v7, %s9083_s0 }
  0xcd   :  { %7693 = vrot.lane.b32.xlu1 %v9383_v17, %s9084_s22  ;;  %7668 = vrot.lane.b32.xlu0 %v9383_v17, %s9083_s0 }
  0xd1   :  { %705 = vrot.lane.b32.xlu1 %v13348_v2, %s9084_s22  ;;  %7673 = vrot.lane.b32.xlu0 %v9364_v6, %s9084_s22 }
  0xd5   :  { %7703 = vrot.lane.b32.xlu1 %v9364_v6, %s9085_s9  ;;  %7683 = vrot.lane.b32.xlu0 %v9374_v12, %s9084_s22 }
  0xd9   :  { %7713 = vrot.lane.b32.xlu1 %v13348_v2, %s9085_s9  ;;  %7688 = vrot.lane.b32.xlu0 %v13348_v2, %s9084_s22 }
  0xdd   :  { %7723 = vrot.lane.b32.xlu1 %v9374_v12, %s9085_s9  ;;  %7698 = vrot.lane.b32.xlu0 %v9314_v42, %s9085_s9 }
  0xe1   :  { %7733 = vrot.lane.b32.xlu1 %v13348_v2, %s9085_s9  ;;  %7708 = vrot.lane.b32.xlu0 %v9366_v7, %s9085_s9 }
  0xe5   :  { %7738 = vrot.lane.b32.xlu1 %v9314_v42, %s9086_s10  ;;  %7718 = vrot.lane.b32.xlu0 %v9338_v58, %s9085_s9 }
  0xe9   :  { %7748 = vrot.lane.b32.xlu1 %v9366_v7, %s9086_s10  ;;  %7728 = vrot.lane.b32.xlu0 %v9383_v17, %s9085_s9 }
  0xed   :  { %7758 = vrot.lane.b32.xlu1 %v9338_v58, %s9086_s10  ;;  %822 = vrot.lane.b32.xlu0 %v13348_v2, %s9085_s9 }
  0xf1   :  { %7768 = vrot.lane.b32.xlu1 %v9383_v17, %s9086_s10  ;;  %7743 = vrot.lane.b32.xlu0 %v9364_v6, %s9086_s10 }
  0xf5   :  { %939 = vrot.lane.b32.xlu1 %v13348_v2, %s9086_s10  ;;  %7753 = vrot.lane.b32.xlu0 %v13348_v2, %s9086_s10  ;;  %v9489_v28 = vpop.permute.xlu1 %7583  ;;  %v7574_v29 = vpop.permute.xlu0 %7573 }
  0xf6   :  { %v7576_v36 = vunpack.i.h.bf16 %v7574_v29  ;;  %v7575_v37 = vunpack.i.l.bf16 %v7574_v29  ;;  %v7586_v61 = vunpack.i.h.bf16 %v9489_v28 }
  0xf8   :  { %v357_v47 = vsel %vm356_vm2, %v7575_v37, %v7576_v36 }
  0xf9   :  { %7783 = vrot.lane.b32.xlu1 %v9364_v6, %s9087_s18  ;;  %7763 = vrot.lane.b32.xlu0 %v9374_v12, %s9086_s10  ;;  %v6857_v53 = vpack.c.bf16 %v357_v47, %v13348_v2 }
  0xfd   :  { %7793 = vrot.lane.b32.xlu1 %v13348_v2, %s9087_s18  ;;  %7773 = vrot.lane.b32.xlu0 %v13348_v2, %s9086_s10 }
 0x101   :  { %7803 = vrot.lane.b32.xlu1 %v9374_v12, %s9087_s18  ;;  %7778 = vrot.lane.b32.xlu0 %v9314_v42, %s9087_s18 }
 0x105   :  { %7813 = vrot.lane.b32.xlu1 %v13348_v2, %s9087_s18  ;;  %7788 = vrot.lane.b32.xlu0 %v9366_v7, %s9087_s18 }
 0x109   :  { %7818 = vrot.lane.b32.xlu1 %v9314_v42, %s9088_s23  ;;  %7798 = vrot.lane.b32.xlu0 %v9338_v58, %s9087_s18 }
 0x10d   :  { %7828 = vrot.lane.b32.xlu1 %v9366_v7, %s9088_s23  ;;  %7808 = vrot.lane.b32.xlu0 %v9383_v17, %s9087_s18 }
 0x111   :  { %7838 = vrot.lane.b32.xlu1 %v9338_v58, %s9088_s23  ;;  %1056 = vrot.lane.b32.xlu0 %v13348_v2, %s9087_s18 }
 0x113   :  { %v9495_v30 = vpop.permute.xlu1 %7588  ;;  %v9497_v31 = vpop.permute.xlu0 %7578 }
 0x114   :  { %13646 = vst [vmem:[#allocation9_spill] sm:$0xff] %v9495_v30 }
 0x115   :  { %7848 = vrot.lane.b32.xlu1 %v9383_v17, %s9088_s23  ;;  %7823 = vrot.lane.b32.xlu0 %v9364_v6, %s9088_s23 }
 0x117   :  { %v9503_v32 = vpop.permute.xlu1 %7603  ;;  %v7594_v33 = vpop.permute.xlu0 %7593 }
 0x118   :  { %v7596_v56 = vunpack.i.h.bf16 %v7594_v33  ;;  %v7595_v57 = vunpack.i.l.bf16 %v7594_v33 }
 0x119   :  { %1173 = vrot.lane.b32.xlu1 %v13348_v2, %s9088_s23  ;;  %7833 = vrot.lane.b32.xlu0 %v13348_v2, %s9088_s23 }
 0x11a   :  { %v591_v3 = vsel %vm590_vm4, %v7595_v57, %v7596_v56 }
 0x11b   :  { %v9509_v34 = vpop.permute.xlu1 %7608  ;;  %v9511_v35 = vpop.permute.xlu0 %7598 }
 0x11c   :  { %13647 = vst [vmem:[#allocation10_spill] sm:$0xff] %v9509_v34  ;;  %13648 = vst [vmem:[#allocation11_spill] sm:$0xff] %v9511_v35 }
 0x11d   :  { %7863 = vrot.lane.b32.xlu1 %v9364_v6, %s9089_s26  ;;  %7843 = vrot.lane.b32.xlu0 %v9374_v12, %s9088_s23 }
 0x11f   :  { %v7614_v38 = vpop.permute.xlu1 %7613  ;;  %v9517_v39 = vpop.permute.xlu0 %7618 }
 0x120   :  { %v7616_v40 = vunpack.i.h.bf16 %v7614_v38  ;;  %v7615_v43 = vunpack.i.l.bf16 %v7614_v38  ;;  %v13345_v44 = vunpack.i.l.bf16 %v9517_v39 }
 0x121   :  { %7873 = vrot.lane.b32.xlu1 %v13348_v2, %s9089_s26  ;;  %7853 = vrot.lane.b32.xlu0 %v13348_v2, %s9088_s23 }
 0x122   :  { %v358_v45 = vsel %vm356_vm2, %v7576_v36, %v7615_v43  ;;  %v360_v46 = vsel %vm356_vm2, %v7616_v40, %v13345_v44  ;;  %v359_v48 = vsel %vm356_vm2, %v7615_v43, %v7616_v40 }
 0x123   :  { %v6855_v49 = vpack.c.bf16 %v358_v45, %v9309_v41  ;;  %v6887_v50 = vpack.c.bf16 %v360_v46, %v9352_v63  ;;  %v6889_v51 = vpack.c.bf16 %v359_v48, %v9359_v5  ;;  %v9533_v52 = vpop.permute.xlu1 %7623 }
 0x125   :  { %7883 = vrot.lane.b32.xlu1 %v9374_v12, %s9089_s26  ;;  %7858 = vrot.lane.b32.xlu0 %v9314_v42, %s9089_s26 }
 0x126   :  { %6856 = vmatprep.subr.bf16.mxu0 %v6855_v49  ;;  %6888 = vmatprep.subr.bf16.mxu1 %v6887_v50 }
 0x127   :  { %6858 = vmatpush1.bf16.msra.mxu0 %v6857_v53  ;;  %6890 = vmatpush1.bf16.msra.mxu1 %v6889_v51  ;;  %v9544_v41 = vpop.permute.xlu1 %7638  ;;  %v1459_v53 = vld [vmem:[#allocation2 + $0x8] sm:$0xff] }
 0x128   :  { %v13343_v10 = vunpack.i.h.bf16 %v9544_v41 }
 0x129   :  { %7893 = vrot.lane.b32.xlu1 %v13348_v2, %s9089_s26  ;;  %7868 = vrot.lane.b32.xlu0 %v9366_v7, %s9089_s26 }
 0x12d   :  { %7898 = vrot.lane.b32.xlu1 %v9314_v42, %s9090_s8  ;;  %7878 = vrot.lane.b32.xlu0 %v9338_v58, %s9089_s26  ;;  %v7585_v42 = vunpack.i.l.bf16 %v9489_v28 }
 0x12f   :  { %v9550_v54 = vpop.permute.xlu1 %7648  ;;  %v9552_v55 = vpop.permute.xlu0 %7628  ;;  %v474_v9 = vsel %vm473_vm3, %v7585_v42, %v7586_v61  ;;  %v7606_v42 = vunpack.i.h.bf16 %v9503_v32 }
 0x130   :  { %13649 = vst [vmem:[#allocation12_spill] sm:$0xff] %v9550_v54  ;;  %v6861_v13 = vpack.c.bf16 %v591_v3, %v474_v9 }
 0x131   :  { %7908 = vrot.lane.b32.xlu1 %v9366_v7, %s9090_s8  ;;  %7888 = vrot.lane.b32.xlu0 %v9383_v17, %s9089_s26 }
 0x133   :  { %v7654_v59 = vpop.permute.xlu1 %7653  ;;  %v7634_v60 = vpop.permute.xlu0 %7633 }
 0x134   :  { %v7655_v62 = vunpack.i.l.bf16 %v7654_v59  ;;  %v7635_v63 = vunpack.i.l.bf16 %v7634_v60  ;;  %v7636_v11 = vunpack.i.h.bf16 %v7634_v60  ;;  %v7656_v14 = vunpack.i.h.bf16 %v7654_v59 }
 0x135   :  { %7918 = vrot.lane.b32.xlu1 %v9338_v58, %s9090_s8  ;;  %1290 = vrot.lane.b32.xlu0 %v13348_v2, %s9089_s26  ;;  %v7640_v58 = vunpack.i.l.bf16 %v9544_v41 }
 0x136   :  { %v475_v0 = vsel %vm473_vm3, %v7586_v61, %v7635_v63  ;;  %v592_v1 = vsel %vm590_vm4, %v7596_v56, %v7655_v62  ;;  %v476_v40 = vsel %vm473_vm3, %v7635_v63, %v7636_v11  ;;  %v593_v43 = vsel %vm590_vm4, %v7655_v62, %v7656_v14  ;;  %v1467_v61 = vld [vmem:[#allocation2 + $0x48] sm:$0xff] }
 0x137   :  { %v9567_v4 = vpop.permute.xlu1 %7663  ;;  %v9569_v5 = vpop.permute.xlu0 %7643  ;;  %v6859_v8 = vpack.c.bf16 %v592_v1, %v475_v0  ;;  %v9587_v33 = vsel %vm473_vm3, %v7640_v58, %v13343_v10  ;;  %v477_v36 = vsel %vm473_vm3, %v7636_v11, %v7640_v58  ;;  %v6893_v49 = vpack.c.bf16 %v593_v43, %v476_v40 }
 0x138   :  { %v7605_v62 = vunpack.i.l.bf16 %v9503_v32  ;;  %v9640_v1 = vpack.i.bf16 %v1467_v61, %v13348_v2 }
 0x139   :  { %7928 = vrot.lane.b32.xlu1 %v9383_v17, %s9090_s8  ;;  %7903 = vrot.lane.b32.xlu0 %v9364_v6, %s9090_s8 }
 0x13a   :  { %6860 = vmatprep.subr.bf16.mxu0 %v6859_v8 }
 0x13b   :  { %6862 = vmatpush1.bf16.msra.mxu0 %v6861_v13  ;;  %v9578_v15 = vpop.permute.xlu1 %7678  ;;  %v9580_v16 = vpop.permute.xlu0 %7658  ;;  %v708_v13 = vsel %vm13629_vm5, %v7605_v62, %v7606_v42 }
 0x13c   :  { %v13344_v28 = vunpack.i.h.bf16 %v9580_v16  ;;  %v7660_v29 = vunpack.i.l.bf16 %v9580_v16  ;;  %v13341_v32 = vunpack.i.h.bf16 %v9578_v15  ;;  %v7680_v58 = vunpack.i.l.bf16 %v9578_v15 }
 0x13d   :  { %1407 = vrot.lane.b32.xlu1 %v13348_v2, %s9090_s8  ;;  %7913 = vrot.lane.b32.xlu0 %v13348_v2, %s9090_s8 }
 0x13e   :  { %v9597_v37 = vsel %vm590_vm4, %v7660_v29, %v13344_v28  ;;  %v594_v38 = vsel %vm590_vm4, %v7656_v14, %v7660_v29 }
 0x13f   :  { %v9602_v45 = vpop.permute.xlu1 %7693  ;;  %v9604_v46 = vpop.permute.xlu0 %7668  ;;  %v6891_v47 = vpack.c.bf16 %v594_v38, %v477_v36 }
 0x140   :  { %13650 = vst [vmem:[#allocation13_spill] sm:$0xff] %v9602_v45  ;;  %13651 = vst [vmem:[#allocation14_spill] sm:$0xff] %v9604_v46 }
 0x141   :  { %7943 = vrot.lane.b32.xlu1 %v9364_v6, %s9091_s24  ;;  %7923 = vrot.lane.b32.xlu0 %v9374_v12, %s9090_s8  ;;  %v9621_v6 = vpack.i.bf16 %v1459_v53, %v13348_v2 }
 0x142   :  { %6892 = vmatprep.subr.bf16.mxu1 %v6891_v47 }
 0x143   :  { %6894 = vmatpush1.bf16.msra.mxu1 %v6893_v49  ;;  %v9612_v50 = vpop.permute.xlu1 %705  ;;  %v7674_v51 = vpop.permute.xlu0 %7673 }
 0x144   :  { %13652 = vst [vmem:[#allocation15_spill] sm:$0xff] %v9612_v50  ;;  %v7676_v11 = vunpack.i.h.bf16 %v7674_v51 }
 0x145   :  { %7953 = vrot.lane.b32.xlu1 %v13348_v2, %s9091_s24  ;;  %7933 = vrot.lane.b32.xlu0 %v13348_v2, %s9090_s8 }
 0x147   :  { %v7704_v56 = vpop.permute.xlu1 %7703  ;;  %v9618_v57 = vpop.permute.xlu0 %7683 }
 0x148   :  { %13653 = vst [vmem:[#allocation16_spill] sm:$0xff] %v9618_v57  ;;  %v7705_v3 = vunpack.i.l.bf16 %v7704_v56  ;;  %v7706_v14 = vunpack.i.h.bf16 %v7704_v56  ;;  %v9661_v56 = vsel %vm13629_vm5, %v7680_v58, %v13341_v32 }
 0x149   :  { %7963 = vrot.lane.b32.xlu1 %v9374_v12, %s9091_s24  ;;  %7938 = vrot.lane.b32.xlu0 %v9621_v6, %s9091_s24  ;;  %v7675_v12 = vunpack.i.l.bf16 %v7674_v51 }
 0x14b   :  { %v9627_v59 = vpop.permute.xlu1 %7713  ;;  %v9629_v60 = vpop.permute.xlu0 %7688  ;;  %v709_v29 = vsel %vm13629_vm5, %v7606_v42, %v7675_v12  ;;  %v711_v42 = vsel %vm13629_vm5, %v7676_v11, %v7680_v58  ;;  %v1577_v58 = vld [vmem:[#allocation2 + $0x10] sm:$0xff] }
 0x14c   :  { %13654 = vst [vmem:[#allocation17_spill] sm:$0xff] %v9629_v60 }
 0x14d   :  { %7973 = vrot.lane.b32.xlu1 %v13348_v2, %s9091_s24  ;;  %7948 = vrot.lane.b32.xlu0 %v9366_v7, %s9091_s24 }
 0x14f   :  { %v9637_v63 = vpop.permute.xlu1 %7723  ;;  %v7699_v0 = vpop.permute.xlu0 %7698 }
 0x150   :  { %13655 = vst [vmem:[#allocation18_spill] sm:$0xff] %v9637_v63  ;;  %v7701_v8 = vunpack.i.h.bf16 %v7699_v0  ;;  %v7700_v9 = vunpack.i.l.bf16 %v7699_v0  ;;  %v827_v0 = vsel %vm13517_vm6, %v7705_v3, %v7706_v14 }
 0x151   :  { %7978 = vrot.lane.b32.xlu1 %v9621_v6, %s9092_s29  ;;  %7958 = vrot.lane.b32.xlu0 %v9640_v1, %s9091_s24 }
 0x152   :  { %v826_v36 = vsel %vm13517_vm6, %v7701_v8, %v7705_v3  ;;  %v825_v38 = vsel %vm13517_vm6, %v7700_v9, %v7701_v8 }
 0x153   :  { %v9652_v40 = vpop.permute.xlu1 %7733  ;;  %v9654_v43 = vpop.permute.xlu0 %7708  ;;  %v6863_v47 = vpack.c.bf16 %v826_v36, %v709_v29  ;;  %v6865_v49 = vpack.c.bf16 %v825_v38, %v708_v13  ;;  %v710_v13 = vsel %vm13629_vm5, %v7675_v12, %v7676_v11  ;;  %v1587_v29 = vld [vmem:[#allocation2 + $0x60] sm:$0xff]  ;;  %v1588_v36 = vld [vmem:[#allocation2 + $0x68] sm:$0xff]  ;;  %v1578_v38 = vld [vmem:[#allocation2 + $0x18] sm:$0xff] }
 0x154   :  { %13656 = vst [vmem:[#allocation19_spill] sm:$0xff] %v9652_v40  ;;  %v13342_v51 = vunpack.i.h.bf16 %v9654_v43  ;;  %v7710_v53 = vunpack.i.l.bf16 %v9654_v43  ;;  %v6897_v3 = vpack.c.bf16 %v827_v0, %v710_v13  ;;  %v9692_v12 = vpack.i.bf16 %v1578_v38, %v1577_v58  ;;  %v9724_v58 = vld [vmem:[#allocation2 + $0x20] sm:$0xff] }
 0x155   :  { %7988 = vrot.lane.b32.xlu1 %v9366_v7, %s9092_s29  ;;  %7968 = vrot.lane.b32.xlu0 %v9383_v17, %s9091_s24 }
 0x156   :  { %v9670_v61 = vsel %vm13517_vm6, %v7710_v53, %v13342_v51  ;;  %6864 = vmatprep.subr.bf16.mxu0 %v6863_v47  ;;  %v828_v62 = vsel %vm13517_vm6, %v7706_v14, %v7710_v53 }
 0x157   :  { %6866 = vmatpush1.bf16.msra.mxu0 %v6865_v49  ;;  %v9675_v8 = vpop.permute.xlu1 %7738  ;;  %v9677_v9 = vpop.permute.xlu0 %7718  ;;  %v6895_v7 = vpack.c.bf16 %v828_v62, %v711_v42  ;;  %v9690_v49 = vpack.i.bf16 %v1588_v36, %v1587_v29  ;;  %v1586_v42 = vld [vmem:[#allocation2 + $0x58] sm:$0xff]  ;;  %v1585_v62 = vld [vmem:[#allocation2 + $0x50] sm:$0xff] }
 0x158   :  { %v9708_v13 = vpack.i.bf16 %v1586_v42, %v1585_v62  ;;  %v9726_v42 = vld [vmem:[#allocation2 + $0x28] sm:$0xff]  ;;  %v7741_v32 = vunpack.i.h.bf16 %v9675_v8  ;;  %v7740_v51 = vunpack.i.l.bf16 %v9675_v8 }
 0x159   :  { %7998 = vrot.lane.b32.xlu1 %v9640_v1, %s9092_s29  ;;  %1524 = vrot.lane.b32.xlu0 %v13348_v2, %s9091_s24  ;;  %v9738_v48 = vpack.i.bf16 %v9726_v42, %v9724_v58 }
 0x15a   :  { %6896 = vmatprep.subr.bf16.mxu1 %v6895_v7 }
 0x15b   :  { %6898 = vmatpush1.bf16.msra.mxu1 %v6897_v3  ;;  %v9686_v14 = vpop.permute.xlu1 %7748  ;;  %v9688_v47 = vpop.permute.xlu0 %7728 }
 0x15c   :  { %13657 = vst [vmem:[#allocation20_spill] sm:$0xff] %v9688_v47  ;;  %v7750_v60 = vunpack.i.l.bf16 %v9686_v14  ;;  %v13665_v57 = vunpack.i.h.bf16 %v9686_v14 }
 0x15d   :  { %8008 = vrot.lane.b32.xlu1 %v9690_v49, %s9092_s29  ;;  %7983 = vrot.lane.b32.xlu0 %v9692_v12, %s9092_s29 }
 0x15f   :  { %v9698_v11 = vpop.permute.xlu1 %7758  ;;  %v9700_v53 = vpop.permute.xlu0 %822 }
 0x160   :  { %13658 = vst [vmem:[#allocation21_spill] sm:$0xff] %v9700_v53 }
 0x161   :  { %1641 = vrot.lane.b32.xlu1 %v13348_v2, %s9092_s29  ;;  %7993 = vrot.lane.b32.xlu0 %v13348_v2, %s9092_s29 }
 0x163   :  { %v9706_v0 = vpop.permute.xlu1 %7768  ;;  %v7744_v7 = vpop.permute.xlu0 %7743 }
 0x164   :  { %13659 = vst [vmem:[#allocation22_spill] sm:$0xff] %v9706_v0  ;;  %v7745_v10 = vunpack.i.l.bf16 %v7744_v7  ;;  %v7746_v8 = vunpack.i.h.bf16 %v7744_v7 }
 0x165   :  { %8023 = vrot.lane.b32.xlu1 %v9692_v12, %s9093_s13  ;;  %8003 = vrot.lane.b32.xlu0 %v9708_v13, %s9092_s29 }
 0x166   :  { %v943_v25 = vsel %vm13514_vm7, %v7741_v32, %v7745_v10 }
 0x167   :  { %v9714_v29 = vpop.permute.xlu1 %939  ;;  %v9716_v36 = vpop.permute.xlu0 %7753 }
 0x168   :  { %13660 = vst [vmem:[#allocation23_spill] sm:$0xff] %v9714_v29 }
 0x169   :  { %8033 = vrot.lane.b32.xlu1 %v13348_v2, %s9093_s13  ;;  %8013 = vrot.lane.b32.xlu0 %v13348_v2, %s9092_s29 }
 0x16b   :  { %v7784_v38 = vpop.permute.xlu1 %7783  ;;  %v9722_v3 = vpop.permute.xlu0 %7763 }
 0x16c   :  { %13661 = vst [vmem:[#allocation24_spill] sm:$0xff] %v9722_v3  ;;  %v7785_v29 = vunpack.i.l.bf16 %v7784_v38  ;;  %v7786_v40 = vunpack.i.h.bf16 %v7784_v38 }
 0x16d   :  { %8043 = vrot.lane.b32.xlu1 %v9708_v13, %s9093_s13  ;;  %8018 = vrot.lane.b32.xlu0 %v9621_v6, %s9093_s13 }
 0x16f   :  { %v9732_v62 = vpop.permute.xlu1 %7793  ;;  %v9734_v17 = vpop.permute.xlu0 %7773 }
 0x170   :  { %13662 = vst [vmem:[#allocation25_spill] sm:$0xff] %v9734_v17 }
 0x171   :  { %8053 = vrot.lane.b32.xlu1 %v13348_v2, %s9093_s13  ;;  %8028 = vrot.lane.b32.xlu0 %v9738_v48, %s9093_s13  ;;  %v942_v2 = vsel %vm13514_vm7, %v7740_v51, %v7741_v32  ;;  %v9767_v51 = vsel %vm13514_vm7, %v7750_v60, %v13665_v57  ;;  %v1061_v32 = vsel %vm13502_vm8, %v7785_v29, %v7786_v40 }
 0x172   :  { %13666 = vst [vmem:[#allocation28_spill] sm:$0xff] %v9767_v51 }
 0x173   :  { %v9746_v28 = vpop.permute.xlu1 %7803  ;;  %v7779_v44 = vpop.permute.xlu0 %7778 }
 0x174   :  { %13663 = vst [vmem:[#allocation26_spill] sm:$0xff] %v9746_v28  ;;  %v7781_v50 = vunpack.i.h.bf16 %v7779_v44  ;;  %v7780_v17 = vunpack.i.l.bf16 %v7779_v44 }
 0x175   :  { %8058 = vrot.lane.b32.xlu1 %v9621_v6, %s9094_s14  ;;  %8038 = vrot.lane.b32.xlu0 %v9640_v1, %s9093_s13 }
 0x176   :  { %v1060_v0 = vsel %vm13502_vm8, %v7781_v50, %v7785_v29  ;;  %v1059_v44 = vsel %vm13502_vm8, %v7780_v17, %v7781_v50  ;;  %v13672_v29 = vmov 0.0  }
 0x177   :  { %v9758_v53 = vpop.permute.xlu1 %7813  ;;  %v9760_v3 = vpop.permute.xlu0 %7788  ;;  %v6867_v7 = vpack.c.bf16 %v1060_v0, %v943_v25  ;;  %v6869_v28 = vpack.c.bf16 %v1059_v44, %v942_v2  ;;  %v945_v2 = vsel %vm13514_vm7, %v7746_v8, %v7750_v60  ;;  %v944_v44 = vsel %vm13514_vm7, %v7745_v10, %v7746_v8 }
 0x178   :  { %13664 = vst [vmem:[#allocation27_spill] sm:$0xff] %v9758_v53  ;;  %v13357_v45 = vunpack.i.h.bf16 %v9760_v3  ;;  %v7790_v47 = vunpack.i.l.bf16 %v9760_v3  ;;  %v6901_v60 = vpack.c.bf16 %v1061_v32, %v944_v44 }
 0x179   :  { %8068 = vrot.lane.b32.xlu1 %v9738_v48, %s9094_s14  ;;  %8048 = vrot.lane.b32.xlu0 %v9690_v49, %s9093_s13 }
 0x17a   :  { %v9776_v25 = vsel %vm13502_vm8, %v7790_v47, %v13357_v45  ;;  %6868 = vmatprep.subr.bf16.mxu0 %v6867_v7  ;;  %v1062_v50 = vsel %vm13502_vm8, %v7786_v40, %v7790_v47  ;;  %v9788_v7 = vld [vmem:[#allocation2 + $0x30] sm:$0xff] }
 0x17b   :  { %13667 = vst [vmem:[#allocation29_spill] sm:$0xff] %v9776_v25  ;;  %6870 = vmatpush1.bf16.msra.mxu0 %v6869_v28  ;;  %v7819_v57 = vpop.permute.xlu1 %7818  ;;  %v9781_v17 = vpop.permute.xlu0 %7798  ;;  %v6899_v0 = vpack.c.bf16 %v1062_v50, %v945_v2 }
 0x17c   :  { %v7821_v38 = vunpack.i.h.bf16 %v7819_v57  ;;  %v7820_v45 = vunpack.i.l.bf16 %v7819_v57 }
 0x17d   :  { %8078 = vrot.lane.b32.xlu1 %v9640_v1, %s9094_s14  ;;  %1758 = vrot.lane.b32.xlu0 %v9788_v7, %s9093_s13 }
 0x17e   :  { %6900 = vmatprep.subr.bf16.mxu1 %v6899_v0 }
 0x17f   :  { %6902 = vmatpush1.bf16.msra.mxu1 %v6901_v60  ;;  %v9792_v28 = vpop.permute.xlu1 %7828  ;;  %v9794_v40 = vpop.permute.xlu0 %7808 }
 0x180   :  { %13668 = vst [vmem:[#allocation30_spill] sm:$0xff] %v9792_v28  ;;  %13669 = vst [vmem:[#allocation31_spill] sm:$0xff] %v9794_v40 }
 0x181   :  { %8088 = vrot.lane.b32.xlu1 %v9690_v49, %s9094_s14  ;;  %8063 = vrot.lane.b32.xlu0 %v9692_v12, %s9094_s14 }
 0x183   :  { %v9800_v10 = vpop.permute.xlu1 %7838  ;;  %v9802_v47 = vpop.permute.xlu0 %1056 }
 0x184   :  { %13670 = vst [vmem:[#allocation32_spill] sm:$0xff] %v9800_v10  ;;  %13671 = vst [vmem:[#allocation33_spill] sm:$0xff] %v9802_v47 }
 0x185   :  { %1875 = vrot.lane.b32.xlu1 %v9788_v7, %s9094_s14  ;;  %8073 = vrot.lane.b32.xlu0 %v13672_v29, %s9094_s14 }
 0x187   :  { %v9808_v8 = vpop.permute.xlu1 %7848  ;;  %v7824_v2 = vpop.permute.xlu0 %7823 }
 0x188   :  { %13673 = vst [vmem:[#allocation34_spill] sm:$0xff] %v9808_v8 }
 0x189   :  { %8103 = vrot.lane.b32.xlu1 %v9692_v12, %s9095_s30  ;;  %8083 = vrot.lane.b32.xlu0 %v9708_v13, %s9094_s14 }
 0x18b   :  { %v9814_v50 = vpop.permute.xlu1 %1173  ;;  %v9816_v32 = vpop.permute.xlu0 %7833 }
 0x18c   :  { %13674 = vst [vmem:[#allocation35_spill] sm:$0xff] %v9814_v50  ;;  %v7825_v50 = vunpack.i.l.bf16 %v7824_v2 }
 0x18d   :  { %8113 = vrot.lane.b32.xlu1 %v13672_v29, %s9095_s30  ;;  %8093 = vrot.lane.b32.xlu0 %v13672_v29, %s9094_s14 }
 0x18e   :  { %v1177_v40 = vsel %vm1175_vm9, %v7821_v38, %v7825_v50 }
 0x18f   :  { %v7864_v0 = vpop.permute.xlu1 %7863  ;;  %v9822_v44 = vpop.permute.xlu0 %7843 }
 0x190   :  { %13675 = vst [vmem:[#allocation36_spill] sm:$0xff] %v9822_v44  ;;  %v7865_v53 = vunpack.i.l.bf16 %v7864_v0  ;;  %v7866_v57 = vunpack.i.h.bf16 %v7864_v0 }
 0x191   :  { %8123 = vrot.lane.b32.xlu1 %v9708_v13, %s9095_s30  ;;  %8098 = vrot.lane.b32.xlu0 %v9621_v6, %s9095_s30 }
 0x193   :  { %v9828_v12 = vpop.permute.xlu1 %7873  ;;  %v9830_v60 = vpop.permute.xlu0 %7853 }
 0x194   :  { %13676 = vst [vmem:[#allocation37_spill] sm:$0xff] %v9830_v60  ;;  %v7830_v60 = vunpack.i.l.bf16 %v9792_v28 }
 0x195   :  { %8133 = vrot.lane.b32.xlu1 %v13672_v29, %s9095_s30  ;;  %8108 = vrot.lane.b32.xlu0 %v9738_v48, %s9095_s30  ;;  %v1176_v29 = vsel %vm1175_vm9, %v7820_v45, %v7821_v38  ;;  %v7826_v48 = vunpack.i.h.bf16 %v7824_v2  ;;  %v1295_v45 = vsel %vm1292_vm10, %v7865_v53, %v7866_v57 }
 0x197   :  { %v9836_v47 = vpop.permute.xlu1 %7883  ;;  %v7859_v13 = vpop.permute.xlu0 %7858 }
 0x198   :  { %13677 = vst [vmem:[#allocation38_spill] sm:$0xff] %v9836_v47  ;;  %v7861_v6 = vunpack.i.h.bf16 %v7859_v13  ;;  %v7860_v8 = vunpack.i.l.bf16 %v7859_v13 }
 0x199   :  { %8118 = vrot.lane.b32.xlu0 %v9640_v1, %s9095_s30  ;;  %v13680_v1 = vunpack.i.h.bf16 %v9792_v28 }
 0x19a   :  { %v1294_v47 = vsel %vm1292_vm10, %v7861_v6, %v7865_v53  ;;  %v1293_v63 = vsel %vm1292_vm10, %v7860_v8, %v7861_v6  ;;  %v1178_v53 = vsel %vm1175_vm9, %v7825_v50, %v7826_v48 }
 0x19b   :  { %v9846_v46 = vpop.permute.xlu1 %7893  ;;  %v9848_v13 = vpop.permute.xlu0 %7868  ;;  %v6871_v44 = vpack.c.bf16 %v1294_v47, %v1177_v40  ;;  %v6873_v54 = vpack.c.bf16 %v1293_v63, %v1176_v29  ;;  %v9858_v38 = vsel %vm1175_vm9, %v7830_v60, %v13680_v1  ;;  %v1179_v63 = vsel %vm1175_vm9, %v7826_v48, %v7830_v60 }
 0x19c   :  { %13678 = vst [vmem:[#allocation39_spill] sm:$0xff] %v9846_v46  ;;  %13679 = vst [vmem:[#allocation40_spill] sm:$0xff] %v9848_v13  ;;  %v13368_v0 = vunpack.i.h.bf16 %v9848_v13  ;;  %v7870_v51 = vunpack.i.l.bf16 %v9848_v13  ;;  %v6905_v6 = vpack.c.bf16 %v1295_v45, %v1178_v53 }
 0x19d   :  { %8128 = vrot.lane.b32.xlu0 %v9690_v49, %s9095_s30  ;;  %6872 = vmatprep.subr.bf16.mxu0 %v6871_v44  ;;  %13681 = vst [vmem:[#allocation41_spill] sm:$0xff] %v9858_v38 }
 0x19e   :  { %v9863_v40 = vsel %vm1292_vm10, %v7870_v51, %v13368_v0  ;;  %6874 = vmatpush1.bf16.msra.mxu0 %v6873_v54  ;;  %v1296_v47 = vsel %vm1292_vm10, %v7866_v57, %v7870_v51 }
 0x19f   :  { %13682 = vst [vmem:[#allocation42_spill] sm:$0xff] %v9863_v40  ;;  %v7899_v8 = vpop.permute.xlu1 %7898  ;;  %v9867_v49 = vpop.permute.xlu0 %7878  ;;  %v6903_v2 = vpack.c.bf16 %v1296_v47, %v1179_v63 }
 0x1a0   :  { %v7901_v53 = vunpack.i.h.bf16 %v7899_v8 }
 0x1a1   :  { %1992 = vrot.lane.b32.xlu0 %v9788_v7, %s9095_s30  ;;  %6904 = vmatprep.subr.bf16.mxu1 %v6903_v2 }
 0x1a2   :  { %6906 = vmatpush1.bf16.msra.mxu1 %v6905_v6  ;;  %v7900_v6 = vunpack.i.l.bf16 %v7899_v8 }
 0x1a3   :  { %v9874_v54 = vpop.permute.xlu1 %7908  ;;  %v9876_v60 = vpop.permute.xlu0 %7888 }
 0x1a4   :  { %13683 = vst [vmem:[#allocation43_spill] sm:$0xff] %v9874_v54  ;;  %13684 = vst [vmem:[#allocation44_spill] sm:$0xff] %v9876_v60  ;;  %v7910_v38 = vunpack.i.l.bf16 %v9874_v54  ;;  %v1410_v40 = vsel %vm13520_vm11, %v7900_v6, %v7901_v53 }
 0x1a5   :  { %3104 = vrot.lane.b32.xlu0 %v9788_v7, %s9081_s12 }
 0x1a7   :  { %v9880_v51 = vpop.permute.xlu1 %7918  ;;  %v9882_v57 = vpop.permute.xlu0 %1290 }
 0x1a8   :  { %13685 = vst [vmem:[#allocation45_spill] sm:$0xff] %v9880_v51  ;;  %13686 = vst [vmem:[#allocation46_spill] sm:$0xff] %v9882_v57 }
 0x1a9   :  { %3336 = vrot.lane.b32.xlu0 %v9788_v7, %s9083_s0 }
 0x1ab   :  { %v9886_v50 = vpop.permute.xlu1 %7928  ;;  %v7904_v29 = vpop.permute.xlu0 %7903 }
 0x1ac   :  { %13687 = vst [vmem:[#allocation47_spill] sm:$0xff] %v9886_v50  ;;  %v7905_v44 = vunpack.i.l.bf16 %v7904_v29  ;;  %v7906_v51 = vunpack.i.h.bf16 %v7904_v29  ;;  %v13696_v29 = vunpack.i.h.bf16 %v9874_v54 }
 0x1ad   :  { %3569 = vrot.lane.b32.xlu0 %v9788_v7, %s9084_s22 }
 0x1af   :  { %v9890_v48 = vpop.permute.xlu1 %1407  ;;  %v9892_v45 = vpop.permute.xlu0 %7913 }
 0x1b0   :  { %13688 = vst [vmem:[#allocation48_spill] sm:$0xff] %v9890_v48  ;;  %13689 = vst [vmem:[#allocation49_spill] sm:$0xff] %v9892_v45 }
 0x1b1   :  { %3801 = vrot.lane.b32.xlu0 %v9788_v7, %s9086_s10 }
 0x1b3   :  { %v7944_v1 = vpop.permute.xlu1 %7943  ;;  %v9896_v63 = vpop.permute.xlu0 %7923 }
 0x1b4   :  { %13690 = vst [vmem:[#allocation50_spill] sm:$0xff] %v9896_v63  ;;  %v7945_v48 = vunpack.i.l.bf16 %v7944_v1  ;;  %v7946_v63 = vunpack.i.h.bf16 %v7944_v1 }
 0x1b6   :  { %v1529_v1 = vsel %vm13519_vm12, %v7945_v48, %v7946_v63 }
 0x1b7   :  { %v9898_v47 = vpop.permute.xlu1 %7953  ;;  %v9900_v2 = vpop.permute.xlu0 %7933 }
 0x1b8   :  { %13691 = vst [vmem:[#allocation51_spill] sm:$0xff] %v9898_v47  ;;  %13692 = vst [vmem:[#allocation52_spill] sm:$0xff] %v9900_v2  ;;  %v1411_v2 = vsel %vm13520_vm11, %v7901_v53, %v7905_v44  ;;  %v9920_v53 = vsel %vm13520_vm11, %v7910_v38, %v13696_v29 }
 0x1b9   :  { %13697 = vst [vmem:[#allocation56_spill] sm:$0xff] %v9920_v53 }
 0x1bb   :  { %v9902_v0 = vpop.permute.xlu1 %7963  ;;  %v7939_v57 = vpop.permute.xlu0 %7938 }
 0x1bc   :  { %13693 = vst [vmem:[#allocation53_spill] sm:$0xff] %v9902_v0  ;;  %v7941_v46 = vunpack.i.h.bf16 %v7939_v57  ;;  %v7940_v50 = vunpack.i.l.bf16 %v7939_v57 }
 0x1be   :  { %v1528_v8 = vsel %vm13519_vm12, %v7941_v46, %v7945_v48  ;;  %v1527_v25 = vsel %vm13519_vm12, %v7940_v50, %v7941_v46  ;;  %v1412_v48 = vsel %vm13520_vm11, %v7905_v44, %v7906_v51 }
 0x1bf   :  { %v9910_v0 = vpop.permute.xlu1 %7973  ;;  %v9912_v10 = vpop.permute.xlu0 %7948  ;;  %v6875_v28 = vpack.c.bf16 %v1528_v8, %v1411_v2  ;;  %v6877_v57 = vpack.c.bf16 %v1527_v25, %v1410_v40  ;;  %v1413_v25 = vsel %vm13520_vm11, %v7906_v51, %v7910_v38  ;;  %v6909_v8 = vpack.c.bf16 %v1529_v1, %v1412_v48 }
 0x1c0   :  { %13694 = vst [vmem:[#allocation54_spill] sm:$0xff] %v9910_v0  ;;  %13695 = vst [vmem:[#allocation55_spill] sm:$0xff] %v9912_v10  ;;  %v13382_v60 = vunpack.i.h.bf16 %v9912_v10  ;;  %v7950_v47 = vunpack.i.l.bf16 %v9912_v10 }
 0x1c1   :  { %6876 = vmatprep.subr.bf16.mxu0 %v6875_v28 }
 0x1c2   :  { %v9925_v46 = vsel %vm13519_vm12, %v7950_v47, %v13382_v60  ;;  %6878 = vmatpush1.bf16.msra.mxu0 %v6877_v57  ;;  %v1530_v40 = vsel %vm13519_vm12, %v7946_v63, %v7950_v47 }
 0x1c3   :  { %13698 = vst [vmem:[#allocation57_spill] sm:$0xff] %v9925_v46  ;;  %v7979_v50 = vpop.permute.xlu1 %7978  ;;  %v9929_v2 = vpop.permute.xlu0 %7958  ;;  %v6907_v28 = vpack.c.bf16 %v1530_v40, %v1413_v25 }
 0x1c4   :  { %13699 = vst [vmem:[#allocation58_spill] sm:$0xff] %v9929_v2  ;;  %v7981_v48 = vunpack.i.h.bf16 %v7979_v50 }
 0x1c5   :  { %6908 = vmatprep.subr.bf16.mxu1 %v6907_v28 }
 0x1c6   :  { %6910 = vmatpush1.bf16.msra.mxu1 %v6909_v8  ;;  %v7980_v8 = vunpack.i.l.bf16 %v7979_v50 }
 0x1c7   :  { %v9934_v29 = vpop.permute.xlu1 %7988  ;;  %v9936_v60 = vpop.permute.xlu0 %7968 }
 0x1c8   :  { %13700 = vst [vmem:[#allocation59_spill] sm:$0xff] %v9934_v29  ;;  %13701 = vst [vmem:[#allocation60_spill] sm:$0xff] %v9936_v60 }
 0x1cb   :  { %v9938_v57 = vpop.permute.xlu1 %7998  ;;  %v9940_v38 = vpop.permute.xlu0 %1524 }
 0x1cc   :  { %13702 = vst [vmem:[#allocation61_spill] sm:$0xff] %v9938_v57  ;;  %13703 = vst [vmem:[#allocation62_spill] sm:$0xff] %v9940_v38 }
 0x1cf   :  { %v9942_v63 = vpop.permute.xlu1 %8008  ;;  %v7984_v47 = vpop.permute.xlu0 %7983 }
 0x1d0   :  { %13704 = vst [vmem:[#allocation63_spill] sm:$0xff] %v9942_v63  ;;  %v7985_v6 = vunpack.i.l.bf16 %v7984_v47  ;;  %v7986_v50 = vunpack.i.h.bf16 %v7984_v47 }
 0x1d2   :  { %v1645_v57 = vsel %vm1643_vm13, %v7981_v48, %v7985_v6  ;;  %v1646_v47 = vsel %vm1643_vm13, %v7985_v6, %v7986_v50  ;;  %v7541_v6 = vunpack.i.h.bf16 %v9437_v18 }
 0x1d3   :  { %v9944_v25 = vpop.permute.xlu1 %1641  ;;  %v9946_v44 = vpop.permute.xlu0 %7993 }
 0x1d4   :  { %13705 = vst [vmem:[#allocation64_spill] sm:$0xff] %v9944_v25  ;;  %13706 = vst [vmem:[#allocation65_spill] sm:$0xff] %v9946_v44  ;;  %v9096_v25 = vmov 0  }
 0x1d5   :  { %8137 = vset.pattern.permute.xlu1 %v9096_v25  ;;  %9058 = vset.pattern.permute.xlu0 %v9096_v25  ;;  %v13396_v25 = vunpack.i.l.bf16 %v9934_v29 }
 0x1d7   :  { %v8024_v51 = vpop.permute.xlu1 %8023  ;;  %v9948_v40 = vpop.permute.xlu0 %8003 }
 0x1d8   :  { %13707 = vst [vmem:[#allocation66_spill] sm:$0xff] %v9948_v40  ;;  %v8025_v63 = vunpack.i.l.bf16 %v8024_v51  ;;  %v2300_v40 = vld [vmem:[%s13333_s2] sm:$0xff]  ;;  %v8026_v46 = vunpack.i.h.bf16 %v8024_v51  ;;  %s9097_s2 = smov 124  }
 0x1d9   :  { %2303 = vperm.xlu1 %8137, %v2300_v40  }
 0x1da   :  { %v1763_v40 = vsel %vm1760_vm14, %v8025_v63, %v8026_v46 }
 0x1db   :  { %v9950_v1 = vpop.permute.xlu1 %8033  ;;  %v9952_v28 = vpop.permute.xlu0 %8013 }
 0x1dc   :  { %13708 = vst [vmem:[#allocation67_spill] sm:$0xff] %v9950_v1  ;;  %13709 = vst [vmem:[#allocation68_spill] sm:$0xff] %v9952_v28  ;;  %v1644_v28 = vsel %vm1643_vm13, %v7980_v8, %v7981_v48 }
 0x1dd   :  { %3220 = vrot.lane.b32.xlu1 %v9788_v7, %s9082_s21 }
 0x1df   :  { %v9954_v0 = vpop.permute.xlu1 %8043  ;;  %v8019_v38 = vpop.permute.xlu0 %8018 }
 0x1e0   :  { %13710 = vst [vmem:[#allocation69_spill] sm:$0xff] %v9954_v0  ;;  %v8021_v60 = vunpack.i.h.bf16 %v8019_v38  ;;  %v8020_v53 = vunpack.i.l.bf16 %v8019_v38 }
 0x1e1   :  { %3452 = vrot.lane.b32.xlu1 %v9788_v7, %s9097_s2 }
 0x1e2   :  { %v1762_v0 = vsel %vm1760_vm14, %v8021_v60, %v8025_v63  ;;  %v1761_v54 = vsel %vm1760_vm14, %v8020_v53, %v8021_v60  ;;  %v1647_v60 = vsel %vm1643_vm13, %v7986_v50, %v13396_v25  ;;  %v6913_v63 = vpack.c.bf16 %v1763_v40, %v1646_v47 }
 0x1e3   :  { %v9963_v38 = vpop.permute.xlu1 %8053  ;;  %v9965_v1 = vpop.permute.xlu0 %8028  ;;  %v6879_v44 = vpack.c.bf16 %v1762_v0, %v1645_v57  ;;  %v6881_v10 = vpack.c.bf16 %v1761_v54, %v1644_v28  ;;  %v7540_v50 = vunpack.i.l.bf16 %v9437_v18  ;;  %v7546_v40 = vunpack.i.h.bf16 %v9449_v20 }
 0x1e4   :  { %13711 = vst [vmem:[#allocation70_spill] sm:$0xff] %v9963_v38  ;;  %13712 = vst [vmem:[#allocation71_spill] sm:$0xff] %v9965_v1  ;;  %v13397_v51 = vunpack.i.l.bf16 %v9965_v1  ;;  %v7556_v47 = vunpack.i.h.bf16 %v9459_v23  ;;  %v7580_v38 = vunpack.i.l.bf16 %v9497_v31 }
 0x1e5   :  { %6880 = vmatprep.subr.bf16.mxu0 %v6879_v44  ;;  %3685 = vrot.lane.b32.xlu1 %v9788_v7, %s9085_s9 }
 0x1e6   :  { %6882 = vmatpush1.bf16.msra.mxu0 %v6881_v10  ;;  %v1764_v0 = vsel %vm1760_vm14, %v8026_v46, %v13397_v51  ;;  %v10010_v51 = vsel %vm356_vm2, %v7540_v50, %v7541_v6  ;;  %v10075_v29 = vsel %vm473_vm3, %v7556_v47, %v9457_v22  ;;  %v7621_v22 = vunpack.i.h.bf16 %v9517_v39 }
 0x1e7   :  { %v9978_v54 = vpop.permute.xlu1 %8058  ;;  %v9980_v53 = vpop.permute.xlu0 %8038  ;;  %v6911_v57 = vpack.c.bf16 %v1764_v0, %v1647_v60  ;;  %v13401_v60 = vunpack.i.l.bf16 %v9449_v20  ;;  %13732 = vst [vmem:[#allocation85_spill] sm:$0xff] %v10075_v29 }
 0x1e8   :  { %13713 = vst [vmem:[#allocation72_spill] sm:$0xff] %v9980_v53  ;;  %v7590_v53 = vunpack.i.l.bf16 %v9495_v30  ;;  %v362_v13 = vsel %vm356_vm2, %v7621_v22, %v7540_v50 }
 0x1e9   :  { %6912 = vmatprep.subr.bf16.mxu1 %v6911_v57  ;;  %v7551_v57 = vunpack.i.h.bf16 %v9451_v21  ;;  %v10015_v18 = vsel %vm356_vm2, %v13401_v60, %v7546_v40  ;;  %3917 = vrot.lane.b32.xlu1 %v9788_v7, %s9087_s18  ;;  %v13723_v60 = vunpack.i.l.bf16 %v9451_v21 }
 0x1ea   :  { %6914 = vmatpush1.bf16.msra.mxu1 %v6913_v63  ;;  %13719 = vst [vmem:[#allocation78_spill] sm:$0xff] %v10015_v18  ;;  %v7571_v63 = vunpack.i.h.bf16 %v9479_v27  ;;  %v13733_v18 = vunpack.i.h.bf16 %v9497_v31 }
 0x1eb   :  { %v9983_v44 = vpop.permute.xlu1 %8068  ;;  %v9985_v10 = vpop.permute.xlu0 %8048 }
 0x1ec   :  { %13714 = vst [vmem:[#allocation73_spill] sm:$0xff] %v9985_v10 }
 0x1ed   :  { %4150 = vrot.lane.b32.xlu1 %v9788_v7, %s9088_s23 }
 0x1ef   :  { %v9987_v28 = vpop.permute.xlu1 %8078  ;;  %v9989_v48 = vpop.permute.xlu0 %1758 }
 0x1f0   :  { %13715 = vst [vmem:[#allocation74_spill] sm:$0xff] %v9987_v28  ;;  %13716 = vst [vmem:[#allocation75_spill] sm:$0xff] %v9989_v48  ;;  %v10019_v48 = vsel %vm356_vm2, %v7546_v40, %v9439_v19  ;;  %v10034_v19 = vsel %vm473_vm3, %v13723_v60, %v7551_v57  ;;  %v13724_v40 = vunpack.i.h.bf16 %v9469_v24  ;;  %v13725_v28 = vunpack.i.l.bf16 %v9469_v24 }
 0x1f1   :  { %13720 = vst [vmem:[#allocation79_spill] sm:$0xff] %v10019_v48  ;;  %v13729_v60 = vunpack.i.l.bf16 %v9477_v26 }
 0x1f3   :  { %v9993_v46 = vpop.permute.xlu0 %8063  ;;  %v9995_v8 = vpop.permute.xlu1 %8088 }
 0x1f4   :  { %13717 = vst [vmem:[#allocation76_spill] sm:$0xff] %v9995_v8 }
 0x1f7   :  { %v10003_v0 = vpop.permute.xlu0 %8073  ;;  %v10027_v8 = vpop.permute.xlu1 %1875 }
 0x1f8   :  { %13718 = vst [vmem:[#allocation77_spill] sm:$0xff] %v10003_v0  ;;  %13721 = vst [vmem:[#allocation80_spill] sm:$0xff] %v10027_v8  ;;  %v10041_v0 = vsel %vm590_vm4, %v13725_v28, %v13724_v40  ;;  %v13726_v40 = vunpack.i.l.bf16 %v9459_v23  ;;  %v7610_v23 = vunpack.i.l.bf16 %v9509_v34 }
 0x1fa   :  { %v10060_v8 = vsel %vm473_vm3, %v13726_v40, %v7556_v47  ;;  %v10080_v40 = vsel %vm356_vm2, %v7580_v38, %v13733_v18  ;;  %v8061_v47 = vunpack.i.h.bf16 %v9978_v54 }
 0x1fb   :  { %v10029_v10 = vpop.permute.xlu0 %8083  ;;  %13727 = vst [vmem:[#allocation82_spill] sm:$0xff] %v10060_v8  ;;  %13734 = vst [vmem:[#allocation86_spill] sm:$0xff] %v10080_v40  ;;  %v8104_v18 = vpop.permute.xlu1 %8103  ;;  %v7600_v8 = vunpack.i.l.bf16 %v9511_v35 }
 0x1fc   :  { %13722 = vst [vmem:[#allocation81_spill] sm:$0xff] %v10029_v10  ;;  %v13728_v10 = vunpack.i.h.bf16 %v9477_v26  ;;  %v8105_v45 = vunpack.i.l.bf16 %v8104_v18 }
 0x1fe   :  { %v10067_v25 = vsel %vm590_vm4, %v13729_v60, %v13728_v10  ;;  %v10085_v10 = vsel %vm356_vm2, %v7541_v6, %v7580_v38  ;;  %v13735_v60 = vunpack.i.l.bf16 %v9479_v27  ;;  %v8065_v38 = vunpack.i.l.bf16 %v9993_v46 }
 0x1ff   :  { %13730 = vst [vmem:[#allocation83_spill] sm:$0xff] %v10067_v25  ;;  %v10069_v1 = vpop.permute.xlu0 %8093  ;;  %v13737_v25 = vunpack.i.h.bf16 %v9495_v30  ;;  %v10102_v6 = vsel %vm473_vm3, %v7551_v57, %v7590_v53  ;;  %v8106_v57 = vunpack.i.h.bf16 %v8104_v18 }
 0x200   :  { %13731 = vst [vmem:[#allocation84_spill] sm:$0xff] %v10069_v1  ;;  %v10090_v28 = vsel %vm13629_vm5, %v13735_v60, %v7571_v63  ;;  %v8060_v1 = vunpack.i.l.bf16 %v9978_v54  ;;  %v6951_v54 = vpack.c.bf16 %v10085_v10, %v9788_v7  ;;  %v1879_v10 = vsel %vm1877_vm15, %v8061_v47, %v8065_v38 }
 0x201   :  { %13736 = vst [vmem:[#allocation87_spill] sm:$0xff] %v10090_v28  ;;  %v10098_v48 = vsel %vm473_vm3, %v7590_v53, %v13737_v25  ;;  %v13738_v25 = vunpack.i.h.bf16 %v9509_v34  ;;  %v8066_v28 = vunpack.i.h.bf16 %v9993_v46  ;;  %v13742_v46 = vunpack.i.l.bf16 %v9517_v39  ;;  %v10148_v39 = vld [vmem:[%s13334_s1] sm:$0xff]  ;;  %s9098_s1 = smov 94  }
 0x202   :  { %v1878_v60 = vsel %vm1877_vm15, %v8060_v1, %v8061_v47  ;;  %v13741_v1 = vunpack.i.h.bf16 %v9469_v24 }
 0x203   :  { %v8099_v29 = vpop.permute.xlu0 %8098  ;;  %v10113_v2 = vsel %vm13629_vm5, %v7610_v23, %v13738_v25  ;;  %v13740_v25 = vunpack.i.h.bf16 %v9511_v35  ;;  %v361_v47 = vsel %vm356_vm2, %v13742_v46, %v7621_v22  ;;  %v7626_v35 = vunpack.i.h.bf16 %v9533_v52 }
 0x204   :  { %13739 = vst [vmem:[#allocation88_spill] sm:$0xff] %v10113_v2  ;;  %v8101_v30 = vunpack.i.h.bf16 %v8099_v29  ;;  %v8100_v53 = vunpack.i.l.bf16 %v8099_v29  ;;  %v10131_v50 = vsel %vm590_vm4, %v13741_v1, %v7600_v8  ;;  %v13432_v46 = vunpack.i.h.bf16 %v9567_v4 }
 0x205   :  { %v10124_v2 = vsel %vm590_vm4, %v7600_v8, %v13740_v25  ;;  %v10143_v8 = vsel %vm13629_vm5, %v7571_v63, %v7610_v23 }
 0x206   :  { %v1996_v26 = vsel %vm13439_vm0, %v8101_v30, %v8105_v45  ;;  %v1995_v34 = vsel %vm13439_vm0, %v8100_v53, %v8101_v30  ;;  %v7625_v30 = vunpack.i.l.bf16 %v9533_v52  ;;  %v13434_v53 = vunpack.i.l.bf16 %v9983_v44 }
 0x207   :  { %v10126_v29 = vpop.permute.xlu0 %8108  ;;  %v6883_v18 = vpack.c.bf16 %v1996_v26, %v1879_v10  ;;  %v6885_v40 = vpack.c.bf16 %v1995_v34, %v1878_v60  ;;  %v6919_v26 = vpack.c.bf16 %v362_v13, %v9726_v42  ;;  %v1997_v34 = vsel %vm13439_vm0, %v8105_v45, %v8106_v57 }
 0x208   :  { %v8110_v25 = vunpack.i.l.bf16 %v10126_v29  ;;  %v1881_v22 = vsel %vm1877_vm15, %v8066_v28, %v13434_v53  ;;  %v13743_v42 = vunpack.i.l.bf16 %v9469_v24  ;;  %v13744_v13 = vunpack.i.h.bf16 %v9580_v16 }
 0x209   :  { %6884 = vmatprep.subr.bf16.mxu0 %v6883_v18  ;;  %v6955_v45 = vpack.c.bf16 %v10131_v50, %v10102_v6  ;;  %v6921_v60 = vpack.c.bf16 %v361_v47, %v9724_v58  ;;  %v13745_v24 = vunpack.i.l.bf16 %v9451_v21  ;;  %v13746_v16 = vunpack.i.h.bf16 %v9544_v41 }
 0x20a   :  { %6886 = vmatpush1.bf16.msra.mxu0 %v6885_v40  ;;  %v1998_v52 = vsel %vm13439_vm0, %v8106_v57, %v8110_v25  ;;  %v596_v23 = vsel %vm590_vm4, %v13744_v13, %v13743_v42  ;;  %v1880_v40 = vsel %vm1877_vm15, %v8065_v38, %v8066_v28  ;;  %v7715_v57 = vunpack.i.l.bf16 %v9627_v59  ;;  %v10197_v13 = vld [vmem:[#allocation2 + $0x50] sm:$0xff] }
 0x20b   :  { %6920 = vmatprep.subr.bf16.mxu0 %v6919_v26  ;;  %v6915_v63 = vpack.c.bf16 %v1998_v52, %v1881_v22  ;;  %v6917_v18 = vpack.c.bf16 %v1997_v34, %v1880_v40  ;;  %v479_v1 = vsel %vm473_vm3, %v13746_v16, %v13745_v24  ;;  %v13747_v6 = vunpack.i.h.bf16 %v9497_v31  ;;  %v10190_v26 = vld [vmem:[#allocation2 + $0x48] sm:$0xff] }
 0x20c   :  { %v10179_v28 = vsel %vm356_vm2, %v7625_v30, %v7626_v35  ;;  %v13423_v58 = vunpack.i.l.bf16 %v9552_v55  ;;  %v13430_v38 = vunpack.i.l.bf16 %v9677_v9  ;;  %v6923_v21 = vpack.c.bf16 %v596_v23, %v479_v1 }
 0x20d   :  { %v10176_v50 = vsel %vm356_vm2, %v13747_v6, %v7625_v30  ;;  %2371 = vmatmul.mubr.f32.vlgmr.msra.gmra.mrb[0].mxu0 %v10148_v39  ;;  %6916 = vmatprep.subr.bf16.mxu1 %v6915_v63  ;;  %v13424_v41 = vunpack.i.h.bf16 %v9552_v55  ;;  %v7665_v31 = vunpack.i.l.bf16 %v9567_v4  ;;  %v13748_v47 = vunpack.i.h.bf16 %v9654_v43 }
 0x20e   :  { %6918 = vmatpush1.bf16.msra.mxu1 %v6917_v18  ;;  %6922 = vmatpush1.bf16.msra.mxu0 %v6921_v60  ;;  %v13433_v34 = vunpack.i.h.bf16 %v9569_v5  ;;  %v7645_v22 = vunpack.i.l.bf16 %v9569_v5  ;;  %v7716_v52 = vunpack.i.h.bf16 %v9627_v59  ;;  %v7755_v23 = vunpack.i.l.bf16 %v9716_v36  ;;  %v13773_v59 = vld [vmem:[#allocation55_spill] sm:$0xff] }
 0x20f   :  { %v830_v30 = vsel %vm13517_vm6, %v13748_v47, %v7715_v57  ;;  %6924 = vmatprep.subr.bf16.mxu0 %v6923_v21  ;;  %6952 = vmatprep.subr.bf16.mxu1 %v6951_v54  ;;  %v7795_v43 = vunpack.i.l.bf16 %v9732_v62  ;;  %v13749_v63 = vunpack.i.l.bf16 %v9479_v27  ;;  %v13750_v40 = vunpack.i.h.bf16 %v9578_v15 }
 0x210   :  { %2512 = vmatprep.mubr.f32.mxu0 %v9788_v7  ;;  %v13427_v54 = vunpack.i.l.bf16 %v9781_v17  ;;  %v832_v24 = vsel %vm13517_vm6, %v7716_v52, %v13430_v38  ;;  %v10217_v27 = vsel %vm356_vm2, %v7626_v35, %v13423_v58  ;;  %v10224_v15 = vsel %vm590_vm4, %v7665_v31, %v13432_v46 }
 0x211   :  { %v713_v60 = vsel %vm13629_vm5, %v13750_v40, %v13749_v63  ;;  %2442 = vmatmul.mubr.f32.vlgmr.msra.gmra.mrb[0].mxu1 %v10148_v39  ;;  %v13751_v16 = vpack.c.bf16 %v9597_v37, %v9587_v33  ;;  %v13752_v1 = vpack.c.bf16 %v10010_v51, %v9788_v7  ;;  %v13753_v6 = vunpack.i.h.bf16 %v9760_v3 }
 0x212   :  { %v6927_v18 = vpack.c.bf16 %v830_v30, %v713_v60  ;;  %v13754_v21 = vunpack.i.l.bf16 %v9449_v20  ;;  %v10245_v33 = vsel %vm473_vm3, %v7645_v22, %v13433_v34  ;;  %v831_v37 = vsel %vm13517_vm6, %v7715_v57, %v7716_v52  ;;  %2583 = vmatprep.mubr.f32.mxu1 %v9788_v7 }
 0x213   :  { %6926 = vmatpush1.bf16.msra.mxu0 %v13751_v16  ;;  %6954 = vmatpush1.bf16.msra.mxu1 %v13752_v1  ;;  %v1064_v35 = vsel %vm13502_vm8, %v13753_v6, %v7795_v43  ;;  %v7756_v51 = vunpack.i.h.bf16 %v9716_v36  ;;  %v7796_v3 = vunpack.i.h.bf16 %v9732_v62  ;;  %v7835_v20 = vunpack.i.l.bf16 %v9816_v32  ;;  %v13759_v16 = vld [vmem:[#allocation40_spill] sm:$0xff]  ;;  %v13761_v6 = vld [vmem:[#allocation9_spill] sm:$0xff] }
 0x214   :  { %v10240_v47 = vsel %vm356_vm2, %v13424_v41, %v13754_v21  ;;  %6928 = vmatprep.subr.bf16.mxu0 %v6927_v18  ;;  %6956 = vmatprep.subr.bf16.mxu1 %v6955_v45  ;;  %v7875_v30 = vunpack.i.l.bf16 %v9828_v12  ;;  %v13755_v63 = vunpack.i.h.bf16 %v9686_v14  ;;  %v6959_v60 = vpack.c.bf16 %v832_v24, %v10143_v8  ;;  %v13758_v18 = vld [vmem:[#allocation87_spill] sm:$0xff] }
 0x215   :  { %v13428_v57 = vunpack.i.l.bf16 %v9698_v11  ;;  %v7876_v36 = vunpack.i.h.bf16 %v9828_v12  ;;  %v1066_v62 = vsel %vm13502_vm8, %v7796_v3, %v13427_v54  ;;  %v13425_v45 = vunpack.i.l.bf16 %v9867_v49 }
 0x216   :  { %v947_v40 = vsel %vm13514_vm7, %v13755_v63, %v7755_v23  ;;  %v13756_v14 = vpack.c.bf16 %v9670_v61, %v9661_v56  ;;  %v13757_v8 = vpack.c.bf16 %v10041_v0, %v10034_v19  ;;  %v6961_v24 = vpack.c.bf16 %v831_v37, %v13758_v18  ;;  %v13763_v19 = vld [vmem:[#allocation49_spill] sm:$0xff] }
 0x217   :  { %v6931_v52 = vpack.c.bf16 %v1064_v35, %v947_v40  ;;  %v13760_v1 = vunpack.i.h.bf16 %v13759_v16  ;;  %v13762_v35 = vunpack.i.h.bf16 %v13761_v6  ;;  %v948_v63 = vsel %vm13514_vm7, %v7755_v23, %v7756_v51  ;;  %v13764_v40 = vld [vmem:[#allocation51_spill] sm:$0xff]  ;;  %v13767_v23 = vld [vmem:[#allocation32_spill] sm:$0xff] }
 0x218   :  { %6930 = vmatpush1.bf16.msra.mxu0 %v13756_v14  ;;  %6958 = vmatpush1.bf16.msra.mxu1 %v13757_v8  ;;  %v1065_v56 = vsel %vm13502_vm8, %v7795_v43, %v7796_v3  ;;  %v7836_v61 = vunpack.i.h.bf16 %v9816_v32  ;;  %v949_v0 = vsel %vm13514_vm7, %v7756_v51, %v13428_v57  ;;  %v7915_v37 = vunpack.i.l.bf16 %v13763_v19  ;;  %v13765_v8 = vld [vmem:[#allocation30_spill] sm:$0xff]  ;;  %v13771_v51 = vld [vmem:[#allocation28_spill] sm:$0xff]  ;;  %v13783_v57 = vld [vmem:[#allocation41_spill] sm:$0xff] }
 0x219   :  { %v1298_v12 = vsel %vm1292_vm10, %v13760_v1, %v7875_v30  ;;  %v10276_v21 = vsel %vm473_vm3, %v13762_v35, %v7645_v22  ;;  %6932 = vmatprep.subr.bf16.mxu0 %v6931_v52  ;;  %6960 = vmatprep.subr.bf16.mxu1 %v6959_v60  ;;  %v7955_v14 = vunpack.i.l.bf16 %v13764_v40  ;;  %v13766_v18 = vunpack.i.h.bf16 %v13765_v8  ;;  %v13768_v32 = vld [vmem:[#allocation58_spill] sm:$0xff]  ;;  %v13769_v52 = vld [vmem:[#allocation71_spill] sm:$0xff]  ;;  %v13770_v35 = vld [vmem:[#allocation29_spill] sm:$0xff] }
 0x21a   :  { %v6963_v16 = vpack.c.bf16 %v1066_v62, %v949_v0  ;;  %v13426_v1 = vunpack.i.l.bf16 %v13767_v23  ;;  %v1299_v43 = vsel %vm1292_vm10, %v7875_v30, %v7876_v36  ;;  %v13429_v3 = vunpack.i.l.bf16 %v13768_v32 }
 0x21b   :  { %v1181_v22 = vsel %vm1175_vm9, %v13766_v18, %v7835_v20  ;;  %v8031_v6 = vunpack.i.h.bf16 %v13769_v52  ;;  %v13772_v58 = vpack.c.bf16 %v13770_v35, %v13771_v51  ;;  %v6965_v41 = vpack.c.bf16 %v1065_v56, %v948_v63  ;;  %v13776_v63 = vld [vmem:[#allocation67_spill] sm:$0xff] }
 0x21c   :  { %v6935_v60 = vpack.c.bf16 %v1298_v12, %v1181_v22  ;;  %6962 = vmatpush1.bf16.msra.mxu1 %v6961_v24  ;;  %v13774_v8 = vunpack.i.h.bf16 %v13773_v59  ;;  %v1300_v62 = vsel %vm1292_vm10, %v7876_v36, %v13425_v45  ;;  %v1182_v30 = vsel %vm1175_vm9, %v7835_v20, %v7836_v61  ;;  %v13775_v24 = vld [vmem:[#allocation65_spill] sm:$0xff]  ;;  %v13777_v22 = vld [vmem:[#allocation43_spill] sm:$0xff] }
 0x21d   :  { %6934 = vmatpush1.bf16.msra.mxu0 %v13772_v58  ;;  %v7916_v12 = vunpack.i.h.bf16 %v13763_v19  ;;  %v7956_v0 = vunpack.i.h.bf16 %v13764_v40  ;;  %6964 = vmatprep.subr.bf16.mxu1 %v6963_v16  ;;  %v1183_v58 = vsel %vm1175_vm9, %v7836_v61, %v13426_v1  ;;  %v7995_v59 = vunpack.i.l.bf16 %v13775_v24  ;;  %v13779_v20 = vld [vmem:[#allocation45_spill] sm:$0xff]  ;;  %v10314_v19 = vpop.permute.xlu1 %8113  ;;  %v13780_v61 = vld [vmem:[#allocation59_spill] sm:$0xff]  ;;  %v13781_v1 = vld [vmem:[#allocation72_spill] sm:$0xff] }
 0x21e   :  { %v1532_v18 = vsel %vm13519_vm12, %v13774_v8, %v7955_v14  ;;  %6936 = vmatprep.subr.bf16.mxu0 %v6935_v60  ;;  %v8035_v56 = vunpack.i.l.bf16 %v13776_v63  ;;  %v13778_v35 = vunpack.i.h.bf16 %v13777_v22  ;;  %v6969_v51 = vpack.c.bf16 %v1299_v43, %v1182_v30  ;;  %v13782_v22 = vld [vmem:[#allocation42_spill] sm:$0xff] }
 0x21f   :  { %v13431_v8 = vunpack.i.l.bf16 %v13779_v20  ;;  %v6967_v60 = vpack.c.bf16 %v1300_v62, %v1183_v58  ;;  %v1534_v16 = vsel %vm13519_vm12, %v7956_v0, %v13429_v3  ;;  %v7991_v45 = vunpack.i.h.bf16 %v13780_v61  ;;  %v10329_v58 = vpop.permute.xlu0 %8118  ;;  %v13786_v3 = vld [vmem:[#allocation61_spill] sm:$0xff] }
 0x220   :  { %v1415_v36 = vsel %vm13520_vm11, %v13778_v35, %v7915_v37  ;;  %v8040_v10 = vunpack.i.l.bf16 %v13781_v1  ;;  %v8111_v54 = vunpack.i.h.bf16 %v10126_v29  ;;  %v13784_v35 = vpack.c.bf16 %v13782_v22, %v13783_v57  ;;  %6966 = vmatpush1.bf16.msra.mxu1 %v6965_v41  ;;  %v13785_v22 = vld [vmem:[#allocation77_spill] sm:$0xff] }
 0x221   :  { %v6939_v40 = vpack.c.bf16 %v1532_v18, %v1415_v36  ;;  %v1766_v43 = vsel %vm1760_vm14, %v8031_v6, %v8035_v56  ;;  %v1416_v18 = vsel %vm13520_vm11, %v7915_v37, %v7916_v12  ;;  %v1533_v62 = vsel %vm13519_vm12, %v7955_v14, %v7956_v0  ;;  %6968 = vmatprep.subr.bf16.mxu1 %v6967_v60 }
 0x222   :  { %6938 = vmatpush1.bf16.msra.mxu0 %v13784_v35  ;;  %v7996_v30 = vunpack.i.h.bf16 %v13775_v24  ;;  %v1417_v36 = vsel %vm13520_vm11, %v7916_v12, %v13431_v8  ;;  %v8036_v57 = vunpack.i.h.bf16 %v13776_v63  ;;  %v8075_v41 = vunpack.i.l.bf16 %v13785_v22  ;;  %v13788_v8 = vld [vmem:[#allocation57_spill] sm:$0xff]  ;;  %v13789_v63 = vld [vmem:[#allocation56_spill] sm:$0xff] }
 0x223   :  { %6940 = vmatprep.subr.bf16.mxu0 %v6939_v40  ;;  %v8115_v35 = vunpack.i.l.bf16 %v10314_v19  ;;  %v1649_v37 = vsel %vm1643_vm13, %v7991_v45, %v7995_v59  ;;  %v8000_v14 = vunpack.i.l.bf16 %v13786_v3  ;;  %v13787_v0 = vunpack.i.l.bf16 %v13769_v52  ;;  %v13791_v52 = vld [vmem:[#allocation12_spill] sm:$0xff] }
 0x224   :  { %v6943_v40 = vpack.c.bf16 %v1766_v43, %v1649_v37  ;;  %v6971_v60 = vpack.c.bf16 %v1534_v16, %v1417_v36  ;;  %v8071_v38 = vunpack.i.h.bf16 %v9983_v44  ;;  %v8120_v12 = vunpack.i.l.bf16 %v10329_v58  ;;  %6970 = vmatpush1.bf16.msra.mxu1 %v6969_v51 }
 0x225   :  { %v1765_v24 = vsel %vm1760_vm14, %v13787_v0, %v8031_v6  ;;  %v13790_v46 = vpack.c.bf16 %v13788_v8, %v13789_v63  ;;  %v2000_v42 = vsel %vm13439_vm0, %v8111_v54, %v8115_v35  ;;  %v1768_v34 = vsel %vm1760_vm14, %v8036_v57, %v8040_v10 }
 0x226   :  { %v7650_v53 = vunpack.i.l.bf16 %v13791_v52  ;;  %v13792_v6 = vunpack.i.l.bf16 %v13780_v61  ;;  %6972 = vmatprep.subr.bf16.mxu1 %v6971_v60  ;;  %v6973_v43 = vpack.c.bf16 %v1533_v62, %v1416_v18  ;;  %v8076_v51 = vunpack.i.h.bf16 %v13785_v22  ;;  %v13793_v18 = vld [vmem:[#allocation14_spill] sm:$0xff]  ;;  %v13795_v22 = vld [vmem:[#allocation11_spill] sm:$0xff] }
 0x227   :  { %6942 = vmatpush1.bf16.msra.mxu0 %v13790_v46  ;;  %v1651_v46 = vsel %vm1643_vm13, %v7996_v30, %v8000_v14  ;;  %v8116_v8 = vunpack.i.h.bf16 %v10314_v19  ;;  %v1883_v37 = vsel %vm1877_vm15, %v8071_v38, %v8075_v41  ;;  %v1767_v0 = vsel %vm1760_vm14, %v8035_v56, %v8036_v57  ;;  %v13794_v60 = vld [vmem:[#allocation74_spill] sm:$0xff] }
 0x228   :  { %v1648_v16 = vsel %vm1643_vm13, %v13792_v6, %v7991_v45  ;;  %6944 = vmatprep.subr.bf16.mxu0 %v6943_v40  ;;  %v1999_v45 = vsel %vm13439_vm0, %v8110_v25, %v8111_v54  ;;  %v6947_v61 = vpack.c.bf16 %v2000_v42, %v1883_v37  ;;  %v6975_v40 = vpack.c.bf16 %v1768_v34, %v1651_v46  ;;  %v13797_v57 = vld [vmem:[#allocation18_spill] sm:$0xff]  ;;  %v267_v46 = vld [vmem:[#allocation2 + $0x58] sm:$0xff] }
 0x229   :  { %v6945_v36 = vpack.c.bf16 %v1765_v24, %v1648_v16  ;;  %v7670_v62 = vunpack.i.l.bf16 %v13793_v18  ;;  %v8080_v63 = vunpack.i.l.bf16 %v13794_v60  ;;  %6974 = vmatpush1.bf16.msra.mxu1 %v6973_v43  ;;  %v2002_v19 = vsel %vm13439_vm0, %v8116_v8, %v8120_v12 }
 0x22a   :  { %v13796_v56 = vunpack.i.h.bf16 %v13795_v22  ;;  %v7726_v25 = vunpack.i.h.bf16 %v13797_v57  ;;  %v7725_v34 = vunpack.i.l.bf16 %v13797_v57  ;;  %v1650_v42 = vsel %vm1643_vm13, %v7995_v59, %v7996_v30  ;;  %6976 = vmatprep.subr.bf16.mxu1 %v6975_v40  ;;  %v13799_v30 = vld [vmem:[#allocation16_spill] sm:$0xff]  ;;  %v13806_v57 = vld [vmem:[#allocation26_spill] sm:$0xff] }
 0x22b   :  { %6946 = vmatpush1.bf16.msra.mxu0 %v6945_v36  ;;  %v13798_v54 = vunpack.i.l.bf16 %v9983_v44  ;;  %v7721_v6 = vunpack.i.h.bf16 %v9677_v9  ;;  %v6977_v43 = vpack.c.bf16 %v1767_v0, %v1650_v42  ;;  %v2001_v36 = vsel %vm13439_vm0, %v8115_v35, %v8116_v8  ;;  %v13800_v40 = vld [vmem:[#allocation20_spill] sm:$0xff] }
 0x22c   :  { %v600_v29 = vsel %vm590_vm4, %v13796_v56, %v7665_v31  ;;  %6948 = vmatprep.subr.bf16.mxu0 %v6947_v61  ;;  %v1885_v31 = vsel %vm1877_vm15, %v8076_v51, %v8080_v63  ;;  %v7015_v44 = vpack.c.bf16 %v10217_v27, %v267_v46  ;;  %v7685_v61 = vunpack.i.l.bf16 %v13799_v30  ;;  %v13804_v56 = vld [vmem:[#allocation13_spill] sm:$0xff] }
 0x22d   :  { %v1882_v24 = vsel %vm1877_vm15, %v13798_v54, %v8071_v38  ;;  %v6979_v37 = vpack.c.bf16 %v2002_v19, %v1885_v31  ;;  %v6987_v59 = vpack.c.bf16 %v600_v29, %v10276_v21  ;;  %v7686_v38 = vunpack.i.h.bf16 %v13799_v30  ;;  %6978 = vmatpush1.bf16.msra.mxu1 %v6977_v43  ;;  %v13809_v31 = vld [vmem:[#allocation31_spill] sm:$0xff] }
 0x22e   :  { %v6949_v16 = vpack.c.bf16 %v1999_v45, %v1882_v24  ;;  %v7730_v22 = vunpack.i.l.bf16 %v13800_v40  ;;  %v13801_v0 = vunpack.i.h.bf16 %v9569_v5  ;;  %v1884_v35 = vsel %vm1877_vm15, %v8075_v41, %v8076_v51 }
 0x22f   :  { %6980 = vmatprep.subr.bf16.mxu1 %v6979_v37  ;;  %v13802_v27 = vpack.c.bf16 %v10176_v50, %v10190_v26  ;;  %v13803_v21 = vunpack.i.h.bf16 %v9567_v4  ;;  %v7021_v19 = vpack.c.bf16 %v10224_v15, %v10245_v33  ;;  %v7695_v5 = vunpack.i.l.bf16 %v13804_v56 }
 0x230   :  { %6950 = vmatpush1.bf16.msra.mxu0 %v6949_v16  ;;  %v485_v45 = vsel %vm473_vm3, %v13801_v0, %v7650_v53  ;;  %v10409_v29 = vsel %vm13517_vm6, %v7725_v34, %v7726_v25  ;;  %v13805_v41 = vunpack.i.l.bf16 %v9677_v9  ;;  %v6981_v50 = vpack.c.bf16 %v2001_v36, %v1884_v35  ;;  %v13807_v9 = vld [vmem:[#allocation86_spill] sm:$0xff]  ;;  %v13812_v0 = vld [vmem:[#allocation24_spill] sm:$0xff] }
 0x231   :  { %6984 = vmatprep.subr.bf16.mxu0 %v13802_v27  ;;  %v602_v8 = vsel %vm590_vm4, %v13803_v21, %v7670_v62  ;;  %v7761_v26 = vunpack.i.h.bf16 %v9698_v11  ;;  %v7806_v42 = vunpack.i.h.bf16 %v13806_v57  ;;  %v7805_v4 = vunpack.i.l.bf16 %v13806_v57  ;;  %v13813_v27 = vld [vmem:[#allocation88_spill] sm:$0xff] }
 0x232   :  { %v833_v51 = vsel %vm13517_vm6, %v13805_v41, %v7721_v6  ;;  %v834_v15 = vsel %vm13517_vm6, %v7721_v6, %v7725_v34  ;;  %v10420_v33 = vsel %vm13629_vm5, %v7685_v61, %v7686_v38  ;;  %v7801_v54 = vunpack.i.h.bf16 %v9781_v17  ;;  %6982 = vmatpush1.bf16.msra.mxu1 %v6981_v50  ;;  %v13810_v34 = vld [vmem:[#allocation10_spill] sm:$0xff] }
 0x233   :  { %2513 = vmatmul.mubr.f32.vlgmr.msra.gmra.mrb[2].mxu0 %v10148_v39  ;;  %v13808_v24 = vpack.c.bf16 %v13807_v9, %v9788_v7  ;;  %v7019_v16 = vpack.c.bf16 %v602_v8, %v485_v45  ;;  %v836_v43 = vsel %vm13517_vm6, %v7726_v25, %v7730_v22  ;;  %v7810_v46 = vunpack.i.l.bf16 %v13809_v31  ;;  %7016 = vmatprep.subr.bf16.mxu1 %v7015_v44  ;;  %v13819_v9 = vld [vmem:[#allocation36_spill] sm:$0xff] }
 0x234   :  { %v13811_v6 = vunpack.i.h.bf16 %v13810_v34  ;;  %v719_v37 = vsel %vm13629_vm5, %v7686_v38, %v7695_v5  ;;  %v7025_v30 = vpack.c.bf16 %v10409_v29, %v10420_v33  ;;  %v7766_v45 = vunpack.i.h.bf16 %v13812_v0  ;;  %2654 = vmatprep.mubr.f32.mxu0 %v9788_v7 }
 0x235   :  { %6986 = vmatpush1.bf16.msra.mxu0 %v13808_v24  ;;  %v7765_v35 = vunpack.i.l.bf16 %v13812_v0  ;;  %v6993_v21 = vpack.c.bf16 %v833_v51, %v13813_v27  ;;  %v10447_v38 = vsel %vm13502_vm8, %v7805_v4, %v7806_v42  ;;  %2584 = vmatmul.mubr.f32.vlgmr.msra.gmra.mrb[2].mxu1 %v10148_v39  ;;  %v7023_v29 = vpack.c.bf16 %v836_v43, %v719_v37  ;;  %v13820_v43 = vld [vmem:[#allocation38_spill] sm:$0xff] }
 0x236   :  { %6988 = vmatprep.subr.bf16.mxu0 %v6987_v59  ;;  %v717_v36 = vsel %vm13629_vm5, %v13811_v6, %v7685_v61  ;;  %v13814_v59 = vunpack.i.l.bf16 %v9698_v11  ;;  %v13815_v61 = vld [vmem:[#allocation22_spill] sm:$0xff]  ;;  %v13816_v41 = vunpack.i.l.bf16 %v9781_v17  ;;  %v7841_v51 = vunpack.i.h.bf16 %v13767_v23  ;;  %2725 = vmatprep.mubr.f32.mxu1 %v9788_v7 }
 0x237   :  { %v6991_v25 = vpack.c.bf16 %v834_v15, %v717_v36  ;;  %v7770_v8 = vunpack.i.l.bf16 %v13815_v61  ;;  %v7881_v57 = vunpack.i.h.bf16 %v9867_v49  ;;  %v13817_v11 = vpack.c.bf16 %v10124_v2, %v10098_v48  ;;  %v13821_v48 = vld [vmem:[#allocation44_spill] sm:$0xff] }
 0x238   :  { %v950_v44 = vsel %vm13514_vm7, %v13814_v59, %v7761_v26  ;;  %v1067_v50 = vsel %vm13502_vm8, %v13816_v41, %v7801_v54  ;;  %v13818_v15 = vpack.c.bf16 %v10179_v28, %v10197_v13  ;;  %v1068_v33 = vsel %vm13502_vm8, %v7801_v54, %v7805_v4 }
 0x239   :  { %6990 = vmatpush1.bf16.msra.mxu0 %v13817_v11  ;;  %v7845_v24 = vunpack.i.l.bf16 %v13819_v9  ;;  %v7886_v17 = vunpack.i.h.bf16 %v13820_v43  ;;  %v7885_v34 = vunpack.i.l.bf16 %v13820_v43  ;;  %v1070_v6 = vsel %vm13502_vm8, %v7806_v42, %v7810_v46  ;;  %v13827_v43 = vld [vmem:[#allocation60_spill] sm:$0xff] }
 0x23a   :  { %7018 = vmatpush1.bf16.msra.mxu1 %v13818_v15  ;;  %6992 = vmatprep.subr.bf16.mxu0 %v6991_v25  ;;  %v952_v2 = vsel %vm13514_vm7, %v7765_v35, %v7766_v45  ;;  %v7890_v36 = vunpack.i.l.bf16 %v13821_v48  ;;  %v951_v28 = vsel %vm13514_vm7, %v7761_v26, %v7765_v35  ;;  %v953_v13 = vsel %vm13514_vm7, %v7766_v45, %v7770_v8  ;;  %v13823_v45 = vld [vmem:[#allocation34_spill] sm:$0xff] }
 0x23b   :  { %7020 = vmatprep.subr.bf16.mxu1 %v7019_v16  ;;  %v7846_v4 = vunpack.i.h.bf16 %v13819_v9  ;;  %v6995_v54 = vpack.c.bf16 %v1068_v33, %v951_v28  ;;  %v6997_v16 = vpack.c.bf16 %v1067_v50, %v950_v44  ;;  %v7029_v37 = vpack.c.bf16 %v10447_v38, %v952_v2  ;;  %v13825_v50 = vld [vmem:[#allocation50_spill] sm:$0xff] }
 0x23c   :  { %v13822_v42 = vunpack.i.l.bf16 %v13767_v23  ;;  %v7961_v25 = vunpack.i.h.bf16 %v13768_v32  ;;  %v1302_v26 = vsel %vm1292_vm10, %v7881_v57, %v7885_v34  ;;  %v7027_v35 = vpack.c.bf16 %v1070_v6, %v953_v13 }
 0x23d   :  { %6994 = vmatpush1.bf16.msra.mxu0 %v6993_v21  ;;  %v7850_v27 = vunpack.i.l.bf16 %v13823_v45  ;;  %v1303_v59 = vsel %vm1292_vm10, %v7885_v34, %v7886_v17  ;;  %v7921_v41 = vunpack.i.h.bf16 %v13779_v20  ;;  %v1185_v44 = vsel %vm1175_vm9, %v7841_v51, %v7845_v24 }
 0x23e   :  { %v1184_v0 = vsel %vm1175_vm9, %v13822_v42, %v7841_v51  ;;  %7022 = vmatpush1.bf16.msra.mxu1 %v7021_v19  ;;  %6996 = vmatprep.subr.bf16.mxu0 %v6995_v54  ;;  %v13824_v23 = vunpack.i.l.bf16 %v9867_v49  ;;  %v7925_v21 = vunpack.i.l.bf16 %v13825_v50  ;;  %v13826_v19 = vld [vmem:[#allocation53_spill] sm:$0xff]  ;;  %v1304_v15 = vsel %vm1292_vm10, %v7886_v17, %v7890_v36 }
 0x23f   :  { %7024 = vmatprep.subr.bf16.mxu1 %v7023_v29  ;;  %v7965_v11 = vunpack.i.l.bf16 %v13826_v19  ;;  %v1186_v33 = vsel %vm1175_vm9, %v7845_v24, %v7846_v4  ;;  %v7926_v9 = vunpack.i.h.bf16 %v13825_v50  ;;  %v7970_v29 = vunpack.i.l.bf16 %v13827_v43  ;;  %v10514_v50 = vpop.permute.xlu1 %8123 }
 0x240   :  { %v1301_v38 = vsel %vm1292_vm10, %v13824_v23, %v7881_v57  ;;  %v6999_v34 = vpack.c.bf16 %v1302_v26, %v1185_v44  ;;  %v8041_v51 = vunpack.i.h.bf16 %v13781_v1  ;;  %v1187_v57 = vsel %vm1175_vm9, %v7846_v4, %v7850_v27  ;;  %v13831_v26 = vld [vmem:[#allocation69_spill] sm:$0xff] }
 0x241   :  { %6998 = vmatpush1.bf16.msra.mxu0 %v6997_v16  ;;  %v1536_v49 = vsel %vm13519_vm12, %v7961_v25, %v7965_v11  ;;  %v7033_v6 = vpack.c.bf16 %v1303_v59, %v1186_v33  ;;  %v13828_v17 = vunpack.i.l.bf16 %v13779_v20  ;;  %v7966_v2 = vunpack.i.h.bf16 %v13826_v19  ;;  %v13830_v16 = vld [vmem:[#allocation66_spill] sm:$0xff]  ;;  %v13832_v59 = vld [vmem:[#allocation47_spill] sm:$0xff]  ;;  %v10525_v33 = vpop.permute.xlu0 %8128 }
 0x242   :  { %7026 = vmatpush1.bf16.msra.mxu1 %v7025_v30  ;;  %7000 = vmatprep.subr.bf16.mxu0 %v6999_v34  ;;  %v7001_v28 = vpack.c.bf16 %v1301_v38, %v1184_v0  ;;  %v7031_v13 = vpack.c.bf16 %v1304_v15, %v1187_v57  ;;  %v13829_v54 = vunpack.i.l.bf16 %v13768_v32  ;;  %v8005_v42 = vunpack.i.l.bf16 %v13830_v16 }
 0x243   :  { %v1418_v24 = vsel %vm13520_vm11, %v13828_v17, %v7921_v41  ;;  %7028 = vmatprep.subr.bf16.mxu1 %v7027_v35  ;;  %v8045_v44 = vunpack.i.l.bf16 %v13831_v26  ;;  %v1419_v4 = vsel %vm13520_vm11, %v7921_v41, %v7925_v21  ;;  %v7930_v20 = vunpack.i.l.bf16 %v13832_v59  ;;  %v13834_v17 = vld [vmem:[#allocation81_spill] sm:$0xff] }
 0x244   :  { %v1535_v30 = vsel %vm13519_vm12, %v13829_v54, %v7961_v25  ;;  %v1420_v23 = vsel %vm13520_vm11, %v7925_v21, %v7926_v9  ;;  %v7003_v19 = vpack.c.bf16 %v1536_v49, %v1419_v4  ;;  %v1538_v0 = vsel %vm13519_vm12, %v7966_v2, %v7970_v29  ;;  %v13833_v25 = vld [vmem:[#allocation73_spill] sm:$0xff] }
 0x245   :  { %v8001_v32 = vunpack.i.h.bf16 %v13786_v3  ;;  %v8050_v35 = vunpack.i.l.bf16 %v13833_v25  ;;  %v8121_v38 = vunpack.i.h.bf16 %v10329_v58  ;;  %7002 = vmatpush1.bf16.msra.mxu0 %v7001_v28  ;;  %v1770_v41 = vsel %vm1760_vm14, %v8041_v51, %v8045_v44 }
 0x246   :  { %7030 = vmatpush1.bf16.msra.mxu1 %v7029_v37  ;;  %v1537_v15 = vsel %vm13519_vm12, %v7965_v11, %v7966_v2  ;;  %v8006_v21 = vunpack.i.h.bf16 %v13830_v16  ;;  %7004 = vmatprep.subr.bf16.mxu0 %v7003_v19  ;;  %v7005_v34 = vpack.c.bf16 %v1535_v30, %v1418_v24  ;;  %v1421_v49 = vsel %vm13520_vm11, %v7926_v9, %v7930_v20  ;;  %v13835_v11 = vld [vmem:[#allocation63_spill] sm:$0xff] }
 0x247   :  { %7032 = vmatprep.subr.bf16.mxu1 %v7031_v13  ;;  %v8046_v57 = vunpack.i.h.bf16 %v13831_v26  ;;  %v8085_v28 = vunpack.i.l.bf16 %v13834_v17  ;;  %v8125_v37 = vunpack.i.l.bf16 %v10514_v50  ;;  %v1653_v54 = vsel %vm1643_vm13, %v8001_v32, %v8005_v42 }
 0x248   :  { %v8010_v2 = vunpack.i.l.bf16 %v13835_v11  ;;  %v1769_v16 = vsel %vm1760_vm14, %v8040_v10, %v8041_v51  ;;  %v7007_v13 = vpack.c.bf16 %v1770_v41, %v1653_v54  ;;  %v7035_v24 = vpack.c.bf16 %v1538_v0, %v1421_v49  ;;  %v13838_v54 = vld [vmem:[#allocation8_spill] sm:$0xff] }
 0x249   :  { %v8081_v30 = vunpack.i.h.bf16 %v13794_v60  ;;  %v8130_v9 = vunpack.i.l.bf16 %v10525_v33  ;;  %7006 = vmatpush1.bf16.msra.mxu0 %v7005_v34  ;;  %v2004_v26 = vsel %vm13439_vm0, %v8121_v38, %v8125_v37  ;;  %v1772_v4 = vsel %vm1760_vm14, %v8046_v57, %v8050_v35 }
 0x24a   :  { %7034 = vmatpush1.bf16.msra.mxu1 %v7033_v6  ;;  %v1652_v1 = vsel %vm1643_vm13, %v8000_v14, %v8001_v32  ;;  %7008 = vmatprep.subr.bf16.mxu0 %v7007_v13  ;;  %v7037_v10 = vpack.c.bf16 %v1537_v15, %v1420_v23  ;;  %v1655_v51 = vsel %vm1643_vm13, %v8006_v21, %v8010_v2  ;;  %v8086_v19 = vunpack.i.h.bf16 %v13834_v17  ;;  %v13836_v15 = vld [vmem:[#allocation76_spill] sm:$0xff]  ;;  %v13837_v17 = vld [vmem:[#allocation7_spill] sm:$0xff] }
 0x24b   :  { %7036 = vmatprep.subr.bf16.mxu1 %v7035_v24  ;;  %v8126_v6 = vunpack.i.h.bf16 %v10514_v50  ;;  %v7009_v0 = vpack.c.bf16 %v1769_v16, %v1652_v1  ;;  %v1887_v41 = vsel %vm1877_vm15, %v8081_v30, %v8085_v28  ;;  %v1771_v34 = vsel %vm1760_vm14, %v8045_v44, %v8046_v57 }
 0x24c   :  { %v2003_v3 = vsel %vm13439_vm0, %v8120_v12, %v8121_v38  ;;  %v7011_v14 = vpack.c.bf16 %v2004_v26, %v1887_v41  ;;  %v7039_v32 = vpack.c.bf16 %v1772_v4, %v1655_v51  ;;  %v7671_v23 = vunpack.i.h.bf16 %v13793_v18  ;;  %v269_v26 = vld [vmem:[#allocation2 + $0x68] sm:$0xff] }
 0x24d   :  { %v8090_v49 = vunpack.i.l.bf16 %v13836_v15  ;;  %7010 = vmatpush1.bf16.msra.mxu0 %v7009_v0  ;;  %v2006_v50 = vsel %vm13439_vm0, %v8126_v6, %v8130_v9  ;;  %v13839_v16 = vunpack.i.h.bf16 %v13838_v54  ;;  %v7651_v58 = vunpack.i.h.bf16 %v13791_v52 }
 0x24e   :  { %7038 = vmatpush1.bf16.msra.mxu1 %v7037_v10  ;;  %v13840_v12 = vunpack.i.h.bf16 %v9552_v55  ;;  %v13841_v38 = vunpack.i.l.bf16 %v9552_v55  ;;  %v1654_v13 = vsel %vm1643_vm13, %v8005_v42, %v8006_v21  ;;  %v1886_v24 = vsel %vm1877_vm15, %v8080_v63, %v8081_v30  ;;  %7012 = vmatprep.subr.bf16.mxu0 %v7011_v14  ;;  %v13842_v55 = vld [vmem:[#allocation19_spill] sm:$0xff]  ;;  %v268_v21 = vld [vmem:[#allocation2 + $0x60] sm:$0xff] }
 0x24f   :  { %v10566_v44 = vsel %vm590_vm4, %v13839_v16, %v13837_v17  ;;  %7040 = vmatprep.subr.bf16.mxu1 %v7039_v32  ;;  %v7013_v4 = vpack.c.bf16 %v2003_v3, %v1886_v24  ;;  %v7041_v1 = vpack.c.bf16 %v1771_v34, %v1654_v13  ;;  %v1889_v10 = vsel %vm1877_vm15, %v8086_v19, %v8090_v49  ;;  %v13844_v3 = vld [vmem:[#allocation85_spill] sm:$0xff]  ;;  %v13846_v32 = vld [vmem:[#allocation83_spill] sm:$0xff] }
 0x250   :  { %v369_v57 = vsel %vm356_vm2, %v13841_v38, %v13840_v12  ;;  %v7047_v51 = vpack.c.bf16 %v10240_v47, %v269_v26  ;;  %v7736_v0 = vunpack.i.h.bf16 %v13842_v55  ;;  %v7735_v41 = vunpack.i.l.bf16 %v13842_v55  ;;  %v13845_v47 = vld [vmem:[#allocation82_spill] sm:$0xff] }
 0x251   :  { %v2005_v42 = vsel %vm13439_vm0, %v8125_v37, %v8126_v6  ;;  %v7043_v60 = vpack.c.bf16 %v2006_v50, %v1889_v10  ;;  %v7731_v63 = vunpack.i.h.bf16 %v13800_v40  ;;  %7014 = vmatpush1.bf16.msra.mxu0 %v7013_v4  ;;  %v13843_v30 = vunpack.i.l.bf16 %v13838_v54  ;;  %v13847_v6 = vld [vmem:[#allocation6_spill] sm:$0xff]  ;;  %v13849_v54 = vld [vmem:[#allocation17_spill] sm:$0xff]  ;;  %v13853_v40 = vld [vmem:[#allocation79_spill] sm:$0xff] }
 0x252   :  { %7042 = vmatpush1.bf16.msra.mxu1 %v7041_v1  ;;  %v7083_v14 = vpack.c.bf16 %v10566_v44, %v13844_v3  ;;  %v7085_v17 = vpack.c.bf16 %v13846_v32, %v13845_v47  ;;  %v1888_v16 = vsel %vm1877_vm15, %v8085_v28, %v8086_v19  ;;  %7048 = vmatprep.subr.bf16.mxu0 %v7047_v51  ;;  %v13848_v50 = vunpack.i.l.bf16 %v13847_v6  ;;  %v13850_v1 = vld [vmem:[#allocation21_spill] sm:$0xff]  ;;  %v13856_v32 = vld [vmem:[#allocation78_spill] sm:$0xff] }
 0x253   :  { %v604_v34 = vsel %vm590_vm4, %v7671_v23, %v13843_v30  ;;  %7044 = vmatprep.subr.bf16.mxu1 %v7043_v60  ;;  %v7049_v37 = vpack.c.bf16 %v369_v57, %v268_v21  ;;  %v7696_v38 = vunpack.i.h.bf16 %v13804_v56  ;;  %v7691_v13 = vunpack.i.h.bf16 %v13849_v54  ;;  %v13855_v21 = vld [vmem:[#allocation15_spill] sm:$0xff] }
 0x254   :  { %v487_v12 = vsel %vm473_vm3, %v7651_v58, %v13848_v50  ;;  %v7690_v24 = vunpack.i.l.bf16 %v13849_v54  ;;  %v7045_v26 = vpack.c.bf16 %v2005_v42, %v1888_v16  ;;  %v486_v44 = vsel %vm473_vm3, %v7650_v53, %v7651_v58  ;;  %2655 = vmatmul.mubr.f32.vlgmr.msra.gmra.mrb[4].mxu0 %v10148_v39  ;;  %v13852_v58 = vld [vmem:[#allocation27_spill] sm:$0xff] }
 0x255   :  { %v603_v28 = vsel %vm590_vm4, %v7670_v62, %v7671_v23  ;;  %v10607_v19 = vsel %vm13517_vm6, %v7735_v41, %v7736_v0  ;;  %v7051_v57 = vpack.c.bf16 %v604_v34, %v487_v12  ;;  %v837_v4 = vsel %vm13517_vm6, %v7730_v22, %v7731_v63  ;;  %7050 = vmatpush1.bf16.msra.mxu0 %v7049_v37  ;;  %v13851_v62 = vld [vmem:[#allocation25_spill] sm:$0xff] }
 0x256   :  { %v840_v10 = vsel %vm13517_vm6, %v7736_v0, %v13850_v1  ;;  %v7811_v52 = vunpack.i.h.bf16 %v13809_v31  ;;  %7046 = vmatpush1.bf16.msra.mxu1 %v7045_v26  ;;  %v838_v53 = vsel %vm13517_vm6, %v7731_v63, %v7735_v41  ;;  %v7771_v18 = vunpack.i.h.bf16 %v13815_v61  ;;  %v10629_v63 = vld [vmem:[#allocation2 + $0x30] sm:$0xff] }
 0x257   :  { %v7775_v23 = vunpack.i.l.bf16 %v13851_v62  ;;  %v7816_v51 = vunpack.i.h.bf16 %v13852_v58  ;;  %v7815_v55 = vunpack.i.l.bf16 %v13852_v58  ;;  %7052 = vmatprep.subr.bf16.mxu0 %v7051_v57  ;;  %v13854_v22 = vpack.c.bf16 %v13853_v40, %v9788_v7  ;;  %2796 = vmatprep.mubr.f32.mxu0 %v10629_v63  ;;  %v13861_v57 = vld [vmem:[#allocation23_spill] sm:$0xff]  ;;  %v13863_v58 = vld [vmem:[#allocation54_spill] sm:$0xff] }
 0x258   :  { %v720_v0 = vsel %vm13629_vm5, %v7695_v5, %v7696_v38  ;;  %v722_v42 = vsel %vm13629_vm5, %v7690_v24, %v7691_v13  ;;  %v7053_v41 = vpack.c.bf16 %v603_v28, %v486_v44  ;;  %v721_v60 = vsel %vm13629_vm5, %v7696_v38, %v7690_v24  ;;  %v13859_v24 = vld [vmem:[#allocation37_spill] sm:$0xff]  ;;  %v13860_v44 = vld [vmem:[#allocation39_spill] sm:$0xff]  ;;  %4033 = vrot.lane.b32.xlu0 %v10629_v63, %s9098_s1 }
 0x259   :  { %7080 = vmatprep.subr.bf16.mxu1 %v13854_v22  ;;  %v723_v30 = vsel %vm13629_vm5, %v7691_v13, %v13855_v21  ;;  %v7776_v34 = vunpack.i.h.bf16 %v13851_v62  ;;  %2726 = vmatmul.mubr.f32.vlgmr.msra.gmra.mrb[4].mxu1 %v10148_v39  ;;  %v7055_v3 = vpack.c.bf16 %v838_v53, %v721_v60  ;;  %v7089_v56 = vpack.c.bf16 %v10607_v19, %v722_v42  ;;  %v13858_v13 = vld [vmem:[#allocation33_spill] sm:$0xff]  ;;  %v13862_v62 = vld [vmem:[#allocation52_spill] sm:$0xff]  ;;  %v13865_v21 = vld [vmem:[#allocation35_spill] sm:$0xff] }
 0x25a   :  { %v7087_v5 = vpack.c.bf16 %v840_v10, %v723_v30  ;;  %v7891_v47 = vunpack.i.h.bf16 %v13821_v48  ;;  %7054 = vmatpush1.bf16.msra.mxu0 %v7053_v41  ;;  %v13857_v16 = vpack.c.bf16 %v13856_v32, %v9788_v7  ;;  %v7057_v37 = vpack.c.bf16 %v837_v4, %v720_v0  ;;  %2867 = vmatprep.mubr.f32.mxu1 %v10629_v63  ;;  %v13864_v48 = vld [vmem:[#allocation46_spill] sm:$0xff]  ;;  %v10742_v63 = vld [vmem:[%s13335_s5] sm:$0xff] }
 0x25b   :  { %v1072_v6 = vsel %vm13502_vm8, %v7811_v52, %v7815_v55  ;;  %v954_v50 = vsel %vm13514_vm7, %v7770_v8, %v7771_v18  ;;  %v1073_v12 = vsel %vm13502_vm8, %v7815_v55, %v7816_v51  ;;  %7056 = vmatprep.subr.bf16.mxu0 %v7055_v3  ;;  %v955_v38 = vsel %vm13514_vm7, %v7771_v18, %v7775_v23  ;;  %v13867_v32 = vld [vmem:[#allocation70_spill] sm:$0xff] }
 0x25c   :  { %7082 = vmatpush1.bf16.msra.mxu1 %v13857_v16  ;;  %v1071_v54 = vsel %vm13502_vm8, %v7810_v46, %v7811_v52  ;;  %v1074_v7 = vsel %vm13502_vm8, %v7816_v51, %v13858_v13  ;;  %v7855_v26 = vunpack.i.l.bf16 %v13859_v24  ;;  %v7895_v28 = vunpack.i.l.bf16 %v13860_v44 }
 0x25d   :  { %7084 = vmatprep.subr.bf16.mxu1 %v7083_v14  ;;  %v956_v61 = vsel %vm13514_vm7, %v7775_v23, %v7776_v34  ;;  %v7851_v8 = vunpack.i.h.bf16 %v13823_v45  ;;  %v7856_v14 = vunpack.i.h.bf16 %v13859_v24  ;;  %v7059_v19 = vpack.c.bf16 %v1072_v6, %v955_v38 }
 0x25e   :  { %v957_v31 = vsel %vm13514_vm7, %v7776_v34, %v13861_v57  ;;  %v7896_v46 = vunpack.i.h.bf16 %v13860_v44  ;;  %v7971_v4 = vunpack.i.h.bf16 %v13827_v43  ;;  %7058 = vmatpush1.bf16.msra.mxu0 %v7057_v37  ;;  %v1306_v1 = vsel %vm1292_vm10, %v7891_v47, %v7895_v28 }
 0x25f   :  { %v7091_v10 = vpack.c.bf16 %v1074_v7, %v957_v31  ;;  %7060 = vmatprep.subr.bf16.mxu0 %v7059_v19  ;;  %v7061_v52 = vpack.c.bf16 %v1071_v54, %v954_v50  ;;  %v7093_v53 = vpack.c.bf16 %v1073_v12, %v956_v61  ;;  %v1305_v18 = vsel %vm1292_vm10, %v7890_v36, %v7891_v47  ;;  %v8134_v50 = vpop.permute.xlu1 %8133  ;;  %v13868_v54 = vld [vmem:[#allocation62_spill] sm:$0xff]  ;;  %v13870_v61 = vld [vmem:[#allocation84_spill] sm:$0xff] }
 0x260   :  { %7086 = vmatpush1.bf16.msra.mxu1 %v7085_v17  ;;  %v7935_v23 = vunpack.i.l.bf16 %v13862_v62  ;;  %v7975_v51 = vunpack.i.l.bf16 %v13863_v58  ;;  %v1189_v55 = vsel %vm1175_vm9, %v7851_v8, %v7855_v26  ;;  %v1188_v17 = vsel %vm1175_vm9, %v7850_v27, %v7851_v8 }
 0x261   :  { %7088 = vmatprep.subr.bf16.mxu1 %v7087_v5  ;;  %v1190_v40 = vsel %vm1175_vm9, %v7855_v26, %v7856_v14  ;;  %v7931_v22 = vunpack.i.h.bf16 %v13832_v59  ;;  %v7063_v0 = vpack.c.bf16 %v1306_v1, %v1189_v55  ;;  %v1307_v42 = vsel %vm1292_vm10, %v7895_v28, %v7896_v46  ;;  %v13866_v5 = vld [vmem:[#allocation68_spill] sm:$0xff]  ;;  %v13871_v1 = vld [vmem:[#allocation75_spill] sm:$0xff] }
 0x262   :  { %v1308_v36 = vsel %vm1292_vm10, %v7896_v46, %v13864_v48  ;;  %v8051_v41 = vunpack.i.h.bf16 %v13833_v25  ;;  %7062 = vmatpush1.bf16.msra.mxu0 %v7061_v52  ;;  %v1540_v60 = vsel %vm13519_vm12, %v7971_v4, %v7975_v51  ;;  %v1191_v45 = vsel %vm1175_vm9, %v7856_v14, %v13865_v21  ;;  %v13869_v26 = vld [vmem:[#allocation48_spill] sm:$0xff] }
 0x263   :  { %v7936_v27 = vunpack.i.h.bf16 %v13862_v62  ;;  %v7976_v30 = vunpack.i.h.bf16 %v13863_v58  ;;  %7064 = vmatprep.subr.bf16.mxu0 %v7063_v0  ;;  %v7065_v34 = vpack.c.bf16 %v1305_v18, %v1188_v17  ;;  %v1539_v3 = vsel %vm13519_vm12, %v7970_v29, %v7971_v4  ;;  %v13872_v62 = vld [vmem:[#allocation64_spill] sm:$0xff] }
 0x264   :  { %7090 = vmatpush1.bf16.msra.mxu1 %v7089_v56  ;;  %v8015_v47 = vunpack.i.l.bf16 %v13866_v5  ;;  %v8055_v56 = vunpack.i.l.bf16 %v13867_v32  ;;  %v1423_v16 = vsel %vm13520_vm11, %v7931_v22, %v7935_v23  ;;  %v7095_v37 = vpack.c.bf16 %v1308_v36, %v1191_v45  ;;  %v13873_v36 = vld [vmem:[#allocation80_spill] sm:$0xff] }
 0x265   :  { %7092 = vmatprep.subr.bf16.mxu1 %v7091_v10  ;;  %v1422_v6 = vsel %vm13520_vm11, %v7930_v20, %v7931_v22  ;;  %v7067_v12 = vpack.c.bf16 %v1540_v60, %v1423_v16  ;;  %v7097_v38 = vpack.c.bf16 %v1307_v42, %v1190_v40  ;;  %v1542_v13 = vsel %vm13519_vm12, %v7976_v30, %v13868_v54  ;;  %v2891_v16 = vld [vmem:[%s13335_s5 + $0x8] sm:$0xff]  ;;  %s9099_s5 = smov 64  }
 0x266   :  { %v8011_v43 = vunpack.i.h.bf16 %v13835_v11  ;;  %v8131_v29 = vunpack.i.h.bf16 %v10525_v33  ;;  %7066 = vmatpush1.bf16.msra.mxu0 %v7065_v34  ;;  %v1774_v7 = vsel %vm1760_vm14, %v8051_v41, %v8055_v56  ;;  %v1541_v24 = vsel %vm13519_vm12, %v7975_v51, %v7976_v30 }
 0x267   :  { %v1425_v59 = vsel %vm13520_vm11, %v7936_v27, %v13869_v26  ;;  %v8016_v20 = vunpack.i.h.bf16 %v13866_v5  ;;  %7068 = vmatprep.subr.bf16.mxu0 %v7067_v12  ;;  %v7069_v44 = vpack.c.bf16 %v1539_v3, %v1422_v6  ;;  %v8056_v28 = vunpack.i.h.bf16 %v13867_v32  ;;  %v10777_v26 = vpop.permute.xlu1 %2303 }
 0x268   :  { %7094 = vmatpush1.bf16.msra.mxu1 %v7093_v53  ;;  %v8095_v8 = vunpack.i.l.bf16 %v13870_v61  ;;  %v8135_v14 = vunpack.i.l.bf16 %v8134_v50  ;;  %v1657_v19 = vsel %vm1643_vm13, %v8011_v43, %v8015_v47  ;;  %v7099_v57 = vpack.c.bf16 %v1542_v13, %v1425_v59 }
 0x269   :  { %7096 = vmatprep.subr.bf16.mxu1 %v7095_v37  ;;  %v1773_v31 = vsel %vm1760_vm14, %v8050_v35, %v8051_v41  ;;  %v7071_v46 = vpack.c.bf16 %v1774_v7, %v1657_v19  ;;  %v1424_v4 = vsel %vm13520_vm11, %v7935_v23, %v7936_v27  ;;  %v1776_v10 = vsel %vm1760_vm14, %v8056_v28, %v13871_v1  ;;  %v1993_v35 = vpop.permute.xlu0 %1992 }
 0x26a   :  { %v8091_v52 = vunpack.i.h.bf16 %v13836_v15  ;;  %7070 = vmatpush1.bf16.msra.mxu0 %v7069_v44  ;;  %v2008_v53 = vsel %vm13439_vm0, %v8131_v29, %v8135_v14  ;;  %v1656_v18 = vsel %vm1643_vm13, %v8010_v2, %v8011_v43  ;;  %v1659_v25 = vsel %vm1643_vm13, %v8016_v20, %v13872_v62 }
 0x26b   :  { %7072 = vmatprep.subr.bf16.mxu0 %v7071_v46  ;;  %v7101_v23 = vpack.c.bf16 %v1541_v24, %v1424_v4  ;;  %v8096_v58 = vunpack.i.h.bf16 %v13870_v61  ;;  %v8136_v51 = vunpack.i.h.bf16 %v8134_v50  ;;  %v7073_v55 = vpack.c.bf16 %v1773_v31, %v1656_v18 }
 0x26c   :  { %7098 = vmatpush1.bf16.msra.mxu1 %v7097_v38  ;;  %v1891_v17 = vsel %vm1877_vm15, %v8091_v52, %v8095_v8  ;;  %v1775_v40 = vsel %vm1760_vm14, %v8055_v56, %v8056_v28  ;;  %v7103_v22 = vpack.c.bf16 %v1776_v10, %v1659_v25  ;;  %v2007_v11 = vsel %vm13439_vm0, %v8130_v9, %v8131_v29 }
 0x26d   :  { %7100 = vmatprep.subr.bf16.mxu1 %v7099_v57  ;;  %v7075_v2 = vpack.c.bf16 %v2008_v53, %v1891_v17  ;;  %v2010_v0 = vsel %vm13439_vm0, %v8136_v51, %v1993_v35  ;;  %v1658_v42 = vsel %vm1643_vm13, %v8015_v47, %v8016_v20  ;;  %v1890_v48 = vsel %vm1877_vm15, %v8090_v49, %v8091_v52 }
 0x26e   :  { %7074 = vmatpush1.bf16.msra.mxu0 %v7073_v55  ;;  %v1893_v41 = vsel %vm1877_vm15, %v8096_v58, %v13873_v36  ;;  %v7077_v60 = vpack.c.bf16 %v2007_v11, %v1890_v48  ;;  %v7105_v33 = vpack.c.bf16 %v1775_v40, %v1658_v42  ;;  %v2009_v9 = vsel %vm13439_vm0, %v8135_v14, %v8136_v51 }
 0x26f   :  { %7076 = vmatprep.subr.bf16.mxu0 %v7075_v2  ;;  %v7107_v21 = vpack.c.bf16 %v2010_v0, %v1893_v41  ;;  %v1892_v15 = vsel %vm1877_vm15, %v8095_v8, %v8096_v58  ;;  %v2894_v45 = vlaneseq  ;;  %vm13503_vm0 = vcmask 769024  }
 0x270   :  { %7102 = vmatpush1.bf16.msra.mxu1 %v7101_v23  ;;  %v7109_v49 = vpack.c.bf16 %v2009_v9, %v1892_v15 }
 0x271   :  { %7104 = vmatprep.subr.bf16.mxu1 %v7103_v22  ;;  %v10736_v27 = vshrl.u32 %v2894_v45, 7 }
 0x272   :  { %7078 = vmatpush1.bf16.msra.mxu0 %v7077_v60 }
 0x273   :  { %v2916_v30 = vsub.s32 5, %v10736_v27  ;;  %v2920_v3 = vsub.s32 6, %v10736_v27  ;;  %v2924_v5 = vsub.s32 7, %v10736_v27  ;;  %v2896_v32 = vsub.s32 0, %v10736_v27 }
 0x274   :  { %7106 = vmatpush1.bf16.msra.mxu1 %v7105_v33  ;;  %v2900_v56 = vsub.s32 1, %v10736_v27  ;;  %v2904_v6 = vsub.s32 2, %v10736_v27  ;;  %v2908_v12 = vsub.s32 3, %v10736_v27  ;;  %v2912_v13 = vsub.s32 4, %v10736_v27 }
 0x275   :  { %7108 = vmatprep.subr.bf16.mxu1 %v7107_v21  ;;  %2797 = vmatmul.mubr.f32.vlgmr.msra.gmra.mrb[6].mxu0 %v10148_v39  ;;  %v2917_v34 = vrot.slane %v10742_v63, %v2916_v30  ;;  %v10748_v47 = vrot.slane %v10742_v63, %v2920_v3  ;;  %v10758_v37 = vrot.slane %v2891_v16, %v2896_v32 }
 0x276   :  { %v10761_v50 = vrot.slane %v2891_v16, %v2900_v56  ;;  %v10764_v38 = vrot.slane %v2891_v16, %v2904_v6  ;;  %v10766_v54 = vrot.slane %v2891_v16, %v2908_v12  ;;  %v10769_v43 = vrot.slane %v2891_v16, %v2912_v13 }
 0x277   :  { %v10771_v29 = vrot.slane %v2891_v16, %v2916_v30  ;;  %v10773_v7 = vrot.slane %v2891_v16, %v2920_v3  ;;  %v10775_v24 = vrot.slane %v2891_v16, %v2924_v5  ;;  %v2897_v28 = vrot.slane %v10742_v63, %v2896_v32 }
 0x278   :  { %7110 = vmatpush1.bf16.msra.mxu1 %v7109_v49  ;;  %v2901_v8 = vrot.slane %v10742_v63, %v2900_v56  ;;  %v2905_v4 = vrot.slane %v10742_v63, %v2904_v6  ;;  %v2909_v53 = vrot.slane %v10742_v63, %v2908_v12  ;;  %v2913_v21 = vrot.slane %v10742_v63, %v2912_v13 }
 0x27b   :  { %2868 = vmatmul.mubr.f32.vlgmr.msra.gmra.mrb[6].mxu1 %v10148_v39  ;;  %v10751_v39 = vrot.slane %v10742_v63, %v2924_v5 }
 0x2e0   :  { %v2372_v59 = vpop.f32.mrb[0].mxu0 }
 0x2e1   :  { %v2373_v20 = vadd.f32 %v2372_v59, %v10777_v26  ;;  %v2374_v44 = vpop.f32.mrb[1].mxu0 }
 0x2e2   :  { %v2375_v61 = vadd.f32 %v2374_v44, %v10777_v26 }
 0x2e3   :  { %v2874_v14 = vmax.f32 %v2373_v20, 0.0 }
 0x2e4   :  { %v2875_v19 = vmax.f32 %v2375_v61, 0.0  ;;  %v2443_v57 = vpop.f32.mrb[0].mxu1  ;;  %v10901_v61 = vpop.permute.xlu1 %3220 }
 0x2e5   :  { %v10783_v31 = vmul.f32 %v2897_v28, %v2874_v14  ;;  %v2444_v46 = vadd.f32 %v2443_v57, %v10777_v26  ;;  %v2445_v1 = vpop.f32.mrb[1].mxu1  ;;  %13882 = vst [vmem:[#allocation71_spill] sm:$0xff] %v10901_v61 }
 0x2e6   :  { %v10787_v10 = vmul.f32 %v2901_v8, %v2875_v19  ;;  %v2446_v52 = vadd.f32 %v2445_v1, %v10777_v26 }
 0x2e7   :  { %v2876_v18 = vmax.f32 %v2444_v46, 0.0 }
 0x2e8   :  { %v2877_v62 = vmax.f32 %v2446_v52, 0.0  ;;  %v8138_v25 = vpack.i.bf16 %v10787_v10, %v10783_v31 }
 0x2e9   :  { %v10793_v35 = vmul.f32 %v2905_v4, %v2876_v18 }
 0x2ea   :  { %v10795_v23 = vmul.f32 %v2909_v53, %v2877_v62  ;;  %8139 = vrot.lane.b32.xlu0 %v8138_v25, %s9081_s12 }
 0x2eb   :  { %v8248_v45 = vpack.i.bf16 %v10793_v35, %v10787_v10 }
 0x2ec   :  { %v8143_v58 = vpack.i.bf16 %v10795_v23, %v10793_v35 }
 0x2ee   :  { %8144 = vrot.lane.b32.xlu1 %v8143_v58, %s9081_s12  ;;  %8154 = vrot.lane.b32.xlu0 %v8143_v58, %s9082_s21 }
 0x2f2   :  { %8149 = vrot.lane.b32.xlu1 %v8138_v25, %s9082_s21  ;;  %8159 = vrot.lane.b32.xlu0 %v8138_v25, %s9083_s0 }
 0x2f6   :  { %8164 = vrot.lane.b32.xlu1 %v8143_v58, %s9083_s0  ;;  %8174 = vrot.lane.b32.xlu0 %v8143_v58, %s9097_s2 }
 0x2fa   :  { %8169 = vrot.lane.b32.xlu1 %v8138_v25, %s9097_s2  ;;  %8179 = vrot.lane.b32.xlu0 %v8138_v25, %s9084_s22 }
 0x2fe   :  { %8184 = vrot.lane.b32.xlu1 %v8143_v58, %s9084_s22  ;;  %8194 = vrot.lane.b32.xlu0 %v8143_v58, %s9085_s9 }
 0x302   :  { %8189 = vrot.lane.b32.xlu1 %v8138_v25, %s9085_s9  ;;  %8199 = vrot.lane.b32.xlu0 %v8138_v25, %s9086_s10 }
 0x306   :  { %v2514_v51 = vpop.f32.mrb[2].mxu0  ;;  %8204 = vrot.lane.b32.xlu1 %v8143_v58, %s9086_s10  ;;  %8214 = vrot.lane.b32.xlu0 %v8143_v58, %s9087_s18 }
 0x307   :  { %v2516_v55 = vpop.f32.mrb[3].mxu0  ;;  %v2515_v36 = vadd.f32 %v2514_v51, %v10777_v26 }
 0x308   :  { %v2517_v17 = vadd.f32 %v2516_v55, %v10777_v26  ;;  %v2585_v22 = vpop.f32.mrb[2].mxu1 }
 0x309   :  { %v2586_v11 = vadd.f32 %v2585_v22, %v10777_v26  ;;  %v2587_v2 = vpop.f32.mrb[3].mxu1  ;;  %v2878_v9 = vmax.f32 %v2515_v36, 0.0 }
 0x30a   :  { %v2879_v40 = vmax.f32 %v2517_v17, 0.0  ;;  %v2588_v42 = vadd.f32 %v2587_v2, %v10777_v26  ;;  %8209 = vrot.lane.b32.xlu1 %v8138_v25, %s9087_s18  ;;  %8219 = vrot.lane.b32.xlu0 %v8138_v25, %s9098_s1 }
 0x30b   :  { %v2880_v48 = vmax.f32 %v2586_v11, 0.0  ;;  %v10831_v15 = vmul.f32 %v2913_v21, %v2878_v9 }
 0x30c   :  { %v10814_v0 = vmul.f32 %v2917_v34, %v2879_v40  ;;  %v2881_v41 = vmax.f32 %v2588_v42, 0.0 }
 0x30d   :  { %v10821_v60 = vmul.f32 %v10748_v47, %v2880_v48  ;;  %v10837_v49 = vpack.i.bf16 %v10831_v15, %v10795_v23 }
 0x30e   :  { %13874 = vst [vmem:[#allocation87_spill] sm:$0xff] %v10814_v0  ;;  %v10824_v33 = vmul.f32 %v10751_v39, %v2881_v41  ;;  %8224 = vrot.lane.b32.xlu1 %v8143_v58, %s9098_s1  ;;  %8234 = vrot.lane.b32.xlu0 %v8143_v58, %s9088_s23 }
 0x30f   :  { %13875 = vst [vmem:[#allocation40_spill] sm:$0xff] %v10821_v60 }
 0x310   :  { %13876 = vst [vmem:[#allocation9_spill] sm:$0xff] %v10824_v33  ;;  %v10905_v57 = vpack.i.bf16 %v10824_v33, %v10821_v60 }
 0x312   :  { %8229 = vrot.lane.b32.xlu1 %v8138_v25, %s9088_s23  ;;  %8239 = vrot.lane.b32.xlu0 %v8138_v25, %s9089_s26 }
 0x316   :  { %8244 = vrot.lane.b32.xlu1 %v8143_v58, %s9089_s26  ;;  %8309 = vrot.lane.b32.xlu0 %v10837_v49, %s9090_s8  ;;  %v10920_v58 = vpop.permute.xlu1 %3452 }
 0x317   :  { %13886 = vst [vmem:[#allocation65_spill] sm:$0xff] %v10920_v58 }
 0x31a   :  { %8249 = vrot.lane.b32.xlu1 %v8248_v45, %s9090_s8  ;;  %8314 = vrot.lane.b32.xlu0 %v10837_v49, %s9091_s24 }
 0x31e   :  { %8254 = vrot.lane.b32.xlu1 %v8248_v45, %s9091_s24  ;;  %8319 = vrot.lane.b32.xlu0 %v10837_v49, %s9099_s5 }
 0x322   :  { %8259 = vrot.lane.b32.xlu1 %v8248_v45, %s9099_s5  ;;  %8324 = vrot.lane.b32.xlu0 %v10837_v49, %s9092_s29 }
 0x326   :  { %8264 = vrot.lane.b32.xlu1 %v8248_v45, %s9092_s29  ;;  %8329 = vrot.lane.b32.xlu0 %v10837_v49, %s9093_s13 }
 0x327   :  { %v2656_v27 = vpop.f32.mrb[4].mxu0 }
 0x328   :  { %v2657_v30 = vadd.f32 %v2656_v27, %v10777_v26  ;;  %v2658_v63 = vpop.f32.mrb[5].mxu0 }
 0x329   :  { %v2659_v34 = vadd.f32 %v2658_v63, %v10777_v26 }
 0x32a   :  { %v2882_v3 = vmax.f32 %v2657_v30, 0.0  ;;  %8269 = vrot.lane.b32.xlu1 %v8248_v45, %s9093_s13  ;;  %8334 = vrot.lane.b32.xlu0 %v10837_v49, %s9094_s14 }
 0x32b   :  { %v2883_v5 = vmax.f32 %v2659_v34, 0.0 }
 0x32c   :  { %v2727_v47 = vpop.f32.mrb[4].mxu1  ;;  %v10856_v39 = vmul.f32 %v10758_v37, %v2882_v3 }
 0x32d   :  { %v2728_v32 = vadd.f32 %v2727_v47, %v10777_v26  ;;  %v2729_v56 = vpop.f32.mrb[5].mxu1  ;;  %v10860_v16 = vmul.f32 %v10761_v50, %v2883_v5  ;;  %v10890_v50 = vpop.permute.xlu0 %3104 }
 0x32e   :  { %13877 = vst [vmem:[#allocation49_spill] sm:$0xff] %v10856_v39  ;;  %v2730_v6 = vadd.f32 %v2729_v56, %v10777_v26  ;;  %8274 = vrot.lane.b32.xlu1 %v8248_v45, %s9094_s14  ;;  %8339 = vrot.lane.b32.xlu0 %v10837_v49, %s9095_s30  ;;  %13881 = vst [vmem:[#allocation58_spill] sm:$0xff] %v10890_v50 }
 0x32f   :  { %13878 = vst [vmem:[#allocation51_spill] sm:$0xff] %v10860_v16  ;;  %v2884_v12 = vmax.f32 %v2728_v32, 0.0 }
 0x330   :  { %v2885_v13 = vmax.f32 %v2730_v6, 0.0 }
 0x331   :  { %v10867_v59 = vmul.f32 %v10764_v38, %v2884_v12  ;;  %v10907_v46 = vpop.permute.xlu0 %3336 }
 0x332   :  { %v10870_v37 = vmul.f32 %v10766_v54, %v2885_v13  ;;  %8279 = vrot.lane.b32.xlu1 %v8248_v45, %s9095_s30  ;;  %8344 = vrot.lane.b32.xlu0 %v10837_v49, %s9100_s7  ;;  %v10894_v54 = vpack.i.bf16 %v10814_v0, %v10831_v15  ;;  %13883 = vst [vmem:[#allocation29_spill] sm:$0xff] %v10907_v46 }
 0x333   :  { %13879 = vst [vmem:[#allocation30_spill] sm:$0xff] %v10867_v59 }
 0x334   :  { %13880 = vst [vmem:[#allocation32_spill] sm:$0xff] %v10870_v37 }
 0x336   :  { %8284 = vrot.lane.b32.xlu1 %v8248_v45, %s9100_s7  ;;  %8349 = vrot.lane.b32.xlu0 %v10837_v49, %s9101_s11 }
 0x33a   :  { %8289 = vrot.lane.b32.xlu1 %v8248_v45, %s9101_s11  ;;  %8354 = vrot.lane.b32.xlu0 %v10837_v49, %s9102_s15 }
 0x33e   :  { %8294 = vrot.lane.b32.xlu1 %v8248_v45, %s9102_s15  ;;  %8359 = vrot.lane.b32.xlu0 %v10837_v49, %s9103_s19 }
 0x342   :  { %8299 = vrot.lane.b32.xlu1 %v8248_v45, %s9103_s19  ;;  %8364 = vrot.lane.b32.xlu0 %v10894_v54, %s9081_s12 }
 0x346   :  { %8304 = vrot.lane.b32.xlu1 %v8248_v45, %s9104_s20  ;;  %8379 = vrot.lane.b32.xlu0 %v10905_v57, %s9082_s21 }
 0x348   :  { %v2798_v38 = vpop.f32.mrb[6].mxu0 }
 0x349   :  { %v2799_v20 = vadd.f32 %v2798_v38, %v10777_v26  ;;  %v2800_v44 = vpop.f32.mrb[7].mxu0 }
 0x34a   :  { %v2801_v28 = vadd.f32 %v2800_v44, %v10777_v26  ;;  %8369 = vrot.lane.b32.xlu1 %v10905_v57, %s9081_s12  ;;  %8384 = vrot.lane.b32.xlu0 %v10894_v54, %s9083_s0 }
 0x34b   :  { %v2886_v8 = vmax.f32 %v2799_v20, 0.0 }
 0x34c   :  { %v2887_v14 = vmax.f32 %v2801_v28, 0.0 }
 0x34d   :  { %v10910_v4 = vmul.f32 %v10769_v43, %v2886_v8 }
 0x34e   :  { %v2869_v19 = vpop.f32.mrb[6].mxu1  ;;  %v10914_v53 = vmul.f32 %v10771_v29, %v2887_v14  ;;  %v10932_v29 = vpop.permute.xlu0 %3569  ;;  %8374 = vrot.lane.b32.xlu1 %v10894_v54, %s9082_s21  ;;  %8399 = vrot.lane.b32.xlu0 %v10905_v57, %s9097_s2 }
 0x34f   :  { %13884 = vst [vmem:[#allocation28_spill] sm:$0xff] %v10910_v4  ;;  %v2870_v1 = vadd.f32 %v2869_v19, %v10777_v26  ;;  %v2871_v52 = vpop.f32.mrb[7].mxu1  ;;  %13889 = vst [vmem:[#allocation45_spill] sm:$0xff] %v10932_v29 }
 0x350   :  { %13885 = vst [vmem:[#allocation55_spill] sm:$0xff] %v10914_v53  ;;  %v2872_v18 = vadd.f32 %v2871_v52, %v10777_v26  ;;  %v10938_v26 = vpop.permute.xlu1 %3685  ;;  %v11245_v50 = vpack.i.bf16 %v10914_v53, %v10910_v4 }
 0x351   :  { %v2888_v62 = vmax.f32 %v2870_v1, 0.0  ;;  %13890 = vst [vmem:[#allocation59_spill] sm:$0xff] %v10938_v26 }
 0x352   :  { %v2889_v25 = vmax.f32 %v2872_v18, 0.0  ;;  %8389 = vrot.lane.b32.xlu1 %v10905_v57, %s9083_s0  ;;  %8404 = vrot.lane.b32.xlu0 %v10894_v54, %s9084_s22  ;;  %v11013_v18 = vpack.i.bf16 %v10814_v0, %v10783_v31 }
 0x353   :  { %v10923_v43 = vmul.f32 %v10773_v7, %v2888_v62  ;;  %v10940_v7 = vpop.permute.xlu0 %3801 }
 0x354   :  { %v10926_v51 = vmul.f32 %v10775_v24, %v2889_v25  ;;  %13891 = vst [vmem:[#allocation72_spill] sm:$0xff] %v10940_v7  ;;  %v10946_v24 = vpop.permute.xlu1 %3917 }
 0x355   :  { %13887 = vst [vmem:[#allocation67_spill] sm:$0xff] %v10923_v43  ;;  %13892 = vst [vmem:[#allocation42_spill] sm:$0xff] %v10946_v24 }
 0x356   :  { %13888 = vst [vmem:[#allocation43_spill] sm:$0xff] %v10926_v51  ;;  %8394 = vrot.lane.b32.xlu1 %v10894_v54, %s9097_s2  ;;  %8419 = vrot.lane.b32.xlu0 %v10905_v57, %s9085_s9 }
 0x357   :  { %v10952_v55 = vpop.permute.xlu0 %4033 }
 0x358   :  { %13893 = vst [vmem:[#allocation41_spill] sm:$0xff] %v10952_v55  ;;  %v10958_v17 = vpop.permute.xlu1 %4150 }
 0x359   :  { %13894 = vst [vmem:[#allocation77_spill] sm:$0xff] %v10958_v17 }
 0x35a   :  { %8409 = vrot.lane.b32.xlu1 %v10905_v57, %s9084_s22  ;;  %8424 = vrot.lane.b32.xlu0 %v10894_v54, %s9086_s10 }
 0x35c   :  { %v8140_v40 = vpop.permute.xlu0 %8139 }
 0x35d   :  { %v8142_v22 = vunpack.i.h.bf16 %v8140_v40  ;;  %v8141_v11 = vunpack.i.l.bf16 %v8140_v40 }
 0x35e   :  { %8414 = vrot.lane.b32.xlu1 %v10894_v54, %s9085_s9  ;;  %8439 = vrot.lane.b32.xlu0 %v10905_v57, %s9087_s18 }
 0x35f   :  { %v3106_v36 = vsel %vm356_vm2, %v8141_v11, %v8142_v22 }
 0x360   :  { %v10964_v2 = vpop.permute.xlu1 %8144  ;;  %v10966_v42 = vpop.permute.xlu0 %8154  ;;  %v7113_v27 = vpack.c.bf16 %v3106_v36, %v10783_v31 }
 0x361   :  { %v13444_v48 = vunpack.i.l.bf16 %v10964_v2  ;;  %v13442_v5 = vunpack.i.h.bf16 %v10966_v42  ;;  %v8156_v47 = vunpack.i.l.bf16 %v10966_v42 }
 0x362   :  { %8429 = vrot.lane.b32.xlu1 %v10905_v57, %s9086_s10  ;;  %8444 = vrot.lane.b32.xlu0 %v10894_v54, %s9098_s1 }
 0x363   :  { %v3107_v41 = vsel %vm356_vm2, %v8142_v22, %v13444_v48  ;;  %v10998_v20 = vsel %vm473_vm3, %v8156_v47, %v13442_v5 }
 0x364   :  { %v8150_v9 = vpop.permute.xlu1 %8149  ;;  %v8160_v21 = vpop.permute.xlu0 %8159  ;;  %v7111_v45 = vpack.c.bf16 %v3107_v41, %v10787_v10 }
 0x365   :  { %v8152_v30 = vunpack.i.h.bf16 %v8150_v9  ;;  %v8151_v63 = vunpack.i.l.bf16 %v8150_v9  ;;  %v8162_v34 = vunpack.i.h.bf16 %v8160_v21  ;;  %v8161_v3 = vunpack.i.l.bf16 %v8160_v21 }
 0x366   :  { %7112 = vmatprep.subr.bf16.mxu0 %v7111_v45  ;;  %8434 = vrot.lane.b32.xlu1 %v10894_v54, %s9087_s18 }
 0x367   :  { %8459 = vrot.lane.b32.xlu0 %v10905_v57, %s9088_s23  ;;  %7114 = vmatpush1.bf16.msra.mxu0 %v7113_v27  ;;  %v3222_v13 = vsel %vm473_vm3, %v8151_v63, %v8152_v30  ;;  %v3338_v38 = vsel %vm590_vm4, %v8161_v3, %v8162_v34  ;;  %v3223_v28 = vsel %vm473_vm3, %v8152_v30, %v8156_v47 }
 0x368   :  { %v10985_v32 = vpop.permute.xlu1 %8164  ;;  %v10987_v56 = vpop.permute.xlu0 %8174  ;;  %v7117_v62 = vpack.c.bf16 %v3338_v38, %v3222_v13 }
 0x369   :  { %v13440_v6 = vunpack.i.h.bf16 %v10985_v32  ;;  %v8166_v12 = vunpack.i.l.bf16 %v10985_v32  ;;  %v13437_v36 = vunpack.i.h.bf16 %v10987_v56  ;;  %v8176_v41 = vunpack.i.l.bf16 %v10987_v56 }
 0x36a   :  { %8449 = vrot.lane.b32.xlu1 %v10905_v57, %s9098_s1 }
 0x36b   :  { %v11003_v44 = vsel %vm590_vm4, %v8166_v12, %v13440_v6  ;;  %8464 = vrot.lane.b32.xlu0 %v10894_v54, %s9089_s26  ;;  %v3339_v8 = vsel %vm590_vm4, %v8162_v34, %v8166_v12  ;;  %v11034_v63 = vsel %vm3454_vm1, %v8176_v41, %v13437_v36 }
 0x36c   :  { %v8170_v14 = vpop.permute.xlu1 %8169  ;;  %v8180_v19 = vpop.permute.xlu0 %8179  ;;  %v7115_v1 = vpack.c.bf16 %v3339_v8, %v3223_v28 }
 0x36d   :  { %v8172_v25 = vunpack.i.h.bf16 %v8170_v14  ;;  %v8171_v40 = vunpack.i.l.bf16 %v8170_v14  ;;  %v8182_v22 = vunpack.i.h.bf16 %v8180_v19  ;;  %v8181_v11 = vunpack.i.l.bf16 %v8180_v19 }
 0x36e   :  { %7116 = vmatprep.subr.bf16.mxu0 %v7115_v1  ;;  %8454 = vrot.lane.b32.xlu1 %v10894_v54, %s9088_s23 }
 0x36f   :  { %8479 = vrot.lane.b32.xlu0 %v11013_v18, %s9091_s24  ;;  %7118 = vmatpush1.bf16.msra.mxu0 %v7117_v62  ;;  %v3455_v30 = vsel %vm3454_vm1, %v8171_v40, %v8172_v25  ;;  %v3571_v54 = vsel %vm13629_vm5, %v8181_v11, %v8182_v22  ;;  %v3456_v3 = vsel %vm3454_vm1, %v8172_v25, %v8176_v41 }
 0x370   :  { %v11021_v9 = vpop.permute.xlu1 %8184  ;;  %v11023_v21 = vpop.permute.xlu0 %8194  ;;  %v7121_v8 = vpack.c.bf16 %v3571_v54, %v3455_v30 }
 0x371   :  { %v13436_v45 = vunpack.i.h.bf16 %v11021_v9  ;;  %v8186_v27 = vunpack.i.l.bf16 %v11021_v9  ;;  %v13435_v40 = vunpack.i.h.bf16 %v11023_v21  ;;  %v8196_v25 = vunpack.i.l.bf16 %v11023_v21 }
 0x372   :  { %8469 = vrot.lane.b32.xlu1 %v10905_v57, %s9089_s26 }
 0x373   :  { %v11039_v34 = vsel %vm13629_vm5, %v8186_v27, %v13436_v45  ;;  %8489 = vrot.lane.b32.xlu0 %v11013_v18, %s9092_s29  ;;  %v3572_v47 = vsel %vm13629_vm5, %v8182_v22, %v8186_v27 }
 0x374   :  { %v8190_v12 = vpop.permute.xlu1 %8189  ;;  %v8200_v13 = vpop.permute.xlu0 %8199  ;;  %v7119_v38 = vpack.c.bf16 %v3572_v47, %v3456_v3  ;;  %v11066_v3 = vsel %vm13517_vm6, %v8196_v25, %v13435_v40 }
 0x375   :  { %v8192_v14 = vunpack.i.h.bf16 %v8190_v12  ;;  %v8191_v19 = vunpack.i.l.bf16 %v8190_v12  ;;  %v8202_v1 = vunpack.i.h.bf16 %v8200_v13  ;;  %v8201_v62 = vunpack.i.l.bf16 %v8200_v13 }
 0x376   :  { %7120 = vmatprep.subr.bf16.mxu0 %v7119_v38  ;;  %8474 = vrot.lane.b32.xlu1 %v11013_v18, %s9090_s8 }
 0x377   :  { %8499 = vrot.lane.b32.xlu0 %v11013_v18, %s9094_s14  ;;  %7122 = vmatpush1.bf16.msra.mxu0 %v7121_v8  ;;  %v3687_v30 = vsel %vm13517_vm6, %v8191_v19, %v8192_v14  ;;  %v3803_v54 = vsel %vm13514_vm7, %v8201_v62, %v8202_v1  ;;  %v3688_v12 = vsel %vm13517_vm6, %v8192_v14, %v8196_v25 }
 0x378   :  { %v11053_v22 = vpop.permute.xlu1 %8204  ;;  %v11055_v11 = vpop.permute.xlu0 %8214  ;;  %v7125_v40 = vpack.c.bf16 %v3803_v54, %v3687_v30  ;;  %v11093_v54 = vpack.i.bf16 %v10860_v16, %v10856_v39  ;;  %v11257_v16 = vpack.i.bf16 %v10926_v51, %v10923_v43  ;;  %v8147_v39 = vunpack.i.h.bf16 %v10964_v2 }
 0x379   :  { %v13438_v41 = vunpack.i.h.bf16 %v11053_v22  ;;  %v8206_v27 = vunpack.i.l.bf16 %v11053_v22  ;;  %v8216_v14 = vunpack.i.l.bf16 %v11055_v11 }
 0x37a   :  { %8484 = vrot.lane.b32.xlu1 %v11013_v18, %s9099_s5 }
 0x37b   :  { %v11071_v47 = vsel %vm13514_vm7, %v8206_v27, %v13438_v41  ;;  %8509 = vrot.lane.b32.xlu0 %v11013_v18, %s9100_s7  ;;  %v3804_v13 = vsel %vm13514_vm7, %v8202_v1, %v8206_v27  ;;  %v13441_v41 = vunpack.i.h.bf16 %v11055_v11 }
 0x37c   :  { %v8210_v38 = vpop.permute.xlu1 %8209  ;;  %v8220_v8 = vpop.permute.xlu0 %8219  ;;  %v7123_v19 = vpack.c.bf16 %v3804_v13, %v3688_v12 }
 0x37d   :  { %v8212_v28 = vunpack.i.h.bf16 %v8210_v38  ;;  %v8211_v45 = vunpack.i.l.bf16 %v8210_v38  ;;  %v8222_v36 = vunpack.i.h.bf16 %v8220_v8  ;;  %v8221_v52 = vunpack.i.l.bf16 %v8220_v8 }
 0x37e   :  { %7124 = vmatprep.subr.bf16.mxu0 %v7123_v19  ;;  %8494 = vrot.lane.b32.xlu1 %v11013_v18, %s9093_s13 }
 0x37f   :  { %8519 = vrot.lane.b32.xlu0 %v11013_v18, %s9102_s15  ;;  %7126 = vmatpush1.bf16.msra.mxu0 %v7125_v40  ;;  %v3919_v12 = vsel %vm13502_vm8, %v8211_v45, %v8212_v28  ;;  %v4036_v13 = vsel %vm13503_vm0, %v8221_v52, %v8222_v36  ;;  %v11102_v40 = vsel %vm13502_vm8, %v8216_v14, %v13441_v41 }
 0x380   :  { %v11085_v1 = vpop.permute.xlu1 %8224  ;;  %v11087_v25 = vpop.permute.xlu0 %8234  ;;  %v3920_v45 = vsel %vm13502_vm8, %v8212_v28, %v8216_v14  ;;  %v11117_v41 = vpack.i.bf16 %v10870_v37, %v10867_v59  ;;  %v7129_v5 = vpack.c.bf16 %v4036_v13, %v3919_v12 }
 0x381   :  { %v13443_v27 = vunpack.i.h.bf16 %v11085_v1  ;;  %v8226_v30 = vunpack.i.l.bf16 %v11085_v1  ;;  %v8236_v28 = vunpack.i.l.bf16 %v11087_v25 }
 0x382   :  { %8504 = vrot.lane.b32.xlu1 %v11013_v18, %s9095_s30  ;;  %13895 = vst [vmem:[#allocation61_spill] sm:$0xff] %v11117_v41 }
 0x383   :  { %v11107_v38 = vsel %vm13503_vm0, %v8226_v30, %v13443_v27  ;;  %8524 = vrot.lane.b32.xlu0 %v11093_v54, %s9081_s12  ;;  %v4037_v52 = vsel %vm13503_vm0, %v8222_v36, %v8226_v30  ;;  %v13445_v36 = vunpack.i.h.bf16 %v11087_v25 }
 0x384   :  { %v8230_v8 = vpop.permute.xlu1 %8229  ;;  %v8240_v19 = vpop.permute.xlu0 %8239  ;;  %v7127_v62 = vpack.c.bf16 %v4037_v52, %v3920_v45 }
 0x385   :  { %v8232_v27 = vunpack.i.h.bf16 %v8230_v8  ;;  %v8231_v48 = vunpack.i.l.bf16 %v8230_v8  ;;  %v8242_v17 = vunpack.i.h.bf16 %v8240_v19  ;;  %v8241_v24 = vunpack.i.l.bf16 %v8240_v19 }
 0x386   :  { %7128 = vmatprep.subr.bf16.mxu0 %v7127_v62  ;;  %8514 = vrot.lane.b32.xlu1 %v11013_v18, %s9101_s11  ;;  %v11138_v52 = vsel %vm1175_vm9, %v8236_v28, %v13445_v36 }
 0x387   :  { %8539 = vrot.lane.b32.xlu0 %v11117_v41, %s9082_s21  ;;  %7130 = vmatpush1.bf16.msra.mxu0 %v7129_v5  ;;  %v4152_v62 = vsel %vm1175_vm9, %v8231_v48, %v8232_v27  ;;  %v4268_v45 = vsel %vm1292_vm10, %v8241_v24, %v8242_v17  ;;  %v4153_v48 = vsel %vm1175_vm9, %v8232_v27, %v8236_v28 }
 0x388   :  { %v11125_v14 = vpop.permute.xlu1 %8244  ;;  %v11127_v30 = vpop.permute.xlu0 %8309  ;;  %v7133_v55 = vpack.c.bf16 %v4268_v45, %v4152_v62 }
 0x389   :  { %13896 = vst [vmem:[#allocation57_spill] sm:$0xff] %v11127_v30  ;;  %v13446_v12 = vunpack.i.h.bf16 %v11125_v14  ;;  %v8246_v13 = vunpack.i.l.bf16 %v11125_v14  ;;  %v13447_v28 = vunpack.i.l.bf16 %v11127_v30 }
 0x38a   :  { %8529 = vrot.lane.b32.xlu1 %v11117_v41, %s9081_s12 }
 0x38b   :  { %v11143_v5 = vsel %vm1292_vm10, %v8246_v13, %v13446_v12  ;;  %8544 = vrot.lane.b32.xlu0 %v11093_v54, %s9083_s0  ;;  %v4269_v24 = vsel %vm1292_vm10, %v8242_v17, %v8246_v13 }
 0x38c   :  { %v11149_v8 = vpop.permute.xlu1 %8249  ;;  %v11151_v19 = vpop.permute.xlu0 %8314  ;;  %v7131_v6 = vpack.c.bf16 %v4269_v24, %v4153_v48 }
 0x38d   :  { %13897 = vst [vmem:[#allocation56_spill] sm:$0xff] %v11151_v19  ;;  %v8252_v12 = vunpack.i.h.bf16 %v11149_v8  ;;  %v13449_v26 = vunpack.i.l.bf16 %v11149_v8  ;;  %v13448_v13 = vunpack.i.l.bf16 %v11151_v19 }
 0x38e   :  { %7132 = vmatprep.subr.bf16.mxu0 %v7131_v6  ;;  %8534 = vrot.lane.b32.xlu1 %v11093_v54, %s9082_s21 }
 0x38f   :  { %8559 = vrot.lane.b32.xlu0 %v11117_v41, %s9097_s2  ;;  %7134 = vmatpush1.bf16.msra.mxu0 %v7133_v55  ;;  %v11174_v45 = vsel %vm13520_vm11, %v8252_v12, %v13447_v28  ;;  %v4385_v48 = vsel %vm13520_vm11, %v13449_v26, %v8252_v12 }
 0x390   :  { %v11161_v17 = vpop.permute.xlu1 %8254  ;;  %v11163_v27 = vpop.permute.xlu0 %8319 }
 0x391   :  { %13898 = vst [vmem:[#allocation12_spill] sm:$0xff] %v11163_v27  ;;  %v8257_v6 = vunpack.i.h.bf16 %v11161_v17  ;;  %v13450_v62 = vunpack.i.l.bf16 %v11161_v17 }
 0x392   :  { %8549 = vrot.lane.b32.xlu1 %v11117_v41, %s9083_s0 }
 0x393   :  { %v11179_v55 = vsel %vm13519_vm12, %v8257_v6, %v13448_v13  ;;  %8564 = vrot.lane.b32.xlu0 %v11093_v54, %s9084_s22  ;;  %v4501_v24 = vsel %vm13519_vm12, %v13450_v62, %v8257_v6 }
 0x394   :  { %v11189_v36 = vpop.permute.xlu1 %8259  ;;  %v11191_v28 = vpop.permute.xlu0 %8324  ;;  %v7135_v7 = vpack.c.bf16 %v4501_v24, %v4385_v48 }
 0x395   :  { %13899 = vst [vmem:[#allocation14_spill] sm:$0xff] %v11191_v28 }
 0x396   :  { %7136 = vmatprep.subr.bf16.mxu0 %v7135_v7  ;;  %8554 = vrot.lane.b32.xlu1 %v11093_v54, %s9097_s2 }
 0x397   :  { %8579 = vrot.lane.b32.xlu0 %v11117_v41, %s9085_s9 }
 0x398   :  { %v11199_v12 = vpop.permute.xlu1 %8264  ;;  %v11201_v26 = vpop.permute.xlu0 %8329 }
 0x399   :  { %13900 = vst [vmem:[#allocation74_spill] sm:$0xff] %v11201_v26 }
 0x39a   :  { %8569 = vrot.lane.b32.xlu1 %v11117_v41, %s9084_s22 }
 0x39b   :  { %8584 = vrot.lane.b32.xlu0 %v11093_v54, %s9086_s10 }
 0x39c   :  { %v11207_v6 = vpop.permute.xlu1 %8269  ;;  %v11209_v48 = vpop.permute.xlu0 %8334 }
 0x39d   :  { %13901 = vst [vmem:[#allocation11_spill] sm:$0xff] %v11209_v48 }
 0x39e   :  { %8574 = vrot.lane.b32.xlu1 %v11093_v54, %s9085_s9 }
 0x39f   :  { %8599 = vrot.lane.b32.xlu0 %v11117_v41, %s9087_s18 }
 0x3a0   :  { %v11215_v7 = vpop.permute.xlu1 %8274  ;;  %v11217_v24 = vpop.permute.xlu0 %8339 }
 0x3a1   :  { %13902 = vst [vmem:[#allocation18_spill] sm:$0xff] %v11217_v24 }
 0x3a2   :  { %8589 = vrot.lane.b32.xlu1 %v11117_v41, %s9086_s10 }
 0x3a3   :  { %8604 = vrot.lane.b32.xlu0 %v11093_v54, %s9098_s1 }
 0x3a4   :  { %v11223_v13 = vpop.permute.xlu1 %8279  ;;  %v11225_v62 = vpop.permute.xlu0 %8344 }
 0x3a5   :  { %13903 = vst [vmem:[#allocation16_spill] sm:$0xff] %v11225_v62 }
 0x3a6   :  { %8594 = vrot.lane.b32.xlu1 %v11093_v54, %s9087_s18 }
 0x3a7   :  { %8619 = vrot.lane.b32.xlu0 %v11117_v41, %s9088_s23 }
 0x3a8   :  { %v11231_v29 = vpop.permute.xlu1 %8284  ;;  %v11233_v58 = vpop.permute.xlu0 %8349 }
 0x3a9   :  { %13904 = vst [vmem:[#allocation20_spill] sm:$0xff] %v11233_v58 }
 0x3aa   :  { %8609 = vrot.lane.b32.xlu1 %v11117_v41, %s9098_s1 }
 0x3ab   :  { %8624 = vrot.lane.b32.xlu0 %v11093_v54, %s9089_s26 }
 0x3ac   :  { %v11239_v46 = vpop.permute.xlu1 %8289  ;;  %v11241_v61 = vpop.permute.xlu0 %8354 }
 0x3ad   :  { %13905 = vst [vmem:[#allocation13_spill] sm:$0xff] %v11239_v46  ;;  %13906 = vst [vmem:[#allocation26_spill] sm:$0xff] %v11241_v61 }
 0x3ae   :  { %8614 = vrot.lane.b32.xlu1 %v11093_v54, %s9088_s23 }
 0x3af   :  { %8634 = vrot.lane.b32.xlu0 %v11245_v50, %s9081_s12 }
 0x3b0   :  { %v11251_v37 = vpop.permute.xlu1 %8294  ;;  %v11253_v59 = vpop.permute.xlu0 %8359 }
 0x3b1   :  { %13907 = vst [vmem:[#allocation86_spill] sm:$0xff] %v11251_v37  ;;  %13908 = vst [vmem:[#allocation31_spill] sm:$0xff] %v11253_v59  ;;  %v13911_v59 = vunpack.i.l.bf16 %v10964_v2 }
 0x3b2   :  { %8629 = vrot.lane.b32.xlu1 %v11117_v41, %s9089_s26 }
 0x3b3   :  { %8649 = vrot.lane.b32.xlu0 %v11257_v16, %s9082_s21  ;;  %v3108_v60 = vsel %vm356_vm2, %v13911_v59, %v8147_v39 }
 0x3b4   :  { %v11264_v53 = vpop.permute.xlu1 %8299  ;;  %v11266_v4 = vpop.permute.xlu0 %8364  ;;  %v7161_v2 = vpack.c.bf16 %v3108_v60, %v10793_v35 }
 0x3b5   :  { %13909 = vst [vmem:[#allocation10_spill] sm:$0xff] %v11264_v53  ;;  %13910 = vst [vmem:[#allocation24_spill] sm:$0xff] %v11266_v4  ;;  %v13478_v33 = vunpack.i.l.bf16 %v11266_v4 }
 0x3b6   :  { %8639 = vrot.lane.b32.xlu1 %v11257_v16, %s9081_s12 }
 0x3b7   :  { %8654 = vrot.lane.b32.xlu0 %v11245_v50, %s9083_s0  ;;  %v3109_v51 = vsel %vm356_vm2, %v8147_v39, %v13478_v33 }
 0x3b8   :  { %v11279_v43 = vpop.permute.xlu1 %8304  ;;  %v11281_v41 = vpop.permute.xlu0 %8379  ;;  %v7159_v0 = vpack.c.bf16 %v3109_v51, %v10795_v23 }
 0x3b9   :  { %13912 = vst [vmem:[#allocation88_spill] sm:$0xff] %v11279_v43  ;;  %13913 = vst [vmem:[#allocation22_spill] sm:$0xff] %v11281_v41  ;;  %v13920_v43 = vunpack.i.h.bf16 %v10985_v32 }
 0x3ba   :  { %8644 = vrot.lane.b32.xlu1 %v11245_v50, %s9082_s21  ;;  %7160 = vmatprep.subr.bf16.mxu1 %v7159_v0 }
 0x3bb   :  { %8669 = vrot.lane.b32.xlu0 %v11257_v16, %s9097_s2  ;;  %7162 = vmatpush1.bf16.msra.mxu1 %v7161_v2 }
 0x3bc   :  { %v11289_v59 = vpop.permute.xlu1 %8369  ;;  %v11291_v4 = vpop.permute.xlu0 %8384 }
 0x3bd   :  { %13914 = vst [vmem:[#allocation36_spill] sm:$0xff] %v11289_v59  ;;  %13915 = vst [vmem:[#allocation38_spill] sm:$0xff] %v11291_v4  ;;  %v13486_v39 = vunpack.i.h.bf16 %v11291_v4  ;;  %v8386_v51 = vunpack.i.l.bf16 %v11291_v4 }
 0x3be   :  { %8659 = vrot.lane.b32.xlu1 %v11257_v16, %s9083_s0  ;;  %s9105_s0 = smov 4  }
 0x3bf   :  { %8674 = vrot.lane.b32.xlu0 %v11245_v50, %s9084_s22  ;;  %v11310_v41 = vsel %vm590_vm4, %v8386_v51, %v13486_v39  ;;  %v3341_v46 = vsel %vm590_vm4, %v13920_v43, %v8386_v51  ;;  %v13921_v43 = vpack.c.bf16 %v11003_v44, %v10998_v20  ;;  %v13924_v44 = vunpack.i.h.bf16 %v10987_v56 }
 0x3c0   :  { %v11299_v60 = vpop.permute.xlu1 %8374  ;;  %v11301_v0 = vpop.permute.xlu0 %8399  ;;  %13917 = vst [vmem:[#allocation34_spill] sm:$0xff] %v11310_v41 }
 0x3c1   :  { %13916 = vst [vmem:[#allocation44_spill] sm:$0xff] %v11301_v0  ;;  %v13488_v2 = vunpack.i.h.bf16 %v11299_v60  ;;  %v8376_v33 = vunpack.i.l.bf16 %v11299_v60  ;;  %v13919_v0 = vunpack.i.h.bf16 %v10966_v42 }
 0x3c2   :  { %8664 = vrot.lane.b32.xlu1 %v11245_v50, %s9097_s2 }
 0x3c3   :  { %v11315_v59 = vsel %vm473_vm3, %v8376_v33, %v13488_v2  ;;  %8689 = vrot.lane.b32.xlu0 %v11257_v16, %s9085_s9  ;;  %v3225_v53 = vsel %vm473_vm3, %v13919_v0, %v8376_v33 }
 0x3c4   :  { %13918 = vst [vmem:[#allocation50_spill] sm:$0xff] %v11315_v59  ;;  %v11325_v4 = vpop.permute.xlu1 %8389  ;;  %v11327_v39 = vpop.permute.xlu0 %8404  ;;  %v7163_v37 = vpack.c.bf16 %v3341_v46, %v3225_v53 }
 0x3c5   :  { %v13490_v42 = vunpack.i.h.bf16 %v11327_v39  ;;  %v8406_v33 = vunpack.i.l.bf16 %v11327_v39 }
 0x3c6   :  { %8679 = vrot.lane.b32.xlu1 %v11257_v16, %s9084_s22  ;;  %7164 = vmatprep.subr.bf16.mxu1 %v7163_v37 }
 0x3c7   :  { %8694 = vrot.lane.b32.xlu0 %v11245_v50, %s9086_s10  ;;  %7166 = vmatpush1.bf16.msra.mxu1 %v13921_v43  ;;  %v11351_v37 = vsel %vm13629_vm5, %v8406_v33, %v13490_v42  ;;  %v13925_v43 = vunpack.i.h.bf16 %v11021_v9  ;;  %v13926_v9 = vpack.c.bf16 %v11039_v34, %v11034_v63  ;;  %v13929_v34 = vunpack.i.h.bf16 %v11023_v21 }
 0x3c8   :  { %v11340_v32 = vpop.permute.xlu1 %8394  ;;  %v11342_v46 = vpop.permute.xlu0 %8419  ;;  %13922 = vst [vmem:[#allocation53_spill] sm:$0xff] %v11351_v37 }
 0x3c9   :  { %v13492_v53 = vunpack.i.h.bf16 %v11340_v32  ;;  %v8396_v51 = vunpack.i.l.bf16 %v11340_v32  ;;  %v3574_v2 = vsel %vm13629_vm5, %v13925_v43, %v8406_v33 }
 0x3ca   :  { %8684 = vrot.lane.b32.xlu1 %v11245_v50, %s9085_s9 }
 0x3cb   :  { %v11356_v20 = vsel %vm3454_vm1, %v8396_v51, %v13492_v53  ;;  %8709 = vrot.lane.b32.xlu0 %v11257_v16, %s9087_s18  ;;  %v3458_v0 = vsel %vm3454_vm1, %v13924_v44, %v8396_v51 }
 0x3cc   :  { %13923 = vst [vmem:[#allocation60_spill] sm:$0xff] %v11356_v20  ;;  %v11366_v59 = vpop.permute.xlu1 %8409  ;;  %v11368_v42 = vpop.permute.xlu0 %8424  ;;  %v7167_v41 = vpack.c.bf16 %v3574_v2, %v3458_v0 }
 0x3cd   :  { %v13494_v56 = vunpack.i.h.bf16 %v11368_v42  ;;  %v8426_v51 = vunpack.i.l.bf16 %v11368_v42 }
 0x3ce   :  { %8699 = vrot.lane.b32.xlu1 %v11257_v16, %s9086_s10  ;;  %7168 = vmatprep.subr.bf16.mxu1 %v7167_v41 }
 0x3cf   :  { %8714 = vrot.lane.b32.xlu0 %v11245_v50, %s9098_s1  ;;  %7170 = vmatpush1.bf16.msra.mxu1 %v13926_v9  ;;  %v11392_v41 = vsel %vm13514_vm7, %v8426_v51, %v13494_v56  ;;  %v13930_v9 = vunpack.i.h.bf16 %v11053_v22  ;;  %v13931_v22 = vpack.c.bf16 %v11071_v47, %v11066_v3 }
 0x3d0   :  { %v11381_v33 = vpop.permute.xlu1 %8414  ;;  %v11383_v2 = vpop.permute.xlu0 %8439  ;;  %13927 = vst [vmem:[#allocation66_spill] sm:$0xff] %v11392_v41 }
 0x3d1   :  { %v13496_v44 = vunpack.i.h.bf16 %v11381_v33  ;;  %v8416_v0 = vunpack.i.l.bf16 %v11381_v33  ;;  %v3806_v53 = vsel %vm13514_vm7, %v13930_v9, %v8426_v51  ;;  %v13936_v9 = vunpack.i.h.bf16 %v11085_v1  ;;  %v11464_v1 = vld [vmem:[%s13336_s3 + $0x8] sm:$0xff] }
 0x3d2   :  { %8704 = vrot.lane.b32.xlu1 %v11245_v50, %s9087_s18  ;;  %vm13639_vm7 = vcmask 56320  }
 0x3d3   :  { %v11397_v63 = vsel %vm13517_vm6, %v8416_v0, %v13496_v44  ;;  %8729 = vrot.lane.b32.xlu0 %v11257_v16, %s9088_s23  ;;  %v3690_v43 = vsel %vm13517_vm6, %v13929_v34, %v8416_v0  ;;  %vm13588_vm6 = vcmask 64512  }
 0x3d4   :  { %13928 = vst [vmem:[#allocation69_spill] sm:$0xff] %v11397_v63  ;;  %v11407_v20 = vpop.permute.xlu1 %8429  ;;  %v11409_v56 = vpop.permute.xlu0 %8444  ;;  %v7171_v37 = vpack.c.bf16 %v3806_v53, %v3690_v43 }
 0x3d5   :  { %v13498_v21 = vunpack.i.h.bf16 %v11409_v56  ;;  %v8446_v0 = vunpack.i.l.bf16 %v11409_v56 }
 0x3d6   :  { %8719 = vrot.lane.b32.xlu1 %v11257_v16, %s9098_s1  ;;  %7172 = vmatprep.subr.bf16.mxu1 %v7171_v37 }
 0x3d7   :  { %8734 = vrot.lane.b32.xlu0 %v11245_v50, %s9089_s26  ;;  %7174 = vmatpush1.bf16.msra.mxu1 %v13931_v22  ;;  %v11435_v3 = vsel %vm13503_vm0, %v8446_v0, %v13498_v21  ;;  %v13935_v22 = vunpack.i.h.bf16 %v11055_v11  ;;  %v4039_v53 = vsel %vm13503_vm0, %v13936_v9, %v8446_v0  ;;  %vm4616_vm0 = vcmask 523264  }
 0x3d8   :  { %v11422_v51 = vpop.permute.xlu1 %8434  ;;  %13933 = vst [vmem:[#allocation73_spill] sm:$0xff] %v11435_v3 }
 0x3d9   :  { %13932 = vst [vmem:[#allocation47_spill] sm:$0xff] %v11422_v51  ;;  %v13501_v34 = vunpack.i.h.bf16 %v11422_v51  ;;  %v8436_v43 = vunpack.i.l.bf16 %v11422_v51  ;;  %v11427_v37 = vpop.permute.xlu0 %8459 }
 0x3da   :  { %8724 = vrot.lane.b32.xlu1 %v11245_v50, %s9088_s23 }
 0x3db   :  { %v11440_v47 = vsel %vm13502_vm8, %v8436_v43, %v13501_v34  ;;  %8739 = vrot.lane.b32.xlu0 %v10837_v49, %s9104_s20  ;;  %v3922_v44 = vsel %vm13502_vm8, %v13935_v22, %v8436_v43  ;;  %v13938_v34 = vunpack.i.h.bf16 %v11151_v19  ;;  %v13939_v49 = vunpack.i.l.bf16 %v11151_v19 }
 0x3dc   :  { %13934 = vst [vmem:[#allocation81_spill] sm:$0xff] %v11440_v47  ;;  %v11450_v63 = vpop.permute.xlu1 %8449  ;;  %v7175_v21 = vpack.c.bf16 %v4039_v53, %v3922_v44  ;;  %vm13504_vm8 = vcmask 588800   ;;  %v13940_v53 = vpack.c.bf16 %v11107_v38, %v11102_v40  ;;  %v13942_v43 = vunpack.i.l.bf16 %v11127_v30 }
 0x3dd   :  { %v11454_v51 = vpop.permute.xlu0 %8464  ;;  %v4503_v11 = vsel %vm13519_vm12, %v13939_v49, %v13938_v34  ;;  %v13941_v34 = vunpack.i.h.bf16 %v11127_v30  ;;  %6848 = vmatprep.mubr.msk.f32.mxu1 %vm13504_vm8, %v11464_v1  ;;  %6847 = vmatprep.mubr.msk.f32.mxu0 %vm13504_vm8, %v11464_v1  ;;  %vm13640_vm8 = vcmask 277504   ;;  %v13946_v22 = vunpack.i.h.bf16 %v11087_v25 }
 0x3de   :  { %13937 = vst [vmem:[#allocation63_spill] sm:$0xff] %v11454_v51  ;;  %8744 = vrot.lane.b32.xlu1 %v11013_v18, %s9103_s19  ;;  %7176 = vmatprep.subr.bf16.mxu1 %v7175_v21  ;;  %v13508_v44 = vunpack.i.h.bf16 %v11454_v51  ;;  %v8466_v0 = vunpack.i.l.bf16 %v11454_v51  ;;  %v8326_v21 = vunpack.i.l.bf16 %v11191_v28  ;;  %v8336_v25 = vunpack.i.l.bf16 %v11209_v48 }
 0x3df   :  { %8749 = vrot.lane.b32.xlu0 %v11013_v18, %s9104_s20  ;;  %7178 = vmatpush1.bf16.msra.mxu1 %v13940_v53  ;;  %v4387_v9 = vsel %vm13520_vm11, %v13942_v43, %v13941_v34  ;;  %v8267_v18 = vunpack.i.h.bf16 %v11199_v12  ;;  %v8272_v30 = vunpack.i.h.bf16 %v11207_v6 }
 0x3e0   :  { %v11482_v49 = vpop.permute.xlu1 %8454  ;;  %v7183_v41 = vpack.c.bf16 %v4503_v11, %v4387_v9  ;;  %v8321_v11 = vunpack.i.l.bf16 %v11163_v27  ;;  %v8262_v9 = vunpack.i.h.bf16 %v11189_v36  ;;  %v11503_v40 = vsel %vm1292_vm10, %v8466_v0, %v13508_v44 }
 0x3e1   :  { %13943 = vst [vmem:[#allocation76_spill] sm:$0xff] %v11482_v49  ;;  %v13511_v38 = vunpack.i.h.bf16 %v11482_v49  ;;  %v8456_v53 = vunpack.i.l.bf16 %v11482_v49  ;;  %v11492_v34 = vpop.permute.xlu0 %8479  ;;  %13944 = vst [vmem:[#allocation7_spill] sm:$0xff] %v11503_v40  ;;  %v8331_v44 = vunpack.i.l.bf16 %v11201_v26 }
 0x3e2   :  { %5750 = vrot.lane.b32.xlu1 %v10787_v10, %s9105_s0  ;;  %v13947_v10 = vunpack.i.h.bf16 %v11125_v14  ;;  %v13948_v14 = vunpack.i.h.bf16 %v11191_v28 }
 0x3e3   :  { %v11508_v43 = vsel %vm1175_vm9, %v8456_v53, %v13511_v38  ;;  %5752 = vrot.lane.b32.xlu0 %v10793_v35, %s9105_s0  ;;  %v4155_v47 = vsel %vm1175_vm9, %v13946_v22, %v8456_v53  ;;  %v13949_v22 = vunpack.i.l.bf16 %v11199_v12  ;;  %v13950_v38 = vunpack.i.h.bf16 %v11163_v27 }
 0x3e4   :  { %13945 = vst [vmem:[#allocation8_spill] sm:$0xff] %v11508_v43  ;;  %v4271_v3 = vsel %vm1292_vm10, %v13947_v10, %v8466_v0  ;;  %v11520_v19 = vpop.permute.xlu1 %8469  ;;  %v4736_v0 = vsel %vm1643_vm13, %v8326_v21, %v13948_v14  ;;  %v11535_v10 = vsel %vm4616_vm0, %v8262_v9, %v8321_v11  ;;  %v4735_v14 = vsel %vm1643_vm13, %v8267_v18, %v8326_v21 }
 0x3e5   :  { %v7179_v51 = vpack.c.bf16 %v4271_v3, %v4155_v47  ;;  %v11526_v49 = vpop.permute.xlu0 %8489  ;;  %v4734_v53 = vsel %vm1643_vm13, %v13949_v22, %v8267_v18  ;;  %v8277_v3 = vunpack.i.h.bf16 %v11215_v7  ;;  %v4620_v35 = vsel %vm4616_vm0, %v8321_v11, %v13950_v38 }
 0x3e6   :  { %5754 = vrot.lane.b32.xlu1 %v10795_v23, %s9105_s0  ;;  %v8481_v22 = vunpack.i.l.bf16 %v11492_v34  ;;  %v13951_v47 = vpack.c.bf16 %v11143_v5, %v11138_v52  ;;  %v13952_v23 = vunpack.i.l.bf16 %v11189_v36  ;;  %v7187_v21 = vpack.c.bf16 %v4736_v0, %v4620_v35 }
 0x3e7   :  { %7180 = vmatprep.subr.bf16.mxu1 %v7179_v51  ;;  %5756 = vrot.lane.b32.xlu0 %v10831_v15, %s9105_s0  ;;  %v13953_v11 = vunpack.i.h.bf16 %v11201_v26  ;;  %v8341_v52 = vunpack.i.l.bf16 %v11217_v24  ;;  %v8346_v35 = vunpack.i.l.bf16 %v11225_v62  ;;  %v7189_v0 = vpack.c.bf16 %v4735_v14, %v11535_v10 }
 0x3e8   :  { %7182 = vmatpush1.bf16.msra.mxu1 %v13951_v47  ;;  %v4618_v51 = vsel %vm4616_vm0, %v13952_v23, %v8262_v9  ;;  %v11556_v38 = vpop.permute.xlu1 %8474  ;;  %v13955_v9 = vunpack.i.h.bf16 %v11209_v48  ;;  %v13957_v27 = vunpack.i.l.bf16 %v11161_v17  ;;  %v13958_v43 = vunpack.i.l.bf16 %v11149_v8 }
 0x3e9   :  { %7184 = vmatprep.subr.bf16.mxu1 %v7183_v41  ;;  %v7139_v18 = vpack.c.bf16 %v4734_v53, %v4618_v51  ;;  %v4852_v40 = vsel %vm1760_vm14, %v8331_v44, %v13953_v11  ;;  %v8476_v5 = vunpack.i.l.bf16 %v11556_v38  ;;  %v11564_v47 = vpop.permute.xlu0 %8499  ;;  %v13956_v53 = vunpack.i.l.bf16 %v11215_v7 }
 0x3ea   :  { %13954 = vst [vmem:[#allocation19_spill] sm:$0xff] %v11564_v47  ;;  %v4968_v23 = vsel %vm1877_vm15, %v8336_v25, %v13955_v9  ;;  %5748 = vrot.lane.b32.xlu1 %v10783_v31, %s9105_s0  ;;  %v4851_v11 = vsel %vm1760_vm14, %v8272_v30, %v8331_v44  ;;  %v4500_v9 = vsel %vm13519_vm12, %v8481_v22, %v13957_v27  ;;  %v8491_v41 = vunpack.i.l.bf16 %v11526_v49 }
 0x3eb   :  { %v4966_v51 = vsel %vm1877_vm15, %v13956_v53, %v8277_v3  ;;  %v4384_v26 = vsel %vm13520_vm11, %v8476_v5, %v13958_v43  ;;  %8754 = vrot.lane.b32.xlu0 %v10905_v57, %s9090_s8  ;;  %v13959_v31 = vpack.c.bf16 %v11179_v55, %v11174_v45  ;;  %v8282_v10 = vunpack.i.h.bf16 %v11223_v13 }
 0x3ec   :  { %v11591_v44 = vpop.permute.xlu1 %8484  ;;  %v7137_v17 = vpack.c.bf16 %v4500_v9, %v4384_v26  ;;  %v7191_v27 = vpack.c.bf16 %v4968_v23, %v4852_v40  ;;  %v13961_v14 = vunpack.i.l.bf16 %v11207_v6  ;;  %v4967_v43 = vsel %vm1877_vm15, %v8277_v3, %v8336_v25 }
 0x3ed   :  { %7186 = vmatpush1.bf16.msra.mxu1 %v13959_v31  ;;  %13960 = vst [vmem:[#allocation85_spill] sm:$0xff] %v11591_v44  ;;  %v8486_v22 = vunpack.i.l.bf16 %v11591_v44  ;;  %v11598_v5 = vpop.permute.xlu0 %8509  ;;  %v13963_v45 = vunpack.i.h.bf16 %v11217_v24  ;;  %vm13964_vm12 = vcmask 285696   ;;  %v8287_v31 = vunpack.i.h.bf16 %v11231_v29 }
 0x3ee   :  { %7188 = vmatprep.subr.bf16.mxu1 %v7187_v21  ;;  %v4850_v8 = vsel %vm1760_vm14, %v13961_v14, %v8272_v30  ;;  %13962 = vst [vmem:[#allocation82_spill] sm:$0xff] %v11598_v5  ;;  %v8286_v26 = vunpack.i.l.bf16 %v11231_v29  ;;  %v13521_v40 = vunpack.i.h.bf16 %v11241_v61  ;;  %8759 = vrot.lane.b32.xlu1 %v11093_v54, %s9090_s8  ;;  %v13965_v30 = vunpack.i.h.bf16 %v11225_v62  ;;  %v14028_v62 = vld [vmem:[#allocation22_spill] sm:$0xff] }
 0x3ef   :  { %v7143_v53 = vpack.c.bf16 %v4966_v51, %v4850_v8  ;;  %v5084_v55 = vsel %vm13964_vm12, %v8341_v52, %v13963_v45  ;;  %7138 = vmatpush1.bf16.msra.mxu0 %v7137_v17  ;;  %v8356_v3 = vunpack.i.l.bf16 %v11241_v61  ;;  %v13966_v21 = vunpack.i.l.bf16 %v11199_v12  ;;  %8764 = vrot.lane.b32.xlu0 %v10905_v57, %s9091_s24 }
 0x3f0   :  { %v5201_v25 = vsel %vm13640_vm8, %v8346_v35, %v13965_v30  ;;  %v8501_v51 = vunpack.i.l.bf16 %v11564_v47  ;;  %v13967_v29 = vunpack.i.l.bf16 %v11189_v36  ;;  %7140 = vmatprep.subr.bf16.mxu0 %v7139_v18  ;;  %vm13593_vm12 = vcmask 39936   ;;  %v11623_v8 = vpop.permute.xlu1 %8494 }
 0x3f1   :  { %v4733_v23 = vsel %vm1643_vm13, %v8491_v41, %v13966_v21  ;;  %v8281_v17 = vunpack.i.l.bf16 %v11223_v13  ;;  %vm13968_vm11 = vcmask 285696   ;;  %7190 = vmatpush1.bf16.msra.mxu1 %v7189_v0  ;;  %13969 = vst [vmem:[#allocation83_spill] sm:$0xff] %v11623_v8  ;;  %v7193_v41 = vpack.c.bf16 %v4967_v43, %v4851_v11  ;;  %v11628_v30 = vpop.permute.xlu0 %8519  ;;  %v13971_v13 = vld [vmem:[#allocation86_spill] sm:$0xff] }
 0x3f2   :  { %v4617_v9 = vsel %vm4616_vm0, %v8486_v22, %v13967_v29  ;;  %v5083_v14 = vsel %vm13968_vm11, %v8282_v10, %v8341_v52  ;;  %v13522_v45 = vunpack.i.h.bf16 %v11233_v58  ;;  %v8351_v36 = vunpack.i.l.bf16 %v11233_v58  ;;  %13970 = vst [vmem:[#allocation6_spill] sm:$0xff] %v11628_v30  ;;  %7192 = vmatprep.subr.bf16.mxu1 %v7191_v27  ;;  %8769 = vrot.lane.b32.xlu1 %v11093_v54, %s9091_s24  ;;  %v14019_v58 = vld [vmem:[#allocation67_spill] sm:$0xff] }
 0x3f3   :  { %v7141_v12 = vpack.c.bf16 %v4733_v23, %v4617_v9  ;;  %v8496_v22 = vunpack.i.l.bf16 %v11623_v8  ;;  %v7195_v18 = vpack.c.bf16 %v5201_v25, %v5084_v55  ;;  %v5200_v21 = vsel %vm13640_vm8, %v8287_v31, %v8346_v35  ;;  %8774 = vrot.lane.b32.xlu0 %v10905_v57, %s9099_s5  ;;  %v13974_v25 = vld [vmem:[#allocation13_spill] sm:$0xff] }
 0x3f4   :  { %v8297_v29 = vunpack.i.h.bf16 %v13971_v13  ;;  %v8296_v52 = vunpack.i.l.bf16 %v13971_v13  ;;  %v5199_v0 = vsel %vm13640_vm8, %v8286_v26, %v8287_v31  ;;  %v13972_v11 = vunpack.i.l.bf16 %v11215_v7 }
 0x3f5   :  { %7142 = vmatpush1.bf16.msra.mxu0 %v7141_v12  ;;  %v8511_v23 = vunpack.i.l.bf16 %v11598_v5  ;;  %v13973_v27 = vunpack.i.l.bf16 %v11207_v6  ;;  %v5435_v55 = vsel %vm13639_vm7, %v8356_v3, %v13521_v40  ;;  %v8292_v31 = vunpack.i.h.bf16 %v13974_v25  ;;  %7194 = vmatpush1.bf16.msra.mxu1 %v7193_v41 }
 0x3f6   :  { %v4965_v43 = vsel %vm1877_vm15, %v8501_v51, %v13972_v11  ;;  %7144 = vmatprep.subr.bf16.mxu0 %v7143_v53  ;;  %v8291_v7 = vunpack.i.l.bf16 %v13974_v25  ;;  %v11650_v51 = vpop.permute.xlu1 %8504  ;;  %v5082_v6 = vsel %vm13968_vm11, %v8281_v17, %v8282_v10  ;;  %7196 = vmatprep.subr.bf16.mxu1 %v7195_v18  ;;  %v7197_v13 = vpack.c.bf16 %v5200_v21, %v5083_v14 }
 0x3f7   :  { %v4849_v35 = vsel %vm1760_vm14, %v8496_v22, %v13973_v27  ;;  %13975 = vst [vmem:[#allocation17_spill] sm:$0xff] %v11650_v51  ;;  %v8506_v12 = vunpack.i.l.bf16 %v11650_v51  ;;  %v11654_v22 = vpop.permute.xlu0 %8524  ;;  %v7147_v53 = vpack.c.bf16 %v5199_v0, %v5082_v6  ;;  %v5318_v11 = vsel %vm13588_vm6, %v8351_v36, %v13522_v45  ;;  %v13976_v27 = vld [vmem:[#allocation88_spill] sm:$0xff]  ;;  %8779 = vrot.lane.b32.xlu1 %v11093_v54, %s9099_s5  ;;  %v13977_v0 = vld [vmem:[#allocation10_spill] sm:$0xff] }
 0x3f8   :  { %v7145_v9 = vpack.c.bf16 %v4965_v43, %v4849_v35  ;;  %v13525_v40 = vunpack.i.h.bf16 %v13976_v27  ;;  %v13523_v41 = vunpack.i.l.bf16 %v13976_v27  ;;  %v7199_v10 = vpack.c.bf16 %v5435_v55, %v5318_v11  ;;  %8784 = vrot.lane.b32.xlu0 %v10905_v57, %s9092_s29  ;;  %v13991_v45 = vld [vmem:[#allocation40_spill] sm:$0xff] }
 0x3f9   :  { %v5433_v43 = vsel %vm13639_vm7, %v8296_v52, %v8297_v29  ;;  %v5434_v35 = vsel %vm13639_vm7, %v8297_v29, %v8356_v3  ;;  %v5198_v18 = vsel %vm13640_vm8, %v8511_v23, %v8286_v26  ;;  %v8521_v14 = vunpack.i.l.bf16 %v11628_v30  ;;  %7198 = vmatpush1.bf16.msra.mxu1 %v7197_v13 }
 0x3fa   :  { %7146 = vmatpush1.bf16.msra.mxu0 %v7145_v9  ;;  %v5081_v21 = vsel %vm13968_vm11, %v8506_v12, %v8281_v17  ;;  %v13526_v25 = vunpack.i.h.bf16 %v13977_v0  ;;  %v13524_v6 = vunpack.i.l.bf16 %v13977_v0  ;;  %v11672_v55 = vpop.permute.xlu1 %8514  ;;  %v5316_v3 = vsel %vm13588_vm6, %v8291_v7, %v8292_v31  ;;  %7200 = vmatprep.subr.bf16.mxu1 %v7199_v10 }
 0x3fb   :  { %7148 = vmatprep.subr.bf16.mxu0 %v7147_v53  ;;  %13978 = vst [vmem:[#allocation21_spill] sm:$0xff] %v11672_v55  ;;  %v7149_v9 = vpack.c.bf16 %v5198_v18, %v5081_v21  ;;  %v5317_v26 = vsel %vm13588_vm6, %v8292_v31, %v8351_v36  ;;  %v8516_v29 = vunpack.i.l.bf16 %v11672_v55  ;;  %v11677_v23 = vpop.permute.xlu0 %8539  ;;  %v7151_v17 = vpack.c.bf16 %v5433_v43, %v5316_v3  ;;  %v14024_v55 = vld [vmem:[#allocation36_spill] sm:$0xff] }
 0x3fc   :  { %13979 = vst [vmem:[#allocation25_spill] sm:$0xff] %v11677_v23  ;;  %8789 = vrot.lane.b32.xlu1 %v11093_v54, %s9092_s29  ;;  %v7201_v12 = vpack.c.bf16 %v5434_v35, %v5317_v26  ;;  %v5667_v53 = vsel %vm13593_vm12, %v13523_v41, %v13525_v40  ;;  %vm13594_vm11 = vcmask 48128   ;;  %v5432_v36 = vsel %vm13639_vm7, %v8521_v14, %v8296_v52  ;;  %v13992_v41 = vld [vmem:[#allocation9_spill] sm:$0xff]  ;;  %v14022_v23 = vld [vmem:[#allocation43_spill] sm:$0xff] }
 0x3fd   :  { %v5315_v31 = vsel %vm13588_vm6, %v8516_v29, %v8291_v7  ;;  %8794 = vrot.lane.b32.xlu0 %v10905_v57, %s9093_s13  ;;  %v5550_v10 = vsel %vm13594_vm11, %v13524_v6, %v13526_v25  ;;  %v13994_v40 = vld [vmem:[#allocation49_spill] sm:$0xff]  ;;  %v8371_v51 = vunpack.i.l.bf16 %v14024_v55  ;;  %v8381_v48 = vunpack.i.l.bf16 %v14028_v62 }
 0x3fe   :  { %7150 = vmatpush1.bf16.msra.mxu0 %v7149_v9  ;;  %7202 = vmatpush1.bf16.msra.mxu1 %v7201_v12  ;;  %v11690_v13 = vpop.permute.xlu1 %8529  ;;  %v7153_v11 = vpack.c.bf16 %v5432_v36, %v5315_v31  ;;  %v7155_v35 = vpack.c.bf16 %v5667_v53, %v5550_v10  ;;  %vm13596_vm6 = vcmask 31744  }
 0x3ff   :  { %7152 = vmatprep.subr.bf16.mxu0 %v7151_v17  ;;  %13980 = vst [vmem:[#allocation27_spill] sm:$0xff] %v11690_v13  ;;  %v11697_v43 = vpop.permute.xlu0 %8544 }
 0x400   :  { %8799 = vrot.lane.b32.xlu1 %v11093_v54, %s9093_s13 }
 0x401   :  { %8804 = vrot.lane.b32.xlu0 %v10905_v57, %s9094_s14 }
 0x402   :  { %7154 = vmatpush1.bf16.msra.mxu0 %v7153_v11  ;;  %v11703_v52 = vpop.permute.xlu1 %8534  ;;  %v13988_v11 = vld [vmem:[#allocation87_spill] sm:$0xff] }
 0x403   :  { %7156 = vmatprep.subr.bf16.mxu0 %v7155_v35  ;;  %v11705_v7 = vpop.permute.xlu0 %8559 }
 0x404   :  { %13981 = vst [vmem:[#allocation79_spill] sm:$0xff] %v11705_v7  ;;  %8809 = vrot.lane.b32.xlu1 %v11093_v54, %s9094_s14 }
 0x405   :  { %8814 = vrot.lane.b32.xlu0 %v10905_v57, %s9095_s30 }
 0x406   :  { %v11711_v18 = vpop.permute.xlu1 %8549 }
 0x407   :  { %13982 = vst [vmem:[#allocation15_spill] sm:$0xff] %v11711_v18  ;;  %v11713_v14 = vpop.permute.xlu0 %8564 }
 0x408   :  { %8819 = vrot.lane.b32.xlu1 %v11093_v54, %s9095_s30 }
 0x409   :  { %8824 = vrot.lane.b32.xlu0 %v10905_v57, %s9100_s7 }
 0x40a   :  { %v11719_v21 = vpop.permute.xlu1 %8554 }
 0x40b   :  { %v11721_v9 = vpop.permute.xlu0 %8579 }
 0x40c   :  { %13983 = vst [vmem:[#allocation78_spill] sm:$0xff] %v11721_v9  ;;  %8829 = vrot.lane.b32.xlu1 %v11093_v54, %s9100_s7 }
 0x40d   :  { %8834 = vrot.lane.b32.xlu0 %v10905_v57, %s9101_s11 }
 0x40e   :  { %v11727_v3 = vpop.permute.xlu1 %8569 }
 0x40f   :  { %13984 = vst [vmem:[#allocation33_spill] sm:$0xff] %v11727_v3  ;;  %v11729_v26 = vpop.permute.xlu0 %8584 }
 0x410   :  { %8839 = vrot.lane.b32.xlu1 %v11093_v54, %s9101_s11 }
 0x411   :  { %8844 = vrot.lane.b32.xlu0 %v10905_v57, %s9102_s15 }
 0x412   :  { %v11735_v29 = vpop.permute.xlu1 %8574 }
 0x413   :  { %v11737_v17 = vpop.permute.xlu0 %8599 }
 0x414   :  { %13985 = vst [vmem:[#allocation37_spill] sm:$0xff] %v11737_v17  ;;  %8849 = vrot.lane.b32.xlu1 %v11093_v54, %s9102_s15 }
 0x415   :  { %8854 = vrot.lane.b32.xlu0 %v10905_v57, %s9103_s19 }
 0x416   :  { %v11743_v12 = vpop.permute.xlu1 %8589 }
 0x417   :  { %13986 = vst [vmem:[#allocation39_spill] sm:$0xff] %v11743_v12  ;;  %v11745_v53 = vpop.permute.xlu0 %8604 }
 0x418   :  { %8859 = vrot.lane.b32.xlu1 %v11093_v54, %s9103_s19 }
 0x419   :  { %8864 = vrot.lane.b32.xlu0 %v10905_v57, %s9104_s20 }
 0x41a   :  { %v11751_v36 = vpop.permute.xlu1 %8594 }
 0x41b   :  { %v11753_v31 = vpop.permute.xlu0 %8619 }
 0x41c   :  { %13987 = vst [vmem:[#allocation23_spill] sm:$0xff] %v11753_v31  ;;  %8869 = vrot.lane.b32.xlu1 %v11093_v54, %s9104_s20  ;;  %v13995_v54 = vld [vmem:[#allocation61_spill] sm:$0xff] }
 0x41d   :  { %5758 = vrot.lane.b32.xlu0 %v13988_v11, %s9105_s0 }
 0x41e   :  { %v11759_v10 = vpop.permute.xlu1 %8609 }
 0x41f   :  { %13989 = vst [vmem:[#allocation52_spill] sm:$0xff] %v11759_v10  ;;  %v11761_v35 = vpop.permute.xlu0 %8624 }
 0x420   :  { %13990 = vst [vmem:[#allocation54_spill] sm:$0xff] %v11761_v35  ;;  %5760 = vrot.lane.b32.xlu1 %v13991_v45, %s9105_s0 }
 0x421   :  { %5762 = vrot.lane.b32.xlu0 %v13992_v41, %s9105_s0 }
 0x422   :  { %v11767_v57 = vpop.permute.xlu1 %8614 }
 0x423   :  { %v11769_v6 = vpop.permute.xlu0 %8634 }
 0x424   :  { %13993 = vst [vmem:[#allocation46_spill] sm:$0xff] %v11769_v6  ;;  %5764 = vrot.lane.b32.xlu1 %v13994_v40, %s9105_s0  ;;  %v14018_v40 = vld [vmem:[#allocation55_spill] sm:$0xff] }
 0x425   :  { %8874 = vrot.lane.b32.xlu0 %v13995_v54, %s9090_s8  ;;  %v11854_v13 = vpack.i.bf16 %v14019_v58, %v14018_v40 }
 0x426   :  { %v11775_v25 = vpop.permute.xlu1 %8629 }
 0x427   :  { %13996 = vst [vmem:[#allocation35_spill] sm:$0xff] %v11775_v25  ;;  %v11777_v10 = vpop.permute.xlu0 %8649  ;;  %14020 = vst [vmem:[#allocation90_spill] sm:$0xff] %v11854_v13 }
 0x428   :  { %13997 = vst [vmem:[#allocation68_spill] sm:$0xff] %v11777_v10  ;;  %8879 = vrot.lane.b32.xlu1 %v11245_v50, %s9090_s8 }
 0x429   :  { %8884 = vrot.lane.b32.xlu0 %v13995_v54, %s9091_s24 }
 0x42a   :  { %v11783_v17 = vpop.permute.xlu1 %8639 }
 0x42b   :  { %13998 = vst [vmem:[#allocation70_spill] sm:$0xff] %v11783_v17  ;;  %v11785_v12 = vpop.permute.xlu0 %8654 }
 0x42c   :  { %13999 = vst [vmem:[#allocation62_spill] sm:$0xff] %v11785_v12  ;;  %8889 = vrot.lane.b32.xlu1 %v11245_v50, %s9091_s24 }
 0x42d   :  { %8894 = vrot.lane.b32.xlu0 %v13995_v54, %s9099_s5 }
 0x42e   :  { %v11791_v9 = vpop.permute.xlu1 %8644 }
 0x42f   :  { %14000 = vst [vmem:[#allocation48_spill] sm:$0xff] %v11791_v9  ;;  %v11793_v6 = vpop.permute.xlu0 %8669 }
 0x430   :  { %14001 = vst [vmem:[#allocation84_spill] sm:$0xff] %v11793_v6  ;;  %8899 = vrot.lane.b32.xlu1 %v11245_v50, %s9099_s5 }
 0x431   :  { %8904 = vrot.lane.b32.xlu0 %v13995_v54, %s9092_s29 }
 0x432   :  { %v11799_v10 = vpop.permute.xlu1 %8659 }
 0x433   :  { %14002 = vst [vmem:[#allocation75_spill] sm:$0xff] %v11799_v10  ;;  %v11801_v17 = vpop.permute.xlu0 %8674 }
 0x434   :  { %14003 = vst [vmem:[#allocation64_spill] sm:$0xff] %v11801_v17  ;;  %8909 = vrot.lane.b32.xlu1 %v11245_v50, %s9092_s29  ;;  %v14008_v17 = vld [vmem:[#allocation28_spill] sm:$0xff] }
 0x435   :  { %8914 = vrot.lane.b32.xlu0 %v13995_v54, %s9093_s13 }
 0x436   :  { %v11807_v12 = vpop.permute.xlu1 %8664 }
 0x437   :  { %14004 = vst [vmem:[#allocation80_spill] sm:$0xff] %v11807_v12  ;;  %v11809_v9 = vpop.permute.xlu0 %8689 }
 0x438   :  { %14005 = vst [vmem:[#allocation86_spill] sm:$0xff] %v11809_v9  ;;  %8919 = vrot.lane.b32.xlu1 %v11245_v50, %s9093_s13 }
 0x439   :  { %8924 = vrot.lane.b32.xlu0 %v13995_v54, %s9094_s14 }
 0x43a   :  { %v11815_v6 = vpop.permute.xlu1 %8679 }
 0x43b   :  { %14006 = vst [vmem:[#allocation13_spill] sm:$0xff] %v11815_v6  ;;  %v11817_v10 = vpop.permute.xlu0 %8694 }
 0x43c   :  { %14007 = vst [vmem:[#allocation88_spill] sm:$0xff] %v11817_v10  ;;  %4955 = vrot.lane.b32.xlu1 %v14008_v17, %s9094_s14 }
 0x43d   :  { %8929 = vrot.lane.b32.xlu0 %v13995_v54, %s9095_s30 }
 0x43e   :  { %v11823_v3 = vpop.permute.xlu1 %8684 }
 0x43f   :  { %14009 = vst [vmem:[#allocation10_spill] sm:$0xff] %v11823_v3  ;;  %v11825_v12 = vpop.permute.xlu0 %8709 }
 0x440   :  { %14010 = vst [vmem:[#allocation87_spill] sm:$0xff] %v11825_v12  ;;  %5071 = vrot.lane.b32.xlu1 %v14008_v17, %s9095_s30  ;;  %v14015_v12 = vld [vmem:[#allocation31_spill] sm:$0xff] }
 0x441   :  { %8934 = vrot.lane.b32.xlu0 %v13995_v54, %s9100_s7  ;;  %v8361_v18 = vunpack.i.l.bf16 %v14015_v12  ;;  %v14025_v40 = vunpack.i.h.bf16 %v14015_v12 }
 0x442   :  { %v11831_v50 = vpop.permute.xlu1 %8699 }
 0x443   :  { %14011 = vst [vmem:[#allocation40_spill] sm:$0xff] %v11831_v50  ;;  %v11833_v9 = vpop.permute.xlu0 %8714  ;;  %v14016_v50 = vld [vmem:[#allocation24_spill] sm:$0xff]  ;;  %v5552_v13 = vsel %vm13594_vm11, %v8361_v18, %v14025_v40 }
 0x444   :  { %14012 = vst [vmem:[#allocation9_spill] sm:$0xff] %v11833_v9  ;;  %5187 = vrot.lane.b32.xlu1 %v14008_v17, %s9100_s7  ;;  %v8367_v9 = vunpack.i.h.bf16 %v14016_v50 }
 0x445   :  { %8939 = vrot.lane.b32.xlu0 %v13995_v54, %s9101_s11 }
 0x446   :  { %v11839_v6 = vpop.permute.xlu1 %8704 }
 0x447   :  { %14013 = vst [vmem:[#allocation61_spill] sm:$0xff] %v11839_v6  ;;  %v11841_v10 = vpop.permute.xlu0 %8729 }
 0x448   :  { %14014 = vst [vmem:[#allocation89_spill] sm:$0xff] %v11841_v10  ;;  %5304 = vrot.lane.b32.xlu1 %v14008_v17, %s9101_s11  ;;  %v11858_v10 = vld [vmem:[#allocation2 + $0x30] sm:$0xff] }
 0x449   :  { %8944 = vrot.lane.b32.xlu0 %v13995_v54, %s9102_s15  ;;  %v11862_v3 = vpack.i.bf16 %v11858_v10, %v14022_v23  ;;  %v14026_v23 = vunpack.i.h.bf16 %v13977_v0 }
 0x44a   :  { %v11850_v7 = vpop.permute.xlu1 %8719 }
 0x44b   :  { %14017 = vst [vmem:[#allocation24_spill] sm:$0xff] %v11850_v7  ;;  %v11856_v6 = vpop.permute.xlu0 %8734  ;;  %14023 = vst [vmem:[#allocation92_spill] sm:$0xff] %v11862_v3  ;;  %v5551_v24 = vsel %vm13594_vm11, %v14026_v23, %v8361_v18  ;;  %v14027_v3 = vunpack.i.l.bf16 %v14016_v50  ;;  %v14031_v18 = vunpack.i.h.bf16 %v14024_v55  ;;  %v14037_v7 = vunpack.i.h.bf16 %v11775_v25 }
 0x44c   :  { %14021 = vst [vmem:[#allocation91_spill] sm:$0xff] %v11856_v6  ;;  %5421 = vrot.lane.b32.xlu1 %v14008_v17, %s9102_s15  ;;  %v8736_v58 = vunpack.i.l.bf16 %v11856_v6  ;;  %v14032_v12 = vunpack.i.h.bf16 %v11856_v6 }
 0x44d   :  { %8949 = vrot.lane.b32.xlu0 %v13995_v54, %s9103_s19  ;;  %v11881_v61 = vsel %vm356_vm2, %v14027_v3, %v8367_v9  ;;  %v11896_v3 = vsel %vm356_vm2, %v8371_v51, %v14031_v18  ;;  %v14035_v18 = vunpack.i.h.bf16 %v11753_v31 }
 0x44e   :  { %v11885_v30 = vpop.permute.xlu1 %8724  ;;  %v11906_v28 = vsel %vm1292_vm10, %v8736_v58, %v14032_v12  ;;  %v11923_v6 = vsel %vm1292_vm10, %v14037_v7, %v8736_v58 }
 0x44f   :  { %14029 = vst [vmem:[#allocation36_spill] sm:$0xff] %v11885_v30  ;;  %v13577_v40 = vunpack.i.h.bf16 %v11885_v30  ;;  %v8726_v8 = vunpack.i.l.bf16 %v11885_v30  ;;  %v11891_v23 = vpop.permute.xlu0 %8739  ;;  %14033 = vst [vmem:[#allocation93_spill] sm:$0xff] %v11906_v28  ;;  %v14039_v30 = vunpack.i.h.bf16 %v13976_v27 }
 0x450   :  { %14030 = vst [vmem:[#allocation22_spill] sm:$0xff] %v11891_v23  ;;  %v8741_v35 = vunpack.i.l.bf16 %v11891_v23  ;;  %5538 = vrot.lane.b32.xlu1 %v14008_v17, %s9103_s19  ;;  %14038 = vst [vmem:[#allocation96_spill] sm:$0xff] %v11923_v6 }
 0x451   :  { %v11911_v5 = vsel %vm1175_vm9, %v8726_v8, %v13577_v40  ;;  %8954 = vrot.lane.b32.xlu0 %v13995_v54, %s9104_s20  ;;  %v11918_v50 = vsel %vm1175_vm9, %v14035_v18, %v8726_v8  ;;  %v14040_v54 = vunpack.i.h.bf16 %v11891_v23  ;;  %v8391_v18 = vunpack.i.l.bf16 %v11325_v4 }
 0x452   :  { %14034 = vst [vmem:[#allocation94_spill] sm:$0xff] %v11911_v5  ;;  %14036 = vst [vmem:[#allocation95_spill] sm:$0xff] %v11918_v50  ;;  %v5668_v40 = vsel %vm13593_vm12, %v14039_v30, %v8741_v35  ;;  %v11930_v47 = vpop.permute.xlu1 %8744  ;;  %v14042_v5 = vld [vmem:[#allocation44_spill] sm:$0xff]  ;;  %v14045_v8 = vunpack.i.h.bf16 %v14028_v62 }
 0x453   :  { %v5669_v31 = vsel %vm13593_vm12, %v8741_v35, %v14040_v54  ;;  %v7205_v58 = vpack.c.bf16 %v5668_v40, %v5551_v24  ;;  %v8746_v7 = vunpack.i.l.bf16 %v11930_v47  ;;  %v11939_v25 = vpop.permute.xlu0 %8749  ;;  %v8401_v30 = vunpack.i.l.bf16 %v14042_v5 }
 0x454   :  { %14041 = vst [vmem:[#allocation97_spill] sm:$0xff] %v11939_v25  ;;  %v7203_v12 = vpack.c.bf16 %v5669_v31, %v5552_v13  ;;  %v8751_v44 = vunpack.i.l.bf16 %v11939_v25  ;;  %5655 = vrot.lane.b32.xlu1 %v14008_v17, %s9104_s20  ;;  %v11947_v35 = vsel %vm356_vm2, %v8367_v9, %v8371_v51  ;;  %v8411_v24 = vunpack.i.l.bf16 %v11366_v59  ;;  %v14044_v31 = vld [vmem:[#allocation51_spill] sm:$0xff] }
 0x455   :  { %v14043_v40 = vunpack.i.l.bf16 %v13977_v0  ;;  %5766 = vrot.lane.b32.xlu0 %v14044_v31, %s9105_s0  ;;  %v11959_v28 = vsel %vm473_vm3, %v8381_v48, %v14045_v8  ;;  %v14046_v9 = vunpack.i.l.bf16 %v13976_v27  ;;  %v8421_v8 = vunpack.i.l.bf16 %v11342_v46  ;;  %v14048_v27 = vld [vmem:[#allocation30_spill] sm:$0xff] }
 0x456   :  { %7204 = vmatprep.subr.bf16.mxu1 %v7203_v12  ;;  %v5751_v0 = vpop.permute.xlu1 %5750  ;;  %v14051_v50 = vunpack.i.h.bf16 %v14042_v5 }
 0x457   :  { %v5549_v13 = vsel %vm13594_vm11, %v8746_v7, %v14043_v40  ;;  %v5666_v54 = vsel %vm13593_vm12, %v8751_v44, %v14046_v9  ;;  %7206 = vmatpush1.bf16.msra.mxu1 %v7205_v58  ;;  %v14047_v40 = vunpack.i.h.bf16 %v11325_v4  ;;  %v5753_v51 = vpop.permute.xlu0 %5752  ;;  %v7257_v58 = vpack.c.bf16 %v11896_v3, %v13991_v45  ;;  %v14049_v7 = vld [vmem:[#allocation38_spill] sm:$0xff]  ;;  %v14053_v3 = vld [vmem:[#allocation32_spill] sm:$0xff] }
 0x458   :  { %v7157_v6 = vpack.c.bf16 %v5666_v54, %v5549_v13  ;;  %5768 = vrot.lane.b32.xlu1 %v14048_v27, %s9105_s0  ;;  %v5784_v44 = vsel %vm13596_vm6, %v5751_v0, %v5753_v51  ;;  %v7207_v9 = vpack.c.bf16 %v11947_v35, %v13988_v11  ;;  %v11989_v54 = vsel %vm3454_vm1, %v8401_v30, %v14051_v50 }
 0x459   :  { %v11970_v12 = vsel %vm590_vm4, %v8391_v18, %v14047_v40  ;;  %v14050_v40 = vunpack.i.h.bf16 %v14049_v7  ;;  %v14052_v13 = vunpack.i.h.bf16 %v11366_v59  ;;  %5770 = vrot.lane.b32.xlu0 %v14053_v3, %s9105_s0  ;;  %v14054_v11 = vunpack.i.h.bf16 %v11299_v60 }
 0x45a   :  { %7158 = vmatpush1.bf16.msra.mxu0 %v7157_v6  ;;  %v8431_v50 = vunpack.i.l.bf16 %v11407_v20  ;;  %v5755_v7 = vpop.permute.xlu1 %5754  ;;  %v7261_v6 = vpack.c.bf16 %v11970_v12, %v11959_v28  ;;  %v14057_v60 = vunpack.i.h.bf16 %v11342_v46  ;;  %vm14058_vm12 = vcmask 793600  }
 0x45b   :  { %v11984_v23 = vsel %vm590_vm4, %v14050_v40, %v8391_v18  ;;  %v11994_v25 = vsel %vm13629_vm5, %v8411_v24, %v14052_v13  ;;  %v12002_v18 = vsel %vm473_vm3, %v14054_v11, %v8381_v48  ;;  %6291 = vmatprep.subr.mxu0 %v5784_v44  ;;  %v14055_v40 = vunpack.i.l.bf16 %v11654_v22  ;;  %v12020_v44 = vpop.permute.xlu0 %5756 }
 0x45c   :  { %v14056_v13 = vunpack.i.h.bf16 %v14024_v55  ;;  %v12016_v48 = vsel %vm14058_vm12, %v8421_v8, %v14057_v60  ;;  %v13595_v11 = vunpack.i.l.bf16 %v11697_v43  ;;  %v5785_v35 = vsel %vm13596_vm6, %v5753_v51, %v5755_v7  ;;  %5772 = vrot.lane.b32.xlu1 %v14008_v17, %s9105_s0  ;;  %v12031_v55 = vld [vmem:[%s13336_s3] sm:$0xff] }
 0x45d   :  { %v7211_v3 = vpack.c.bf16 %v11984_v23, %v12002_v18  ;;  %v5786_v28 = vsel %vm13596_vm6, %v5755_v7, %v12020_v44  ;;  %v14059_v12 = vunpack.i.h.bf16 %v11340_v32  ;;  %v8451_v7 = vunpack.i.l.bf16 %v11450_v63  ;;  %8959 = vrot.lane.b32.xlu0 %v11257_v16, %s9089_s26 }
 0x45e   :  { %v3113_v45 = vsel %vm356_vm2, %v14056_v13, %v14055_v40  ;;  %v14060_v40 = vunpack.i.h.bf16 %v11327_v39  ;;  %6362 = vmatprep.subr.mxu1 %v5786_v28  ;;  %v14062_v39 = vunpack.i.h.bf16 %v14028_v62  ;;  %v8442_v60 = vunpack.i.h.bf16 %v11383_v2  ;;  %v5749_v13 = vpop.permute.xlu1 %5748 }
 0x45f   :  { %v12036_v51 = vsel %vm3454_vm1, %v14059_v12, %v8401_v30  ;;  %v7255_v32 = vpack.c.bf16 %v3113_v45, %v13992_v41  ;;  %v14061_v30 = vunpack.i.l.bf16 %v11703_v52  ;;  %v8441_v12 = vunpack.i.l.bf16 %v11383_v2  ;;  %6363 = vmatpush1.msra.mxu1 %v5785_v35 }
 0x460   :  { %v12041_v23 = vsel %vm13629_vm5, %v14060_v40, %v8411_v24  ;;  %v14063_v40 = vunpack.i.h.bf16 %v11407_v20  ;;  %vm14064_vm12 = vcmask 785408   ;;  %v14065_v28 = vunpack.i.h.bf16 %v11368_v42  ;;  %6379 = vmatmul.mubr.f32.vlgmr.msra.gmra.mrb[8].mxu1 %v12031_v55  ;;  %4266 = vrot.lane.b32.xlu1 %v11858_v10, %s9089_s26 }
 0x461   :  { %v3229_v24 = vsel %vm473_vm3, %v14062_v39, %v14061_v30  ;;  %vm14066_vm11 = vmmov %vm14064_vm12  ;;  %v8452_v62 = vunpack.i.h.bf16 %v11450_v63  ;;  %v13598_v45 = vunpack.i.l.bf16 %v11713_v14  ;;  %v5783_v30 = vsel %vm13596_vm6, %v5749_v13, %v5751_v0  ;;  %v12070_v39 = vpop.permute.xlu0 %8754  ;;  %7256 = vmatprep.subr.bf16.mxu1 %v7255_v32  ;;  %8964 = vrot.lane.b32.xlu0 %v11257_v16, %s9090_s8  ;;  %v14111_v63 = vld [vmem:[#allocation60_spill] sm:$0xff] }
 0x462   :  { %v12060_v18 = vsel %vm14064_vm12, %v8431_v50, %v14063_v40  ;;  %v12065_v41 = vsel %vm14066_vm11, %v14065_v28, %v8431_v50  ;;  %v14067_v35 = vunpack.i.h.bf16 %v11325_v4  ;;  %v13599_v50 = vunpack.i.h.bf16 %v11427_v37  ;;  %7258 = vmatpush1.bf16.msra.mxu1 %v7257_v58  ;;  %6292 = vmatpush1.msra.mxu0 %v5783_v30 }
 0x463   :  { %v8461_v40 = vunpack.i.l.bf16 %v11427_v37  ;;  %v7215_v13 = vpack.c.bf16 %v12041_v23, %v12036_v51  ;;  %v13597_v32 = vunpack.i.l.bf16 %v11735_v29  ;;  %v14068_v4 = vunpack.i.l.bf16 %v11719_v21  ;;  %7208 = vmatprep.subr.bf16.mxu0 %v7207_v9  ;;  %6308 = vmatmul.mubr.f32.vlgmr.msra.gmra.mrb[8].mxu0 %v12031_v55 }
 0x464   :  { %v3345_v42 = vsel %vm590_vm4, %v14067_v35, %v13595_v11  ;;  %v14069_v28 = vunpack.i.h.bf16 %v14042_v5  ;;  %v14070_v58 = vunpack.i.h.bf16 %v11381_v33  ;;  %vm14071_vm11 = vcmask 793600   ;;  %v12107_v5 = vpop.permute.xlu1 %8759  ;;  %4382 = vrot.lane.b32.xlu1 %v11858_v10, %s9090_s8 }
 0x465   :  { %v7259_v0 = vpack.c.bf16 %v3345_v42, %v3229_v24  ;;  %v14072_v24 = vunpack.i.h.bf16 %v11409_v56  ;;  %vm14073_vm12 = vcmask 769024   ;;  %vm14074_vm6 = vcmask 777216   ;;  %v12119_v42 = vpop.permute.xlu0 %8764  ;;  %8969 = vrot.lane.b32.xlu0 %v11257_v16, %s9091_s24 }
 0x466   :  { %v3462_v35 = vsel %vm3454_vm1, %v14069_v28, %v14068_v4  ;;  %v12095_v11 = vsel %vm14071_vm11, %v14070_v58, %v8421_v8  ;;  %v12105_v23 = vsel %vm14074_vm6, %v8441_v12, %v8442_v60  ;;  %v7269_v8 = vpack.c.bf16 %v12060_v18, %v12016_v48  ;;  %vm14075_vm11 = vmmov %vm14073_vm12  ;;  %v14077_v4 = vld [vmem:[#allocation47_spill] sm:$0xff] }
 0x467   :  { %v12100_v51 = vsel %vm14073_vm12, %v14072_v24, %v8451_v7  ;;  %7260 = vmatprep.subr.bf16.mxu1 %v7259_v0  ;;  %v12116_v56 = vsel %vm14075_vm11, %v8451_v7, %v8452_v62  ;;  %v13600_v30 = vunpack.i.l.bf16 %v11729_v26  ;;  %v14076_v9 = vunpack.i.h.bf16 %v11366_v59 }
 0x468   :  { %v14078_v28 = vunpack.i.h.bf16 %v14077_v4  ;;  %vm14079_vm12 = vcmask 588800   ;;  %v12137_v18 = vsel %vm1175_vm9, %v8461_v40, %v13599_v50  ;;  %v14080_v7 = vpack.c.bf16 %v11881_v61, %v10831_v15  ;;  %7262 = vmatpush1.bf16.msra.mxu1 %v7261_v6  ;;  %v14089_v6 = vld [vmem:[#allocation76_spill] sm:$0xff]  ;;  %4498 = vrot.lane.b32.xlu1 %v11858_v10, %s9091_s24 }
 0x469   :  { %v3578_v0 = vsel %vm13629_vm5, %v14076_v9, %v13598_v45  ;;  %6850 = vmatprep.mubr.msk.f32.mxu1 %vm14079_vm12, %v11464_v1  ;;  %v13602_v24 = vunpack.i.h.bf16 %v12107_v5  ;;  %v13604_v9 = vunpack.i.l.bf16 %v12107_v5  ;;  %v14081_v15 = vunpack.i.h.bf16 %v11342_v46  ;;  %6849 = vmatprep.mubr.msk.f32.mxu0 %vm14079_vm12, %v11464_v1  ;;  %v14086_v45 = vld [vmem:[#allocation50_spill] sm:$0xff] }
 0x46a   :  { %v12130_v48 = vsel %vm14074_vm6, %v14078_v28, %v8441_v12  ;;  %7210 = vmatpush1.bf16.msra.mxu0 %v14080_v7  ;;  %v7263_v59 = vpack.c.bf16 %v3578_v0, %v3462_v35  ;;  %v13603_v12 = vunpack.i.l.bf16 %v11751_v36  ;;  %vm14082_vm11 = vcmask 793600   ;;  %8974 = vrot.lane.b32.xlu0 %v11257_v16, %s9099_s5 }
 0x46b   :  { %7212 = vmatprep.subr.bf16.mxu0 %v7211_v3  ;;  %v3694_v61 = vsel %vm14082_vm11, %v14081_v15, %v13597_v32  ;;  %v8472_v35 = vunpack.i.h.bf16 %v11520_v19  ;;  %v8471_v0 = vunpack.i.l.bf16 %v11520_v19  ;;  %v12159_v3 = vpop.permute.xlu1 %8769  ;;  %v7273_v4 = vpack.c.bf16 %v12116_v56, %v12105_v23  ;;  %v12166_v15 = vpop.permute.xlu0 %8774  ;;  %v14085_v56 = vld [vmem:[#allocation34_spill] sm:$0xff] }
 0x46c   :  { %7264 = vmatprep.subr.bf16.mxu1 %v7263_v59  ;;  %v13606_v28 = vunpack.i.l.bf16 %v11745_v53  ;;  %v13601_v46 = vunpack.i.h.bf16 %v12159_v3  ;;  %v13605_v7 = vunpack.i.l.bf16 %v12159_v3  ;;  %v14083_v19 = vunpack.i.h.bf16 %v11407_v20  ;;  %4614 = vrot.lane.b32.xlu1 %v11858_v10, %s9099_s5 }
 0x46d   :  { %vm14084_vm6 = vcmask 785408   ;;  %v13607_v59 = vunpack.i.h.bf16 %v11526_v49  ;;  %v13608_v23 = vunpack.i.h.bf16 %v11556_v38  ;;  %v14087_v58 = vpack.c.bf16 %v14085_v56, %v14086_v45  ;;  %v14100_v56 = vld [vmem:[#allocation82_spill] sm:$0xff] }
 0x46e   :  { %v3810_v32 = vsel %vm14084_vm6, %v14083_v19, %v13600_v30  ;;  %v14088_v50 = vpack.c.bf16 %v11994_v25, %v11989_v54  ;;  %v14090_v20 = vunpack.i.h.bf16 %v14089_v6  ;;  %vm14091_vm11 = vcmask 539648   ;;  %8979 = vrot.lane.b32.xlu0 %v11257_v16, %s9092_s29 }
 0x46f   :  { %7214 = vmatpush1.bf16.msra.mxu0 %v14087_v58  ;;  %v7267_v33 = vpack.c.bf16 %v3810_v32, %v3694_v61  ;;  %v12194_v30 = vsel %vm14091_vm11, %v13604_v9, %v13602_v24  ;;  %vm14093_vm6 = vcmask 531456   ;;  %vm14095_vm12 = vcmask 777216   ;;  %v14097_v58 = vld [vmem:[#allocation63_spill] sm:$0xff] }
 0x470   :  { %7266 = vmatpush1.bf16.msra.mxu1 %v14088_v50  ;;  %v12186_v19 = vsel %vm1175_vm9, %v14090_v20, %v8461_v40  ;;  %14092 = vst [vmem:[#allocation44_spill] sm:$0xff] %v12194_v30  ;;  %v12201_v25 = vsel %vm14093_vm6, %v13605_v7, %v13601_v46  ;;  %7216 = vmatprep.subr.bf16.mxu0 %v7215_v13  ;;  %v14096_v50 = vld [vmem:[#allocation85_spill] sm:$0xff]  ;;  %v12218_v13 = vpop.permute.xlu1 %8779  ;;  %v14098_v61 = vunpack.i.h.bf16 %v14097_v58  ;;  %v14101_v46 = vld [vmem:[#allocation54_spill] sm:$0xff]  ;;  %vm14102_vm11 = vcmask 769024   ;;  %v14104_v58 = vld [vmem:[#allocation56_spill] sm:$0xff] }
 0x471   :  { %14094 = vst [vmem:[#allocation51_spill] sm:$0xff] %v12201_v25  ;;  %v3926_v54 = vsel %vm14095_vm12, %v8442_v60, %v13603_v12  ;;  %v12211_v45 = vsel %vm1292_vm10, %v8471_v0, %v8472_v35  ;;  %7268 = vmatprep.subr.bf16.mxu1 %v7267_v33  ;;  %v14099_v60 = vld [vmem:[#allocation19_spill] sm:$0xff]  ;;  %v12228_v12 = vpop.permute.xlu0 %8784  ;;  %v4043_v33 = vsel %vm14102_vm11, %v8452_v62, %v13606_v28  ;;  %v14103_v32 = vunpack.i.h.bf16 %v11492_v34  ;;  %v14110_v40 = vld [vmem:[#allocation53_spill] sm:$0xff]  ;;  %v14115_v28 = vld [vmem:[#allocation6_spill] sm:$0xff] }
 0x472   :  { %v12223_v2 = vsel %vm1292_vm10, %v14098_v61, %v8471_v0  ;;  %v14105_v9 = vunpack.i.h.bf16 %v14104_v58  ;;  %v14106_v61 = vld [vmem:[#allocation57_spill] sm:$0xff]  ;;  %vm14108_vm12 = vcmask 539648   ;;  %v14109_v20 = vld [vmem:[#allocation83_spill] sm:$0xff]  ;;  %v14112_v1 = vpack.c.bf16 %v14110_v40, %v14111_v63  ;;  %v14113_v58 = vld [vmem:[#allocation14_spill] sm:$0xff]  ;;  %4731 = vrot.lane.b32.xlu1 %v11858_v10, %s9092_s29  ;;  %8984 = vrot.lane.b32.xlu0 %v11257_v16, %s9093_s13 }
 0x473   :  { %v14107_v7 = vunpack.i.h.bf16 %v14106_v61  ;;  %v13611_v6 = vunpack.i.h.bf16 %v14109_v20  ;;  %v7271_v62 = vpack.c.bf16 %v4043_v33, %v3926_v54  ;;  %v7227_v40 = vpack.c.bf16 %v12223_v2, %v12186_v19  ;;  %v14120_v63 = vld [vmem:[#allocation12_spill] sm:$0xff]  ;;  %vm14139_vm11 = vmmov %vm14093_vm6 }
 0x474   :  { %v12240_v0 = vsel %vm14093_vm6, %v14105_v9, %v14103_v32  ;;  %7218 = vmatpush1.bf16.msra.mxu0 %v14112_v1  ;;  %7270 = vmatpush1.bf16.msra.mxu1 %v7269_v8  ;;  %v14114_v9 = vunpack.i.h.bf16 %v14113_v58  ;;  %v14117_v1 = vunpack.i.l.bf16 %v11767_v57  ;;  %v14118_v8 = vunpack.i.h.bf16 %v11427_v37  ;;  %v12284_v37 = vpop.permute.xlu1 %8789 }
 0x475   :  { %v12247_v24 = vsel %vm14108_vm12, %v14107_v7, %v13608_v23  ;;  %v14116_v7 = vpack.c.bf16 %v12065_v41, %v12095_v11  ;;  %v14119_v33 = vunpack.i.h.bf16 %v14096_v50  ;;  %v14121_v58 = vunpack.i.h.bf16 %v14120_v63  ;;  %7272 = vmatprep.subr.bf16.mxu1 %v7271_v62  ;;  %v14126_v63 = vld [vmem:[#allocation16_spill] sm:$0xff]  ;;  %v12302_v62 = vpop.permute.xlu0 %8794  ;;  %v14132_v23 = vld [vmem:[#allocation69_spill] sm:$0xff] }
 0x476   :  { %v12258_v32 = vsel %vm1643_vm13, %v14114_v9, %v13607_v59  ;;  %v4159_v54 = vsel %vm1175_vm9, %v14118_v8, %v14117_v1  ;;  %v8767_v11 = vunpack.i.h.bf16 %v12119_v42  ;;  %v8766_v41 = vunpack.i.l.bf16 %v12119_v42  ;;  %4847 = vrot.lane.b32.xlu1 %v11858_v10, %s9093_s13 }
 0x477   :  { %7220 = vmatprep.subr.bf16.mxu0 %v14116_v7  ;;  %v12278_v9 = vsel %vm4616_vm0, %v14121_v58, %v14119_v33  ;;  %v7277_v19 = vpack.c.bf16 %v12211_v45, %v12137_v18  ;;  %v14122_v2 = vunpack.i.h.bf16 %v14099_v60  ;;  %v14123_v7 = vld [vmem:[#allocation11_spill] sm:$0xff]  ;;  %v14125_v33 = vunpack.i.h.bf16 %v14100_v56  ;;  %v14135_v45 = vld [vmem:[#allocation26_spill] sm:$0xff] }
 0x478   :  { %v14124_v1 = vunpack.i.h.bf16 %v14123_v7  ;;  %v14127_v42 = vunpack.i.h.bf16 %v14126_v63  ;;  %v14128_v59 = vunpack.i.l.bf16 %v14101_v46  ;;  %v8757_v63 = vunpack.i.h.bf16 %v12070_v39  ;;  %7274 = vmatpush1.bf16.msra.mxu1 %v7273_v4 }
 0x479   :  { %v14136_v17 = vunpack.i.h.bf16 %v14135_v45  ;;  %v8777_v16 = vunpack.i.h.bf16 %v12166_v15  ;;  %v8796_v25 = vunpack.i.l.bf16 %v12302_v62 }
 0x47a   :  { %v12293_v8 = vsel %vm1877_vm15, %v14124_v1, %v14122_v2  ;;  %v12300_v58 = vsel %vm13640_vm8, %v14127_v42, %v14125_v33  ;;  %v4275_v18 = vsel %vm1292_vm10, %v8472_v35, %v14128_v59  ;;  %v14129_v2 = vld [vmem:[#allocation74_spill] sm:$0xff]  ;;  %v8756_v33 = vunpack.i.l.bf16 %v12070_v39 }
 0x47b   :  { %v14130_v7 = vunpack.i.h.bf16 %v14129_v2  ;;  %v14131_v42 = vld [vmem:[#allocation66_spill] sm:$0xff]  ;;  %v7275_v35 = vpack.c.bf16 %v4275_v18, %v4159_v54  ;;  %v14134_v59 = vunpack.i.h.bf16 %v14115_v28  ;;  %v14138_v39 = vunpack.i.l.bf16 %v12159_v3 }
 0x47c   :  { %v14133_v61 = vpack.c.bf16 %v14131_v42, %v14132_v23  ;;  %v8787_v54 = vunpack.i.h.bf16 %v12228_v12  ;;  %v8786_v18 = vunpack.i.l.bf16 %v12228_v12  ;;  %v8805_v42 = vpop.permute.xlu0 %8804  ;;  %v14148_v2 = vunpack.i.h.bf16 %v11556_v38  ;;  %v14151_v38 = vld [vmem:[#allocation90_spill] sm:$0xff] }
 0x47d   :  { %v12314_v1 = vsel %vm1760_vm14, %v14130_v7, %v13611_v6  ;;  %v12326_v30 = vsel %vm13639_vm7, %v14136_v17, %v14134_v59  ;;  %v14137_v7 = vpack.c.bf16 %v12100_v51, %v12130_v48  ;;  %v4507_v4 = vsel %vm14139_vm11, %v8767_v11, %v14138_v39  ;;  %7276 = vmatprep.subr.bf16.mxu1 %v7275_v35  ;;  %v12345_v51 = vpop.permute.xlu1 %8799  ;;  %v14140_v48 = vld [vmem:[#allocation17_spill] sm:$0xff]  ;;  %vm14143_vm11 = vmmov %vm14093_vm6 }
 0x47e   :  { %7222 = vmatpush1.bf16.msra.mxu0 %v14133_v61  ;;  %v4506_v61 = vsel %vm14093_vm6, %v8766_v41, %v8767_v11  ;;  %v14141_v59 = vunpack.i.l.bf16 %v12107_v5  ;;  %v14142_v11 = vunpack.i.h.bf16 %v11492_v34  ;;  %vm14144_vm6 = vmmov %vm14108_vm12  ;;  %v14145_v35 = vld [vmem:[#allocation73_spill] sm:$0xff]  ;;  %7278 = vmatpush1.bf16.msra.mxu1 %v7277_v19 }
 0x47f   :  { %7224 = vmatprep.subr.bf16.mxu0 %v14137_v7  ;;  %v4390_v23 = vsel %vm14144_vm6, %v8756_v33, %v8757_v63  ;;  %v14146_v6 = vld [vmem:[#allocation81_spill] sm:$0xff]  ;;  %8989 = vrot.lane.b32.xlu0 %v14151_v38, %s9094_s14 }
 0x480   :  { %v4391_v7 = vsel %vm14108_vm12, %v8757_v63, %v14141_v59  ;;  %v4505_v39 = vsel %vm14143_vm11, %v14142_v11, %v8766_v41  ;;  %v14147_v17 = vpack.c.bf16 %v14145_v35, %v14146_v6  ;;  %vm14149_vm12 = vmmov %vm14144_vm6  ;;  %v7281_v34 = vpack.c.bf16 %v4506_v61, %v4390_v23  ;;  %v12382_v35 = vpop.permute.xlu0 %8814 }
 0x481   :  { %v7279_v45 = vpack.c.bf16 %v4507_v4, %v4391_v7  ;;  %v4389_v59 = vsel %vm14149_vm12, %v14148_v2, %v8756_v33  ;;  %v8776_v41 = vunpack.i.l.bf16 %v12166_v15  ;;  %v14150_v63 = vunpack.i.l.bf16 %v12284_v37  ;;  %v12375_v33 = vpop.permute.xlu1 %8809 }
 0x482   :  { %7226 = vmatpush1.bf16.msra.mxu0 %v14147_v17  ;;  %v4739_v4 = vsel %vm1643_vm13, %v8786_v18, %v8787_v54  ;;  %v7231_v15 = vpack.c.bf16 %v4505_v39, %v4389_v59  ;;  %v8797_v23 = vunpack.i.h.bf16 %v12302_v62  ;;  %v8807_v61 = vunpack.i.h.bf16 %v8805_v42  ;;  %v14157_v39 = vld [vmem:[#allocation7_spill] sm:$0xff]  ;;  %v14158_v59 = vld [vmem:[#allocation8_spill] sm:$0xff] }
 0x483   :  { %7228 = vmatprep.subr.bf16.mxu0 %v7227_v40  ;;  %v4740_v6 = vsel %vm1643_vm13, %v8787_v54, %v14150_v63  ;;  %7280 = vmatprep.subr.bf16.mxu1 %v7279_v45  ;;  %v14152_v40 = vunpack.i.l.bf16 %v12218_v13  ;;  %v8806_v17 = vunpack.i.l.bf16 %v8805_v42  ;;  %v14153_v54 = vunpack.i.h.bf16 %v14140_v48  ;;  %v14154_v63 = vld [vmem:[#allocation18_spill] sm:$0xff] }
 0x484   :  { %v14155_v12 = vunpack.i.h.bf16 %v14154_v63  ;;  %vm14156_vm11 = vcmask 285696   ;;  %v14159_v19 = vpack.c.bf16 %v14157_v39, %v14158_v59  ;;  %7282 = vmatpush1.bf16.msra.mxu1 %v7281_v34  ;;  %v14160_v11 = vunpack.i.h.bf16 %v11526_v49  ;;  %v14161_v63 = vld [vmem:[#allocation92_spill] sm:$0xff]  ;;  %8999 = vrot.lane.b32.xlu0 %v14151_v38, %s9095_s30 }
 0x485   :  { %v4624_v2 = vsel %vm4616_vm0, %v8777_v16, %v14152_v40  ;;  %v4623_v7 = vsel %vm4616_vm0, %v8776_v41, %v8777_v16  ;;  %8994 = vrot.lane.b32.xlu1 %v14161_v63, %s9094_s14  ;;  %v12409_v49 = vpop.permute.xlu1 %8819  ;;  %v14164_v62 = vunpack.i.h.bf16 %v14096_v50  ;;  %v14168_v50 = vld [vmem:[#allocation25_spill] sm:$0xff]  ;;  %vm14175_vm6 = vcmask 64512   ;;  %vm14179_vm12 = vmmov %vm14156_vm11 }
 0x486   :  { %v12389_v45 = vsel %vm14156_vm11, %v14155_v12, %v14153_v54  ;;  %7230 = vmatpush1.bf16.msra.mxu0 %v14159_v19  ;;  %v7283_v40 = vpack.c.bf16 %v4740_v6, %v4624_v2  ;;  %v4738_v42 = vsel %vm1643_vm13, %v14160_v11, %v8786_v18  ;;  %v14162_v12 = vunpack.i.l.bf16 %v12345_v51 }
 0x487   :  { %7232 = vmatprep.subr.bf16.mxu0 %v7231_v15  ;;  %v14163_v19 = vunpack.i.l.bf16 %v12375_v33  ;;  %v7285_v6 = vpack.c.bf16 %v4739_v4, %v4623_v7  ;;  %v4622_v18 = vsel %vm4616_vm0, %v14164_v62, %v8776_v41  ;;  %v14165_v11 = vunpack.i.h.bf16 %v11654_v22  ;;  %v8825_v7 = vpop.permute.xlu0 %8824 }
 0x488   :  { %v4856_v54 = vsel %vm1760_vm14, %v8797_v23, %v14162_v12  ;;  %7284 = vmatprep.subr.bf16.mxu1 %v7283_v40  ;;  %v14166_v15 = vunpack.i.l.bf16 %v11654_v22  ;;  %v4971_v4 = vsel %vm1877_vm15, %v8806_v17, %v8807_v61  ;;  %v7235_v39 = vpack.c.bf16 %v4738_v42, %v4622_v18  ;;  %v14167_v40 = vld [vmem:[#allocation21_spill] sm:$0xff]  ;;  %9009 = vrot.lane.b32.xlu0 %v14151_v38, %s9100_s7 }
 0x489   :  { %v4972_v34 = vsel %vm1877_vm15, %v8807_v61, %v14163_v19  ;;  %v13617_v12 = vunpack.i.h.bf16 %v14167_v40  ;;  %v13615_v19 = vunpack.i.h.bf16 %v14168_v50  ;;  %v8826_v41 = vunpack.i.l.bf16 %v8825_v7  ;;  %7286 = vmatpush1.bf16.msra.mxu1 %v7285_v6  ;;  %9004 = vrot.lane.b32.xlu1 %v14161_v63, %s9095_s30 }
 0x48a   :  { %v7287_v16 = vpack.c.bf16 %v4972_v34, %v4856_v54  ;;  %v12419_v2 = vsel %vm356_vm2, %v14166_v15, %v14165_v11  ;;  %v14169_v54 = vpack.c.bf16 %v12240_v0, %v12247_v24  ;;  %v14170_v34 = vunpack.i.h.bf16 %v14099_v60  ;;  %v14171_v15 = vld [vmem:[#allocation27_spill] sm:$0xff]  ;;  %v12441_v60 = vpop.permute.xlu1 %8829 }
 0x48b   :  { %v13616_v61 = vunpack.i.l.bf16 %v14168_v50  ;;  %v4855_v42 = vsel %vm1760_vm14, %v8796_v25, %v8797_v23  ;;  %v13613_v18 = vunpack.i.l.bf16 %v12409_v49  ;;  %v8827_v11 = vunpack.i.h.bf16 %v8825_v7 }
 0x48c   :  { %7234 = vmatpush1.bf16.msra.mxu0 %v14169_v54  ;;  %v4970_v62 = vsel %vm1877_vm15, %v14170_v34, %v8806_v17  ;;  %v7289_v24 = vpack.c.bf16 %v4971_v4, %v4855_v42  ;;  %v8816_v0 = vunpack.i.l.bf16 %v12382_v35  ;;  %7288 = vmatprep.subr.bf16.mxu1 %v7287_v16  ;;  %v14172_v23 = vunpack.i.h.bf16 %v14109_v20  ;;  %v8835_v54 = vpop.permute.xlu0 %8834  ;;  %v14173_v34 = vld [vmem:[#allocation20_spill] sm:$0xff] }
 0x48d   :  { %7236 = vmatprep.subr.bf16.mxu0 %v7235_v39  ;;  %v8531_v6 = vunpack.i.l.bf16 %v14171_v15  ;;  %v8817_v7 = vunpack.i.h.bf16 %v12382_v35  ;;  %v13614_v39 = vunpack.i.l.bf16 %v12441_v60  ;;  %v14174_v42 = vunpack.i.h.bf16 %v14173_v34  ;;  %9014 = vrot.lane.b32.xlu1 %v14161_v63, %s9100_s7 }
 0x48e   :  { %v4854_v17 = vsel %vm1760_vm14, %v14172_v23, %v8796_v25  ;;  %v14176_v20 = vpack.c.bf16 %v12258_v32, %v12278_v9  ;;  %7290 = vmatpush1.bf16.msra.mxu1 %v7289_v24  ;;  %v14177_v25 = vunpack.i.h.bf16 %v14100_v56  ;;  %v14178_v23 = vld [vmem:[#allocation49_spill] sm:$0xff]  ;;  %v12479_v9 = vsel %vm473_vm3, %v13616_v61, %v13615_v19  ;;  %9019 = vrot.lane.b32.xlu0 %v14151_v38, %s9101_s11  ;;  %v12483_v24 = vpop.permute.xlu1 %8839 }
 0x48f   :  { %v7239_v4 = vpack.c.bf16 %v4970_v62, %v4854_v17  ;;  %v12454_v16 = vsel %vm14175_vm6, %v14174_v42, %v13617_v12  ;;  %v8547_v62 = vunpack.i.h.bf16 %v11697_v43  ;;  %v5204_v17 = vsel %vm13640_vm8, %v8826_v41, %v8827_v11  ;;  %14180 = vst [vmem:[#allocation30_spill] sm:$0xff] %v12483_v24  ;;  %vm14183_vm6 = vmmov %vm14156_vm11 }
 0x490   :  { %7238 = vmatpush1.bf16.msra.mxu0 %v14176_v20  ;;  %v5203_v35 = vsel %vm13640_vm8, %v14177_v25, %v8826_v41  ;;  %v5088_v32 = vsel %vm14179_vm12, %v8817_v7, %v13613_v18  ;;  %v5205_v56 = vsel %vm13640_vm8, %v8827_v11, %v13614_v39  ;;  %v8836_v41 = vunpack.i.l.bf16 %v8835_v54  ;;  %v8845_v18 = vpop.permute.xlu0 %8844 }
 0x491   :  { %7240 = vmatprep.subr.bf16.mxu0 %v7239_v4  ;;  %v14181_v4 = vunpack.i.h.bf16 %v14140_v48  ;;  %v7291_v42 = vpack.c.bf16 %v5205_v56, %v5088_v32  ;;  %v14182_v11 = vunpack.i.h.bf16 %v14171_v15  ;;  %v5087_v25 = vsel %vm14183_vm6, %v8816_v0, %v8817_v7  ;;  %v14186_v7 = vld [vmem:[#allocation79_spill] sm:$0xff]  ;;  %9024 = vrot.lane.b32.xlu1 %v14161_v63, %s9101_s11 }
 0x492   :  { %v7249_v19 = vpack.c.bf16 %v12326_v30, %v12454_v16  ;;  %v8537_v59 = vunpack.i.h.bf16 %v11703_v52  ;;  %v7293_v61 = vpack.c.bf16 %v5204_v17, %v5087_v25  ;;  %v8847_v12 = vunpack.i.h.bf16 %v8845_v18  ;;  %9029 = vrot.lane.b32.xlu0 %v14151_v38, %s9102_s15  ;;  %v12519_v17 = vpop.permute.xlu1 %8849 }
 0x493   :  { %v5086_v34 = vsel %vm14156_vm11, %v14181_v4, %v8816_v0  ;;  %v12491_v20 = vsel %vm356_vm2, %v8531_v6, %v14182_v11  ;;  %v8846_v48 = vunpack.i.l.bf16 %v8845_v18  ;;  %v14184_v32 = vpack.c.bf16 %v12293_v8, %v12314_v1  ;;  %7292 = vmatprep.subr.bf16.mxu1 %v7291_v42  ;;  %v14191_v42 = vld [vmem:[#allocation15_spill] sm:$0xff] }
 0x494   :  { %v7243_v39 = vpack.c.bf16 %v5203_v35, %v5086_v34  ;;  %v14185_v56 = vunpack.i.l.bf16 %v11697_v43  ;;  %v13620_v35 = vunpack.i.h.bf16 %v14186_v7  ;;  %v13618_v30 = vunpack.i.l.bf16 %v12483_v24  ;;  %7294 = vmatpush1.bf16.msra.mxu1 %v7293_v61  ;;  %v8855_v25 = vpop.permute.xlu0 %8854 }
 0x495   :  { %7242 = vmatpush1.bf16.msra.mxu0 %v14184_v32  ;;  %v14187_v18 = vunpack.i.h.bf16 %v11654_v22  ;;  %v13622_v1 = vunpack.i.l.bf16 %v14186_v7  ;;  %v8837_v16 = vunpack.i.h.bf16 %v8835_v54  ;;  %v14188_v4 = vunpack.i.h.bf16 %v14167_v40  ;;  %9034 = vrot.lane.b32.xlu1 %v14161_v63, %s9102_s15 }
 0x496   :  { %v12505_v0 = vsel %vm590_vm4, %v14185_v56, %v8547_v62  ;;  %7244 = vmatprep.subr.bf16.mxu0 %v7243_v39  ;;  %vm14189_vm12 = vcmask 64512   ;;  %v14190_v34 = vunpack.i.h.bf16 %v14115_v28  ;;  %v8551_v11 = vunpack.i.l.bf16 %v14191_v42  ;;  %9039 = vrot.lane.b32.xlu0 %v14151_v38, %s9103_s19 }
 0x497   :  { %v12514_v8 = vsel %vm356_vm2, %v14187_v18, %v8531_v6  ;;  %v5320_v39 = vsel %vm14189_vm12, %v14188_v4, %v8836_v41  ;;  %v13621_v6 = vunpack.i.h.bf16 %v14191_v42  ;;  %v13619_v54 = vunpack.i.l.bf16 %v12519_v17  ;;  %vm14195_vm11 = vmmov %vm14189_vm12  ;;  %v14200_v4 = vld [vmem:[#allocation31_spill] sm:$0xff] }
 0x498   :  { %v5437_v22 = vsel %vm13639_vm7, %v14190_v34, %v8846_v48  ;;  %v14192_v61 = vunpack.i.l.bf16 %v11703_v52  ;;  %v5438_v40 = vsel %vm13639_vm7, %v8846_v48, %v8847_v12  ;;  %v14193_v28 = vpack.c.bf16 %v12300_v58, %v12389_v45  ;;  %vm14196_vm6 = vmmov %vm14195_vm11 }
 0x499   :  { %v7247_v32 = vpack.c.bf16 %v5437_v22, %v5320_v39  ;;  %v8747_v34 = vunpack.i.h.bf16 %v11930_v47  ;;  %v14194_v39 = vld [vmem:[#allocation97_spill] sm:$0xff]  ;;  %v5322_v52 = vsel %vm14195_vm11, %v8837_v16, %v13618_v30  ;;  %v5439_v58 = vsel %vm13639_vm7, %v8847_v12, %v13619_v54  ;;  %v12556_v47 = vpop.permute.xlu1 %8859  ;;  %9044 = vrot.lane.b32.xlu1 %v14161_v63, %s9103_s19 }
 0x49a   :  { %v12533_v56 = vsel %vm473_vm3, %v14192_v61, %v8537_v59  ;;  %7246 = vmatpush1.bf16.msra.mxu0 %v14193_v28  ;;  %v8752_v22 = vunpack.i.h.bf16 %v14194_v39  ;;  %v5321_v45 = vsel %vm14196_vm6, %v8836_v41, %v8837_v16  ;;  %v8856_v48 = vunpack.i.l.bf16 %v8855_v25  ;;  %14197 = vst [vmem:[#allocation38_spill] sm:$0xff] %v12556_v47  ;;  %v14199_v54 = vld [vmem:[#allocation33_spill] sm:$0xff]  ;;  %9049 = vrot.lane.b32.xlu0 %v14151_v38, %s9104_s20 }
 0x49b   :  { %7248 = vmatprep.subr.bf16.mxu0 %v7247_v32  ;;  %v7295_v61 = vpack.c.bf16 %v5439_v58, %v5322_v52  ;;  %v14198_v28 = vunpack.i.l.bf16 %v14168_v50  ;;  %v12568_v12 = vsel %vm3454_vm1, %v13622_v1, %v13620_v35  ;;  %v12573_v41 = vsel %vm590_vm4, %v8551_v11, %v13621_v6  ;;  %v8865_v52 = vpop.permute.xlu0 %8864  ;;  %v14203_v1 = vld [vmem:[#allocation22_spill] sm:$0xff] }
 0x49c   :  { %v8567_v16 = vunpack.i.h.bf16 %v11713_v14  ;;  %v7297_v39 = vpack.c.bf16 %v5438_v40, %v5321_v45  ;;  %v8557_v58 = vunpack.i.h.bf16 %v11719_v21  ;;  %v12580_v30 = vsel %vm590_vm4, %v8547_v62, %v8551_v11 }
 0x49d   :  { %v12561_v32 = vsel %vm473_vm3, %v8537_v59, %v14198_v28  ;;  %v8867_v59 = vunpack.i.h.bf16 %v8865_v52  ;;  %v8866_v28 = vunpack.i.l.bf16 %v8865_v52  ;;  %7296 = vmatprep.subr.bf16.mxu1 %v7295_v61  ;;  %v14201_v6 = vunpack.i.h.bf16 %v14200_v4  ;;  %v12595_v62 = vpop.permute.xlu1 %8869  ;;  %9054 = vrot.lane.b32.xlu1 %v14161_v63, %s9104_s20  ;;  %v14214_v63 = vld [vmem:[#allocation55_spill] sm:$0xff] }
 0x49e   :  { %7250 = vmatpush1.bf16.msra.mxu0 %v7249_v19  ;;  %vm14202_vm12 = vcmask 48128   ;;  %v14204_v40 = vunpack.i.h.bf16 %v14203_v1  ;;  %vm14205_vm11 = vcmask 39936   ;;  %v13625_v24 = vunpack.i.l.bf16 %v12556_v47  ;;  %7298 = vmatpush1.bf16.msra.mxu1 %v7297_v39 }
 0x49f   :  { %v5553_v18 = vsel %vm14202_vm12, %v14201_v6, %v8747_v34  ;;  %v8571_v43 = vunpack.i.l.bf16 %v14199_v54  ;;  %v8857_v19 = vunpack.i.h.bf16 %v8855_v25  ;;  %vm14206_vm6 = vmmov %vm14202_vm12  ;;  %v14208_v11 = vunpack.i.l.bf16 %v11713_v14  ;;  %v5759_v39 = vpop.permute.xlu0 %5758  ;;  %5774 = vrot.lane.b32.xlu0 %v14214_v63, %s9105_s0 }
 0x4a0   :  { %v5670_v45 = vsel %vm14205_vm11, %v14204_v40, %v8752_v22  ;;  %v5554_v6 = vsel %vm14206_vm6, %v8747_v34, %v8856_v48  ;;  %vm14207_vm12 = vmmov %vm14205_vm11  ;;  %v13626_v61 = vunpack.i.l.bf16 %v12595_v62  ;;  %v5672_v38 = vsel %vm14205_vm11, %v8866_v28, %v8867_v59 }
 0x4a1   :  { %v5671_v1 = vsel %vm14207_vm12, %v8752_v22, %v8866_v28  ;;  %v12602_v4 = vsel %vm13629_vm5, %v14208_v11, %v8567_v16  ;;  %v7253_v40 = vpack.c.bf16 %v5670_v45, %v5553_v18  ;;  %v7307_v34 = vpack.c.bf16 %v12580_v30, %v12561_v32  ;;  %vm14210_vm12 = vmmov %vm14205_vm11  ;;  %v14212_v28 = vld [vmem:[#allocation46_spill] sm:$0xff]  ;;  %v14217_v45 = vld [vmem:[#allocation39_spill] sm:$0xff] }
 0x4a2   :  { %v7251_v52 = vpack.c.bf16 %v5671_v1, %v5554_v6  ;;  %v14209_v14 = vunpack.i.l.bf16 %v11719_v21  ;;  %v8587_v35 = vunpack.i.h.bf16 %v11729_v26  ;;  %v5556_v18 = vsel %vm14206_vm6, %v8857_v19, %v13625_v24  ;;  %vm14213_vm11 = vmmov %vm14206_vm6  ;;  %v5761_v1 = vpop.permute.xlu1 %5760 }
 0x4a3   :  { %v5673_v30 = vsel %vm14210_vm12, %v8867_v59, %v13626_v61  ;;  %v14211_v32 = vunpack.i.h.bf16 %v14199_v54  ;;  %v5555_v6 = vsel %vm14213_vm11, %v8856_v48, %v8857_v19  ;;  %v5763_v22 = vpop.permute.xlu0 %5762  ;;  %vm14215_vm6 = vcmask 31744   ;;  %v14218_v48 = vld [vmem:[#allocation48_spill] sm:$0xff] }
 0x4a4   :  { %v12615_v11 = vsel %vm3454_vm1, %v14209_v14, %v8557_v58  ;;  %7252 = vmatprep.subr.bf16.mxu0 %v7251_v52  ;;  %v7299_v52 = vpack.c.bf16 %v5673_v30, %v5556_v18  ;;  %v8577_v14 = vunpack.i.h.bf16 %v11735_v29  ;;  %v7301_v24 = vpack.c.bf16 %v5672_v38, %v5555_v6  ;;  %vm14222_vm11 = vmmov %vm14215_vm6  ;;  %v14230_v38 = vld [vmem:[#allocation37_spill] sm:$0xff] }
 0x4a5   :  { %v12629_v21 = vsel %vm13629_vm5, %v8571_v43, %v14211_v32  ;;  %7254 = vmatpush1.bf16.msra.mxu0 %v7253_v40  ;;  %v5788_v59 = vsel %vm14215_vm6, %v5759_v39, %v5761_v1  ;;  %v12638_v61 = vsel %vm13629_vm5, %v8567_v16, %v8571_v43  ;;  %v14216_v32 = vld [vmem:[#allocation78_spill] sm:$0xff]  ;;  %v8591_v47 = vunpack.i.l.bf16 %v14217_v45  ;;  %v14223_v43 = vld [vmem:[#allocation67_spill] sm:$0xff] }
 0x4a6   :  { %6433 = vmatprep.subr.mxu0 %v5788_v59  ;;  %7300 = vmatprep.subr.bf16.mxu1 %v7299_v52  ;;  %v14219_v40 = vunpack.i.l.bf16 %v14186_v7  ;;  %v14220_v30 = vunpack.i.l.bf16 %v11729_v26  ;;  %vm14221_vm12 = vcmask 785408   ;;  %v5787_v16 = vsel %vm14222_vm11, %v12020_v44, %v5759_v39  ;;  %v14224_v59 = vld [vmem:[#allocation62_spill] sm:$0xff]  ;;  %v12661_v26 = vpop.permute.xlu1 %5764 }
 0x4a7   :  { %5776 = vrot.lane.b32.xlu1 %v14223_v43, %s9105_s0  ;;  %7302 = vmatpush1.bf16.msra.mxu1 %v7301_v24  ;;  %v14228_v52 = vunpack.i.l.bf16 %v11735_v29  ;;  %vm14229_vm6 = vcmask 793600   ;;  %v12678_v43 = vpop.permute.xlu0 %8874  ;;  %v6233_v29 = vld [vmem:[%s13337_s4] sm:$0xff]  ;;  %v8597_v24 = vunpack.i.h.bf16 %v11751_v36 }
 0x4a8   :  { %v3464_v18 = vsel %vm3454_vm1, %v8557_v58, %v14219_v40  ;;  %v12650_v6 = vsel %vm14221_vm12, %v14220_v30, %v8587_v35  ;;  %v14225_v58 = vld [vmem:[#allocation43_spill] sm:$0xff]  ;;  %v14226_v40 = vunpack.i.l.bf16 %v14212_v28  ;;  %v14227_v30 = vunpack.i.h.bf16 %v14171_v15  ;;  %vm14232_vm12 = vmmov %vm14222_vm11 }
 0x4a9   :  { %5778 = vrot.lane.b32.xlu0 %v14225_v58, %s9105_s0  ;;  %6434 = vmatpush1.msra.mxu0 %v5787_v16  ;;  %v7311_v39 = vpack.c.bf16 %v12638_v61, %v3464_v18  ;;  %v12674_v25 = vsel %vm14229_vm6, %v14228_v52, %v8577_v14  ;;  %v14231_v15 = vpack.c.bf16 %v12514_v8, %v14044_v31  ;;  %v14233_v52 = vld [vmem:[#allocation80_spill] sm:$0xff]  ;;  %v14235_v31 = vunpack.i.l.bf16 %v14218_v48  ;;  %vm14238_vm6 = vmmov %vm14232_vm12 }
 0x4aa   :  { %v3117_v44 = vsel %vm356_vm2, %v14227_v30, %v14226_v40  ;;  %6450 = vmatmul.mubr.f32.vlgmr.msra.gmra.mrb[10].mxu0 %v12031_v55  ;;  %v5790_v61 = vsel %vm14232_vm12, %v5763_v22, %v12661_v26  ;;  %v13631_v40 = vunpack.i.l.bf16 %v14233_v52  ;;  %v14234_v30 = vpack.c.bf16 %v12419_v2, %v14178_v23  ;;  %v14239_v18 = vld [vmem:[#allocation32_spill] sm:$0xff] }
 0x4ab   :  { %7304 = vmatprep.subr.bf16.mxu0 %v14231_v15  ;;  %6504 = vmatprep.subr.mxu1 %v5790_v61  ;;  %v14236_v8 = vunpack.i.h.bf16 %v14168_v50  ;;  %vm14237_vm11 = vcmask 785408   ;;  %v5789_v19 = vsel %vm14238_vm6, %v5761_v1, %v5763_v22  ;;  %v7351_v2 = vpack.c.bf16 %v3117_v44, %v14239_v18 }
 0x4ac   :  { %7306 = vmatpush1.bf16.msra.mxu0 %v14234_v30  ;;  %v3812_v16 = vsel %vm14237_vm11, %v8587_v35, %v8591_v47  ;;  %5780 = vrot.lane.b32.xlu1 %v11858_v10, %s9105_s0  ;;  %v14240_v23 = vunpack.i.l.bf16 %v14216_v32  ;;  %vm14241_vm12 = vcmask 793600   ;;  %v14242_v30 = vld [vmem:[#allocation64_spill] sm:$0xff]  ;;  %v12710_v35 = vpop.permute.xlu1 %8879  ;;  %v14244_v22 = vunpack.i.h.bf16 %v14191_v42 }
 0x4ad   :  { %v3233_v15 = vsel %vm473_vm3, %v14236_v8, %v14235_v31  ;;  %7308 = vmatprep.subr.bf16.mxu0 %v7307_v34  ;;  %v13630_v50 = vunpack.i.l.bf16 %v14242_v30  ;;  %6505 = vmatpush1.msra.mxu1 %v5789_v19  ;;  %v14243_v8 = vunpack.i.l.bf16 %v14224_v59  ;;  %v7317_v34 = vpack.c.bf16 %v12650_v6, %v12674_v25  ;;  %v12725_v19 = vpop.permute.xlu0 %8884 }
 0x4ae   :  { %v3696_v61 = vsel %vm14241_vm12, %v8577_v14, %v14240_v23  ;;  %6236 = vperm.xlu0 %9058, %v6233_v29   ;;  %v14245_v1 = vunpack.i.h.bf16 %v14217_v45  ;;  %v8607_v44 = vunpack.i.h.bf16 %v11745_v53  ;;  %7352 = vmatprep.subr.bf16.mxu1 %v7351_v2  ;;  %v14246_v23 = vld [vmem:[#allocation52_spill] sm:$0xff]  ;;  %v13632_v25 = vunpack.i.l.bf16 %v12725_v19 }
 0x4af   :  { %v3349_v10 = vsel %vm590_vm4, %v14244_v22, %v14243_v8  ;;  %6521 = vmatmul.mubr.f32.vlgmr.msra.gmra.mrb[10].mxu1 %v12031_v55  ;;  %v7315_v42 = vpack.c.bf16 %v3812_v16, %v3696_v61  ;;  %v8611_v8 = vunpack.i.l.bf16 %v14246_v23  ;;  %v14247_v22 = vld [vmem:[#allocation10_spill] sm:$0xff]  ;;  %v14248_v6 = vpack.c.bf16 %v12505_v0, %v12533_v56  ;;  %v14255_v56 = vld [vmem:[#allocation88_spill] sm:$0xff] }
 0x4b0   :  { %v12722_v14 = vsel %vm14237_vm11, %v8591_v47, %v14245_v1  ;;  %v7355_v18 = vpack.c.bf16 %v3349_v10, %v3233_v15  ;;  %v13635_v31 = vunpack.i.l.bf16 %v14247_v22  ;;  %v14249_v47 = vpack.c.bf16 %v12491_v20, %v14048_v27 }
 0x4b1   :  { %7310 = vmatpush1.bf16.msra.mxu0 %v14248_v6  ;;  %v14250_v55 = vunpack.i.h.bf16 %v14186_v7  ;;  %v14251_v29 = vunpack.i.l.bf16 %v11751_v36  ;;  %vm14252_vm6 = vcmask 777216   ;;  %v13633_v2 = vunpack.i.h.bf16 %v12710_v35  ;;  %v12753_v7 = vpop.permute.xlu1 %8889 }
 0x4b2   :  { %7354 = vmatpush1.bf16.msra.mxu1 %v14249_v47  ;;  %v13636_v0 = vunpack.i.l.bf16 %v12710_v35  ;;  %7312 = vmatprep.subr.bf16.mxu0 %v7311_v39  ;;  %v14253_v27 = vunpack.i.l.bf16 %v14230_v38  ;;  %vm14254_vm12 = vmmov %vm14252_vm6  ;;  %v8696_v61 = vunpack.i.l.bf16 %v14255_v56  ;;  %v14256_v36 = vunpack.i.h.bf16 %v14199_v54  ;;  %v12777_v54 = vld [vmem:[%s13336_s3 + $0x8] sm:$0xff] }
 0x4b3   :  { %v3466_v16 = vsel %vm3454_vm1, %v14250_v55, %v13631_v40  ;;  %v12745_v15 = vsel %vm14252_vm6, %v14251_v29, %v8597_v24  ;;  %7356 = vmatprep.subr.bf16.mxu1 %v7355_v18  ;;  %v14257_v1 = vunpack.i.l.bf16 %v12678_v43  ;;  %v14258_v6 = vunpack.i.h.bf16 %v12107_v5  ;;  %v12785_v55 = vpop.permute.xlu0 %8894 }
 0x4b4   :  { %v3928_v20 = vsel %vm14254_vm12, %v8597_v24, %v14253_v27  ;;  %v3582_v10 = vsel %vm13629_vm5, %v14256_v36, %v13630_v50  ;;  %vm14259_vm11 = vcmask 539648   ;;  %v14260_v24 = vunpack.i.h.bf16 %v12159_v3  ;;  %v14264_v27 = vld [vmem:[#allocation35_spill] sm:$0xff] }
 0x4b5   :  { %v12765_v39 = vsel %vm14259_vm11, %v14258_v6, %v14257_v1  ;;  %vm14261_vm6 = vcmask 531456   ;;  %vm14262_vm12 = vcmask 588800   ;;  %v13634_v5 = vunpack.i.h.bf16 %v12753_v7  ;;  %v14265_v1 = vld [vmem:[#allocation61_spill] sm:$0xff]  ;;  %v14281_v6 = vld [vmem:[#allocation23_spill] sm:$0xff] }
 0x4b6   :  { %v12772_v18 = vsel %vm14261_vm6, %v14260_v24, %v13632_v25  ;;  %6851 = vmatprep.mubr.msk.f32.mxu0 %vm14262_vm12, %v12777_v54  ;;  %vm14263_vm5 = vmmov %vm14262_vm12  ;;  %v13637_v47 = vunpack.i.l.bf16 %v12753_v7  ;;  %v7359_v3 = vpack.c.bf16 %v3582_v10, %v3466_v16  ;;  %v8631_v36 = vunpack.i.l.bf16 %v14264_v27 }
 0x4b7   :  { %6852 = vmatprep.mubr.msk.f32.mxu1 %vm14263_vm5, %v12777_v54  ;;  %v14266_v24 = vpack.c.bf16 %v12602_v4, %v12615_v11  ;;  %v14267_v50 = vpack.c.bf16 %v12573_v41, %v12479_v9  ;;  %vm14268_vm5 = vcmask 769024   ;;  %v14269_v16 = vunpack.i.h.bf16 %v14216_v32  ;;  %v14274_v11 = vld [vmem:[#allocation9_spill] sm:$0xff] }
 0x4b8   :  { %v4045_v40 = vsel %vm14268_vm5, %v8607_v44, %v8611_v8  ;;  %vm14270_vm11 = vcmask 793600   ;;  %v8612_v25 = vunpack.i.h.bf16 %v14246_v23  ;;  %v8627_v29 = vunpack.i.h.bf16 %v14101_v46 }
 0x4b9   :  { %7314 = vmatpush1.bf16.msra.mxu0 %v14266_v24  ;;  %7358 = vmatpush1.bf16.msra.mxu1 %v14267_v50  ;;  %v3698_v10 = vsel %vm14270_vm11, %v14269_v16, %v13635_v31  ;;  %vm14271_vm6 = vcmask 539648   ;;  %vm14273_vm12 = vcmask 531456   ;;  %v8617_v41 = vunpack.i.h.bf16 %v11767_v57  ;;  %v12823_v24 = vpop.permute.xlu1 %8899  ;;  %v12835_v31 = vpop.permute.xlu0 %8904 }
 0x4ba   :  { %v12810_v4 = vsel %vm14271_vm6, %v13636_v0, %v13633_v2  ;;  %v12817_v9 = vsel %vm14273_vm12, %v13637_v47, %v13634_v5  ;;  %7316 = vmatprep.subr.bf16.mxu0 %v7315_v42  ;;  %7360 = vmatprep.subr.bf16.mxu1 %v7359_v3  ;;  %v14275_v16 = vunpack.i.h.bf16 %v14217_v45  ;;  %vm14276_vm5 = vcmask 785408  }
 0x4bb   :  { %14272 = vst [vmem:[#allocation47_spill] sm:$0xff] %v12810_v4  ;;  %v14277_v5 = vunpack.i.h.bf16 %v14216_v32  ;;  %v14278_v42 = vunpack.i.l.bf16 %v14216_v32  ;;  %v7319_v0 = vpack.c.bf16 %v4045_v40, %v3928_v20  ;;  %v14279_v23 = vunpack.i.l.bf16 %v11745_v53 }
 0x4bc   :  { %v3814_v2 = vsel %vm14276_vm5, %v14275_v16, %v8696_v61  ;;  %vm14280_vm6 = vcmask 769024   ;;  %v8621_v4 = vunpack.i.l.bf16 %v14281_v6  ;;  %v14282_v45 = vpack.c.bf16 %v12629_v21, %v12568_v12 }
 0x4bd   :  { %v3697_v3 = vsel %vm14270_vm11, %v14278_v42, %v14277_v5  ;;  %v7363_v47 = vpack.c.bf16 %v3814_v2, %v3698_v10  ;;  %v4044_v50 = vsel %vm14280_vm6, %v14279_v23, %v8607_v44  ;;  %7318 = vmatpush1.bf16.msra.mxu0 %v7317_v34  ;;  %v4277_v16 = vsel %vm1292_vm10, %v8627_v29, %v8631_v36  ;;  %vm14286_vm5 = vmmov %vm14280_vm6  ;;  %v12854_v12 = vpop.permute.xlu1 %8909 }
 0x4be   :  { %7362 = vmatpush1.bf16.msra.mxu1 %v14282_v45  ;;  %v14283_v32 = vunpack.i.l.bf16 %v14265_v1  ;;  %v14284_v5 = vunpack.i.h.bf16 %v14230_v38  ;;  %vm14285_vm12 = vcmask 777216   ;;  %7320 = vmatprep.subr.bf16.mxu0 %v7319_v0  ;;  %v7321_v53 = vpack.c.bf16 %v4044_v50, %v12745_v15  ;;  %vm14288_vm11 = vmmov %vm14286_vm5 }
 0x4bf   :  { %7364 = vmatprep.subr.bf16.mxu1 %v7363_v47  ;;  %v7365_v44 = vpack.c.bf16 %v12722_v14, %v3697_v3  ;;  %v4046_v34 = vsel %vm14286_vm5, %v8611_v8, %v8612_v25  ;;  %v8792_v2 = vunpack.i.h.bf16 %v12284_v37  ;;  %v4161_v21 = vsel %vm1175_vm9, %v8617_v41, %v8621_v4  ;;  %v12864_v47 = vpop.permute.xlu0 %8914  ;;  %vm14292_vm6 = vmmov %vm14285_vm12 }
 0x4c0   :  { %v3930_v40 = vsel %vm14285_vm12, %v14284_v5, %v14283_v32  ;;  %v14287_v20 = vunpack.i.l.bf16 %v14274_v11  ;;  %v14289_v23 = vunpack.i.l.bf16 %v11767_v57  ;;  %v8782_v15 = vunpack.i.h.bf16 %v12218_v13 }
 0x4c1   :  { %v7323_v14 = vpack.c.bf16 %v4277_v16, %v4161_v21  ;;  %v14290_v50 = vmov %v14284_v5  ;;  %v14291_v42 = vunpack.i.l.bf16 %v14230_v38  ;;  %v14293_v45 = vunpack.i.h.bf16 %v14264_v27  ;;  %7322 = vmatpush1.bf16.msra.mxu0 %v7321_v53 }
 0x4c2   :  { %v4047_v10 = vsel %vm14288_vm11, %v8612_v25, %v14287_v20  ;;  %v4160_v0 = vsel %vm1175_vm9, %v14289_v23, %v8617_v41  ;;  %v8906_v57 = vunpack.i.l.bf16 %v12835_v31  ;;  %7366 = vmatpush1.bf16.msra.mxu1 %v7365_v44  ;;  %v14294_v41 = vunpack.i.h.bf16 %v14281_v6  ;;  %v12886_v44 = vpop.permute.xlu1 %8919 }
 0x4c3   :  { %v7367_v8 = vpack.c.bf16 %v4047_v10, %v3930_v40  ;;  %v3929_v3 = vsel %vm14292_vm6, %v14291_v42, %v14290_v50  ;;  %v4278_v25 = vsel %vm1292_vm10, %v8631_v36, %v14293_v45  ;;  %v14295_v16 = vunpack.i.l.bf16 %v14101_v46  ;;  %7324 = vmatprep.subr.bf16.mxu0 %v7323_v14  ;;  %v14301_v45 = vld [vmem:[#allocation96_spill] sm:$0xff] }
 0x4c4   :  { %v4162_v32 = vsel %vm1175_vm9, %v8621_v4, %v14294_v41  ;;  %v7369_v38 = vpack.c.bf16 %v4046_v34, %v3929_v3  ;;  %v14296_v40 = vunpack.i.l.bf16 %v12284_v37  ;;  %v8887_v36 = vunpack.i.h.bf16 %v12725_v19  ;;  %v12893_v34 = vpop.permute.xlu0 %8924 }
 0x4c5   :  { %v4276_v5 = vsel %vm1292_vm10, %v14295_v16, %v8627_v29  ;;  %7368 = vmatprep.subr.bf16.mxu1 %v7367_v8  ;;  %v8896_v53 = vunpack.i.l.bf16 %v12785_v55  ;;  %v14297_v4 = vunpack.i.l.bf16 %v12218_v13  ;;  %v8812_v29 = vunpack.i.h.bf16 %v12375_v33 }
 0x4c6   :  { %v4741_v27 = vsel %vm1643_vm13, %v14296_v40, %v8792_v2  ;;  %v7325_v6 = vpack.c.bf16 %v4276_v5, %v4160_v0  ;;  %v8877_v21 = vunpack.i.h.bf16 %v12678_v43  ;;  %v7373_v37 = vpack.c.bf16 %v4278_v25, %v4162_v32  ;;  %7370 = vmatpush1.bf16.msra.mxu1 %v7369_v38  ;;  %v14302_v25 = vld [vmem:[#allocation95_spill] sm:$0xff]  ;;  %v12914_v5 = vpop.permute.xlu1 %4955 }
 0x4c7   :  { %v4625_v46 = vsel %vm4616_vm0, %v14297_v4, %v8782_v15  ;;  %v8911_v20 = vunpack.i.l.bf16 %v12854_v12  ;;  %v8926_v10 = vunpack.i.l.bf16 %v12893_v34  ;;  %v4742_v23 = vsel %vm1643_vm13, %v8792_v2, %v8906_v57 }
 0x4c8   :  { %7326 = vmatpush1.bf16.msra.mxu0 %v7325_v6  ;;  %v14298_v0 = vunpack.i.l.bf16 %v12753_v7  ;;  %vm14299_vm12 = vcmask 531456   ;;  %v7333_v14 = vpack.c.bf16 %v4741_v27, %v4625_v46  ;;  %v8802_v8 = vunpack.i.h.bf16 %v12345_v51  ;;  %v12924_v6 = vpop.permute.xlu0 %8929 }
 0x4c9   :  { %v8901_v50 = vunpack.i.l.bf16 %v12823_v24  ;;  %v8907_v42 = vunpack.i.h.bf16 %v12835_v31  ;;  %v14300_v3 = vpack.c.bf16 %v12772_v18, %v12765_v39  ;;  %v14303_v41 = vpack.c.bf16 %v14301_v45, %v14302_v25  ;;  %vm14305_vm5 = vmmov %vm14299_vm12 }
 0x4ca   :  { %v4511_v13 = vsel %vm14299_vm12, %v8887_v36, %v14298_v0  ;;  %v14304_v2 = vunpack.i.l.bf16 %v12725_v19  ;;  %v8916_v16 = vunpack.i.l.bf16 %v12864_v47  ;;  %v4626_v38 = vsel %vm4616_vm0, %v8782_v15, %v8896_v53  ;;  %v14311_v0 = vld [vmem:[#allocation51_spill] sm:$0xff]  ;;  %v14312_v15 = vld [vmem:[#allocation44_spill] sm:$0xff] }
 0x4cb   :  { %7328 = vmatprep.subr.bf16.mxu0 %v14300_v3  ;;  %7372 = vmatprep.subr.bf16.mxu1 %v14303_v41  ;;  %v14306_v31 = vunpack.i.l.bf16 %v12710_v35  ;;  %vm14307_vm11 = vcmask 539648   ;;  %v14308_v39 = vunpack.i.l.bf16 %v12375_v33  ;;  %v8897_v27 = vunpack.i.h.bf16 %v12785_v55 }
 0x4cc   :  { %v4510_v32 = vsel %vm14305_vm5, %v14304_v2, %v8887_v36  ;;  %v7331_v19 = vpack.c.bf16 %v4742_v23, %v4626_v38  ;;  %v14309_v4 = vunpack.i.l.bf16 %v12678_v43  ;;  %vm14310_vm6 = vmmov %vm14307_vm11  ;;  %v14313_v3 = vpack.c.bf16 %v14311_v0, %v14312_v15  ;;  %7374 = vmatpush1.bf16.msra.mxu1 %v7373_v37 }
 0x4cd   :  { %v4395_v40 = vsel %vm14307_vm11, %v8877_v21, %v14306_v31  ;;  %v4973_v18 = vsel %vm1877_vm15, %v14308_v39, %v8812_v29  ;;  %v4974_v45 = vsel %vm1877_vm15, %v8812_v29, %v8926_v10  ;;  %v4744_v33 = vsel %vm1643_vm13, %v8907_v42, %v8911_v20 }
 0x4ce   :  { %v7375_v36 = vpack.c.bf16 %v4511_v13, %v4395_v40  ;;  %v4394_v46 = vsel %vm14310_vm6, %v14309_v4, %v8877_v21  ;;  %7330 = vmatpush1.bf16.msra.mxu0 %v14313_v3  ;;  %v8832_v55 = vunpack.i.h.bf16 %v12441_v60  ;;  %v4743_v23 = vsel %vm1643_vm13, %v8906_v57, %v8907_v42  ;;  %v12944_v13 = vpop.permute.xlu1 %5071 }
 0x4cf   :  { %v7377_v25 = vpack.c.bf16 %v4510_v32, %v4394_v46  ;;  %7332 = vmatprep.subr.bf16.mxu0 %v7331_v19  ;;  %v4628_v43 = vsel %vm4616_vm0, %v8897_v27, %v8901_v50  ;;  %v8921_v21 = vunpack.i.l.bf16 %v12886_v44  ;;  %v8927_v37 = vunpack.i.h.bf16 %v12893_v34  ;;  %v8935_v32 = vpop.permute.xlu0 %8934 }
 0x4d0   :  { %7376 = vmatprep.subr.bf16.mxu1 %v7375_v36  ;;  %v8931_v29 = vunpack.i.l.bf16 %v12924_v6  ;;  %v4858_v41 = vsel %vm1760_vm14, %v8802_v8, %v8916_v16  ;;  %v14314_v2 = vunpack.i.l.bf16 %v12345_v51  ;;  %v8822_v42 = vunpack.i.h.bf16 %v12409_v49 }
 0x4d1   :  { %v7335_v38 = vpack.c.bf16 %v4974_v45, %v4858_v41  ;;  %v7379_v31 = vpack.c.bf16 %v4744_v33, %v4628_v43  ;;  %v4627_v40 = vsel %vm4616_vm0, %v8896_v53, %v8897_v27  ;;  %v8917_v39 = vunpack.i.h.bf16 %v12864_v47  ;;  %7378 = vmatpush1.bf16.msra.mxu1 %v7377_v25 }
 0x4d2   :  { %v4857_v57 = vsel %vm1760_vm14, %v14314_v2, %v8802_v8  ;;  %v4976_v34 = vsel %vm1877_vm15, %v8927_v37, %v12914_v5  ;;  %v8936_v19 = vunpack.i.l.bf16 %v8935_v32  ;;  %7334 = vmatpush1.bf16.msra.mxu0 %v7333_v14  ;;  %v14315_v51 = vunpack.i.l.bf16 %v12441_v60  ;;  %v12961_v47 = vpop.permute.xlu1 %5187 }
 0x4d3   :  { %v7337_v36 = vpack.c.bf16 %v4973_v18, %v4857_v57  ;;  %v7381_v4 = vpack.c.bf16 %v4743_v23, %v4627_v40  ;;  %7336 = vmatprep.subr.bf16.mxu0 %v7335_v38  ;;  %7380 = vmatprep.subr.bf16.mxu1 %v7379_v31  ;;  %v4860_v53 = vsel %vm1760_vm14, %v8917_v39, %v8921_v21  ;;  %v8937_v27 = vunpack.i.h.bf16 %v8935_v32  ;;  %v8940_v60 = vpop.permute.xlu0 %8939 }
 0x4d4   :  { %v5206_v8 = vsel %vm13640_vm8, %v14315_v51, %v8832_v55  ;;  %vm14316_vm12 = vcmask 285696   ;;  %v5207_v14 = vsel %vm13640_vm8, %v8832_v55, %v8936_v19  ;;  %v4975_v18 = vsel %vm1877_vm15, %v8926_v10, %v8927_v37  ;;  %v14319_v10 = vld [vmem:[#allocation30_spill] sm:$0xff] }
 0x4d5   :  { %v5090_v46 = vsel %vm14316_vm12, %v8822_v42, %v8931_v29  ;;  %v7383_v0 = vpack.c.bf16 %v4976_v34, %v4860_v53  ;;  %v14317_v3 = vunpack.i.l.bf16 %v12409_v49  ;;  %vm14318_vm5 = vmmov %vm14316_vm12  ;;  %v8932_v33 = vunpack.i.h.bf16 %v12924_v6  ;;  %7382 = vmatpush1.bf16.msra.mxu1 %v7381_v4 }
 0x4d6   :  { %v7339_v15 = vpack.c.bf16 %v5207_v14, %v5090_v46  ;;  %v5209_v25 = vsel %vm13640_vm8, %v8937_v27, %v12961_v47  ;;  %7338 = vmatpush1.bf16.msra.mxu0 %v7337_v36  ;;  %v8852_v43 = vunpack.i.h.bf16 %v12519_v17  ;;  %v4859_v55 = vsel %vm1760_vm14, %v8916_v16, %v8917_v39  ;;  %vm14320_vm11 = vmmov %vm14318_vm5  ;;  %v12977_v6 = vpop.permute.xlu1 %5304 }
 0x4d7   :  { %v5089_v45 = vsel %vm14318_vm5, %v14317_v3, %v8822_v42  ;;  %7384 = vmatprep.subr.bf16.mxu1 %v7383_v0  ;;  %v8842_v37 = vunpack.i.h.bf16 %v14319_v10  ;;  %v7385_v41 = vpack.c.bf16 %v4975_v18, %v4859_v55  ;;  %v5092_v49 = vsel %vm14320_vm11, %v8932_v33, %v12944_v13  ;;  %v8945_v32 = vpop.permute.xlu0 %8944  ;;  %vm14322_vm6 = vmmov %vm14318_vm5  ;;  %v14327_v0 = vld [vmem:[#allocation70_spill] sm:$0xff] }
 0x4d8   :  { %v7341_v23 = vpack.c.bf16 %v5206_v8, %v5089_v45  ;;  %7340 = vmatprep.subr.bf16.mxu0 %v7339_v15  ;;  %v8941_v2 = vunpack.i.l.bf16 %v8940_v60  ;;  %v5208_v57 = vsel %vm13640_vm8, %v8936_v19, %v8937_v27  ;;  %v7387_v42 = vpack.c.bf16 %v5209_v25, %v5092_v49 }
 0x4d9   :  { %v8947_v38 = vunpack.i.h.bf16 %v8945_v32  ;;  %v8946_v31 = vunpack.i.l.bf16 %v8945_v32  ;;  %7386 = vmatpush1.bf16.msra.mxu1 %v7385_v41  ;;  %v8637_v16 = vunpack.i.h.bf16 %v14212_v28  ;;  %v14321_v40 = vunpack.i.l.bf16 %v12519_v17  ;;  %v14330_v41 = vld [vmem:[#allocation68_spill] sm:$0xff]  ;;  %v14331_v32 = vld [vmem:[#allocation38_spill] sm:$0xff] }
 0x4da   :  { %7342 = vmatpush1.bf16.msra.mxu0 %v7341_v23  ;;  %v5091_v34 = vsel %vm14322_vm6, %v8931_v29, %v8932_v33  ;;  %v8942_v36 = vunpack.i.h.bf16 %v8940_v60  ;;  %7388 = vmatprep.subr.bf16.mxu1 %v7387_v42  ;;  %v14323_v51 = vunpack.i.l.bf16 %v14319_v10  ;;  %vm14324_vm12 = vcmask 64512   ;;  %v12988_v4 = vpop.permute.xlu1 %5421 }
 0x4db   :  { %v5440_v39 = vsel %vm13639_vm7, %v14321_v40, %v8852_v43  ;;  %v7389_v8 = vpack.c.bf16 %v5208_v57, %v5091_v34  ;;  %vm14325_vm5 = vmmov %vm14324_vm12  ;;  %v5441_v27 = vsel %vm13639_vm7, %v8852_v43, %v8946_v31  ;;  %v5442_v46 = vsel %vm13639_vm7, %v8946_v31, %v8947_v38  ;;  %v8950_v14 = vpop.permute.xlu0 %8949 }
 0x4dc   :  { %v5323_v19 = vsel %vm14324_vm12, %v14323_v51, %v8842_v37  ;;  %v5324_v53 = vsel %vm14325_vm5, %v8842_v37, %v8941_v2  ;;  %vm14326_vm11 = vmmov %vm14325_vm5  ;;  %v5443_v29 = vsel %vm13639_vm7, %v8947_v38, %v12988_v4  ;;  %v8641_v60 = vunpack.i.l.bf16 %v14327_v0 }
 0x4dd   :  { %v5326_v17 = vsel %vm14326_vm11, %v8942_v36, %v12977_v6  ;;  %v7343_v18 = vpack.c.bf16 %v5441_v27, %v5324_v53  ;;  %v7345_v15 = vpack.c.bf16 %v5440_v39, %v5323_v19  ;;  %7390 = vmatpush1.bf16.msra.mxu1 %v7389_v8  ;;  %v8642_v45 = vunpack.i.h.bf16 %v14327_v0  ;;  %vm14328_vm6 = vmmov %vm14325_vm5  ;;  %v14335_v53 = vld [vmem:[#allocation58_spill] sm:$0xff] }
 0x4de   :  { %v7391_v3 = vpack.c.bf16 %v5443_v29, %v5326_v17  ;;  %v8872_v33 = vunpack.i.h.bf16 %v12595_v62  ;;  %v5325_v25 = vsel %vm14328_vm6, %v8941_v2, %v8942_v36  ;;  %v14329_v23 = vunpack.i.l.bf16 %v14212_v28  ;;  %v13006_v37 = vpop.permute.xlu1 %5538  ;;  %v14332_v36 = vld [vmem:[#allocation84_spill] sm:$0xff] }
 0x4df   :  { %7344 = vmatprep.subr.bf16.mxu0 %v7343_v18  ;;  %v7393_v55 = vpack.c.bf16 %v5442_v46, %v5325_v25  ;;  %v8951_v10 = vunpack.i.l.bf16 %v8950_v14  ;;  %v8652_v49 = vunpack.i.h.bf16 %v14330_v41  ;;  %v8651_v57 = vunpack.i.l.bf16 %v14330_v41  ;;  %v8955_v38 = vpop.permute.xlu0 %8954 }
 0x4e0   :  { %v13004_v43 = vsel %vm356_vm2, %v14329_v23, %v8637_v16  ;;  %7346 = vmatpush1.bf16.msra.mxu0 %v7345_v15  ;;  %7392 = vmatprep.subr.bf16.mxu1 %v7391_v3  ;;  %v8657_v42 = vunpack.i.h.bf16 %v14224_v59  ;;  %v8862_v2 = vunpack.i.h.bf16 %v14331_v32  ;;  %v8952_v31 = vunpack.i.h.bf16 %v8950_v14  ;;  %v14343_v23 = vld [vmem:[#allocation75_spill] sm:$0xff] }
 0x4e1   :  { %v8957_v28 = vunpack.i.h.bf16 %v8955_v38  ;;  %v8956_v40 = vunpack.i.l.bf16 %v8955_v38  ;;  %7394 = vmatpush1.bf16.msra.mxu1 %v7393_v55  ;;  %v3119_v39 = vsel %vm356_vm2, %v8637_v16, %v8641_v60  ;;  %v8647_v34 = vunpack.i.h.bf16 %v14218_v48 }
 0x4e2   :  { %v8672_v51 = vunpack.i.h.bf16 %v14332_v36  ;;  %v14333_v19 = vunpack.i.l.bf16 %v12595_v62  ;;  %vm14334_vm12 = vcmask 39936   ;;  %v13020_v27 = vsel %vm356_vm2, %v8642_v45, %v14335_v53  ;;  %v13024_v29 = vpop.permute.xlu1 %5655 }
 0x4e3   :  { %v8671_v17 = vunpack.i.l.bf16 %v14332_v36  ;;  %vm14336_vm5 = vmmov %vm14334_vm12  ;;  %vm14337_vm11 = vcmask 48128   ;;  %v14339_v18 = vunpack.i.l.bf16 %v14331_v32  ;;  %v5767_v3 = vpop.permute.xlu0 %5766  ;;  %v8661_v55 = vunpack.i.l.bf16 %v14343_v23  ;;  %v14365_v36 = vld [vmem:[#allocation91_spill] sm:$0xff] }
 0x4e4   :  { %v5674_v8 = vsel %vm14334_vm12, %v14333_v19, %v8872_v33  ;;  %v5676_v46 = vsel %vm14336_vm5, %v8956_v40, %v8957_v28  ;;  %v5558_v16 = vsel %vm14337_vm11, %v8862_v2, %v8951_v10  ;;  %vm14338_vm6 = vmmov %vm14336_vm5  ;;  %v3120_v32 = vsel %vm356_vm2, %v8641_v60, %v8642_v45  ;;  %v14348_v60 = vld [vmem:[#allocation71_spill] sm:$0xff] }
 0x4e5   :  { %v5675_v14 = vsel %vm14338_vm6, %v8872_v33, %v8956_v40  ;;  %vm14340_vm7 = vmmov %vm14337_vm11  ;;  %v13038_v33 = vsel %vm473_vm3, %v8651_v57, %v8652_v49  ;;  %v14345_v40 = vld [vmem:[#allocation28_spill] sm:$0xff]  ;;  %v3237_v45 = vsel %vm473_vm3, %v8652_v49, %v14348_v60  ;;  %vm14350_vm2 = vcmask 31744  }
 0x4e6   :  { %v5557_v62 = vsel %vm14340_vm7, %v14339_v18, %v8862_v2  ;;  %vm14341_vm12 = vmmov %vm14340_vm7  ;;  %v7347_v25 = vpack.c.bf16 %v5675_v14, %v5558_v16  ;;  %v7401_v53 = vpack.c.bf16 %v13004_v43, %v14345_v40  ;;  %v5769_v14 = vpop.permute.xlu1 %5768  ;;  %v3351_v49 = vsel %vm590_vm4, %v8657_v42, %v8661_v55 }
 0x4e7   :  { %v5560_v0 = vsel %vm14341_vm12, %v8952_v31, %v13006_v37  ;;  %vm14342_vm8 = vmmov %vm14336_vm5  ;;  %v7349_v41 = vpack.c.bf16 %v5674_v8, %v5557_v62  ;;  %v14347_v8 = vunpack.i.l.bf16 %v14218_v48  ;;  %v5771_v43 = vpop.permute.xlu0 %5770  ;;  %v7399_v62 = vpack.c.bf16 %v3119_v39, %v14214_v63 }
 0x4e8   :  { %v5677_v15 = vsel %vm14342_vm8, %v8957_v28, %v13024_v29  ;;  %vm14344_vm5 = vmmov %vm14340_vm7  ;;  %7348 = vmatprep.subr.bf16.mxu0 %v7347_v25  ;;  %v14346_v28 = vunpack.i.l.bf16 %v14224_v59  ;;  %v5792_v59 = vsel %vm14350_vm2, %v5767_v3, %v5769_v14  ;;  %v7447_v48 = vpack.c.bf16 %v13020_v27, %v14225_v58  ;;  %v14351_v25 = vld [vmem:[#allocation67_spill] sm:$0xff] }
 0x4e9   :  { %v5559_v38 = vsel %vm14344_vm5, %v8951_v10, %v8952_v31  ;;  %v7395_v19 = vpack.c.bf16 %v5677_v15, %v5560_v0  ;;  %v3234_v10 = vsel %vm473_vm3, %v14347_v8, %v8647_v34  ;;  %v8662_v31 = vunpack.i.h.bf16 %v14343_v23  ;;  %7350 = vmatpush1.bf16.msra.mxu0 %v7349_v41  ;;  %vm14352_vm7 = vmmov %vm14350_vm2  ;;  %v14358_v8 = vld [vmem:[#allocation89_spill] sm:$0xff] }
 0x4ea   :  { %v7397_v2 = vpack.c.bf16 %v5676_v46, %v5559_v38  ;;  %v13046_v16 = vsel %vm590_vm4, %v14346_v28, %v8657_v42  ;;  %v14349_v46 = vld [vmem:[#allocation13_spill] sm:$0xff]  ;;  %v13062_v0 = vsel %vm3454_vm1, %v8671_v17, %v8672_v51  ;;  %6575 = vmatprep.subr.mxu0 %v5792_v59  ;;  %v3235_v15 = vsel %vm473_vm3, %v8647_v34, %v8651_v57  ;;  %vm14355_vm3 = vmmov %vm14350_vm2  ;;  %v14357_v28 = vld [vmem:[#allocation40_spill] sm:$0xff] }
 0x4eb   :  { %7396 = vmatprep.subr.bf16.mxu1 %v7395_v19  ;;  %v8681_v18 = vunpack.i.l.bf16 %v14349_v46  ;;  %v7449_v23 = vpack.c.bf16 %v3120_v32, %v14351_v25  ;;  %v8677_v41 = vunpack.i.h.bf16 %v14242_v30  ;;  %v8667_v38 = vunpack.i.h.bf16 %v14233_v52  ;;  %v13074_v19 = vpop.permute.xlu1 %5772  ;;  %v14353_v57 = vld [vmem:[#allocation29_spill] sm:$0xff] }
 0x4ec   :  { %7398 = vmatpush1.bf16.msra.mxu1 %v7397_v2  ;;  %v5791_v63 = vsel %vm14352_vm7, %v12661_v26, %v5767_v3  ;;  %v7405_v58 = vpack.c.bf16 %v13046_v16, %v3234_v10  ;;  %v3352_v39 = vsel %vm590_vm4, %v8661_v55, %v8662_v31  ;;  %v8682_v27 = vunpack.i.h.bf16 %v14349_v46  ;;  %v14354_v34 = vld [vmem:[#allocation65_spill] sm:$0xff]  ;;  %v13080_v2 = vpop.permute.xlu0 %8959 }
 0x4ed   :  { %6576 = vmatpush1.msra.mxu0 %v5791_v63  ;;  %v3353_v42 = vsel %vm590_vm4, %v8662_v31, %v14353_v57  ;;  %v3470_v32 = vsel %vm3454_vm1, %v8672_v51, %v14354_v34  ;;  %v13085_v26 = vld [vmem:[%s13336_s3] sm:$0xff]  ;;  %v5794_v3 = vsel %vm14355_vm3, %v5771_v43, %v13074_v19  ;;  %v7403_v55 = vpack.c.bf16 %v3351_v49, %v3235_v15  ;;  %vm14359_vm4 = vmmov %vm14350_vm2 }
 0x4ee   :  { %7400 = vmatprep.subr.bf16.mxu0 %v7399_v62  ;;  %6592 = vmatmul.mubr.f32.vlgmr.msra.gmra.mrb[12].mxu0 %v13085_v26  ;;  %vm14356_vm8 = vcmask 801792   ;;  %v8701_v16 = vunpack.i.l.bf16 %v14357_v28  ;;  %v8731_v51 = vunpack.i.l.bf16 %v14358_v8  ;;  %v5793_v10 = vsel %vm14359_vm4, %v5769_v14, %v5771_v43  ;;  %v14363_v43 = vld [vmem:[#allocation36_spill] sm:$0xff] }
 0x4ef   :  { %v3584_v40 = vsel %vm14356_vm8, %v8677_v41, %v8681_v18  ;;  %v8961_v31 = vunpack.i.l.bf16 %v13080_v2  ;;  %7402 = vmatpush1.bf16.msra.mxu0 %v7401_v53  ;;  %6646 = vmatprep.subr.mxu1 %v5794_v3  ;;  %v14360_v60 = vunpack.i.l.bf16 %v14233_v52  ;;  %v8697_v59 = vunpack.i.h.bf16 %v14255_v56  ;;  %v13103_v14 = vpop.permute.xlu1 %4266  ;;  %v14361_v53 = vld [vmem:[#allocation45_spill] sm:$0xff]  ;;  %vm14362_vm11 = vmmov %vm14356_vm8 }
 0x4f0   :  { %7404 = vmatprep.subr.bf16.mxu0 %v7403_v55  ;;  %6647 = vmatpush1.msra.mxu1 %v5793_v10  ;;  %v3468_v62 = vsel %vm3454_vm1, %v8667_v38, %v8671_v17  ;;  %v7451_v15 = vpack.c.bf16 %v3353_v42, %v3237_v45  ;;  %v8687_v49 = vunpack.i.h.bf16 %v14247_v22  ;;  %v3586_v52 = vsel %vm14362_vm11, %v8682_v27, %v14361_v53  ;;  %v13126_v42 = vpop.permute.xlu0 %8964  ;;  %v14370_v55 = vld [vmem:[#allocation86_spill] sm:$0xff] }
 0x4f1   :  { %v3467_v46 = vsel %vm3454_vm1, %v14360_v60, %v8667_v38  ;;  %7448 = vmatprep.subr.bf16.mxu1 %v7447_v48  ;;  %6663 = vmatmul.mubr.f32.vlgmr.msra.gmra.mrb[12].mxu1 %v13085_v26  ;;  %v14364_v25 = vunpack.i.h.bf16 %v14363_v43  ;;  %v14366_v17 = vunpack.i.h.bf16 %v14365_v36  ;;  %v14367_v48 = vunpack.i.l.bf16 %v14242_v30  ;;  %vm14368_vm1 = vmmov %vm14356_vm8  ;;  %v14371_v60 = vld [vmem:[#allocation24_spill] sm:$0xff] }
 0x4f2   :  { %v8702_v57 = vunpack.i.h.bf16 %v14357_v28  ;;  %7450 = vmatpush1.bf16.msra.mxu1 %v7449_v23  ;;  %v7407_v34 = vpack.c.bf16 %v3584_v40, %v3468_v62  ;;  %vm14369_vm6 = vcmask 588800   ;;  %v8691_v10 = vunpack.i.l.bf16 %v14370_v55  ;;  %vm14373_vm5 = vmmov %vm14368_vm1 }
 0x4f3   :  { %v13113_v63 = vsel %vm1175_vm9, %v14364_v25, %v8731_v51  ;;  %v13120_v45 = vsel %vm1292_vm10, %v14366_v17, %v8961_v31  ;;  %v3583_v38 = vsel %vm14368_vm1, %v14367_v48, %v8677_v41  ;;  %6853 = vmatprep.mubr.msk.f32.mxu0 %vm14369_vm6, %v12777_v54  ;;  %v8721_v53 = vunpack.i.l.bf16 %v14371_v60  ;;  %7406 = vmatpush1.bf16.msra.mxu0 %v7405_v58  ;;  %vm14374_vm2 = vmmov %vm14369_vm6 }
 0x4f4   :  { %v7419_v3 = vpack.c.bf16 %v13120_v45, %v13113_v63  ;;  %7452 = vmatprep.subr.bf16.mxu1 %v7451_v15  ;;  %v7453_v30 = vpack.c.bf16 %v3352_v39, %v13038_v33  ;;  %vm14372_vm12 = vcmask 785408   ;;  %v8692_v28 = vunpack.i.h.bf16 %v14370_v55  ;;  %7408 = vmatprep.subr.bf16.mxu0 %v7407_v34 }
 0x4f5   :  { %v3816_v41 = vsel %vm14372_vm12, %v8697_v59, %v8701_v16  ;;  %v3585_v23 = vsel %vm14373_vm5, %v8681_v18, %v8682_v27  ;;  %v7409_v40 = vpack.c.bf16 %v3583_v38, %v3467_v46  ;;  %v7455_v62 = vpack.c.bf16 %v3586_v52, %v3470_v32  ;;  %6854 = vmatprep.mubr.msk.f32.mxu1 %vm14374_vm2, %v12777_v54  ;;  %v13148_v27 = vpop.permute.xlu1 %4382  ;;  %v14378_v46 = vld [vmem:[#allocation72_spill] sm:$0xff]  ;;  %vm14379_vm8 = vmmov %vm14372_vm12  ;;  %v14381_v52 = vld [vmem:[#allocation87_spill] sm:$0xff] }
 0x4f6   :  { %v14375_v43 = vunpack.i.l.bf16 %v14247_v22  ;;  %vm14376_vm7 = vcmask 793600   ;;  %v8717_v58 = vunpack.i.h.bf16 %v14274_v11  ;;  %v8707_v33 = vunpack.i.h.bf16 %v14265_v1  ;;  %7454 = vmatpush1.bf16.msra.mxu1 %v7453_v30  ;;  %vm14380_vm4 = vmmov %vm14379_vm8 }
 0x4f7   :  { %vm14377_vm3 = vmmov %vm14376_vm7  ;;  %v8722_v15 = vunpack.i.h.bf16 %v14371_v60  ;;  %v8966_v18 = vunpack.i.l.bf16 %v13126_v42  ;;  %v3818_v54 = vsel %vm14379_vm8, %v8702_v57, %v14378_v46  ;;  %v3815_v22 = vsel %vm14380_vm4, %v8696_v61, %v8697_v59  ;;  %7410 = vmatpush1.bf16.msra.mxu0 %v7409_v40  ;;  %7456 = vmatprep.subr.bf16.mxu1 %v7455_v62  ;;  %v14383_v60 = vld [vmem:[#allocation59_spill] sm:$0xff] }
 0x4f8   :  { %v3699_v25 = vsel %vm14376_vm7, %v14375_v43, %v8687_v49  ;;  %v3700_v39 = vsel %vm14377_vm3, %v8687_v49, %v8691_v10  ;;  %v8712_v36 = vunpack.i.h.bf16 %v14381_v52  ;;  %v8711_v17 = vunpack.i.l.bf16 %v14381_v52  ;;  %v13157_v49 = vpop.permute.xlu0 %8969  ;;  %vm14384_vm1 = vmmov %vm14377_vm3 }
 0x4f9   :  { %v7411_v32 = vpack.c.bf16 %v3816_v41, %v3700_v39  ;;  %vm14382_vm11 = vcmask 769024   ;;  %v8971_v38 = vunpack.i.l.bf16 %v13157_v49  ;;  %v7413_v34 = vpack.c.bf16 %v3815_v22, %v3699_v25  ;;  %vm14385_vm6 = vmmov %vm14380_vm4  ;;  %v4499_v62 = vpop.permute.xlu1 %4498  ;;  %v14389_v39 = vld [vmem:[#allocation41_spill] sm:$0xff] }
 0x4fa   :  { %v4049_v48 = vsel %vm14382_vm11, %v8717_v58, %v8721_v53  ;;  %v7457_v55 = vpack.c.bf16 %v3585_v23, %v13062_v0  ;;  %v3702_v56 = vsel %vm14384_vm1, %v8692_v28, %v14383_v60  ;;  %v3817_v61 = vsel %vm14385_vm6, %v8701_v16, %v8702_v57  ;;  %vm14390_vm2 = vmmov %vm14382_vm11 }
 0x4fb   :  { %7412 = vmatprep.subr.bf16.mxu0 %v7411_v32  ;;  %v14386_v59 = vunpack.i.l.bf16 %v14265_v1  ;;  %vm14387_vm12 = vcmask 777216   ;;  %v7459_v40 = vpack.c.bf16 %v3818_v54, %v3702_v56  ;;  %v4051_v25 = vsel %vm14390_vm2, %v8722_v15, %v14389_v39  ;;  %vm14395_vm8 = vmmov %vm14384_vm1  ;;  %v14396_v32 = vld [vmem:[#allocation42_spill] sm:$0xff] }
 0x4fc   :  { %vm14388_vm5 = vmmov %vm14387_vm12  ;;  %7458 = vmatpush1.bf16.msra.mxu1 %v7457_v55  ;;  %v14391_v0 = vunpack.i.h.bf16 %v12710_v35  ;;  %vm14392_vm7 = vcmask 539648   ;;  %v14393_v16 = vunpack.i.h.bf16 %v12753_v7  ;;  %vm14394_vm3 = vcmask 531456   ;;  %7414 = vmatpush1.bf16.msra.mxu0 %v7413_v34 }
 0x4fd   :  { %v3931_v30 = vsel %vm14387_vm12, %v14386_v59, %v8707_v33  ;;  %v3932_v41 = vsel %vm14388_vm5, %v8707_v33, %v8711_v17  ;;  %v3701_v57 = vsel %vm14395_vm8, %v8691_v10, %v8692_v28  ;;  %v13180_v33 = vpop.permute.xlu0 %8974  ;;  %7460 = vmatprep.subr.bf16.mxu1 %v7459_v40  ;;  %vm14397_vm4 = vmmov %vm14388_vm5  ;;  %v14398_v22 = vunpack.i.l.bf16 %v14274_v11  ;;  %v4615_v60 = vpop.permute.xlu1 %4614  ;;  %v14402_v59 = vld [vmem:[#allocation77_spill] sm:$0xff] }
 0x4fe   :  { %v7415_v43 = vpack.c.bf16 %v4049_v48, %v3932_v41  ;;  %v4397_v23 = vsel %vm14392_vm7, %v14391_v0, %v8966_v18  ;;  %v4513_v1 = vsel %vm14394_vm3, %v14393_v16, %v8971_v38  ;;  %v3934_v46 = vsel %vm14397_vm4, %v8712_v36, %v14396_v32  ;;  %vm14399_vm11 = vmmov %vm14390_vm2 }
 0x4ff   :  { %v7423_v54 = vpack.c.bf16 %v4513_v1, %v4397_v23  ;;  %v4048_v35 = vsel %vm14399_vm11, %v14398_v22, %v8717_v58  ;;  %v8732_v52 = vunpack.i.h.bf16 %v14358_v8  ;;  %v8962_v7 = vunpack.i.h.bf16 %v13080_v2  ;;  %vm14400_vm1 = vmmov %vm14390_vm2  ;;  %v14405_v2 = vld [vmem:[#allocation94_spill] sm:$0xff] }
 0x500   :  { %7416 = vmatprep.subr.bf16.mxu0 %v7415_v43  ;;  %v7461_v48 = vpack.c.bf16 %v3817_v61, %v3701_v57  ;;  %v4050_v10 = vsel %vm14400_vm1, %v8721_v53, %v8722_v15  ;;  %v7417_v28 = vpack.c.bf16 %v4048_v35, %v3931_v30  ;;  %v7463_v55 = vpack.c.bf16 %v4051_v25, %v3934_v46  ;;  %vm14401_vm6 = vmmov %vm14397_vm4 }
 0x501   :  { %v4283_v34 = vsel %vm1292_vm10, %v8962_v7, %v13103_v14  ;;  %v3933_v56 = vsel %vm14401_vm6, %v8711_v17, %v8712_v36  ;;  %v8980_v11 = vpop.permute.xlu0 %8979  ;;  %v4167_v41 = vsel %vm1175_vm9, %v8732_v52, %v14402_v59  ;;  %v8972_v61 = vunpack.i.h.bf16 %v13157_v49  ;;  %vm14403_vm12 = vmmov %vm14394_vm3  ;;  %v4732_v43 = vpop.permute.xlu1 %4731  ;;  %v14404_v49 = vld [vmem:[#allocation93_spill] sm:$0xff] }
 0x502   :  { %7462 = vmatpush1.bf16.msra.mxu1 %v7461_v48  ;;  %7418 = vmatpush1.bf16.msra.mxu0 %v7417_v28  ;;  %v7465_v58 = vpack.c.bf16 %v4050_v10, %v3933_v56  ;;  %v8981_v40 = vunpack.i.l.bf16 %v8980_v11  ;;  %v8912_v14 = vunpack.i.h.bf16 %v12854_v12  ;;  %v4282_v53 = vsel %vm1292_vm10, %v8961_v31, %v8962_v7  ;;  %vm14407_vm10 = vmmov %vm14392_vm7 }
 0x503   :  { %7464 = vmatprep.subr.bf16.mxu1 %v7463_v55  ;;  %7420 = vmatprep.subr.bf16.mxu0 %v7419_v3  ;;  %v7467_v15 = vpack.c.bf16 %v4283_v34, %v4167_v41  ;;  %v8976_v36 = vunpack.i.l.bf16 %v13180_v33  ;;  %v8967_v17 = vunpack.i.h.bf16 %v13126_v42  ;;  %v4515_v30 = vsel %vm14403_vm12, %v8972_v61, %v4499_v62  ;;  %vm14409_vm5 = vmmov %vm14392_vm7 }
 0x504   :  { %v4166_v63 = vsel %vm1175_vm9, %v8731_v51, %v8732_v52  ;;  %v8902_v45 = vunpack.i.h.bf16 %v12823_v24  ;;  %v14406_v39 = vpack.c.bf16 %v14404_v49, %v14405_v2  ;;  %v4746_v31 = vsel %vm1643_vm13, %v8912_v14, %v8981_v40  ;;  %vm14408_vm9 = vmmov %vm14394_vm3 }
 0x505   :  { %v8985_v3 = vpop.permute.xlu0 %8984  ;;  %v7469_v25 = vpack.c.bf16 %v4282_v53, %v4166_v63  ;;  %v4399_v62 = vsel %vm14407_vm10, %v8967_v17, %v13148_v27  ;;  %v8982_v0 = vunpack.i.h.bf16 %v8980_v11  ;;  %v4745_v8 = vsel %vm1643_vm13, %v8911_v20, %v8912_v14  ;;  %v4848_v46 = vpop.permute.xlu1 %4847 }
 0x506   :  { %7466 = vmatpush1.bf16.msra.mxu1 %v7465_v58  ;;  %7422 = vmatpush1.bf16.msra.mxu0 %v14406_v39  ;;  %v4514_v51 = vsel %vm14408_vm9, %v8971_v38, %v8972_v61  ;;  %v7471_v23 = vpack.c.bf16 %v4515_v30, %v4399_v62  ;;  %v4630_v16 = vsel %vm4616_vm0, %v8902_v45, %v8976_v36  ;;  %v8977_v1 = vunpack.i.h.bf16 %v13180_v33 }
 0x507   :  { %7468 = vmatprep.subr.bf16.mxu1 %v7467_v15  ;;  %7424 = vmatprep.subr.bf16.mxu0 %v7423_v54  ;;  %v4748_v57 = vsel %vm1643_vm13, %v8982_v0, %v4732_v43  ;;  %v8986_v32 = vunpack.i.l.bf16 %v8985_v3  ;;  %v7427_v22 = vpack.c.bf16 %v4746_v31, %v4630_v16  ;;  %v4629_v27 = vsel %vm4616_vm0, %v8901_v50, %v8902_v45  ;;  %v14410_v54 = vld [vmem:[#allocation47_spill] sm:$0xff] }
 0x508   :  { %v8922_v12 = vunpack.i.h.bf16 %v12886_v44  ;;  %v4398_v20 = vsel %vm14409_vm5, %v8966_v18, %v8967_v17  ;;  %v14411_v33 = vpack.c.bf16 %v12817_v9, %v14410_v54  ;;  %v4632_v52 = vsel %vm4616_vm0, %v8977_v1, %v4615_v60 }
 0x509   :  { %v8990_v38 = vpop.permute.xlu0 %8989  ;;  %v7473_v35 = vpack.c.bf16 %v4514_v51, %v4398_v20  ;;  %v7429_v24 = vpack.c.bf16 %v4745_v8, %v4629_v27  ;;  %v4747_v50 = vsel %vm1643_vm13, %v8981_v40, %v8982_v0  ;;  %v7475_v10 = vpack.c.bf16 %v4748_v57, %v4632_v52  ;;  %v8995_v28 = vpop.permute.xlu1 %8994 }
 0x50a   :  { %7470 = vmatpush1.bf16.msra.mxu1 %v7469_v25  ;;  %7426 = vmatpush1.bf16.msra.mxu0 %v14411_v33  ;;  %v8992_v7 = vunpack.i.h.bf16 %v8990_v38  ;;  %v8991_v48 = vunpack.i.l.bf16 %v8990_v38  ;;  %v4631_v42 = vsel %vm4616_vm0, %v8976_v36, %v8977_v1  ;;  %v4862_v9 = vsel %vm1760_vm14, %v8922_v12, %v8986_v32 }
 0x50b   :  { %7472 = vmatprep.subr.bf16.mxu1 %v7471_v23  ;;  %7428 = vmatprep.subr.bf16.mxu0 %v7427_v22  ;;  %v8987_v34 = vunpack.i.h.bf16 %v8985_v3  ;;  %v8997_v60 = vunpack.i.h.bf16 %v8995_v28  ;;  %v8996_v56 = vunpack.i.l.bf16 %v8995_v28  ;;  %v4861_v59 = vsel %vm1760_vm14, %v8921_v21, %v8922_v12 }
 0x50c   :  { %v4977_v18 = vsel %vm1877_vm15, %v12914_v5, %v8991_v48  ;;  %v4978_v55 = vsel %vm1877_vm15, %v8991_v48, %v8992_v7  ;;  %v7477_v41 = vpack.c.bf16 %v4747_v50, %v4631_v42  ;;  %vm14412_vm13 = vcmask 285696  }
 0x50d   :  { %v9000_v11 = vpop.permute.xlu0 %8999  ;;  %v7431_v58 = vpack.c.bf16 %v4978_v55, %v4862_v9  ;;  %v4864_v5 = vsel %vm1760_vm14, %v8987_v34, %v4848_v46  ;;  %v7433_v61 = vpack.c.bf16 %v4977_v18, %v4861_v59  ;;  %v4979_v40 = vsel %vm1877_vm15, %v8992_v7, %v8996_v56  ;;  %v9005_v36 = vpop.permute.xlu1 %9004  ;;  %vm14414_vm0 = vmmov %vm14412_vm13 }
 0x50e   :  { %7474 = vmatpush1.bf16.msra.mxu1 %v7473_v35  ;;  %7430 = vmatpush1.bf16.msra.mxu0 %v7429_v24  ;;  %v4980_v14 = vsel %vm1877_vm15, %v8996_v56, %v8997_v60  ;;  %v9002_v53 = vunpack.i.h.bf16 %v9000_v11  ;;  %v9001_v15 = vunpack.i.l.bf16 %v9000_v11  ;;  %v4863_v30 = vsel %vm1760_vm14, %v8986_v32, %v8987_v34  ;;  %vm14416_vm14 = vmmov %vm14414_vm0 }
 0x50f   :  { %7476 = vmatprep.subr.bf16.mxu1 %v7475_v10  ;;  %7432 = vmatprep.subr.bf16.mxu0 %v7431_v58  ;;  %v7479_v17 = vpack.c.bf16 %v4980_v14, %v4864_v5  ;;  %v7481_v44 = vpack.c.bf16 %v4979_v40, %v4863_v30  ;;  %v9007_v45 = vunpack.i.h.bf16 %v9005_v36  ;;  %v9006_v3 = vunpack.i.l.bf16 %v9005_v36  ;;  %vm14418_vm3 = vmmov %vm14414_vm0 }
 0x510   :  { %v5093_v49 = vsel %vm14412_vm13, %v12944_v13, %v9001_v15  ;;  %vm14413_vm15 = vcmask 277504   ;;  %v5094_v31 = vsel %vm14414_vm0, %v9001_v15, %v9002_v53  ;;  %vm14420_vm4 = vcmask 64512  }
 0x511   :  { %v9010_v43 = vpop.permute.xlu0 %9009  ;;  %v9015_v39 = vpop.permute.xlu1 %9014  ;;  %vm14415_vm2 = vmmov %vm14413_vm15  ;;  %v5095_v16 = vsel %vm14416_vm14, %v9002_v53, %v9006_v3  ;;  %v5096_v13 = vsel %vm14418_vm3, %v9006_v3, %v9007_v45  ;;  %vm14421_vm11 = vcmask 56320   ;;  %vm14428_vm13 = vcmask 48128  }
 0x512   :  { %7478 = vmatpush1.bf16.msra.mxu1 %v7477_v41  ;;  %7434 = vmatpush1.bf16.msra.mxu0 %v7433_v61  ;;  %v9012_v21 = vunpack.i.h.bf16 %v9010_v43  ;;  %v9011_v63 = vunpack.i.l.bf16 %v9010_v43  ;;  %v9017_v0 = vunpack.i.h.bf16 %v9015_v39  ;;  %v9016_v8 = vunpack.i.l.bf16 %v9015_v39  ;;  %vm14417_vm7 = vmmov %vm14415_vm2 }
 0x513   :  { %7480 = vmatprep.subr.bf16.mxu1 %v7479_v17  ;;  %vm14419_vm8 = vmmov %vm14415_vm2 }
 0x514   :  { %v5210_v2 = vsel %vm14413_vm15, %v12961_v47, %v9011_v63  ;;  %v5211_v25 = vsel %vm14415_vm2, %v9011_v63, %v9012_v21  ;;  %v5212_v1 = vsel %vm14417_vm7, %v9012_v21, %v9016_v8  ;;  %v5213_v47 = vsel %vm14419_vm8, %v9016_v8, %v9017_v0  ;;  %vm14422_vm1 = vmmov %vm14420_vm4 }
 0x515   :  { %v7437_v62 = vpack.c.bf16 %v5210_v2, %v5093_v49  ;;  %v9020_v51 = vpop.permute.xlu0 %9019  ;;  %v7435_v23 = vpack.c.bf16 %v5211_v25, %v5094_v31  ;;  %v7485_v57 = vpack.c.bf16 %v5212_v1, %v5095_v16  ;;  %v9025_v22 = vpop.permute.xlu1 %9024  ;;  %v7483_v27 = vpack.c.bf16 %v5213_v47, %v5096_v13  ;;  %vm14423_vm6 = vmmov %vm14421_vm11 }
 0x516   :  { %7482 = vmatpush1.bf16.msra.mxu1 %v7481_v44  ;;  %v9022_v32 = vunpack.i.h.bf16 %v9020_v51  ;;  %v9021_v46 = vunpack.i.l.bf16 %v9020_v51  ;;  %v9027_v54 = vunpack.i.h.bf16 %v9025_v22  ;;  %v9026_v33 = vunpack.i.l.bf16 %v9025_v22  ;;  %vm14424_vm12 = vmmov %vm14422_vm1 }
 0x517   :  { %7436 = vmatprep.subr.bf16.mxu0 %v7435_v23  ;;  %7484 = vmatprep.subr.bf16.mxu1 %v7483_v27  ;;  %vm14425_vm10 = vmmov %vm14423_vm6  ;;  %vm14429_vm15 = vcmask 39936  }
 0x518   :  { %7438 = vmatpush1.bf16.msra.mxu0 %v7437_v62  ;;  %v5327_v35 = vsel %vm14420_vm4, %v12977_v6, %v9021_v46  ;;  %v5328_v48 = vsel %vm14422_vm1, %v9021_v46, %v9022_v32  ;;  %v5329_v9 = vsel %vm14424_vm12, %v9022_v32, %v9026_v33  ;;  %vm14426_vm9 = vmmov %vm14422_vm1  ;;  %vm14436_vm4 = vcmask 31744  }
 0x519   :  { %v9030_v12 = vpop.permute.xlu0 %9029  ;;  %v9035_v7 = vpop.permute.xlu1 %9034  ;;  %v5330_v6 = vsel %vm14426_vm9, %v9026_v33, %v9027_v54  ;;  %vm14427_vm5 = vmmov %vm14423_vm6 }
 0x51a   :  { %v9032_v20 = vunpack.i.h.bf16 %v9030_v12  ;;  %v9031_v38 = vunpack.i.l.bf16 %v9030_v12  ;;  %7486 = vmatpush1.bf16.msra.mxu1 %v7485_v57  ;;  %v9037_v10 = vunpack.i.h.bf16 %v9035_v7  ;;  %v9036_v42 = vunpack.i.l.bf16 %v9035_v7  ;;  %vm14430_vm0 = vmmov %vm14428_vm13 }
 0x51b   :  { %vm14431_vm2 = vmmov %vm14429_vm15 }
 0x51c   :  { %v5444_v52 = vsel %vm14421_vm11, %v12988_v4, %v9031_v38  ;;  %v5445_v24 = vsel %vm14423_vm6, %v9031_v38, %v9032_v20  ;;  %v5446_v55 = vsel %vm14425_vm10, %v9032_v20, %v9036_v42  ;;  %v5447_v34 = vsel %vm14427_vm5, %v9036_v42, %v9037_v10  ;;  %vm14432_vm14 = vmmov %vm14430_vm0 }
 0x51d   :  { %v7441_v50 = vpack.c.bf16 %v5444_v52, %v5327_v35  ;;  %v9040_v18 = vpop.permute.xlu0 %9039  ;;  %v7439_v28 = vpack.c.bf16 %v5445_v24, %v5328_v48  ;;  %v7489_v4 = vpack.c.bf16 %v5446_v55, %v5329_v9  ;;  %v9045_v11 = vpop.permute.xlu1 %9044  ;;  %v7487_v58 = vpack.c.bf16 %v5447_v34, %v5330_v6  ;;  %vm14433_vm7 = vmmov %vm14431_vm2 }
 0x51e   :  { %v9042_v60 = vunpack.i.h.bf16 %v9040_v18  ;;  %v9041_v56 = vunpack.i.l.bf16 %v9040_v18  ;;  %v9047_v61 = vunpack.i.h.bf16 %v9045_v11  ;;  %v9046_v40 = vunpack.i.l.bf16 %v9045_v11  ;;  %vm14434_vm3 = vmmov %vm14430_vm0 }
 0x51f   :  { %7440 = vmatprep.subr.bf16.mxu0 %v7439_v28  ;;  %7488 = vmatprep.subr.bf16.mxu1 %v7487_v58  ;;  %vm14435_vm8 = vmmov %vm14431_vm2 }
 0x520   :  { %7442 = vmatpush1.bf16.msra.mxu0 %v7441_v50  ;;  %7490 = vmatpush1.bf16.msra.mxu1 %v7489_v4  ;;  %v5561_v14 = vsel %vm14428_vm13, %v13006_v37, %v9041_v56  ;;  %v5562_v36 = vsel %vm14430_vm0, %v9041_v56, %v9042_v60  ;;  %v5563_v45 = vsel %vm14432_vm14, %v9042_v60, %v9046_v40  ;;  %vm14437_vm11 = vmmov %vm14436_vm4 }
 0x521   :  { %v9050_v59 = vpop.permute.xlu0 %9049  ;;  %v9055_v15 = vpop.permute.xlu1 %9054  ;;  %v5564_v37 = vsel %vm14434_vm3, %v9046_v40, %v9047_v61  ;;  %vm14438_vm1 = vmmov %vm14436_vm4 }
 0x522   :  { %v9052_v41 = vunpack.i.h.bf16 %v9050_v59  ;;  %v9051_v5 = vunpack.i.l.bf16 %v9050_v59  ;;  %v9057_v43 = vunpack.i.h.bf16 %v9055_v15  ;;  %v9056_v44 = vunpack.i.l.bf16 %v9055_v15  ;;  %vm14439_vm6 = vmmov %vm14438_vm1 }
 0x524   :  { %v5678_v53 = vsel %vm14429_vm15, %v13024_v29, %v9051_v5  ;;  %v5679_v17 = vsel %vm14431_vm2, %v9051_v5, %v9052_v41  ;;  %v5680_v3 = vsel %vm14433_vm7, %v9052_v41, %v9056_v44  ;;  %v5681_v49 = vsel %vm14435_vm8, %v9056_v44, %v9057_v43 }
 0x525   :  { %v7445_v30 = vpack.c.bf16 %v5678_v53, %v5561_v14  ;;  %v5775_v21 = vpop.permute.xlu0 %5774  ;;  %v7443_v63 = vpack.c.bf16 %v5679_v17, %v5562_v36  ;;  %v7493_v29 = vpack.c.bf16 %v5680_v3, %v5563_v45  ;;  %v5777_v2 = vpop.permute.xlu1 %5776  ;;  %v7491_v39 = vpack.c.bf16 %v5681_v49, %v5564_v37 }
 0x526   :  { %v5796_v31 = vsel %vm14436_vm4, %v5775_v21, %v5777_v2  ;;  %v5795_v25 = vsel %vm14437_vm11, %v13074_v19, %v5775_v21 }
 0x527   :  { %7444 = vmatprep.subr.bf16.mxu0 %v7443_v63  ;;  %7492 = vmatprep.subr.bf16.mxu1 %v7491_v39 }
 0x528   :  { %7446 = vmatpush1.bf16.msra.mxu0 %v7445_v30  ;;  %7494 = vmatpush1.bf16.msra.mxu1 %v7493_v29 }
 0x529   :  { %6717 = vmatprep.subr.mxu0 %v5796_v31  ;;  %v5779_v62 = vpop.permute.xlu0 %5778  ;;  %v5781_v0 = vpop.permute.xlu1 %5780 }
 0x52a   :  { %v5798_v8 = vsel %vm14438_vm1, %v5779_v62, %v5781_v0  ;;  %v5797_v51 = vsel %vm14439_vm6, %v5777_v2, %v5779_v62 }
 0x52b   :  { %6788 = vmatprep.subr.mxu1 %v5798_v8 }
 0x52c   :  { %6718 = vmatpush1.msra.mxu0 %v5795_v25  ;;  %6789 = vmatpush1.msra.mxu1 %v5797_v51 }
 0x52d   :  { %6734 = vmatmul.mubr.f32.vlgmr.msra.gmra.mrb[14].mxu0 %v13085_v26  ;;  %6805 = vmatmul.mubr.f32.vlgmr.msra.gmra.mrb[14].mxu1 %v13085_v26  ;;  %v6237_v23 = vpop.permute.xlu0 %6236 }
 0x533   :  { %v6380_v16 = vpop.f32.mrb[8].mxu1 }
 0x534   :  { %v6381_v1 = vadd.f32 %v6380_v16, %v6237_v23  ;;  %v6382_v13 = vpop.f32.mrb[9].mxu1 }
 0x535   :  { %v6383_v47 = vadd.f32 %v6382_v13, %v6237_v23 }
 0x536   :  { %6813 = vst [vmem:[%s13338_s6 + $0x10] sm:$0xff] %v6381_v1  ;;  %v6309_v19 = vpop.f32.mrb[8].mxu0 }
 0x537   :  { %6814 = vst [vmem:[%s13338_s6 + $0x18] sm:$0xff] %v6383_v47  ;;  %v6310_v57 = vadd.f32 %v6309_v19, %v6237_v23  ;;  %v6311_v32 = vpop.f32.mrb[9].mxu0 }
 0x538   :  { %v6312_v46 = vadd.f32 %v6311_v32, %v6237_v23 }
 0x539   :  { %6811 = vst [vmem:[%s13338_s6] sm:$0xff] %v6310_v57 }
 0x53a   :  { %6812 = vst [vmem:[%s13338_s6 + $0x8] sm:$0xff] %v6312_v46 }
 0x57d   :  { %v6451_v26 = vpop.f32.mrb[10].mxu0 }
 0x57e   :  { %v6452_v22 = vadd.f32 %v6451_v26, %v6237_v23  ;;  %v6453_v27 = vpop.f32.mrb[11].mxu0 }
 0x57f   :  { %v6454_v12 = vadd.f32 %v6453_v27, %v6237_v23 }
 0x580   :  { %6815 = vst [vmem:[%s13338_s6 + $0x20] sm:$0xff] %v6452_v22 }
 0x581   :  { %6816 = vst [vmem:[%s13338_s6 + $0x28] sm:$0xff] %v6454_v12 }
 0x582   :  { %v6522_v20 = vpop.f32.mrb[10].mxu1 }
 0x583   :  { %v6523_v38 = vadd.f32 %v6522_v20, %v6237_v23  ;;  %v6524_v54 = vpop.f32.mrb[11].mxu1 }
 0x584   :  { %v6525_v33 = vadd.f32 %v6524_v54, %v6237_v23 }
 0x585   :  { %6817 = vst [vmem:[%s13338_s6 + $0x30] sm:$0xff] %v6523_v38 }
 0x586   :  { %6818 = vst [vmem:[%s13338_s6 + $0x38] sm:$0xff] %v6525_v33 }
 0x5c1   :  { %v6593_v35 = vpop.f32.mrb[12].mxu0 }
 0x5c2   :  { %v6594_v52 = vadd.f32 %v6593_v35, %v6237_v23  ;;  %v6595_v7 = vpop.f32.mrb[13].mxu0 }
 0x5c3   :  { %v6596_v48 = vadd.f32 %v6595_v7, %v6237_v23 }
 0x5c4   :  { %6819 = vst [vmem:[%s13338_s6 + $0x40] sm:$0xff] %v6594_v52  ;;  %v6664_v24 = vpop.f32.mrb[12].mxu1 }
 0x5c5   :  { %v6665_v50 = vadd.f32 %v6664_v24, %v6237_v23  ;;  %6820 = vst [vmem:[%s13338_s6 + $0x48] sm:$0xff] %v6596_v48  ;;  %v6666_v10 = vpop.f32.mrb[13].mxu1 }
 0x5c6   :  { %v6667_v42 = vadd.f32 %v6666_v10, %v6237_v23 }
 0x5c7   :  { %6821 = vst [vmem:[%s13338_s6 + $0x50] sm:$0xff] %v6665_v50 }
 0x5c8   :  { %6822 = vst [vmem:[%s13338_s6 + $0x58] sm:$0xff] %v6667_v42 }
 0x600   :  { %v6735_v18 = vpop.f32.mrb[14].mxu0  ;;  %v6806_v6 = vpop.f32.mrb[14].mxu1 }
 0x601   :  { %v6736_v28 = vadd.f32 %v6735_v18, %v6237_v23  ;;  %v6737_v9 = vpop.f32.mrb[15].mxu0  ;;  %v6807_v34 = vadd.f32 %v6806_v6, %v6237_v23  ;;  %v6808_v4 = vpop.f32.mrb[15].mxu1 }
 0x602   :  { %v6738_v55 = vadd.f32 %v6737_v9, %v6237_v23  ;;  %v6809_v60 = vadd.f32 %v6808_v4, %v6237_v23 }
 0x603   :  { %6823 = vst [vmem:[%s13338_s6 + $0x60] sm:$0xff] %v6736_v28  ;;  %6825 = vst [vmem:[%s13338_s6 + $0x70] sm:$0xff] %v6807_v34 }
 0x604   :  { %6824 = vst [vmem:[%s13338_s6 + $0x68] sm:$0xff] %v6738_v55  ;;  %6826 = vst [vmem:[%s13338_s6 + $0x78] sm:$0xff] %v6809_v60 }

</bundles_post_ra>
